<compile_context>
chip_gen: v7x
topology: tpu7x:2x2x1
jax: 0.10.0
libtpu: 0.0.40
codegen_flags: <defaults>
</compile_context>

<pallas_src>
import math

import jax
import jax.numpy as jnp
from jax.experimental import pallas as pl
from jax.experimental.pallas import tpu as pltpu


# ----------------------------- Pallas kernels ------------------------------ #

def xw_kernel(x_ref, w0_ref, xw_ref):
    """GraphConv0 feature transform: XW = X @ W0 (f32, row-tiled)."""
    xw_ref[...] = jnp.dot(x_ref[...], w0_ref[...],
                          preferred_element_type=jnp.float32)


def enc_hop1_kernel(a_ref, xw_ref, y_ref,
                    b0_ref, wlz_ref, wly_ref, bl_ref, w12_ref,
                    out_ref, acc_ref):
    """First A-hop (K-tiled accumulation) + ReLU, shared Linear + ReLU and the
    fused [W1|W2] feature transform; single packed store [HW | H]."""
    k = pl.program_id(1)
    kb = pl.num_programs(1)
    tk = a_ref.shape[1]

    @pl.when(k == 0)
    def _():
        acc_ref[...] = jnp.zeros_like(acc_ref)

    start = pl.multiple_of(k * tk, 128)
    xw_blk = xw_ref[pl.ds(start, tk), :]           # resident XW, row slice
    acc_ref[...] += jnp.dot(a_ref[...], xw_blk,
                            preferred_element_type=jnp.float32)

    @pl.when(k == kb - 1)
    def _():
        # layer0: relu(A @ (X W0) + b0)
        h1 = jnp.maximum(acc_ref[...] + b0_ref[...], 0.0)
        # h = relu(Linear(cat([h1, y])))  (concat realized via split weights)
        lin = (jnp.dot(h1, wlz_ref[...], preferred_element_type=jnp.float32)
               + jnp.dot(y_ref[...], wly_ref[...], preferred_element_type=jnp.float32)
               + bl_ref[...])
        h = jnp.maximum(lin, 0.0)
        # fused GraphConv1/2 feature transform: h @ [W1 | W2]
        hw = jnp.dot(h, w12_ref[...], preferred_element_type=jnp.float32)
        out_ref[...] = jnp.concatenate([hw, h], axis=-1).astype(out_ref.dtype)


def enc_hop2_kernel(a_ref, slab1_ref, y_ref, n1_ref, n2_ref,
                    b12_ref, wdz_ref, wdy_ref, bd_ref,
                    out_ref, acc_ref):
    """Second A-hop (mean & log_std fused, K-tiled), L2-normalize,
    reparameterize and both feature decoders; one lane-dense 128-lane store
    [z1 | z2 | mean | log_std | fea1 | fea2]."""
    k = pl.program_id(1)
    kb = pl.num_programs(1)
    tk = a_ref.shape[1]
    h2 = acc_ref.shape[-1] // 2

    @pl.when(k == 0)
    def _():
        acc_ref[...] = jnp.zeros_like(acc_ref)

    start = pl.multiple_of(k * tk, 128)
    hw_blk = slab1_ref[pl.ds(start, tk), :][:, :2 * h2]   # [HW | H] -> HW rows
    acc_ref[...] += jnp.dot(a_ref[...], hw_blk,
                            preferred_element_type=jnp.float32)

    @pl.when(k == kb - 1)
    def _():
        ms = acc_ref[...] + b12_ref[...]
        mean_raw = ms[:, :h2]
        ls_raw = ms[:, h2:]

        # F.normalize(dim=-1), eps=1e-12:
        #   x / max(||x||, eps) == x * rsqrt(max(||x||^2, eps^2))
        mean = mean_raw * jax.lax.rsqrt(
            jnp.maximum(jnp.sum(mean_raw * mean_raw, -1, keepdims=True), 1e-24))
        log_std = ls_raw * jax.lax.rsqrt(
            jnp.maximum(jnp.sum(ls_raw * ls_raw, -1, keepdims=True), 1e-24))

        # reparameterization: z = mean + noise * exp(log_std)
        std = jnp.exp(log_std)
        z1 = mean + n1_ref[...] * std
        z2 = mean + n2_ref[...] * std

        # fea_decoder: relu(Linear(cat([z, y])))   (dlayers = Linear + ReLU)
        def fea_dec(z):
            o = (jnp.dot(z, wdz_ref[...], preferred_element_type=jnp.float32)
                 + jnp.dot(y_ref[...], wdy_ref[...], preferred_element_type=jnp.float32)
                 + bd_ref[...])
            return jnp.maximum(o, 0.0)

        out_ref[...] = jnp.concatenate(
            [z1, z2, mean, log_std, fea_dec(z1), fea_dec(z2)],
            axis=-1).astype(out_ref.dtype)


def adj_dec_kernel(zi_ref, zjt_ref, adj_ref):
    """adj_rec tile (i, j) = sigmoid([z1||y]_i @ [z1||y]^T_j), bf16 writeback."""
    logits = jnp.dot(zi_ref[...], zjt_ref[...],
                     preferred_element_type=jnp.float32)
    # sigmoid(x) == 0.5 * tanh(x/2) + 0.5  (one transcendental instead of two)
    adj_ref[...] = (0.5 * jnp.tanh(0.5 * logits) + 0.5).astype(adj_ref.dtype)


# ------------------------------- tiling policy ------------------------------ #

def _vmem_budget():
    """Generation-aware VMEM limit and per-A-block byte budget."""
    cap = 64 * 1024 * 1024                       # conservative default (v7x)
    try:
        info = pltpu.get_tpu_info()
        cap = int(getattr(info, "vmem_capacity_bytes", cap)) or cap
    except Exception:
        pass
    limit = min(cap * 3 // 4, 100 * 1024 * 1024)   # ~48 MiB v7x, ~96 MiB v5e/v6e
    a_block_budget = max(limit // 6, 2 * 1024 * 1024)
    return limit, a_block_budget


def _divisor_tile(n, cap):
    """Largest multiple-of-128 divisor of n that is <= cap (n % 128 == 0)."""
    best = 128
    c = 256
    while c <= min(n, cap):
        if n % c == 0:
            best = c
        c += 128
    return best


def _choose_tiles(n, a_block_budget):
    """(tm, tk): A row tile (capped so nb >= 2 to span both v7x TensorCores)
    and A column tile (capped so the bf16 (tm, tk) block fits the budget)."""
    if n < 256 or n % 128 != 0:
        return n, n                              # tiny / ragged graphs: one block
    tm = _divisor_tile(n, min(512, n // 2))
    tk_cap = max(128, a_block_budget // (tm * 2))
    tk = _divisor_tile(n, tk_cap)
    return tm, tk


# ------------------------------- JAX wrapper -------------------------------- #

def vgae_forward(a_hat, features, y_onehot, params, noise1, noise2):
    N, in_dim = features.shape
    nc = y_onehot.shape[1]
    hidden1 = params["w0"].shape[1]
    hidden2 = params["w1"].shape[1]
    hc = hidden1 + nc

    vmem_limit, a_budget = _vmem_budget()
    tm, tk = _choose_tiles(N, a_budget)
    nb, kb = N // tm, N // tk

    def cparams(sem):
        return pltpu.CompilerParams(dimension_semantics=sem,
                                    vmem_limit_bytes=vmem_limit)

    a_bf16 = a_hat.astype(jnp.bfloat16)          # dominant HBM stream -> bf16

    # fused GraphConv1/2 weights & biases (one A pass instead of two)
    w12 = jnp.concatenate([params["w1"], params["w2"]], axis=1)   # (hc, 2*h2)
    b12 = jnp.concatenate([params["b1"], params["b2"]], axis=1)   # (1, 2*h2)

    row2 = lambda i, k: (i, 0)     # row-tiled operand on the (i, k) grid
    res2 = lambda i, k: (0, 0)     # VMEM-resident operand
    ak2 = lambda i, k: (i, k)      # A block

    # --- stage 1: XW = X @ W0 (row-tiled) -------------------------------------
    xw = pl.pallas_call(
        xw_kernel,
        grid=(nb,),
        in_specs=[pl.BlockSpec((tm, in_dim), lambda i: (i, 0)),
                  pl.BlockSpec((in_dim, hidden1), lambda i: (0, 0))],
        out_specs=pl.BlockSpec((tm, hidden1), lambda i: (i, 0)),
        out_shape=jax.ShapeDtypeStruct((N, hidden1), jnp.float32),
        compiler_params=cparams(("parallel",)),
    )(features, params["w0"])

    # --- stage 2: first A-hop (+ReLU) + shared Linear + fused [W1|W2] ---------
    slab1 = pl.pallas_call(
        enc_hop1_kernel,
        grid=(nb, kb),
        in_specs=[pl.BlockSpec((tm, tk), ak2),             # A block (bf16)
                  pl.BlockSpec((N, hidden1), res2),        # XW, resident
                  pl.BlockSpec((tm, nc), row2),            # y row block
                  pl.BlockSpec((1, hidden1), res2),        # b0
                  pl.BlockSpec((hidden1, hc), res2),       # WL (h part)
                  pl.BlockSpec((nc, hc), res2),            # WL (y part)
                  pl.BlockSpec((1, hc), res2),             # bl
                  pl.BlockSpec((hc, 2 * hidden2), res2)],  # [W1 | W2]
        out_specs=pl.BlockSpec((tm, 2 * hidden2 + hc), row2),
        out_shape=jax.ShapeDtypeStruct((N, 2 * hidden2 + hc), jnp.float32),
        scratch_shapes=[pltpu.VMEM((tm, hidden1), jnp.float32)],
        compiler_params=cparams(("parallel", "arbitrary")),
    )(a_bf16, xw, y_onehot,
      params["b0"], params["wl_z"], params["wl_y"], params["bl"], w12)

    h = slab1[:, 2 * hidden2:]                   # (N, hc), f32

    # --- stage 3: second A-hop, normalize, reparameterize, fea decoders -------
    slab2 = pl.pallas_call(
        enc_hop2_kernel,
        grid=(nb, kb),
        in_specs=[pl.BlockSpec((tm, tk), ak2),                  # A block (bf16)
                  pl.BlockSpec((N, 2 * hidden2 + hc), res2),    # [HW|H], resident
                  pl.BlockSpec((tm, nc), row2),                 # y row block
                  pl.BlockSpec((tm, hidden2), row2),            # noise1
                  pl.BlockSpec((tm, hidden2), row2),            # noise2
                  pl.BlockSpec((1, 2 * hidden2), res2),         # [b1 | b2]
                  pl.BlockSpec((hidden2, hidden1), res2),       # WD (z part)
                  pl.BlockSpec((nc, hidden1), res2),            # WD (y part)
                  pl.BlockSpec((1, hidden1), res2)],            # bd
        out_specs=pl.BlockSpec((tm, 4 * hidden2 + 2 * hidden1), row2),
        out_shape=jax.ShapeDtypeStruct((N, 4 * hidden2 + 2 * hidden1), jnp.float32),
        scratch_shapes=[pltpu.VMEM((tm, 2 * hidden2), jnp.float32)],
        compiler_params=cparams(("parallel", "arbitrary")),
    )(a_bf16, slab1, y_onehot, noise1, noise2,
      b12, params["wd_z"], params["wd_y"], params["bd"])

    z1 = slab2[:, 0 * hidden2:1 * hidden2]
    z2 = slab2[:, 1 * hidden2:2 * hidden2]
    mean = slab2[:, 2 * hidden2:3 * hidden2]
    log_std = slab2[:, 3 * hidden2:4 * hidden2]
    fea_rec1 = slab2[:, 4 * hidden2:4 * hidden2 + hidden1]
    fea_rec2 = slab2[:, 4 * hidden2 + hidden1:]

    # --- stage 4: adj_rec = sigmoid([z1||y][z1||y]^T), bf16 writeback ---------
    kz = hidden2 + nc
    zc = jnp.concatenate([z1, y_onehot], axis=1).astype(jnp.bfloat16)   # (N, kz)
    zct = zc.T                                                          # (kz, N)
    adj_rec = pl.pallas_call(
        adj_dec_kernel,
        grid=(nb, nb),
        in_specs=[pl.BlockSpec((tm, kz), lambda i, j: (i, 0)),
                  pl.BlockSpec((kz, tm), lambda i, j: (0, j))],
        out_specs=pl.BlockSpec((tm, tm), lambda i, j: (i, j)),
        out_shape=jax.ShapeDtypeStruct((N, N), jnp.bfloat16),
        compiler_params=cparams(("parallel", "parallel")),
    )(zc, zct)

    # --- per-node KL: cheap VPU work on (N, hidden2) tensors, done in wrapper.
    # NOTE: faithful to the reference quirk — the same tensor is used as
    # log-std for reparameterization and as log-var inside log_gaussian.
    log2pi = jnp.float32(math.log(2.0 * math.pi))
    qz = jnp.sum(-0.5 * log2pi - 0.5 * log_std
                 - 0.5 * (z1 - mean) ** 2 * jnp.exp(-log_std), axis=-1)
    pz = jnp.sum(-0.5 * log2pi - 0.5 * z1 * z1, axis=-1)
    kl = qz - pz

    return adj_rec, z1, z2, h, fea_rec1, fea_rec2, mean, log_std, kl


# ----------------------------- params & helpers ----------------------------- #

def init_params(key, in_dim, hidden1, hidden2, num_classes):
    """Deterministic init; linear weights stored (in_features, out_features)."""
    ks = jax.random.split(key, 8)
    hc = hidden1 + num_classes

    def w(k, shape):
        fan_in = shape[0]
        return (jax.random.normal(k, shape, jnp.float32) / jnp.sqrt(fan_in)).astype(jnp.float32)

    wl = w(ks[1], (hc, hc))                           # self.linear
    wd = w(ks[4], (hidden2 + num_classes, hidden1))   # self.dlayers[0]
    return {
        "w0": w(ks[0], (in_dim, hidden1)),
        "b0": jnp.zeros((1, hidden1), jnp.float32),
        "wl_z": wl[:hidden1, :],
        "wl_y": wl[hidden1:, :],
        "bl": 0.01 * jnp.ones((1, hc), jnp.float32),
        "w1": w(ks[2], (hc, hidden2)),
        "b1": jnp.zeros((1, hidden2), jnp.float32),
        "w2": w(ks[3], (hc, hidden2)),
        "b2": jnp.zeros((1, hidden2), jnp.float32),
        "wd_z": wd[:hidden2, :],
        "wd_y": wd[hidden2:, :],
        "bd": 0.01 * jnp.ones((1, hidden1), jnp.float32),
    }


def normalized_adjacency(adj):
    """DGL GraphConv norm='both': D~^{-1/2} A D~^{-1/2} with degrees clamped >= 1."""
    deg = jnp.sum(adj, axis=1)
    d_inv_sqrt = 1.0 / jnp.sqrt(jnp.maximum(deg, 1.0))
    return adj * d_inv_sqrt[:, None] * d_inv_sqrt[None, :]


def _reference_forward(a_hat, x, y, p):
    """Plain-JAX f32 reference of the deterministic encoder pieces."""
    h1 = jax.nn.relu(a_hat @ (x @ p["w0"]) + p["b0"])
    h = jax.nn.relu(h1 @ p["wl_z"] + y @ p["wl_y"] + p["bl"])
    mean_raw = a_hat @ (h @ p["w1"]) + p["b1"]

    def norm(v):
        return v / jnp.maximum(jnp.linalg.norm(v, axis=-1, keepdims=True), 1e-12)

    return h, norm(mean_raw)


# ---------------------------------- main ------------------------------------ #

if __name__ == "__main__":
    N, in_dim, hidden1, hidden2, num_classes = 512, 32, 32, 16, 4

    key = jax.random.PRNGKey(0)
    k_feat, k_adj, k_lbl, k_par, k_n1, k_n2 = jax.random.split(key, 6)

    features = jax.random.normal(k_feat, (N, in_dim), jnp.float32)

    # symmetric random graph (no self loops), then GraphConv-style normalization
    up = (jax.random.uniform(k_adj, (N, N)) < 0.05).astype(jnp.float32)
    adj = jnp.triu(up, k=1)
    adj = adj + adj.T
    a_hat = normalized_adjacency(adj)

    labels = jax.random.randint(k_lbl, (N,), 0, num_classes)
    y_onehot = jax.nn.one_hot(labels, num_classes, dtype=jnp.float32)

    params = init_params(k_par, in_dim, hidden1, hidden2, num_classes)

    noise1 = jax.random.normal(k_n1, (N, hidden2), jnp.float32)
    noise2 = jax.random.normal(k_n2, (N, hidden2), jnp.float32)

    fwd = jax.jit(vgae_forward)
    outs = fwd(a_hat, features, y_onehot, params, noise1, noise2)
    outs = jax.block_until_ready(outs)

    adj_rec, z1, z2, h, fea_rec1, fea_rec2, mean, log_std, kl = outs
    assert adj_rec.shape == (N, N)
    assert z1.shape == (N, hidden2) and z2.shape == (N, hidden2)
    assert h.shape == (N, hidden1 + num_classes)
    assert fea_rec1.shape == (N, hidden1) and fea_rec2.shape == (N, hidden1)
    assert mean.shape == (N, hidden2) and log_std.shape == (N, hidden2)
    assert kl.shape == (N,)
    for t in outs:
        assert bool(jnp.isfinite(t).all())

    # loose numeric sanity check vs f32 plain-JAX reference (bf16 A operand in
    # the kernels -> generous tolerance).
    h_ref, mean_ref = _reference_forward(a_hat, features, y_onehot, params)
    assert float(jnp.max(jnp.abs(h - h_ref))) < 0.15
    assert float(jnp.max(jnp.abs(mean - mean_ref))) < 0.15

    print("KERNEL_OK")
</pallas_src>

<mosaic_0001>
module attributes {stable_mosaic.version = 11 : i64} {
  func.func @xw_kernel(%arg0: i32, %arg1: memref<256x32xf32, #tpu.memory_space<vmem>>, %arg2: memref<32x32xf32, #tpu.memory_space<vmem>>, %arg3: memref<256x32xf32, #tpu.memory_space<vmem>>) attributes {dimension_semantics = [#tpu.dimension_semantics<parallel>], iteration_bounds = array<i64: 2>, scalar_prefetch = 0 : i64, scratch_operands = 0 : i64, tpu.core_type = #tpu.core_type<tc>, window_params = [{transform_indices = @transform_0, window_bounds = array<i64: 256, 32>}, {pipeline_mode = #tpu.pipeline_mode<synchronous>, transform_indices = @transform_1, window_bounds = array<i64: 32, 32>}, {transform_indices = @transform_2, window_bounds = array<i64: 256, 32>}]} {
    %c0 = arith.constant 0 : index
    %c0_0 = arith.constant 0 : index
    %0 = vector.load %arg1[%c0, %c0_0] : memref<256x32xf32, #tpu.memory_space<vmem>>, vector<256x32xf32>
    %c0_1 = arith.constant 0 : index
    %c0_2 = arith.constant 0 : index
    %1 = vector.load %arg2[%c0_1, %c0_2] : memref<32x32xf32, #tpu.memory_space<vmem>>, vector<32x32xf32>
    %cst = arith.constant dense<0.000000e+00> : vector<256x32xf32>
    %2 = tpu.matmul %0, %1, %cst {dimension_numbers = #tpu.dot_dimension_numbers<[1], [0], [0], [1], [0, 0, 1, 1], [], []>} : vector<256x32xf32>, vector<32x32xf32>, vector<256x32xf32> -> vector<256x32xf32>
    %c0_3 = arith.constant 0 : index
    %c0_4 = arith.constant 0 : index
    %3 = vector.load %arg3[%c0_3, %c0_4] : memref<256x32xf32, #tpu.memory_space<vmem>>, vector<256x32xf32>
    tpu.vector_store %arg3[%c0_3, %c0_4], %2 {strides = array<i32>} : memref<256x32xf32, #tpu.memory_space<vmem>>, vector<256x32xf32>,
    return
  }
  func.func @transform_0(%arg0: i32) -> (i32, i32) {
    %c0_i32 = arith.constant 0 : i32
    %c0_i32_0 = arith.constant 0 : i32
    return %arg0, %c0_i32 : i32, i32
  }
  func.func @transform_1(%arg0: i32) -> (i32, i32) {
    %c0_i32 = arith.constant 0 : i32
    %c0_i32_0 = arith.constant 0 : i32
    %c0_i32_1 = arith.constant 0 : i32
    return %c0_i32, %c0_i32_0 : i32, i32
  }
  func.func @transform_2(%arg0: i32) -> (i32, i32) {
    %c0_i32 = arith.constant 0 : i32
    %c0_i32_0 = arith.constant 0 : i32
    return %arg0, %c0_i32 : i32, i32
  }
}

module attributes {stable_mosaic.version = 11 : i64} {
  func.func @enc_hop1_kernel(%arg0: i32, %arg1: i32, %arg2: memref<256x512xbf16, #tpu.memory_space<vmem>>, %arg3: memref<512x32xf32, #tpu.memory_space<vmem>>, %arg4: memref<256x4xf32, #tpu.memory_space<vmem>>, %arg5: memref<1x32xf32, #tpu.memory_space<vmem>>, %arg6: memref<32x36xf32, #tpu.memory_space<vmem>>, %arg7: memref<4x36xf32, #tpu.memory_space<vmem>>, %arg8: memref<1x36xf32, #tpu.memory_space<vmem>>, %arg9: memref<36x32xf32, #tpu.memory_space<vmem>>, %arg10: memref<256x68xf32, #tpu.memory_space<vmem>>, %arg11: memref<256x32xf32, #tpu.memory_space<vmem>>) attributes {dimension_semantics = [#tpu.dimension_semantics<parallel>, #tpu.dimension_semantics<arbitrary>], iteration_bounds = array<i64: 2, 1>, scalar_prefetch = 0 : i64, scratch_operands = 1 : i64, tpu.core_type = #tpu.core_type<tc>, window_params = [{transform_indices = @transform_0, window_bounds = array<i64: 256, 512>}, {pipeline_mode = #tpu.pipeline_mode<synchronous>, transform_indices = @transform_1, window_bounds = array<i64: 512, 32>}, {transform_indices = @transform_2, window_bounds = array<i64: 256, 4>}, {pipeline_mode = #tpu.pipeline_mode<synchronous>, transform_indices = @transform_3, window_bounds = array<i64: 1, 32>}, {pipeline_mode = #tpu.pipeline_mode<synchronous>, transform_indices = @transform_4, window_bounds = array<i64: 32, 36>}, {pipeline_mode = #tpu.pipeline_mode<synchronous>, transform_indices = @transform_5, window_bounds = array<i64: 4, 36>}, {pipeline_mode = #tpu.pipeline_mode<synchronous>, transform_indices = @transform_6, window_bounds = array<i64: 1, 36>}, {pipeline_mode = #tpu.pipeline_mode<synchronous>, transform_indices = @transform_7, window_bounds = array<i64: 36, 32>}, {transform_indices = @transform_8, window_bounds = array<i64: 256, 68>}]} {
    %c0_i32 = arith.constant 0 : i32
    %0 = arith.cmpi eq, %arg1, %c0_i32 : i32
    %1 = arith.extui %0 : i1 to i32
    %c0_i32_0 = arith.constant 0 : i32
    %2 = arith.cmpi ne, %1, %c0_i32_0 : i32
    scf.if %2 {
      %cst_9 = arith.constant 0.000000e+00 : f32
      %15 = vector.broadcast %cst_9 : f32 to vector<256x32xf32>
      %c0_10 = arith.constant 0 : index
      %c0_11 = arith.constant 0 : index
      %16 = vector.load %arg11[%c0_10, %c0_11] : memref<256x32xf32, #tpu.memory_space<vmem>>, vector<256x32xf32>
      tpu.vector_store %arg11[%c0_10, %c0_11], %15 {strides = array<i32>} : memref<256x32xf32, #tpu.memory_space<vmem>>, vector<256x32xf32>,
    } else {
    }
    %c512_i32 = arith.constant 512 : i32
    %3 = arith.muli %arg1, %c512_i32 : i32
    %4 = tpu.assume_multiple %3, 128 : i32
    %5 = arith.index_cast %4 : i32 to index
    %c0 = arith.constant 0 : index
    %6 = vector.load %arg3[%5, %c0] : memref<512x32xf32, #tpu.memory_space<vmem>>, vector<512x32xf32>
    %c0_1 = arith.constant 0 : index
    %c0_2 = arith.constant 0 : index
    %7 = vector.load %arg11[%c0_1, %c0_2] : memref<256x32xf32, #tpu.memory_space<vmem>>, vector<256x32xf32>
    %c0_3 = arith.constant 0 : index
    %c0_4 = arith.constant 0 : index
    %8 = vector.load %arg2[%c0_3, %c0_4] : memref<256x512xbf16, #tpu.memory_space<vmem>>, vector<256x512xbf16>
    %cst = arith.constant dense<0.000000e+00> : vector<256x32xf32>
    %9 = tpu.matmul %8, %6, %cst {dimension_numbers = #tpu.dot_dimension_numbers<[1], [0], [0], [1], [0, 0, 1, 1], [], []>} : vector<256x512xbf16>, vector<512x32xf32>, vector<256x32xf32> -> vector<256x32xf32>
    %10 = arith.addf %7, %9 : vector<256x32xf32>
    %c0_5 = arith.constant 0 : index
    %c0_6 = arith.constant 0 : index
    %11 = vector.load %arg11[%c0_5, %c0_6] : memref<256x32xf32, #tpu.memory_space<vmem>>, vector<256x32xf32>
    tpu.vector_store %arg11[%c0_5, %c0_6], %10 {strides = array<i32>} : memref<256x32xf32, #tpu.memory_space<vmem>>, vector<256x32xf32>,
    %c0_i32_7 = arith.constant 0 : i32
    %12 = arith.cmpi eq, %arg1, %c0_i32_7 : i32
    %13 = arith.extui %12 : i1 to i32
    %c0_i32_8 = arith.constant 0 : i32
    %14 = arith.cmpi ne, %13, %c0_i32_8 : i32
    scf.if %14 {
      %c0_9 = arith.constant 0 : index
      %c0_10 = arith.constant 0 : index
      %15 = vector.load %arg11[%c0_9, %c0_10] : memref<256x32xf32, #tpu.memory_space<vmem>>, vector<256x32xf32>
      %c0_11 = arith.constant 0 : index
      %c0_12 = arith.constant 0 : index
      %16 = vector.load %arg5[%c0_11, %c0_12] : memref<1x32xf32, #tpu.memory_space<vmem>>, vector<1x32xf32>
      %17 = vector.broadcast %16 : vector<1x32xf32> to vector<256x32xf32>
      %18 = arith.addf %15, %17 : vector<256x32xf32>
      %cst_13 = arith.constant 0.000000e+00 : f32
      %19 = vector.broadcast %cst_13 : f32 to vector<256x32xf32>
      %20 = arith.maximumf %18, %19 : vector<256x32xf32>
      %c0_14 = arith.constant 0 : index
      %c0_15 = arith.constant 0 : index
      %21 = vector.load %arg6[%c0_14, %c0_15] : memref<32x36xf32, #tpu.memory_space<vmem>>, vector<32x36xf32>
      %cst_16 = arith.constant dense<0.000000e+00> : vector<256x36xf32>
      %22 = tpu.matmul %20, %21, %cst_16 {dimension_numbers = #tpu.dot_dimension_numbers<[1], [0], [0], [1], [0, 0, 1, 1], [], []>} : vector<256x32xf32>, vector<32x36xf32>, vector<256x36xf32> -> vector<256x36xf32>
      %c0_17 = arith.constant 0 : index
      %c0_18 = arith.constant 0 : index
      %23 = vector.load %arg4[%c0_17, %c0_18] : memref<256x4xf32, #tpu.memory_space<vmem>>, vector<256x4xf32>
      %c0_19 = arith.constant 0 : index
      %c0_20 = arith.constant 0 : index
      %24 = vector.load %arg7[%c0_19, %c0_20] : memref<4x36xf32, #tpu.memory_space<vmem>>, vector<4x36xf32>
      %cst_21 = arith.constant dense<0.000000e+00> : vector<256x36xf32>
      %25 = tpu.matmul %23, %24, %cst_21 {dimension_numbers = #tpu.dot_dimension_numbers<[1], [0], [0], [1], [0, 0, 1, 1], [], []>} : vector<256x4xf32>, vector<4x36xf32>, vector<256x36xf32> -> vector<256x36xf32>
      %26 = arith.addf %22, %25 : vector<256x36xf32>
      %c0_22 = arith.constant 0 : index
      %c0_23 = arith.constant 0 : index
      %27 = vector.load %arg8[%c0_22, %c0_23] : memref<1x36xf32, #tpu.memory_space<vmem>>, vector<1x36xf32>
      %28 = vector.broadcast %27 : vector<1x36xf32> to vector<256x36xf32>
      %29 = arith.addf %26, %28 : vector<256x36xf32>
      %cst_24 = arith.constant 0.000000e+00 : f32
      %30 = vector.broadcast %cst_24 : f32 to vector<256x36xf32>
      %31 = arith.maximumf %29, %30 : vector<256x36xf32>
      %c0_25 = arith.constant 0 : index
      %c0_26 = arith.constant 0 : index
      %32 = vector.load %arg9[%c0_25, %c0_26] : memref<36x32xf32, #tpu.memory_space<vmem>>, vector<36x32xf32>
      %cst_27 = arith.constant dense<0.000000e+00> : vector<256x32xf32>
      %33 = tpu.matmul %31, %32, %cst_27 {dimension_numbers = #tpu.dot_dimension_numbers<[1], [0], [0], [1], [0, 0, 1, 1], [], []>} : vector<256x36xf32>, vector<36x32xf32>, vector<256x32xf32> -> vector<256x32xf32>
      %34 = tpu.concatenate %33, %31 in 1 : vector<256x32xf32>, vector<256x36xf32> -> vector<256x68xf32>
      %c0_28 = arith.constant 0 : index
      %c0_29 = arith.constant 0 : index
      %35 = vector.load %arg10[%c0_28, %c0_29] : memref<256x68xf32, #tpu.memory_space<vmem>>, vector<256x68xf32>
      tpu.vector_store %arg10[%c0_28, %c0_29], %34 {strides = array<i32>} : memref<256x68xf32, #tpu.memory_space<vmem>>, vector<256x68xf32>,
    } else {
    }
    return
  }
  func.func @transform_0(%arg0: i32, %arg1: i32) -> (i32, i32) {
    %c0_i32 = arith.constant 0 : i32
    return %arg0, %arg1 : i32, i32
  }
  func.func @transform_1(%arg0: i32, %arg1: i32) -> (i32, i32) {
    %c0_i32 = arith.constant 0 : i32
    %c0_i32_0 = arith.constant 0 : i32
    %c0_i32_1 = arith.constant 0 : i32
    return %c0_i32, %c0_i32_0 : i32, i32
  }
  func.func @transform_2(%arg0: i32, %arg1: i32) -> (i32, i32) {
    %c0_i32 = arith.constant 0 : i32
    %c0_i32_0 = arith.constant 0 : i32
    return %arg0, %c0_i32 : i32, i32
  }
  func.func @transform_3(%arg0: i32, %arg1: i32) -> (i32, i32) {
    %c0_i32 = arith.constant 0 : i32
    %c0_i32_0 = arith.constant 0 : i32
    %c0_i32_1 = arith.constant 0 : i32
    return %c0_i32, %c0_i32_0 : i32, i32
  }
  func.func @transform_4(%arg0: i32, %arg1: i32) -> (i32, i32) {
    %c0_i32 = arith.constant 0 : i32
    %c0_i32_0 = arith.constant 0 : i32
    %c0_i32_1 = arith.constant 0 : i32
    return %c0_i32, %c0_i32_0 : i32, i32
  }
  func.func @transform_5(%arg0: i32, %arg1: i32) -> (i32, i32) {
    %c0_i32 = arith.constant 0 : i32
    %c0_i32_0 = arith.constant 0 : i32
    %c0_i32_1 = arith.constant 0 : i32
    return %c0_i32, %c0_i32_0 : i32, i32
  }
  func.func @transform_6(%arg0: i32, %arg1: i32) -> (i32, i32) {
    %c0_i32 = arith.constant 0 : i32
    %c0_i32_0 = arith.constant 0 : i32
    %c0_i32_1 = arith.constant 0 : i32
    return %c0_i32, %c0_i32_0 : i32, i32
  }
  func.func @transform_7(%arg0: i32, %arg1: i32) -> (i32, i32) {
    %c0_i32 = arith.constant 0 : i32
    %c0_i32_0 = arith.constant 0 : i32
    %c0_i32_1 = arith.constant 0 : i32
    return %c0_i32, %c0_i32_0 : i32, i32
  }
  func.func @transform_8(%arg0: i32, %arg1: i32) -> (i32, i32) {
    %c0_i32 = arith.constant 0 : i32
    %c0_i32_0 = arith.constant 0 : i32
    return %arg0, %c0_i32 : i32, i32
  }
}

module attributes {stable_mosaic.version = 11 : i64} {
  func.func @enc_hop2_kernel(%arg0: i32, %arg1: i32, %arg2: memref<256x512xbf16, #tpu.memory_space<vmem>>, %arg3: memref<512x68xf32, #tpu.memory_space<vmem>>, %arg4: memref<256x4xf32, #tpu.memory_space<vmem>>, %arg5: memref<256x16xf32, #tpu.memory_space<vmem>>, %arg6: memref<256x16xf32, #tpu.memory_space<vmem>>, %arg7: memref<1x32xf32, #tpu.memory_space<vmem>>, %arg8: memref<16x32xf32, #tpu.memory_space<vmem>>, %arg9: memref<4x32xf32, #tpu.memory_space<vmem>>, %arg10: memref<1x32xf32, #tpu.memory_space<vmem>>, %arg11: memref<256x128xf32, #tpu.memory_space<vmem>>, %arg12: memref<256x32xf32, #tpu.memory_space<vmem>>) attributes {dimension_semantics = [#tpu.dimension_semantics<parallel>, #tpu.dimension_semantics<arbitrary>], iteration_bounds = array<i64: 2, 1>, scalar_prefetch = 0 : i64, scratch_operands = 1 : i64, tpu.core_type = #tpu.core_type<tc>, window_params = [{transform_indices = @transform_0, window_bounds = array<i64: 256, 512>}, {pipeline_mode = #tpu.pipeline_mode<synchronous>, transform_indices = @transform_1, window_bounds = array<i64: 512, 68>}, {transform_indices = @transform_2, window_bounds = array<i64: 256, 4>}, {transform_indices = @transform_3, window_bounds = array<i64: 256, 16>}, {transform_indices = @transform_4, window_bounds = array<i64: 256, 16>}, {pipeline_mode = #tpu.pipeline_mode<synchronous>, transform_indices = @transform_5, window_bounds = array<i64: 1, 32>}, {pipeline_mode = #tpu.pipeline_mode<synchronous>, transform_indices = @transform_6, window_bounds = array<i64: 16, 32>}, {pipeline_mode = #tpu.pipeline_mode<synchronous>, transform_indices = @transform_7, window_bounds = array<i64: 4, 32>}, {pipeline_mode = #tpu.pipeline_mode<synchronous>, transform_indices = @transform_8, window_bounds = array<i64: 1, 32>}, {transform_indices = @transform_9, window_bounds = array<i64: 256, 128>}]} {
    %c0_i32 = arith.constant 0 : i32
    %0 = arith.cmpi eq, %arg1, %c0_i32 : i32
    %1 = arith.extui %0 : i1 to i32
    %c0_i32_0 = arith.constant 0 : i32
    %2 = arith.cmpi ne, %1, %c0_i32_0 : i32
    scf.if %2 {
      %cst_9 = arith.constant 0.000000e+00 : f32
      %16 = vector.broadcast %cst_9 : f32 to vector<256x32xf32>
      %c0_10 = arith.constant 0 : index
      %c0_11 = arith.constant 0 : index
      %17 = vector.load %arg12[%c0_10, %c0_11] : memref<256x32xf32, #tpu.memory_space<vmem>>, vector<256x32xf32>
      tpu.vector_store %arg12[%c0_10, %c0_11], %16 {strides = array<i32>} : memref<256x32xf32, #tpu.memory_space<vmem>>, vector<256x32xf32>,
    } else {
    }
    %c512_i32 = arith.constant 512 : i32
    %3 = arith.muli %arg1, %c512_i32 : i32
    %4 = tpu.assume_multiple %3, 128 : i32
    %5 = arith.index_cast %4 : i32 to index
    %c0 = arith.constant 0 : index
    %6 = vector.load %arg3[%5, %c0] : memref<512x68xf32, #tpu.memory_space<vmem>>, vector<512x68xf32>
    %7 = vector.extract_strided_slice %6 {offsets = [0, 0], sizes = [512, 32], strides = [1, 1]} : vector<512x68xf32> to vector<512x32xf32>
    %c0_1 = arith.constant 0 : index
    %c0_2 = arith.constant 0 : index
    %8 = vector.load %arg12[%c0_1, %c0_2] : memref<256x32xf32, #tpu.memory_space<vmem>>, vector<256x32xf32>
    %c0_3 = arith.constant 0 : index
    %c0_4 = arith.constant 0 : index
    %9 = vector.load %arg2[%c0_3, %c0_4] : memref<256x512xbf16, #tpu.memory_space<vmem>>, vector<256x512xbf16>
    %cst = arith.constant dense<0.000000e+00> : vector<256x32xf32>
    %10 = tpu.matmul %9, %7, %cst {dimension_numbers = #tpu.dot_dimension_numbers<[1], [0], [0], [1], [0, 0, 1, 1], [], []>} : vector<256x512xbf16>, vector<512x32xf32>, vector<256x32xf32> -> vector<256x32xf32>
    %11 = arith.addf %8, %10 : vector<256x32xf32>
    %c0_5 = arith.constant 0 : index
    %c0_6 = arith.constant 0 : index
    %12 = vector.load %arg12[%c0_5, %c0_6] : memref<256x32xf32, #tpu.memory_space<vmem>>, vector<256x32xf32>
    tpu.vector_store %arg12[%c0_5, %c0_6], %11 {strides = array<i32>} : memref<256x32xf32, #tpu.memory_space<vmem>>, vector<256x32xf32>,
    %c0_i32_7 = arith.constant 0 : i32
    %13 = arith.cmpi eq, %arg1, %c0_i32_7 : i32
    %14 = arith.extui %13 : i1 to i32
    %c0_i32_8 = arith.constant 0 : i32
    %15 = arith.cmpi ne, %14, %c0_i32_8 : i32
    scf.if %15 {
      %c0_9 = arith.constant 0 : index
      %c0_10 = arith.constant 0 : index
      %16 = vector.load %arg12[%c0_9, %c0_10] : memref<256x32xf32, #tpu.memory_space<vmem>>, vector<256x32xf32>
      %c0_11 = arith.constant 0 : index
      %c0_12 = arith.constant 0 : index
      %17 = vector.load %arg7[%c0_11, %c0_12] : memref<1x32xf32, #tpu.memory_space<vmem>>, vector<1x32xf32>
      %18 = vector.broadcast %17 : vector<1x32xf32> to vector<256x32xf32>
      %19 = arith.addf %16, %18 : vector<256x32xf32>
      %20 = vector.extract_strided_slice %19 {offsets = [0, 0], sizes = [256, 16], strides = [1, 1]} : vector<256x32xf32> to vector<256x16xf32>
      %21 = vector.extract_strided_slice %19 {offsets = [0, 16], sizes = [256, 16], strides = [1, 1]} : vector<256x32xf32> to vector<256x16xf32>
      %22 = arith.mulf %20, %20 : vector<256x16xf32>
      %cst_13 = arith.constant dense<0.000000e+00> : vector<256xf32>
      %23 = vector.multi_reduction <add>, %22, %cst_13 [1] : vector<256x16xf32> to vector<256xf32>
      %24 = vector.shape_cast %23 : vector<256xf32> to vector<256x1xf32>
      %cst_14 = arith.constant 1.000000e-24 : f32
      %25 = vector.broadcast %cst_14 : f32 to vector<256x1xf32>
      %26 = arith.maximumf %24, %25 : vector<256x1xf32>
      %27 = math.rsqrt %26 : vector<256x1xf32>
      %28 = vector.broadcast %27 : vector<256x1xf32> to vector<256x16xf32>
      %29 = arith.mulf %20, %28 : vector<256x16xf32>
      %30 = arith.mulf %21, %21 : vector<256x16xf32>
      %cst_15 = arith.constant dense<0.000000e+00> : vector<256xf32>
      %31 = vector.multi_reduction <add>, %30, %cst_15 [1] : vector<256x16xf32> to vector<256xf32>
      %32 = vector.shape_cast %31 : vector<256xf32> to vector<256x1xf32>
      %cst_16 = arith.constant 1.000000e-24 : f32
      %33 = vector.broadcast %cst_16 : f32 to vector<256x1xf32>
      %34 = arith.maximumf %32, %33 : vector<256x1xf32>
      %35 = math.rsqrt %34 : vector<256x1xf32>
      %36 = vector.broadcast %35 : vector<256x1xf32> to vector<256x16xf32>
      %37 = arith.mulf %21, %36 : vector<256x16xf32>
      %38 = math.exp %37 : vector<256x16xf32>
      %c0_17 = arith.constant 0 : index
      %c0_18 = arith.constant 0 : index
      %39 = vector.load %arg5[%c0_17, %c0_18] : memref<256x16xf32, #tpu.memory_space<vmem>>, vector<256x16xf32>
      %40 = arith.mulf %39, %38 : vector<256x16xf32>
      %41 = arith.addf %29, %40 : vector<256x16xf32>
      %c0_19 = arith.constant 0 : index
      %c0_20 = arith.constant 0 : index
      %42 = vector.load %arg6[%c0_19, %c0_20] : memref<256x16xf32, #tpu.memory_space<vmem>>, vector<256x16xf32>
      %43 = arith.mulf %42, %38 : vector<256x16xf32>
      %44 = arith.addf %29, %43 : vector<256x16xf32>
      %c0_21 = arith.constant 0 : index
      %c0_22 = arith.constant 0 : index
      %45 = vector.load %arg8[%c0_21, %c0_22] : memref<16x32xf32, #tpu.memory_space<vmem>>, vector<16x32xf32>
      %cst_23 = arith.constant dense<0.000000e+00> : vector<256x32xf32>
      %46 = tpu.matmul %41, %45, %cst_23 {dimension_numbers = #tpu.dot_dimension_numbers<[1], [0], [0], [1], [0, 0, 1, 1], [], []>} : vector<256x16xf32>, vector<16x32xf32>, vector<256x32xf32> -> vector<256x32xf32>
      %c0_24 = arith.constant 0 : index
      %c0_25 = arith.constant 0 : index
      %47 = vector.load %arg4[%c0_24, %c0_25] : memref<256x4xf32, #tpu.memory_space<vmem>>, vector<256x4xf32>
      %c0_26 = arith.constant 0 : index
      %c0_27 = arith.constant 0 : index
      %48 = vector.load %arg9[%c0_26, %c0_27] : memref<4x32xf32, #tpu.memory_space<vmem>>, vector<4x32xf32>
      %cst_28 = arith.constant dense<0.000000e+00> : vector<256x32xf32>
      %49 = tpu.matmul %47, %48, %cst_28 {dimension_numbers = #tpu.dot_dimension_numbers<[1], [0], [0], [1], [0, 0, 1, 1], [], []>} : vector<256x4xf32>, vector<4x32xf32>, vector<256x32xf32> -> vector<256x32xf32>
      %50 = arith.addf %46, %49 : vector<256x32xf32>
      %c0_29 = arith.constant 0 : index
      %c0_30 = arith.constant 0 : index
      %51 = vector.load %arg10[%c0_29, %c0_30] : memref<1x32xf32, #tpu.memory_space<vmem>>, vector<1x32xf32>
      %52 = vector.broadcast %51 : vector<1x32xf32> to vector<256x32xf32>
      %53 = arith.addf %50, %52 : vector<256x32xf32>
      %cst_31 = arith.constant 0.000000e+00 : f32
      %54 = vector.broadcast %cst_31 : f32 to vector<256x32xf32>
      %55 = arith.maximumf %53, %54 : vector<256x32xf32>
      %c0_32 = arith.constant 0 : index
      %c0_33 = arith.constant 0 : index
      %56 = vector.load %arg8[%c0_32, %c0_33] : memref<16x32xf32, #tpu.memory_space<vmem>>, vector<16x32xf32>
      %cst_34 = arith.constant dense<0.000000e+00> : vector<256x32xf32>
      %57 = tpu.matmul %44, %56, %cst_34 {dimension_numbers = #tpu.dot_dimension_numbers<[1], [0], [0], [1], [0, 0, 1, 1], [], []>} : vector<256x16xf32>, vector<16x32xf32>, vector<256x32xf32> -> vector<256x32xf32>
      %c0_35 = arith.constant 0 : index
      %c0_36 = arith.constant 0 : index
      %58 = vector.load %arg4[%c0_35, %c0_36] : memref<256x4xf32, #tpu.memory_space<vmem>>, vector<256x4xf32>
      %c0_37 = arith.constant 0 : index
      %c0_38 = arith.constant 0 : index
      %59 = vector.load %arg9[%c0_37, %c0_38] : memref<4x32xf32, #tpu.memory_space<vmem>>, vector<4x32xf32>
      %cst_39 = arith.constant dense<0.000000e+00> : vector<256x32xf32>
      %60 = tpu.matmul %58, %59, %cst_39 {dimension_numbers = #tpu.dot_dimension_numbers<[1], [0], [0], [1], [0, 0, 1, 1], [], []>} : vector<256x4xf32>, vector<4x32xf32>, vector<256x32xf32> -> vector<256x32xf32>
      %61 = arith.addf %57, %60 : vector<256x32xf32>
      %c0_40 = arith.constant 0 : index
      %c0_41 = arith.constant 0 : index
      %62 = vector.load %arg10[%c0_40, %c0_41] : memref<1x32xf32, #tpu.memory_space<vmem>>, vector<1x32xf32>
      %63 = vector.broadcast %62 : vector<1x32xf32> to vector<256x32xf32>
      %64 = arith.addf %61, %63 : vector<256x32xf32>
      %cst_42 = arith.constant 0.000000e+00 : f32
      %65 = vector.broadcast %cst_42 : f32 to vector<256x32xf32>
      %66 = arith.maximumf %64, %65 : vector<256x32xf32>
      %67 = tpu.concatenate %41, %44, %29, %37, %55, %66 in 1 : vector<256x16xf32>, vector<256x16xf32>, vector<256x16xf32>, vector<256x16xf32>, vector<256x32xf32>, vector<256x32xf32> -> vector<256x128xf32>
      %c0_43 = arith.constant 0 : index
      %c0_44 = arith.constant 0 : index
      %68 = vector.load %arg11[%c0_43, %c0_44] : memref<256x128xf32, #tpu.memory_space<vmem>>, vector<256x128xf32>
      tpu.vector_store %arg11[%c0_43, %c0_44], %67 {strides = array<i32>} : memref<256x128xf32, #tpu.memory_space<vmem>>, vector<256x128xf32>,
    } else {
    }
    return
  }
  func.func @transform_0(%arg0: i32, %arg1: i32) -> (i32, i32) {
    %c0_i32 = arith.constant 0 : i32
    return %arg0, %arg1 : i32, i32
  }
  func.func @transform_1(%arg0: i32, %arg1: i32) -> (i32, i32) {
    %c0_i32 = arith.constant 0 : i32
    %c0_i32_0 = arith.constant 0 : i32
    %c0_i32_1 = arith.constant 0 : i32
    return %c0_i32, %c0_i32_0 : i32, i32
  }
  func.func @transform_2(%arg0: i32, %arg1: i32) -> (i32, i32) {
    %c0_i32 = arith.constant 0 : i32
    %c0_i32_0 = arith.constant 0 : i32
    return %arg0, %c0_i32 : i32, i32
  }
  func.func @transform_3(%arg0: i32, %arg1: i32) -> (i32, i32) {
    %c0_i32 = arith.constant 0 : i32
    %c0_i32_0 = arith.constant 0 : i32
    return %arg0, %c0_i32 : i32, i32
  }
  func.func @transform_4(%arg0: i32, %arg1: i32) -> (i32, i32) {
    %c0_i32 = arith.constant 0 : i32
    %c0_i32_0 = arith.constant 0 : i32
    return %arg0, %c0_i32 : i32, i32
  }
  func.func @transform_5(%arg0: i32, %arg1: i32) -> (i32, i32) {
    %c0_i32 = arith.constant 0 : i32
    %c0_i32_0 = arith.constant 0 : i32
    %c0_i32_1 = arith.constant 0 : i32
    return %c0_i32, %c0_i32_0 : i32, i32
  }
  func.func @transform_6(%arg0: i32, %arg1: i32) -> (i32, i32) {
    %c0_i32 = arith.constant 0 : i32
    %c0_i32_0 = arith.constant 0 : i32
    %c0_i32_1 = arith.constant 0 : i32
    return %c0_i32, %c0_i32_0 : i32, i32
  }
  func.func @transform_7(%arg0: i32, %arg1: i32) -> (i32, i32) {
    %c0_i32 = arith.constant 0 : i32
    %c0_i32_0 = arith.constant 0 : i32
    %c0_i32_1 = arith.constant 0 : i32
    return %c0_i32, %c0_i32_0 : i32, i32
  }
  func.func @transform_8(%arg0: i32, %arg1: i32) -> (i32, i32) {
    %c0_i32 = arith.constant 0 : i32
    %c0_i32_0 = arith.constant 0 : i32
    %c0_i32_1 = arith.constant 0 : i32
    return %c0_i32, %c0_i32_0 : i32, i32
  }
  func.func @transform_9(%arg0: i32, %arg1: i32) -> (i32, i32) {
    %c0_i32 = arith.constant 0 : i32
    %c0_i32_0 = arith.constant 0 : i32
    return %arg0, %c0_i32 : i32, i32
  }
}

module attributes {stable_mosaic.version = 11 : i64} {
  func.func @adj_dec_kernel(%arg0: i32, %arg1: i32, %arg2: memref<256x20xbf16, #tpu.memory_space<vmem>>, %arg3: memref<20x256xbf16, #tpu.memory_space<vmem>>, %arg4: memref<256x256xbf16, #tpu.memory_space<vmem>>) attributes {dimension_semantics = [#tpu.dimension_semantics<parallel>, #tpu.dimension_semantics<parallel>], iteration_bounds = array<i64: 2, 2>, scalar_prefetch = 0 : i64, scratch_operands = 0 : i64, tpu.core_type = #tpu.core_type<tc>, window_params = [{transform_indices = @transform_0, window_bounds = array<i64: 256, 20>}, {transform_indices = @transform_1, window_bounds = array<i64: 20, 256>}, {transform_indices = @transform_2, window_bounds = array<i64: 256, 256>}]} {
    %c0 = arith.constant 0 : index
    %c0_0 = arith.constant 0 : index
    %0 = vector.load %arg2[%c0, %c0_0] : memref<256x20xbf16, #tpu.memory_space<vmem>>, vector<256x20xbf16>
    %c0_1 = arith.constant 0 : index
    %c0_2 = arith.constant 0 : index
    %1 = vector.load %arg3[%c0_1, %c0_2] : memref<20x256xbf16, #tpu.memory_space<vmem>>, vector<20x256xbf16>
    %cst = arith.constant dense<0.000000e+00> : vector<256x256xf32>
    %2 = tpu.matmul %0, %1, %cst {dimension_numbers = #tpu.dot_dimension_numbers<[1], [0], [0], [1], [0, 0, 1, 1], [], []>} : vector<256x20xbf16>, vector<20x256xbf16>, vector<256x256xf32> -> vector<256x256xf32>
    %cst_3 = arith.constant 5.000000e-01 : f32
    %3 = vector.broadcast %cst_3 : f32 to vector<256x256xf32>
    %4 = arith.mulf %3, %2 : vector<256x256xf32>
    %5 = math.tanh %4 : vector<256x256xf32>
    %cst_4 = arith.constant 5.000000e-01 : f32
    %6 = vector.broadcast %cst_4 : f32 to vector<256x256xf32>
    %7 = arith.mulf %6, %5 : vector<256x256xf32>
    %cst_5 = arith.constant 5.000000e-01 : f32
    %8 = vector.broadcast %cst_5 : f32 to vector<256x256xf32>
    %9 = arith.addf %7, %8 : vector<256x256xf32>
    %10 = arith.truncf %9 : vector<256x256xf32> to vector<256x256xbf16>
    %c0_6 = arith.constant 0 : index
    %c0_7 = arith.constant 0 : index
    %11 = vector.load %arg4[%c0_6, %c0_7] : memref<256x256xbf16, #tpu.memory_space<vmem>>, vector<256x256xbf16>
    tpu.vector_store %arg4[%c0_6, %c0_7], %10 {strides = array<i32>} : memref<256x256xbf16, #tpu.memory_space<vmem>>, vector<256x256xbf16>,
    return
  }
  func.func @transform_0(%arg0: i32, %arg1: i32) -> (i32, i32) {
    %c0_i32 = arith.constant 0 : i32
    %c0_i32_0 = arith.constant 0 : i32
    return %arg0, %c0_i32 : i32, i32
  }
  func.func @transform_1(%arg0: i32, %arg1: i32) -> (i32, i32) {
    %c0_i32 = arith.constant 0 : i32
    %c0_i32_0 = arith.constant 0 : i32
    return %c0_i32, %arg1 : i32, i32
  }
  func.func @transform_2(%arg0: i32, %arg1: i32) -> (i32, i32) {
    %c0_i32 = arith.constant 0 : i32
    return %arg0, %arg1 : i32, i32
  }
}

</mosaic_0001>

<bundles_post_ra>
// kernel: vgae_forward.4
= control target key start
LH: loop header
LB: loop body
LE: loop exit
PB: predicated region body
PF: predicated region fallthrough
CT: control target
= control target key end

     0   :  { %s771_s9 = smov 0   ;;  %s939_s0 = inlined_call_operand.vmem [shape: f32[512,32], index: 0, kind: input, shape index: {}]   ;;  %s940_s1 = inlined_call_operand.vmem [shape: f32[32,32], index: 1, kind: input, shape index: {}]   ;;  %s941_s2 = inlined_call_operand.vmem [shape: f32[512,32], index: 2, kind: output, shape index: {}]  }
   0x1 LB: > { %s593_s10 = sadd.s32 4294967295, %s754_s9   ;;  %p597_p0 = scmp.ge.s32.totalorder %s754_s9, 1  ;;  %s754_s9 = sphi %s771_s9, %s12_s9  }
   0x2   : > { %p113_p1 = scmp.lt.s32.totalorder %s754_s9, 3 }
   0x4   : > { %p114_p2 = pnand %p597_p0, %p113_p1 }
   0x5   : > { %v179_v0 = vld [vmem:[%s940_s1] sm:$0xff] (!%p114_p2)  ;;  %v180_v1 = vld [vmem:[%s940_s1 + $0x8] sm:$0xff] (!%p114_p2)  ;;  %v181_v2 = vld [vmem:[%s940_s1 + $0x10] sm:$0xff] (!%p114_p2)  ;;  %s598_s17 = sshll.u32 (!%p114_p2), %s593_s10, 5  ;;  %vm183_vm0 = vcmask (!%p114_p2), 261120  }
   0x6   : > { %117 = sbr.rel (%p114_p2) target bundleno = 261 (0x105), region = 28  ;;  %v728_v3 = vpack.c.bf16 (!%p114_p2), %v180_v1, %v179_v0  ;;  %v182_v4 = vld [vmem:[%s940_s1 + $0x18] sm:$0xff] (!%p114_p2)  ;;  %p136_p3 = scmp.lt.s32.totalorder (!%p114_p2), %s598_s17, 63 }
   0x7   : > { %v732_v5 = vpack.c.bf16 (!%p114_p2), %v182_v4, %v181_v2 }
   0x8   : > { %729 = vmatprep.subr.bf16.mxu0 (!%p114_p2), %v728_v3  ;;  %736 = vmatprep.subr.bf16.mxu1 (!%p114_p2), %v728_v3 }
   0x9   : > { %731 = vmatpush3.bf16.msra.mxu0 (!%p114_p2), %v728_v3  ;;  %738 = vmatpush3.bf16.msra.mxu1 (!%p114_p2), %v728_v3 }
   0xa   : > { %733 = vmatprep.subr.bf16.mxu0 (!%p114_p2), %v732_v5  ;;  %737 = vmatprep.subr.bf16.mxu1 (!%p114_p2), %v732_v5 }
   0xd   : > { %s943_s17 = smov (!%p136_p3, %s598_s17), 63  ;;  %735 = vmatpush3.bf16.msra.mxu0 %v732_v5  ;;  %739 = vmatpush3.bf16.msra.mxu1 %v732_v5 }
   0xe   : > { %s599_s20 = sshll.u32 %s943_s17, 3 }
   0xf   : > { %s799_s23 = scalar_lea.vmem %s939_s0, %s599_s20  ;;  %s870_s26 = scalar_lea.vmem %s941_s2, %s599_s20 }
  0x10   : > { %v147_v6 = vld [vmem:[%s799_s23] sm:$0xff]  ;;  %v148_v8 = vld [vmem:[%s799_s23 + $0x8] sm:$0xff]  ;;  %v149_v10 = vld [vmem:[%s799_s23 + $0x10] sm:$0xff] }
  0x11   : > { %v163_v7 = vld [vmem:[%s799_s23 + $0x80] sm:$0xff]  ;;  %v164_v9 = vld [vmem:[%s799_s23 + $0x88] sm:$0xff]  ;;  %680 = vmatprep.mubr.msk.f32.mxu0 %vm183_vm0, %v147_v6  ;;  %v165_v11 = vld [vmem:[%s799_s23 + $0x90] sm:$0xff] }
  0x12   : > { %704 = vmatprep.mubr.msk.f32.mxu1 %vm183_vm0, %v163_v7  ;;  %681 = vmatmul.mubr.msk.f32.vlgmr.msra.gmra.mrb[0].mxu0 %vm183_vm0, %v148_v8  ;;  %v150_v12 = vld [vmem:[%s799_s23 + $0x18] sm:$0xff]  ;;  %v151_v14 = vld [vmem:[%s799_s23 + $0x20] sm:$0xff]  ;;  %v152_v16 = vld [vmem:[%s799_s23 + $0x28] sm:$0xff] }
  0x13   : > { %705 = vmatmul.mubr.msk.f32.vlgmr.msra.gmra.mrb[0].mxu1 %vm183_vm0, %v164_v9  ;;  %683 = vmatprep.mubr.msk.f32.mxu0 %vm183_vm0, %v149_v10  ;;  %v166_v13 = vld [vmem:[%s799_s23 + $0x98] sm:$0xff]  ;;  %v167_v15 = vld [vmem:[%s799_s23 + $0xa0] sm:$0xff]  ;;  %v168_v17 = vld [vmem:[%s799_s23 + $0xa8] sm:$0xff] }
  0x14   : > { %707 = vmatprep.mubr.msk.f32.mxu1 %vm183_vm0, %v165_v11  ;;  %v153_v18 = vld [vmem:[%s799_s23 + $0x30] sm:$0xff]  ;;  %v154_v20 = vld [vmem:[%s799_s23 + $0x38] sm:$0xff]  ;;  %v155_v22 = vld [vmem:[%s799_s23 + $0x40] sm:$0xff] }
  0x15   : > { %v169_v19 = vld [vmem:[%s799_s23 + $0xb0] sm:$0xff]  ;;  %v170_v21 = vld [vmem:[%s799_s23 + $0xb8] sm:$0xff]  ;;  %v171_v23 = vld [vmem:[%s799_s23 + $0xc0] sm:$0xff] }
  0x16   : > { %684 = vmatmul.mubr.msk.f32.gmra.mrb[2].mxu0 %vm183_vm0, %v150_v12  ;;  %v156_v24 = vld [vmem:[%s799_s23 + $0x48] sm:$0xff]  ;;  %v157_v26 = vld [vmem:[%s799_s23 + $0x50] sm:$0xff]  ;;  %v158_v28 = vld [vmem:[%s799_s23 + $0x58] sm:$0xff] }
  0x17   : > { %708 = vmatmul.mubr.msk.f32.gmra.mrb[2].mxu1 %vm183_vm0, %v166_v13  ;;  %686 = vmatprep.mubr.msk.f32.mxu0 %vm183_vm0, %v151_v14  ;;  %v172_v25 = vld [vmem:[%s799_s23 + $0xc8] sm:$0xff]  ;;  %v173_v27 = vld [vmem:[%s799_s23 + $0xd0] sm:$0xff]  ;;  %v174_v29 = vld [vmem:[%s799_s23 + $0xd8] sm:$0xff] }
  0x18   : > { %710 = vmatprep.mubr.msk.f32.mxu1 %vm183_vm0, %v167_v15  ;;  %v159_v30 = vld [vmem:[%s799_s23 + $0x60] sm:$0xff]  ;;  %v160_v32 = vld [vmem:[%s799_s23 + $0x68] sm:$0xff]  ;;  %v161_v34 = vld [vmem:[%s799_s23 + $0x70] sm:$0xff] }
  0x19   : > { %v175_v31 = vld [vmem:[%s799_s23 + $0xe0] sm:$0xff]  ;;  %v176_v33 = vld [vmem:[%s799_s23 + $0xe8] sm:$0xff]  ;;  %v177_v35 = vld [vmem:[%s799_s23 + $0xf0] sm:$0xff] }
  0x1a   : > { %687 = vmatmul.mubr.msk.f32.gmra.mrb[4].mxu0 %vm183_vm0, %v152_v16  ;;  %v162_v36 = vld [vmem:[%s799_s23 + $0x78] sm:$0xff] }
  0x1b   : > { %711 = vmatmul.mubr.msk.f32.gmra.mrb[4].mxu1 %vm183_vm0, %v168_v17  ;;  %689 = vmatprep.mubr.msk.f32.mxu0 %vm183_vm0, %v153_v18  ;;  %v178_v37 = vld [vmem:[%s799_s23 + $0xf8] sm:$0xff] }
  0x1c   : > { %713 = vmatprep.mubr.msk.f32.mxu1 %vm183_vm0, %v169_v19 }
  0x1e   : > { %690 = vmatmul.mubr.msk.f32.gmra.mrb[6].mxu0 %vm183_vm0, %v154_v20 }
  0x1f   : > { %714 = vmatmul.mubr.msk.f32.gmra.mrb[6].mxu1 %vm183_vm0, %v170_v21  ;;  %692 = vmatprep.mubr.msk.f32.mxu0 %vm183_vm0, %v155_v22 }
  0x20   : > { %716 = vmatprep.mubr.msk.f32.mxu1 %vm183_vm0, %v171_v23 }
  0x22   : > { %693 = vmatmul.mubr.msk.f32.gmra.mrb[8].mxu0 %vm183_vm0, %v156_v24 }
  0x23   : > { %717 = vmatmul.mubr.msk.f32.gmra.mrb[8].mxu1 %vm183_vm0, %v172_v25  ;;  %695 = vmatprep.mubr.msk.f32.mxu0 %vm183_vm0, %v157_v26 }
  0x24   : > { %719 = vmatprep.mubr.msk.f32.mxu1 %vm183_vm0, %v173_v27 }
  0x26   : > { %696 = vmatmul.mubr.msk.f32.gmra.mrb[10].mxu0 %vm183_vm0, %v158_v28 }
  0x27   : > { %720 = vmatmul.mubr.msk.f32.gmra.mrb[10].mxu1 %vm183_vm0, %v174_v29  ;;  %698 = vmatprep.mubr.msk.f32.mxu0 %vm183_vm0, %v159_v30 }
  0x28   : > { %722 = vmatprep.mubr.msk.f32.mxu1 %vm183_vm0, %v175_v31 }
  0x2a   : > { %699 = vmatmul.mubr.msk.f32.gmra.mrb[12].mxu0 %vm183_vm0, %v160_v32 }
  0x2b   : > { %723 = vmatmul.mubr.msk.f32.gmra.mrb[12].mxu1 %vm183_vm0, %v176_v33  ;;  %701 = vmatprep.mubr.msk.f32.mxu0 %vm183_vm0, %v161_v34 }
  0x2c   : > { %725 = vmatprep.mubr.msk.f32.mxu1 %vm183_vm0, %v177_v35 }
  0x2e   : > { %702 = vmatmul.mubr.msk.f32.gmra.mrb[14].mxu0 %vm183_vm0, %v162_v36 }
  0x2f   : > { %726 = vmatmul.mubr.msk.f32.gmra.mrb[14].mxu1 %vm183_vm0, %v178_v37 }
  0xe5   : > { %v682_v38 = vpop.f32.mrb[0].mxu0 }
  0xe6   : > { %v706_v39 = vpop.f32.mrb[0].mxu1  ;;  %506 = vst.msk [vmem:[%s870_s26 + $0x8] sm:$0xff] %vm183_vm0, %v682_v38  ;;  %v346_v40 = vpop.f32.mrb[1].mxu0 }
  0xe7   : > { %522 = vst.msk [vmem:[%s870_s26 + $0x88] sm:$0xff] %vm183_vm0, %v706_v39  ;;  %v426_v41 = vpop.f32.mrb[1].mxu1  ;;  %505 = vst.msk [vmem:[%s870_s26] sm:$0xff] %vm183_vm0, %v346_v40 }
  0xe8   : > { %521 = vst.msk [vmem:[%s870_s26 + $0x80] sm:$0xff] %vm183_vm0, %v426_v41 }
  0xe9   : > { %v685_v42 = vpop.f32.mrb[2].mxu0 }
  0xea   : > { %v709_v43 = vpop.f32.mrb[2].mxu1  ;;  %508 = vst.msk [vmem:[%s870_s26 + $0x18] sm:$0xff] %vm183_vm0, %v685_v42  ;;  %v356_v44 = vpop.f32.mrb[3].mxu0 }
  0xeb   : > { %524 = vst.msk [vmem:[%s870_s26 + $0x98] sm:$0xff] %vm183_vm0, %v709_v43  ;;  %v436_v45 = vpop.f32.mrb[3].mxu1  ;;  %507 = vst.msk [vmem:[%s870_s26 + $0x10] sm:$0xff] %vm183_vm0, %v356_v44 }
  0xec   : > { %523 = vst.msk [vmem:[%s870_s26 + $0x90] sm:$0xff] %vm183_vm0, %v436_v45 }
  0xed   : > { %v688_v46 = vpop.f32.mrb[4].mxu0 }
  0xee   : > { %v712_v47 = vpop.f32.mrb[4].mxu1  ;;  %510 = vst.msk [vmem:[%s870_s26 + $0x28] sm:$0xff] %vm183_vm0, %v688_v46  ;;  %v366_v48 = vpop.f32.mrb[5].mxu0 }
  0xef   : > { %526 = vst.msk [vmem:[%s870_s26 + $0xa8] sm:$0xff] %vm183_vm0, %v712_v47  ;;  %v446_v49 = vpop.f32.mrb[5].mxu1  ;;  %509 = vst.msk [vmem:[%s870_s26 + $0x20] sm:$0xff] %vm183_vm0, %v366_v48 }
  0xf0   : > { %525 = vst.msk [vmem:[%s870_s26 + $0xa0] sm:$0xff] %vm183_vm0, %v446_v49 }
  0xf1   : > { %v691_v50 = vpop.f32.mrb[6].mxu0 }
  0xf2   : > { %v715_v51 = vpop.f32.mrb[6].mxu1  ;;  %512 = vst.msk [vmem:[%s870_s26 + $0x38] sm:$0xff] %vm183_vm0, %v691_v50  ;;  %v376_v52 = vpop.f32.mrb[7].mxu0 }
  0xf3   : > { %528 = vst.msk [vmem:[%s870_s26 + $0xb8] sm:$0xff] %vm183_vm0, %v715_v51  ;;  %v456_v53 = vpop.f32.mrb[7].mxu1  ;;  %511 = vst.msk [vmem:[%s870_s26 + $0x30] sm:$0xff] %vm183_vm0, %v376_v52 }
  0xf4   : > { %527 = vst.msk [vmem:[%s870_s26 + $0xb0] sm:$0xff] %vm183_vm0, %v456_v53 }
  0xf5   : > { %v694_v54 = vpop.f32.mrb[8].mxu0 }
  0xf6   : > { %v718_v55 = vpop.f32.mrb[8].mxu1  ;;  %514 = vst.msk [vmem:[%s870_s26 + $0x48] sm:$0xff] %vm183_vm0, %v694_v54  ;;  %v386_v56 = vpop.f32.mrb[9].mxu0 }
  0xf7   : > { %530 = vst.msk [vmem:[%s870_s26 + $0xc8] sm:$0xff] %vm183_vm0, %v718_v55  ;;  %v466_v57 = vpop.f32.mrb[9].mxu1  ;;  %513 = vst.msk [vmem:[%s870_s26 + $0x40] sm:$0xff] %vm183_vm0, %v386_v56 }
  0xf8   : > { %529 = vst.msk [vmem:[%s870_s26 + $0xc0] sm:$0xff] %vm183_vm0, %v466_v57 }
  0xf9   : > { %v697_v58 = vpop.f32.mrb[10].mxu0 }
  0xfa   : > { %v721_v59 = vpop.f32.mrb[10].mxu1  ;;  %516 = vst.msk [vmem:[%s870_s26 + $0x58] sm:$0xff] %vm183_vm0, %v697_v58  ;;  %v396_v60 = vpop.f32.mrb[11].mxu0 }
  0xfb   : > { %532 = vst.msk [vmem:[%s870_s26 + $0xd8] sm:$0xff] %vm183_vm0, %v721_v59  ;;  %v476_v61 = vpop.f32.mrb[11].mxu1  ;;  %515 = vst.msk [vmem:[%s870_s26 + $0x50] sm:$0xff] %vm183_vm0, %v396_v60 }
  0xfc   : > { %531 = vst.msk [vmem:[%s870_s26 + $0xd0] sm:$0xff] %vm183_vm0, %v476_v61 }
  0xfd   : > { %v700_v62 = vpop.f32.mrb[12].mxu0 }
  0xfe   : > { %v724_v63 = vpop.f32.mrb[12].mxu1  ;;  %518 = vst.msk [vmem:[%s870_s26 + $0x68] sm:$0xff] %vm183_vm0, %v700_v62  ;;  %v406_v0 = vpop.f32.mrb[13].mxu0 }
  0xff   : > { %534 = vst.msk [vmem:[%s870_s26 + $0xe8] sm:$0xff] %vm183_vm0, %v724_v63  ;;  %v486_v1 = vpop.f32.mrb[13].mxu1  ;;  %517 = vst.msk [vmem:[%s870_s26 + $0x60] sm:$0xff] %vm183_vm0, %v406_v0 }
 0x100   : > { %533 = vst.msk [vmem:[%s870_s26 + $0xe0] sm:$0xff] %vm183_vm0, %v486_v1 }
 0x101   : > { %v703_v2 = vpop.f32.mrb[14].mxu0 }
 0x102   : > { %v727_v3 = vpop.f32.mrb[14].mxu1  ;;  %520 = vst.msk [vmem:[%s870_s26 + $0x78] sm:$0xff] %vm183_vm0, %v703_v2  ;;  %v416_v4 = vpop.f32.mrb[15].mxu0 }
 0x103   : > { %536 = vst.msk [vmem:[%s870_s26 + $0xf8] sm:$0xff] %vm183_vm0, %v727_v3  ;;  %v496_v5 = vpop.f32.mrb[15].mxu1  ;;  %519 = vst.msk [vmem:[%s870_s26 + $0x70] sm:$0xff] %vm183_vm0, %v416_v4 }
 0x104   : > { %535 = vst.msk [vmem:[%s870_s26 + $0xf0] sm:$0xff] %vm183_vm0, %v496_v5 }
 0x105 PF: > { %s12_s9 = sadd.s32 1, %s754_s9  }
 0x106   : > { %p9_p4 = scmp.ge.s32.totalorder %s12_s9, 4  }
 0x108   :  { %11 = sbr.rel (!%p9_p4) target bundleno = 1 (0x1), region = 58 }

// kernel: sub.9
= control target key start
LH: loop header
LB: loop body
LE: loop exit
PB: predicated region body
PF: predicated region fallthrough
CT: control target
= control target key end

     0   :  { %3 = vsyncpa [#allocation1], 0  ;;  %s80_s0 = inlined_call_operand.vmem [shape: f32[512], index: 0, kind: input, shape index: {}]   ;;  %s81_s1 = inlined_call_operand.vmem [shape: f32[512], index: 1, kind: input, shape index: {}]   ;;  %s82_s2 = inlined_call_operand.hbm [shape: f32[512], index: 2, kind: output, shape index: {}]  }
   0x1   :  { %v4_v0 = vld [vmem:[%s80_s0] sm:$0xf] }
   0x2   :  { %v5_v1 = vld [vmem:[%s81_s1] sm:$0xf]  ;;  %s46_s1 = smov [#allocation0]  }
   0x3   :  { %v8_v2 = vsub.f32 %v4_v0, %v5_v1  ;;  %s15_s12 = sshll.u32 %s46_s1, 4  ;;  %s16_s12 = int_to_ptr.vmem [resolvable:$true] %s15_s12 }
   0x4   :  { %s22_s13 = scalar_lea.vmem %s16_s12, 64  ;;  %p27_p1 = scmp.lt.s32.totalorder %s16_s12, %s16_s12 }
   0x5   :  { %10 = vst [vmem:[#allocation0] sm:$0xf] %v8_v2  ;;  %p23_p0 = scmp.ne.s32.totalorder %s16_s12, %s22_s13  ;;  %p28_p2 = scmp.lt.s32.totalorder %s22_s13, %s22_s13 }
   0x7   :  { %p29_p3 = por %p28_p2, %p27_p1 }
   0x9   :  { %p30_p4 = pnand %p29_p3, %p23_p0 }
   0xb   :  { %33 = shalt.err (!%p30_p4)
}
   0xc   :  { %s34_s16 = scalar_lea.hbm %s82_s2, 64 }
   0xd   :  { %p35_p5 = scmp.ne.s32.totalorder %s82_s2, %s34_s16  ;;  %p38_p6 = scmp.lt.u32.totalorder %s34_s16, %s82_s2 }
   0xf   :  { %p40_p7 = pnand %p38_p6, %p35_p5 }
  0x11   :  { %43 = shalt.err (!%p40_p7)
}
  0x12   :  { %18 = dma.vmem_to_hbm [thread:$0]  %s16_s12, 64, %s82_s2, [#allocation1]  }
  0x13   :  { %44 = dma.done.wait [#allocation1], 64  }
  0x14   :  { %45 = vsyncadd [#allocation1], 4294967232 }
  0x15   :  { %20 = vsyncpa [#allocation1], 1 }

// kernel: vgae_forward.5
= control target key start
LH: loop header
LB: loop body
LE: loop exit
PB: predicated region body
PF: predicated region fallthrough
CT: control target
= control target key end

     0   :  { %s3795_s27 = smov 0   ;;  %s3797_s28 = smov 0   ;;  %s4613_s0 = inlined_call_operand.vmem [shape: bf16[512,512], index: 0, kind: input, shape index: {}]   ;;  %s4614_s1 = inlined_call_operand.vmem [shape: f32[512,32], index: 1, kind: input, shape index: {}]   ;;  %s4615_s2 = inlined_call_operand.vmem [shape: f32[512,4], index: 2, kind: input, shape index: {}]   ;;  %s4616_s3 = inlined_call_operand.vmem [shape: f32[1,32], index: 3, kind: input, shape index: {}]   ;;  %s4617_s4 = inlined_call_operand.vmem [shape: f32[32,36], index: 4, kind: input, shape index: {}]   ;;  %s4618_s5 = inlined_call_operand.vmem [shape: f32[4,36], index: 5, kind: input, shape index: {}]   ;;  %s4619_s6 = inlined_call_operand.vmem [shape: f32[1,36], index: 6, kind: input, shape index: {}]   ;;  %s4620_s7 = inlined_call_operand.vmem [shape: f32[36,32], index: 7, kind: input, shape index: {}]   ;;  %s4621_s8 = inlined_call_operand.vmem [shape: f32[512,68], index: 8, kind: output, shape index: {}]  }
   0x1   :  { %s3799_s29 = smov 0  }
   0x2 LB: > { %s30_s30 = sadd.s32 1, %s3742_s28  ;;  %p2773_p0 = scmp.ge.s32.totalorder %s3746_s29, 1  ;;  %s3746_s29 = sphi %s3799_s29, %s18_s29   ;;  %s3742_s28 = sphi %s3797_s28, %s4623_s28   ;;  %s3738_s27 = sphi %s3795_s27, %s4622_s27  }
   0x3   : > { %p32_p1 = scmp.ge.s32.totalorder %s30_s30, 2  ;;  %p294_p2 = scmp.lt.s32.totalorder %s3746_s29, 3 }
   0x5   : > { %s4625_s30 = smov (%p32_p1, %s30_s30), 0  ;;  %p295_p3 = pnand %p2773_p0, %p294_p2 }
   0x6   : > { %v417_v0 = vld [vmem:[%s4614_s1 + $0x80] sm:$0xff] (!%p295_p3)  ;;  %v418_v1 = vld [vmem:[%s4614_s1 + $0x88] sm:$0xff] (!%p295_p3)  ;;  %s2774_s15 = sshll.u32 (!%p295_p3), %s3738_s27, 5  ;;  %v419_v5 = vld [vmem:[%s4614_s1 + $0x90] sm:$0xff] (!%p295_p3)  ;;  %vm1572_vm0 = vcmask (!%p295_p3), 1043456   ;;  %vm1475_vm1 = vcmask (!%p295_p3), 31744  }
   0x7   : > { %298 = sbr.rel (%p295_p3) target bundleno = 859 (0x35b), region = 52  ;;  %v401_v2 = vld [vmem:[%s4614_s1] sm:$0xff] (!%p295_p3)  ;;  %v3474_v3 = vpack.c.bf16 (!%p295_p3), %v418_v1, %v417_v0  ;;  %v402_v4 = vld [vmem:[%s4614_s1 + $0x8] sm:$0xff] (!%p295_p3)  ;;  %v420_v6 = vld [vmem:[%s4614_s1 + $0x98] sm:$0xff] (!%p295_p3)  ;;  %p340_p4 = scmp.lt.s32.totalorder (!%p295_p3), %s2774_s15, 63  ;;  %vm366_vm2 = vcmask (!%p295_p3), 261120  }
   0x8   : > { %v3476_v7 = vpack.c.bf16 (!%p295_p3), %v402_v4, %v401_v2  ;;  %v3478_v8 = vpack.c.bf16 (!%p295_p3), %v420_v6, %v419_v5  ;;  %v403_v9 = vld [vmem:[%s4614_s1 + $0x10] sm:$0xff] (!%p295_p3)  ;;  %v404_v10 = vld [vmem:[%s4614_s1 + $0x18] sm:$0xff] (!%p295_p3)  ;;  %v421_v11 = vld [vmem:[%s4614_s1 + $0xa0] sm:$0xff] (!%p295_p3)  ;;  %vm2198_vm3 = vcmask (!%p295_p3), 293888   ;;  %s3749_s14 = smov (!%p295_p3), 32   ;;  %vm2651_vm4 = vcmask (!%p295_p3), 556032  }
   0x9   : > { %3554 = vmatprep.subr.bf16.mxu1 (!%p295_p3), %v3474_v3  ;;  %v422_v12 = vld [vmem:[%s4614_s1 + $0xa8] sm:$0xff] (!%p295_p3)  ;;  %3475 = vmatprep.subr.bf16.mxu0 (!%p295_p3), %v3474_v3  ;;  %v3480_v13 = vpack.c.bf16 (!%p295_p3), %v404_v10, %v403_v9  ;;  %v405_v15 = vld [vmem:[%s4614_s1 + $0x20] sm:$0xff] (!%p295_p3)  ;;  %v423_v17 = vld [vmem:[%s4614_s1 + $0xb0] sm:$0xff] (!%p295_p3) }
   0xa   : > { %3562 = vmatpush3.bf16.msra.mxu1 (!%p295_p3), %v3476_v7  ;;  %3477 = vmatpush3.bf16.msra.mxu0 (!%p295_p3), %v3476_v7  ;;  %v3482_v14 = vpack.c.bf16 (!%p295_p3), %v422_v12, %v421_v11  ;;  %v406_v16 = vld [vmem:[%s4614_s1 + $0x28] sm:$0xff] (!%p295_p3)  ;;  %v424_v18 = vld [vmem:[%s4614_s1 + $0xb8] sm:$0xff] (!%p295_p3)  ;;  %v407_v21 = vld [vmem:[%s4614_s1 + $0x30] sm:$0xff] (!%p295_p3) }
   0xb   : > { %3555 = vmatprep.subr.bf16.mxu1 (!%p295_p3), %v3478_v8  ;;  %3479 = vmatprep.subr.bf16.mxu0 (!%p295_p3), %v3478_v8  ;;  %v3484_v19 = vpack.c.bf16 (!%p295_p3), %v406_v16, %v405_v15  ;;  %v3486_v20 = vpack.c.bf16 (!%p295_p3), %v424_v18, %v423_v17  ;;  %v408_v22 = vld [vmem:[%s4614_s1 + $0x38] sm:$0xff] (!%p295_p3)  ;;  %v425_v23 = vld [vmem:[%s4614_s1 + $0xc0] sm:$0xff] (!%p295_p3)  ;;  %v426_v24 = vld [vmem:[%s4614_s1 + $0xc8] sm:$0xff] (!%p295_p3) }
   0xc   : > { %v3488_v26 = vpack.c.bf16 (!%p295_p3), %v408_v22, %v407_v21  ;;  %v3490_v27 = vpack.c.bf16 (!%p295_p3), %v426_v24, %v425_v23  ;;  %v409_v28 = vld [vmem:[%s4614_s1 + $0x40] sm:$0xff] (!%p295_p3)  ;;  %v410_v29 = vld [vmem:[%s4614_s1 + $0x48] sm:$0xff] (!%p295_p3)  ;;  %v427_v30 = vld [vmem:[%s4614_s1 + $0xd0] sm:$0xff] (!%p295_p3) }
   0xd   : > { %v428_v31 = vld [vmem:[%s4614_s1 + $0xd8] sm:$0xff] (!%p295_p3)  ;;  %v3492_v32 = vpack.c.bf16 (!%p295_p3), %v410_v29, %v409_v28  ;;  %v411_v34 = vld [vmem:[%s4614_s1 + $0x50] sm:$0xff] (!%p295_p3)  ;;  %v429_v36 = vld [vmem:[%s4614_s1 + $0xe0] sm:$0xff] (!%p295_p3) }
   0xe   : > { %s4627_s15 = smov (!%p340_p4, %s2774_s15), 63  ;;  %3563 = vmatpush3.bf16.msra.mxu1 %v3480_v13  ;;  %3481 = vmatpush3.bf16.msra.mxu0 %v3480_v13  ;;  %v3494_v33 = vpack.c.bf16 %v428_v31, %v427_v30  ;;  %v412_v35 = vld [vmem:[%s4614_s1 + $0x58] sm:$0xff]  ;;  %v430_v37 = vld [vmem:[%s4614_s1 + $0xe8] sm:$0xff]  ;;  %v413_v40 = vld [vmem:[%s4614_s1 + $0x60] sm:$0xff] }
   0xf   : > { %s2947_s16 = sshll.u32 %s4627_s15, 4  ;;  %3556 = vmatprep.subr.bf16.mxu1 %v3482_v14  ;;  %3483 = vmatprep.subr.bf16.mxu0 %v3482_v14  ;;  %v3496_v38 = vpack.c.bf16 %v412_v35, %v411_v34  ;;  %v3498_v39 = vpack.c.bf16 %v430_v37, %v429_v36  ;;  %v414_v41 = vld [vmem:[%s4614_s1 + $0x68] sm:$0xff]  ;;  %v431_v42 = vld [vmem:[%s4614_s1 + $0xf0] sm:$0xff]  ;;  %v432_v43 = vld [vmem:[%s4614_s1 + $0xf8] sm:$0xff]  ;;  %s2778_s24 = sshll.u32 %s4627_s15, 3 }
  0x10   : > { %s3861_s23 = scalar_lea.vmem %s4613_s0, %s2947_s16  ;;  %v3500_v44 = vpack.c.bf16 %v414_v41, %v413_v40  ;;  %v3502_v45 = vpack.c.bf16 %v432_v43, %v431_v42  ;;  %v415_v46 = vld [vmem:[%s4614_s1 + $0x70] sm:$0xff]  ;;  %v416_v47 = vld [vmem:[%s4614_s1 + $0x78] sm:$0xff]  ;;  %v449_v48 = vld [vmem:[%s4614_s1 + $0x180] sm:$0xff]  ;;  %s4070_s27 = scalar_lea.vmem %s4615_s2, %s2778_s24 }
  0x11   : > { %v3630_v25 = vld [vmem:[%s3861_s23 + $0x184] ss:$16 sps:$4 sm:$0xff]   ;;  %v450_v49 = vld [vmem:[%s4614_s1 + $0x188] sm:$0xff]  ;;  %v3504_v52 = vpack.c.bf16 %v416_v47, %v415_v46  ;;  %v3628_v54 = vld [vmem:[%s3861_s23 + $0x180] ss:$16 sps:$4 sm:$0xff]  }
  0x12   : > { %3564 = vmatpush3.bf16.msra.mxu1 %v3484_v19  ;;  %3485 = vmatpush3.bf16.msra.mxu0 %v3484_v19  ;;  %v433_v50 = vld [vmem:[%s4614_s1 + $0x100] sm:$0xff]  ;;  %v434_v53 = vld [vmem:[%s4614_s1 + $0x108] sm:$0xff]  ;;  %v3506_v55 = vpack.c.bf16 %v450_v49, %v449_v48  ;;  %v451_v56 = vld [vmem:[%s4614_s1 + $0x190] sm:$0xff] }
  0x13   : > { %3557 = vmatprep.subr.bf16.mxu1 %v3486_v20  ;;  %1041 = vmatprep.mubr.bf16.mxu1 %v3630_v25  ;;  %v3642_v51 = vld [vmem:[%s3861_s23 + $0x4] ss:$16 sps:$4 sm:$0xff]   ;;  %v452_v57 = vld [vmem:[%s4614_s1 + $0x198] sm:$0xff]  ;;  %v3640_v60 = vld [vmem:[%s3861_s23] ss:$16 sps:$4 sm:$0xff]   ;;  %v3508_v61 = vpack.c.bf16 %v434_v53, %v433_v50 }
  0x14   : > { %3487 = vmatprep.subr.bf16.mxu0 %v3486_v20  ;;  %945 = vmatprep.mubr.bf16.mxu0 %v3642_v51  ;;  %v435_v58 = vld [vmem:[%s4614_s1 + $0x110] sm:$0xff]  ;;  %v436_v59 = vld [vmem:[%s4614_s1 + $0x118] sm:$0xff]  ;;  %v3510_v63 = vpack.c.bf16 %v452_v57, %v451_v56  ;;  %v453_v1 = vld [vmem:[%s4614_s1 + $0x1a0] sm:$0xff] }
  0x15   : > { %v3631_v62 = vld [vmem:[%s3861_s23 + $0x1a4] ss:$16 sps:$4 sm:$0xff]   ;;  %v454_v2 = vld [vmem:[%s4614_s1 + $0x1a8] sm:$0xff]  ;;  %v3512_v3 = vpack.c.bf16 %v436_v59, %v435_v58  ;;  %v3633_v6 = vld [vmem:[%s3861_s23 + $0x1a0] ss:$16 sps:$4 sm:$0xff]  }
  0x16   : > { %3565 = vmatpush3.bf16.msra.mxu1 %v3488_v26  ;;  %3489 = vmatpush3.bf16.msra.mxu0 %v3488_v26  ;;  %v3646_v0 = vld [vmem:[%s3861_s23 + $0x24] ss:$16 sps:$4 sm:$0xff]   ;;  %v438_v5 = vld [vmem:[%s4614_s1 + $0x128] sm:$0xff]  ;;  %v3514_v7 = vpack.c.bf16 %v454_v2, %v453_v1  ;;  %v456_v9 = vld [vmem:[%s4614_s1 + $0x1b8] sm:$0xff] }
  0x17   : > { %3558 = vmatprep.subr.bf16.mxu1 %v3490_v27  ;;  %3491 = vmatprep.subr.bf16.mxu0 %v3490_v27  ;;  %v437_v4 = vld [vmem:[%s4614_s1 + $0x120] sm:$0xff]  ;;  %v455_v8 = vld [vmem:[%s4614_s1 + $0x1b0] sm:$0xff]  ;;  %v440_v11 = vld [vmem:[%s4614_s1 + $0x138] sm:$0xff] }
  0x18   : > { %v439_v10 = vld [vmem:[%s4614_s1 + $0x130] sm:$0xff]  ;;  %v3516_v13 = vpack.c.bf16 %v438_v5, %v437_v4  ;;  %v3518_v15 = vpack.c.bf16 %v456_v9, %v455_v8  ;;  %v457_v17 = vld [vmem:[%s4614_s1 + $0x1c0] sm:$0xff]  ;;  %v458_v18 = vld [vmem:[%s4614_s1 + $0x1c8] sm:$0xff] }
  0x19   : > { %v3650_v12 = vld [vmem:[%s3861_s23 + $0x20] ss:$16 sps:$4 sm:$0xff]   ;;  %v3634_v14 = vld [vmem:[%s3861_s23 + $0x1c4] ss:$16 sps:$4 sm:$0xff]   ;;  %v3520_v19 = vpack.c.bf16 %v440_v11, %v439_v10  ;;  %v442_v21 = vld [vmem:[%s4614_s1 + $0x148] sm:$0xff]  ;;  %v3522_v23 = vpack.c.bf16 %v458_v18, %v457_v17 }
  0x1a   : > { %3566 = vmatpush3.bf16.msra.mxu1 %v3492_v32  ;;  %3493 = vmatpush3.bf16.msra.mxu0 %v3492_v32  ;;  %v3652_v16 = vld [vmem:[%s3861_s23 + $0x44] ss:$16 sps:$4 sm:$0xff]   ;;  %v3636_v22 = vld [vmem:[%s3861_s23 + $0x1c0] ss:$16 sps:$4 sm:$0xff]   ;;  %v460_v25 = vld [vmem:[%s4614_s1 + $0x1d8] sm:$0xff] }
  0x1b   : > { %3559 = vmatprep.subr.bf16.mxu1 %v3494_v33  ;;  %3495 = vmatprep.subr.bf16.mxu0 %v3494_v33  ;;  %v441_v20 = vld [vmem:[%s4614_s1 + $0x140] sm:$0xff]  ;;  %v459_v24 = vld [vmem:[%s4614_s1 + $0x1d0] sm:$0xff]  ;;  %v444_v27 = vld [vmem:[%s4614_s1 + $0x158] sm:$0xff] }
  0x1c   : > { %v443_v26 = vld [vmem:[%s4614_s1 + $0x150] sm:$0xff]  ;;  %v3524_v29 = vpack.c.bf16 %v442_v21, %v441_v20  ;;  %v3526_v31 = vpack.c.bf16 %v460_v25, %v459_v24  ;;  %v461_v33 = vld [vmem:[%s4614_s1 + $0x1e0] sm:$0xff]  ;;  %v462_v34 = vld [vmem:[%s4614_s1 + $0x1e8] sm:$0xff] }
  0x1d   : > { %v3656_v28 = vld [vmem:[%s3861_s23 + $0x40] ss:$16 sps:$4 sm:$0xff]   ;;  %v3637_v30 = vld [vmem:[%s3861_s23 + $0x1e4] ss:$16 sps:$4 sm:$0xff]   ;;  %v3528_v35 = vpack.c.bf16 %v444_v27, %v443_v26  ;;  %v446_v37 = vld [vmem:[%s4614_s1 + $0x168] sm:$0xff] }
  0x1e   : > { %3567 = vmatpush3.bf16.msra.mxu1 %v3496_v38  ;;  %3497 = vmatpush3.bf16.msra.mxu0 %v3496_v38  ;;  %v3658_v32 = vld [vmem:[%s3861_s23 + $0x64] ss:$16 sps:$4 sm:$0xff]   ;;  %v3639_v38 = vld [vmem:[%s3861_s23 + $0x1e0] ss:$16 sps:$4 sm:$0xff]   ;;  %v464_v41 = vld [vmem:[%s4614_s1 + $0x1f8] sm:$0xff] }
  0x1f   : > { %3560 = vmatprep.subr.bf16.mxu1 %v3498_v39  ;;  %3499 = vmatprep.subr.bf16.mxu0 %v3498_v39  ;;  %v445_v36 = vld [vmem:[%s4614_s1 + $0x160] sm:$0xff]  ;;  %v3530_v39 = vpack.c.bf16 %v462_v34, %v461_v33  ;;  %v463_v40 = vld [vmem:[%s4614_s1 + $0x1f0] sm:$0xff]  ;;  %v448_v43 = vld [vmem:[%s4614_s1 + $0x178] sm:$0xff] }
  0x20   : > { %v447_v42 = vld [vmem:[%s4614_s1 + $0x170] sm:$0xff]  ;;  %v3645_v46 = vld [vmem:[%s3861_s23 + $0xc] ss:$16 sps:$4 sm:$0xff]   ;;  %v3534_v47 = vpack.c.bf16 %v464_v41, %v463_v40  ;;  %v3643_v50 = vld [vmem:[%s3861_s23 + $0x8] ss:$16 sps:$4 sm:$0xff]  }
  0x21   : > { %v3664_v48 = vld [vmem:[%s3861_s23 + $0x84] ss:$16 sps:$4 sm:$0xff]   ;;  %v3536_v49 = vpack.c.bf16 %v448_v43, %v447_v42  ;;  %v3668_v51 = vld [vmem:[%s3861_s23 + $0x80] ss:$16 sps:$4 sm:$0xff]   ;;  %v3654_v57 = vld [vmem:[%s3861_s23 + $0x4c] ss:$16 sps:$4 sm:$0xff]  }
  0x22   : > { %3568 = vmatpush3.bf16.msra.mxu1 %v3500_v44  ;;  %3501 = vmatpush3.bf16.msra.mxu0 %v3500_v44  ;;  %v3662_v44 = vld [vmem:[%s3861_s23 + $0x60] ss:$16 sps:$4 sm:$0xff]   ;;  %v3670_v53 = vld [vmem:[%s3861_s23 + $0xa4] ss:$16 sps:$4 sm:$0xff]   ;;  %v3657_v59 = vld [vmem:[%s3861_s23 + $0x48] ss:$16 sps:$4 sm:$0xff]  }
  0x23   : > { %3561 = vmatprep.subr.bf16.mxu1 %v3502_v45  ;;  %3503 = vmatprep.subr.bf16.mxu0 %v3502_v45  ;;  %v3532_v45 = vpack.c.bf16 %v446_v37, %v445_v36  ;;  %v3674_v56 = vld [vmem:[%s3861_s23 + $0xa0] ss:$16 sps:$4 sm:$0xff]   ;;  %v3676_v58 = vld [vmem:[%s3861_s23 + $0xc4] ss:$16 sps:$4 sm:$0xff]   ;;  %v3666_v1 = vld [vmem:[%s3861_s23 + $0x8c] ss:$16 sps:$4 sm:$0xff]  }
  0x24   : > { %v3688_v2 = vld [vmem:[%s3861_s23 + $0x104] ss:$16 sps:$4 sm:$0xff]   ;;  %v3692_v4 = vld [vmem:[%s3861_s23 + $0x100] ss:$16 sps:$4 sm:$0xff]   ;;  %v3672_v5 = vld [vmem:[%s3861_s23 + $0xac] ss:$16 sps:$4 sm:$0xff]  }
  0x25   : > { %v3698_v8 = vld [vmem:[%s3861_s23 + $0x120] ss:$16 sps:$4 sm:$0xff]   ;;  %v3678_v9 = vld [vmem:[%s3861_s23 + $0xcc] ss:$16 sps:$4 sm:$0xff]   ;;  %v3700_v10 = vld [vmem:[%s3861_s23 + $0x144] ss:$16 sps:$4 sm:$0xff]  }
  0x26   : > { %3569 = vmatpush3.bf16.msra.mxu1 %v3504_v52  ;;  %3505 = vmatpush3.bf16.msra.mxu0 %v3504_v52  ;;  %v3648_v52 = vld [vmem:[%s3861_s23 + $0x2c] ss:$16 sps:$4 sm:$0xff]   ;;  %v3681_v11 = vld [vmem:[%s3861_s23 + $0xc8] ss:$16 sps:$4 sm:$0xff]   ;;  %v1442_v18 = vld [vmem:[%s4070_s27] sm:$0xff]  ;;  %v3748_v36 = vmov 0.0  }
  0x27   : > { %3507 = vmatprep.subr.bf16.mxu1 %v3506_v55  ;;  %v3651_v55 = vld [vmem:[%s3861_s23 + $0x28] ss:$16 sps:$4 sm:$0xff]   ;;  %v3690_v17 = vld [vmem:[%s3861_s23 + $0x10c] ss:$16 sps:$4 sm:$0xff]   ;;  %v1446_v24 = vld [vmem:[%s4070_s27 + $0x20] sm:$0xff]  ;;  %367 = vst.msk [vmem:[#allocation2] sm:$0xff] %vm366_vm2, %v3748_v36 }
  0x28   : > { %v3696_v20 = vld [vmem:[%s3861_s23 + $0x12c] ss:$16 sps:$4 sm:$0xff]   ;;  %v3699_v25 = vld [vmem:[%s3861_s23 + $0x128] ss:$16 sps:$4 sm:$0xff]   ;;  %v1452_v34 = vld [vmem:[%s4070_s27 + $0x50] sm:$0xff]  ;;  %368 = vst.msk [vmem:[#allocation2 + $0x8] sm:$0xff] %vm366_vm2, %v3748_v36 }
  0x29   : > { %1042 = vmatmul.mubr.bf16.vlgmr.msra.gmra.mrb[0].mxu1 %v3628_v54  ;;  %946 = vmatmul.mubr.bf16.vlgmr.msra.gmra.mrb[0].mxu0 %v3640_v60  ;;  %v1474_v54 = vld [vmem:[%s4618_s5] sm:$0xf]  ;;  %v1443_v21 = vld [vmem:[%s4070_s27 + $0x8] sm:$0xff]  ;;  %369 = vst.msk [vmem:[#allocation2 + $0x10] sm:$0xff] %vm366_vm2, %v3748_v36  ;;  %370 = vst.msk [vmem:[#allocation2 + $0x18] sm:$0xff] %vm366_vm2, %v3748_v36 }
  0x2a   : > { %3509 = vmatpush3.bf16.msra.mxu1 %v3508_v61  ;;  %1049 = vmatprep.mubr.bf16.mxu1 %v3631_v62  ;;  %v3680_v60 = vld [vmem:[%s3861_s23 + $0xc0] ss:$16 sps:$4 sm:$0xff]   ;;  %v3660_v61 = vld [vmem:[%s3861_s23 + $0x6c] ss:$16 sps:$4 sm:$0xff]   ;;  %v3682_v62 = vld [vmem:[%s3861_s23 + $0xe4] ss:$16 sps:$4 sm:$0xff]  }
  0x2b   : > { %3511 = vmatprep.subr.bf16.mxu1 %v3510_v63  ;;  %953 = vmatprep.mubr.bf16.mxu0 %v3646_v0  ;;  %v3663_v63 = vld [vmem:[%s3861_s23 + $0x68] ss:$16 sps:$4 sm:$0xff]   ;;  %v3686_v0 = vld [vmem:[%s3861_s23 + $0xe0] ss:$16 sps:$4 sm:$0xff]   ;;  %v3702_v26 = vld [vmem:[%s3861_s23 + $0x14c] ss:$16 sps:$4 sm:$0xff]  }
  0x2c   : > { %3310 = vmatprep.subr.msk.mxu0 %vm1572_vm0, %v1474_v54  ;;  %v1447_v27 = vld [vmem:[%s4070_s27 + $0x28] sm:$0xff]  ;;  %371 = vst.msk [vmem:[#allocation2 + $0x20] sm:$0xff] %vm366_vm2, %v3748_v36  ;;  %372 = vst.msk [vmem:[#allocation2 + $0x28] sm:$0xff] %vm366_vm2, %v3748_v36  ;;  %v1454_v37 = vld [vmem:[%s4070_s27 + $0x60] sm:$0xff] }
  0x2d   : > { %3311 = vmatpush3.msk.msra.mxu0 %vm1572_vm0, %v1474_v54  ;;  %v1451_v33 = vld [vmem:[%s4070_s27 + $0x48] sm:$0xff]  ;;  %373 = vst.msk [vmem:[#allocation2 + $0x30] sm:$0xff] %vm366_vm2, %v3748_v36  ;;  %374 = vst.msk [vmem:[#allocation2 + $0x38] sm:$0xff] %vm366_vm2, %v3748_v36  ;;  %v1456_v41 = vld [vmem:[%s4070_s27 + $0x70] sm:$0xff] }
  0x2e   : > { %3513 = vmatpush3.bf16.msra.mxu1 %v3512_v3  ;;  %v3669_v3 = vld [vmem:[%s3861_s23 + $0x88] ss:$16 sps:$4 sm:$0xff]   ;;  %375 = vst.msk [vmem:[#allocation2 + $0x40] sm:$0xff] %vm366_vm2, %v3748_v36  ;;  %376 = vst.msk [vmem:[#allocation2 + $0x48] sm:$0xff] %vm366_vm2, %v3748_v36  ;;  %v1458_v43 = vld [vmem:[%s4070_s27 + $0x80] sm:$0xff] }
  0x2f   : > { %3515 = vmatprep.subr.bf16.mxu1 %v3514_v7  ;;  %v3675_v7 = vld [vmem:[%s3861_s23 + $0xa8] ss:$16 sps:$4 sm:$0xff]   ;;  %377 = vst.msk [vmem:[#allocation2 + $0x50] sm:$0xff] %vm366_vm2, %v3748_v36  ;;  %378 = vst.msk [vmem:[#allocation2 + $0x58] sm:$0xff] %vm366_vm2, %v3748_v36 }
  0x30   : > { %379 = vst.msk [vmem:[#allocation2 + $0x60] sm:$0xff] %vm366_vm2, %v3748_v36  ;;  %380 = vst.msk [vmem:[#allocation2 + $0x68] sm:$0xff] %vm366_vm2, %v3748_v36  ;;  %v1455_v40 = vld [vmem:[%s4070_s27 + $0x68] sm:$0xff]  ;;  %v1457_v42 = vld [vmem:[%s4070_s27 + $0x78] sm:$0xff] }
  0x31   : > { %1050 = vmatmul.mubr.bf16.gmra.mrb[4].mxu1 %v3633_v6  ;;  %954 = vmatmul.mubr.bf16.gmra.mrb[4].mxu0 %v3650_v12  ;;  %v3694_v6 = vld [vmem:[%s3861_s23 + $0x124] ss:$16 sps:$4 sm:$0xff]   ;;  %v3704_v12 = vld [vmem:[%s3861_s23 + $0x140] ss:$16 sps:$4 sm:$0xff]   ;;  %381 = vst.msk [vmem:[#allocation2 + $0x70] sm:$0xff] %vm366_vm2, %v3748_v36  ;;  %382 = vst.msk [vmem:[#allocation2 + $0x78] sm:$0xff] %vm366_vm2, %v3748_v36 }
  0x32   : > { %3517 = vmatpush3.bf16.msra.mxu1 %v3516_v13  ;;  %1057 = vmatprep.mubr.bf16.mxu1 %v3634_v14  ;;  %v3684_v13 = vld [vmem:[%s3861_s23 + $0xec] ss:$16 sps:$4 sm:$0xff]   ;;  %v3706_v14 = vld [vmem:[%s3861_s23 + $0x164] ss:$16 sps:$4 sm:$0xff]   ;;  %383 = vst.msk [vmem:[#allocation2 + $0x80] sm:$0xff] %vm366_vm2, %v3748_v36  ;;  %384 = vst.msk [vmem:[#allocation2 + $0x88] sm:$0xff] %vm366_vm2, %v3748_v36 }
  0x33   : > { %3519 = vmatprep.subr.bf16.mxu1 %v3518_v15  ;;  %961 = vmatprep.mubr.bf16.mxu0 %v3652_v16  ;;  %v3687_v15 = vld [vmem:[%s3861_s23 + $0xe8] ss:$16 sps:$4 sm:$0xff]   ;;  %v3710_v16 = vld [vmem:[%s3861_s23 + $0x160] ss:$16 sps:$4 sm:$0xff]   ;;  %385 = vst.msk [vmem:[#allocation2 + $0x90] sm:$0xff] %vm366_vm2, %v3748_v36  ;;  %386 = vst.msk [vmem:[#allocation2 + $0x98] sm:$0xff] %vm366_vm2, %v3748_v36 }
  0x34   : > { %387 = vst.msk [vmem:[#allocation2 + $0xa0] sm:$0xff] %vm366_vm2, %v3748_v36  ;;  %388 = vst.msk [vmem:[#allocation2 + $0xa8] sm:$0xff] %vm366_vm2, %v3748_v36  ;;  %v1441_v54 = vld [vmem:[%s4617_s4 + $0x18] sm:$0xff] }
  0x35   : > { %389 = vst.msk [vmem:[#allocation2 + $0xb0] sm:$0xff] %vm366_vm2, %v3748_v36  ;;  %390 = vst.msk [vmem:[#allocation2 + $0xb8] sm:$0xff] %vm366_vm2, %v3748_v36 }
  0x36   : > { %3521 = vmatpush3.bf16.msra.mxu1 %v3520_v19  ;;  %v3693_v19 = vld [vmem:[%s3861_s23 + $0x108] ss:$16 sps:$4 sm:$0xff]   ;;  %391 = vst.msk [vmem:[#allocation2 + $0xc0] sm:$0xff] %vm366_vm2, %v3748_v36  ;;  %392 = vst.msk [vmem:[#allocation2 + $0xc8] sm:$0xff] %vm366_vm2, %v3748_v36 }
  0x37   : > { %3523 = vmatprep.subr.bf16.mxu1 %v3522_v23  ;;  %v1445_v23 = vld [vmem:[%s4070_s27 + $0x18] sm:$0xff]  ;;  %393 = vst.msk [vmem:[#allocation2 + $0xd0] sm:$0xff] %vm366_vm2, %v3748_v36  ;;  %394 = vst.msk [vmem:[#allocation2 + $0xd8] sm:$0xff] %vm366_vm2, %v3748_v36 }
  0x38   : > { %395 = vst.msk [vmem:[#allocation2 + $0xe0] sm:$0xff] %vm366_vm2, %v3748_v36  ;;  %396 = vst.msk [vmem:[#allocation2 + $0xe8] sm:$0xff] %vm366_vm2, %v3748_v36 }
  0x39   : > { %1058 = vmatmul.mubr.bf16.gmra.mrb[8].mxu1 %v3636_v22  ;;  %962 = vmatmul.mubr.bf16.gmra.mrb[8].mxu0 %v3656_v28  ;;  %v1444_v22 = vld [vmem:[%s4070_s27 + $0x10] sm:$0xff]  ;;  %397 = vst.msk [vmem:[#allocation2 + $0xf0] sm:$0xff] %vm366_vm2, %v3748_v36  ;;  %398 = vst.msk [vmem:[#allocation2 + $0xf8] sm:$0xff] %vm366_vm2, %v3748_v36 }
  0x3a   : > { %3525 = vmatpush3.bf16.msra.mxu1 %v3524_v29  ;;  %1065 = vmatprep.mubr.bf16.mxu1 %v3637_v30  ;;  %v1448_v28 = vld [vmem:[%s4070_s27 + $0x30] sm:$0xff]  ;;  %v1449_v29 = vld [vmem:[%s4070_s27 + $0x38] sm:$0xff]  ;;  %v1450_v30 = vld [vmem:[%s4070_s27 + $0x40] sm:$0xff] }
  0x3b   : > { %3527 = vmatprep.subr.bf16.mxu1 %v3526_v31  ;;  %969 = vmatprep.mubr.bf16.mxu0 %v3658_v32  ;;  %v3705_v31 = vld [vmem:[%s3861_s23 + $0x148] ss:$16 sps:$4 sm:$0xff]   ;;  %v3708_v32 = vld [vmem:[%s3861_s23 + $0x16c] ss:$16 sps:$4 sm:$0xff]  }
  0x3e   : > { %3529 = vmatpush3.bf16.msra.mxu1 %v3528_v35  ;;  %v1453_v35 = vld [vmem:[%s4070_s27 + $0x58] sm:$0xff] }
  0x3f   : > { %3531 = vmatprep.subr.bf16.mxu1 %v3530_v39  ;;  %v3712_v39 = vld [vmem:[%s3861_s23 + $0x18c] ss:$16 sps:$4 sm:$0xff]  }
  0x41   : > { %1066 = vmatmul.mubr.bf16.gmra.mrb[12].mxu1 %v3639_v38  ;;  %970 = vmatmul.mubr.bf16.gmra.mrb[12].mxu0 %v3662_v44  ;;  %v3711_v38 = vld [vmem:[%s3861_s23 + $0x168] ss:$16 sps:$4 sm:$0xff]  }
  0x42   : > { %3533 = vmatpush3.bf16.msra.mxu1 %v3532_v45  ;;  %1138 = vmatprep.mubr.bf16.mxu1 %v3645_v46  ;;  %v3714_v44 = vld [vmem:[%s3861_s23 + $0x188] ss:$16 sps:$4 sm:$0xff]   ;;  %v3715_v45 = vld [vmem:[%s3861_s23 + $0x1ac] ss:$16 sps:$4 sm:$0xff]  }
  0x43   : > { %3535 = vmatprep.subr.bf16.mxu1 %v3534_v47  ;;  %977 = vmatprep.mubr.bf16.mxu0 %v3664_v48  ;;  %v1459_v46 = vld [vmem:[%s4070_s27 + $0x88] sm:$0xff]  ;;  %v1460_v47 = vld [vmem:[%s4070_s27 + $0x90] sm:$0xff]  ;;  %v1438_v48 = vld [vmem:[%s4617_s4] sm:$0xff] }
  0x46   : > { %3537 = vmatpush3.bf16.msra.mxu1 %v3536_v49  ;;  %v1439_v49 = vld [vmem:[%s4617_s4 + $0x8] sm:$0xff] }
  0x49   : > { %1139 = vmatmul.mubr.bf16.vlgmr.msra.gmra.mrb[16].mxu1 %v3643_v50  ;;  %978 = vmatmul.mubr.bf16.gmra.mrb[16].mxu0 %v3668_v51  ;;  %v3538_v50 = vpack.c.bf16 %v1439_v49, %v1438_v48  ;;  %v1461_v51 = vld [vmem:[%s4070_s27 + $0x98] sm:$0xff] }
  0x4a   : > { %1146 = vmatprep.mubr.bf16.mxu1 %v3648_v52  ;;  %985 = vmatprep.mubr.bf16.mxu0 %v3670_v53  ;;  %v1462_v52 = vld [vmem:[%s4070_s27 + $0xa0] sm:$0xff]  ;;  %v1440_v53 = vld [vmem:[%s4617_s4 + $0x10] sm:$0xff] }
  0x4b   : > { %3539 = vmatprep.subr.bf16.mxu0 %v3538_v50 }
  0x51   : > { %1147 = vmatmul.mubr.bf16.gmra.mrb[20].mxu1 %v3651_v55  ;;  %986 = vmatmul.mubr.bf16.gmra.mrb[20].mxu0 %v3674_v56  ;;  %v3542_v55 = vpack.c.bf16 %v1441_v54, %v1440_v53  ;;  %v3717_v56 = vld [vmem:[%s3861_s23 + $0x1a8] ss:$16 sps:$4 sm:$0xff]  }
  0x52   : > { %1154 = vmatprep.mubr.bf16.mxu1 %v3654_v57  ;;  %993 = vmatprep.mubr.bf16.mxu0 %v3676_v58  ;;  %v3718_v57 = vld [vmem:[%s3861_s23 + $0x1cc] ss:$16 sps:$4 sm:$0xff]  }
  0x53   : > { %v1463_v58 = vld [vmem:[%s4070_s27 + $0xa8] sm:$0xff] }
  0x59   : > { %1155 = vmatmul.mubr.bf16.gmra.mrb[24].mxu1 %v3657_v59  ;;  %994 = vmatmul.mubr.bf16.gmra.mrb[24].mxu0 %v3680_v60  ;;  %v1464_v59 = vld [vmem:[%s4070_s27 + $0xb0] sm:$0xff]  ;;  %v1465_v60 = vld [vmem:[%s4070_s27 + $0xb8] sm:$0xff] }
  0x5a   : > { %1162 = vmatprep.mubr.bf16.mxu1 %v3660_v61  ;;  %1001 = vmatprep.mubr.bf16.mxu0 %v3682_v62  ;;  %v1466_v61 = vld [vmem:[%s4070_s27 + $0xc0] sm:$0xff]  ;;  %v3720_v62 = vld [vmem:[%s3861_s23 + $0x1c8] ss:$16 sps:$4 sm:$0xff]  }
  0x61   : > { %1163 = vmatmul.mubr.bf16.gmra.mrb[28].mxu1 %v3663_v63  ;;  %1002 = vmatmul.mubr.bf16.gmra.mrb[28].mxu0 %v3686_v0  ;;  %v3721_v63 = vld [vmem:[%s3861_s23 + $0x1ec] ss:$16 sps:$4 sm:$0xff]  }
  0x62   : > { %1170 = vmatprep.mubr.bf16.mxu1 %v3666_v1  ;;  %1009 = vmatprep.mubr.bf16.mxu0 %v3688_v2  ;;  %v1467_v0 = vld [vmem:[%s4070_s27 + $0xc8] sm:$0xff]  ;;  %v1468_v1 = vld [vmem:[%s4070_s27 + $0xd0] sm:$0xff]  ;;  %v1469_v2 = vld [vmem:[%s4070_s27 + $0xd8] sm:$0xff] }
  0x69   : > { %1171 = vmatmul.mubr.bf16.gmra.mrb[32].mxu1 %v3669_v3  ;;  %1010 = vmatmul.mubr.bf16.gmra.mrb[32].mxu0 %v3692_v4  ;;  %v1470_v3 = vld [vmem:[%s4070_s27 + $0xe0] sm:$0xff]  ;;  %v3723_v4 = vld [vmem:[%s3861_s23 + $0x1e8] ss:$16 sps:$4 sm:$0xff]   ;;  %s4506_s23 = scalar_lea.vmem %s4621_s8, %s2778_s24 }
  0x6a   : > { %1178 = vmatprep.mubr.bf16.mxu1 %v3672_v5  ;;  %1017 = vmatprep.mubr.bf16.mxu0 %v3694_v6  ;;  %v1471_v5 = vld [vmem:[%s4070_s27 + $0xe8] sm:$0xff]  ;;  %v1472_v6 = vld [vmem:[%s4070_s27 + $0xf0] sm:$0xff] }
  0x71   : > { %1179 = vmatmul.mubr.bf16.gmra.mrb[36].mxu1 %v3675_v7  ;;  %1018 = vmatmul.mubr.bf16.gmra.mrb[36].mxu0 %v3698_v8  ;;  %v1473_v7 = vld [vmem:[%s4070_s27 + $0xf8] sm:$0xff] }
  0x72   : > { %1186 = vmatprep.mubr.bf16.mxu1 %v3678_v9  ;;  %1025 = vmatprep.mubr.bf16.mxu0 %v3700_v10 }
  0x79   : > { %1187 = vmatmul.mubr.bf16.gmra.mrb[40].mxu1 %v3681_v11  ;;  %1026 = vmatmul.mubr.bf16.gmra.mrb[40].mxu0 %v3704_v12 }
  0x7a   : > { %1194 = vmatprep.mubr.bf16.mxu1 %v3684_v13  ;;  %1033 = vmatprep.mubr.bf16.mxu0 %v3706_v14 }
  0x81   : > { %1195 = vmatmul.mubr.bf16.gmra.mrb[44].mxu1 %v3687_v15  ;;  %1034 = vmatmul.mubr.bf16.gmra.mrb[44].mxu0 %v3710_v16 }
  0x82   : > { %1202 = vmatprep.mubr.bf16.mxu1 %v3690_v17  ;;  %3312 = vmatprep.mubr.msk.f32.mxu0 %vm1475_vm1, %v1442_v18 }
  0x89   : > { %1203 = vmatmul.mubr.bf16.gmra.mrb[48].mxu1 %v3693_v19  ;;  %3313 = vmatmul.mubr.msk.f32.vlgmr.msra.gmra.mrb[48].mxu0 %vm1475_vm1, %v1443_v21 }
  0x8a   : > { %1210 = vmatprep.mubr.bf16.mxu1 %v3696_v20  ;;  %3315 = vmatprep.mubr.msk.f32.mxu0 %vm1475_vm1, %v1444_v22 }
  0x8b   : > { %3541 = vmatpush3.bf16.msra.mxu0 %v3538_v50 }
  0x8c   : > { %3543 = vmatprep.subr.bf16.mxu0 %v3542_v55 }
  0x8d   : > { %3316 = vmatmul.mubr.msk.f32.gmra.mrb[50].mxu0 %vm1475_vm1, %v1445_v23 }
  0x8e   : > { %3318 = vmatprep.mubr.msk.f32.mxu0 %vm1475_vm1, %v1446_v24 }
  0x8f   : > { %3545 = vmatpush3.bf16.msra.mxu0 %v3542_v55 }
  0x91   : > { %1211 = vmatmul.mubr.bf16.gmra.mrb[52].mxu1 %v3699_v25  ;;  %3319 = vmatmul.mubr.msk.f32.gmra.mrb[52].mxu0 %vm1475_vm1, %v1447_v27 }
  0x92   : > { %1218 = vmatprep.mubr.bf16.mxu1 %v3702_v26  ;;  %3321 = vmatprep.mubr.msk.f32.mxu0 %vm1475_vm1, %v1448_v28 }
  0x95   : > { %3322 = vmatmul.mubr.msk.f32.gmra.mrb[54].mxu0 %vm1475_vm1, %v1449_v29 }
  0x96   : > { %3324 = vmatprep.mubr.msk.f32.mxu0 %vm1475_vm1, %v1450_v30 }
  0x99   : > { %1219 = vmatmul.mubr.bf16.gmra.mrb[56].mxu1 %v3705_v31  ;;  %3325 = vmatmul.mubr.msk.f32.gmra.mrb[56].mxu0 %vm1475_vm1, %v1451_v33 }
  0x9a   : > { %1226 = vmatprep.mubr.bf16.mxu1 %v3708_v32  ;;  %3327 = vmatprep.mubr.msk.f32.mxu0 %vm1475_vm1, %v1452_v34 }
  0x9d   : > { %3328 = vmatmul.mubr.msk.f32.gmra.mrb[58].mxu0 %vm1475_vm1, %v1453_v35 }
  0x9e   : > { %3330 = vmatprep.mubr.msk.f32.mxu0 %vm1475_vm1, %v1454_v37 }
  0xa1   : > { %1227 = vmatmul.mubr.bf16.gmra.mrb[60].mxu1 %v3711_v38  ;;  %3331 = vmatmul.mubr.msk.f32.gmra.mrb[60].mxu0 %vm1475_vm1, %v1455_v40 }
  0xa2   : > { %1234 = vmatprep.mubr.bf16.mxu1 %v3712_v39  ;;  %3333 = vmatprep.mubr.msk.f32.mxu0 %vm1475_vm1, %v1456_v41 }
  0xa5   : > { %3334 = vmatmul.mubr.msk.f32.gmra.mrb[62].mxu0 %vm1475_vm1, %v1457_v42 }
  0xa6   : > { %3336 = vmatprep.mubr.msk.f32.mxu0 %vm1475_vm1, %v1458_v43 }
  0xa9   : > { %1235 = vmatmul.mubr.bf16.gmra.mrb[64].mxu1 %v3714_v44  ;;  %3337 = vmatmul.mubr.msk.f32.gmra.mrb[64].mxu0 %vm1475_vm1, %v1459_v46 }
  0xaa   : > { %1242 = vmatprep.mubr.bf16.mxu1 %v3715_v45  ;;  %3339 = vmatprep.mubr.msk.f32.mxu0 %vm1475_vm1, %v1460_v47 }
  0xad   : > { %3340 = vmatmul.mubr.msk.f32.gmra.mrb[66].mxu0 %vm1475_vm1, %v1461_v51 }
  0xae   : > { %3342 = vmatprep.mubr.msk.f32.mxu0 %vm1475_vm1, %v1462_v52 }
  0xb1   : > { %1243 = vmatmul.mubr.bf16.gmra.mrb[68].mxu1 %v3717_v56  ;;  %3343 = vmatmul.mubr.msk.f32.gmra.mrb[68].mxu0 %vm1475_vm1, %v1463_v58 }
  0xb2   : > { %1250 = vmatprep.mubr.bf16.mxu1 %v3718_v57  ;;  %3345 = vmatprep.mubr.msk.f32.mxu0 %vm1475_vm1, %v1464_v59 }
  0xb5   : > { %3346 = vmatmul.mubr.msk.f32.gmra.mrb[70].mxu0 %vm1475_vm1, %v1465_v60 }
  0xb6   : > { %3348 = vmatprep.mubr.msk.f32.mxu0 %vm1475_vm1, %v1466_v61 }
  0xb9   : > { %1251 = vmatmul.mubr.bf16.gmra.mrb[72].mxu1 %v3720_v62  ;;  %3349 = vmatmul.mubr.msk.f32.gmra.mrb[72].mxu0 %vm1475_vm1, %v1467_v0  ;;  %v465_v0 = vld [vmem:[#allocation2] sm:$0xff] }
  0xba   : > { %1258 = vmatprep.mubr.bf16.mxu1 %v3721_v63  ;;  %3351 = vmatprep.mubr.msk.f32.mxu0 %vm1475_vm1, %v1468_v1 }
  0xbd   : > { %3352 = vmatmul.mubr.msk.f32.gmra.mrb[74].mxu0 %vm1475_vm1, %v1469_v2 }
  0xbe   : > { %3354 = vmatprep.mubr.msk.f32.mxu0 %vm1475_vm1, %v1470_v3 }
  0xc1   : > { %1259 = vmatmul.mubr.bf16.gmra.mrb[76].mxu1 %v3723_v4  ;;  %3355 = vmatmul.mubr.msk.f32.gmra.mrb[76].mxu0 %vm1475_vm1, %v1471_v5 }
  0xc2   : > { %3357 = vmatprep.mubr.msk.f32.mxu0 %vm1475_vm1, %v1472_v6  ;;  %v466_v6 = vld [vmem:[#allocation2 + $0x8] sm:$0xff] }
  0xc5   : > { %3358 = vmatmul.mubr.msk.f32.gmra.mrb[78].mxu0 %vm1475_vm1, %v1473_v7 }
  0xfc   : > { %v3052_v8 = vpop.f32.mrb[0].mxu1  ;;  %v2980_v9 = vpop.f32.mrb[0].mxu0 }
  0xfd   : > { %v3053_v10 = vpop.f32.mrb[1].mxu1  ;;  %v2981_v11 = vpop.f32.mrb[1].mxu0 }
  0xfe   : > { %v4198_v12 = vadd.f32 %v3053_v10, %v3052_v8  ;;  %v3055_v13 = vpop.f32.mrb[2].mxu1  ;;  %v2982_v14 = vadd.f32 %v2981_v11, %v2980_v9  ;;  %v2983_v15 = vpop.f32.mrb[2].mxu0 }
  0xff   : > { %v3056_v16 = vpop.f32.mrb[3].mxu1  ;;  %v2984_v17 = vpop.f32.mrb[3].mxu0 }
 0x100   : > { %v4200_v18 = vadd.f32 %v3056_v16, %v3055_v13  ;;  %v2985_v19 = vadd.f32 %v2984_v17, %v2983_v15 }
 0x104   : > { %v3058_v20 = vpop.f32.mrb[4].mxu1  ;;  %v2986_v21 = vpop.f32.mrb[4].mxu0 }
 0x105   : > { %v3059_v22 = vpop.f32.mrb[5].mxu1  ;;  %v2987_v23 = vpop.f32.mrb[5].mxu0 }
 0x106   : > { %v4202_v24 = vadd.f32 %v3059_v22, %v3058_v20  ;;  %v3061_v25 = vpop.f32.mrb[6].mxu1  ;;  %v2988_v26 = vadd.f32 %v2987_v23, %v2986_v21  ;;  %v2989_v27 = vpop.f32.mrb[6].mxu0  ;;  %v467_v21 = vld [vmem:[#allocation2 + $0x10] sm:$0xff] }
 0x107   : > { %v3062_v28 = vpop.f32.mrb[7].mxu1  ;;  %v2990_v29 = vpop.f32.mrb[7].mxu0 }
 0x108   : > { %v4204_v30 = vadd.f32 %v3062_v28, %v3061_v25  ;;  %v2991_v31 = vadd.f32 %v2990_v29, %v2989_v27  ;;  %v468_v28 = vld [vmem:[#allocation2 + $0x18] sm:$0xff]  ;;  %v4235_v29 = vld [vmem:[%s4616_s3] ss:$0 sm:$0xff] }
 0x10c   : > { %v3064_v32 = vpop.f32.mrb[8].mxu1  ;;  %v2992_v33 = vpop.f32.mrb[8].mxu0 }
 0x10d   : > { %v3065_v34 = vpop.f32.mrb[9].mxu1  ;;  %v2993_v35 = vpop.f32.mrb[9].mxu0 }
 0x10e   : > { %v4206_v36 = vadd.f32 %v3065_v34, %v3064_v32  ;;  %v3067_v37 = vpop.f32.mrb[10].mxu1  ;;  %v4208_v38 = vadd.f32 %v2993_v35, %v2992_v33  ;;  %v2995_v39 = vpop.f32.mrb[10].mxu0  ;;  %v2193_v34 = vld [vmem:[%s4620_s7] sm:$0xff]  ;;  %v2194_v35 = vld [vmem:[%s4620_s7 + $0x8] sm:$0xff] }
 0x10f   : > { %v3068_v40 = vpop.f32.mrb[11].mxu1  ;;  %v2996_v41 = vpop.f32.mrb[11].mxu0 }
 0x110   : > { %v4210_v42 = vadd.f32 %v3068_v40, %v3067_v37  ;;  %v4212_v43 = vadd.f32 %v2996_v41, %v2995_v39  ;;  %v3546_v39 = vpack.c.bf16 %v2194_v35, %v2193_v34  ;;  %v2196_v40 = vld [vmem:[%s4620_s7 + $0x18] sm:$0xff] }
 0x112   : > { %3547 = vmatprep.subr.bf16.mxu1 %v3546_v39 }
 0x113   : > { %3549 = vmatpush3.bf16.msra.mxu1 %v3546_v39 }
 0x114   : > { %v3070_v44 = vpop.f32.mrb[12].mxu1  ;;  %v2998_v45 = vpop.f32.mrb[12].mxu0 }
 0x115   : > { %v3071_v46 = vpop.f32.mrb[13].mxu1  ;;  %v2999_v47 = vpop.f32.mrb[13].mxu0 }
 0x116   : > { %v4214_v48 = vadd.f32 %v3071_v46, %v3070_v44  ;;  %v3073_v49 = vpop.f32.mrb[14].mxu1  ;;  %v4216_v50 = vadd.f32 %v2999_v47, %v2998_v45  ;;  %v3001_v51 = vpop.f32.mrb[14].mxu0 }
 0x117   : > { %v3074_v52 = vpop.f32.mrb[15].mxu1  ;;  %v3002_v53 = vpop.f32.mrb[15].mxu0 }
 0x118   : > { %v4218_v54 = vadd.f32 %v3074_v52, %v3073_v49  ;;  %v4220_v55 = vadd.f32 %v3002_v53, %v3001_v51 }
 0x11c   : > { %v3108_v56 = vpop.f32.mrb[16].mxu1  ;;  %v3004_v57 = vpop.f32.mrb[16].mxu0 }
 0x11d   : > { %v3109_v58 = vpop.f32.mrb[17].mxu1  ;;  %v3005_v59 = vpop.f32.mrb[17].mxu0 }
 0x11e   : > { %v3110_v60 = vadd.f32 %v3109_v58, %v3108_v56  ;;  %v3111_v61 = vpop.f32.mrb[18].mxu1  ;;  %v4222_v62 = vadd.f32 %v3005_v59, %v3004_v57  ;;  %v3007_v63 = vpop.f32.mrb[18].mxu0 }
 0x11f   : > { %v3112_v1 = vpop.f32.mrb[19].mxu1  ;;  %v3008_v2 = vpop.f32.mrb[19].mxu0 }
 0x120   : > { %v1141_v3 = vadd.f32 %v3110_v60, %v2982_v14  ;;  %v3113_v4 = vadd.f32 %v3112_v1, %v3111_v61  ;;  %v4224_v5 = vadd.f32 %v3008_v2, %v3007_v63  ;;  %v469_v60 = vld [vmem:[#allocation2 + $0x20] sm:$0xff] }
 0x122   : > { %v1267_v7 = vadd.f32 %v1141_v3, %v465_v0  ;;  %v1144_v8 = vadd.f32 %v3113_v4, %v2985_v19  ;;  %v470_v4 = vld [vmem:[#allocation2 + $0x28] sm:$0xff] }
 0x124   : > { %1300 = vst.msk [vmem:[#allocation2] sm:$0xff] %vm366_vm2, %v1267_v7  ;;  %v1268_v9 = vadd.f32 %v1144_v8, %v466_v6  ;;  %v3114_v10 = vpop.f32.mrb[20].mxu1  ;;  %v3010_v11 = vpop.f32.mrb[20].mxu0 }
 0x125   : > { %v3115_v13 = vpop.f32.mrb[21].mxu1  ;;  %v3011_v15 = vpop.f32.mrb[21].mxu0 }
 0x126   : > { %1301 = vst.msk [vmem:[#allocation2 + $0x8] sm:$0xff] %vm366_vm2, %v1268_v9  ;;  %v3116_v16 = vadd.f32 %v3115_v13, %v3114_v10  ;;  %v3117_v17 = vpop.f32.mrb[22].mxu1  ;;  %v4228_v20 = vadd.f32 %v3011_v15, %v3010_v11  ;;  %v3013_v14 = vpop.f32.mrb[22].mxu0 }
 0x127   : > { %v3118_v22 = vpop.f32.mrb[23].mxu1  ;;  %v3014_v23 = vpop.f32.mrb[23].mxu0 }
 0x128   : > { %v1149_v25 = vadd.f32 %v3116_v16, %v2988_v26  ;;  %v3119_v27 = vadd.f32 %v3118_v22, %v3117_v17  ;;  %v4230_v19 = vadd.f32 %v3014_v23, %v3013_v14  ;;  %v2195_v26 = vld [vmem:[%s4620_s7 + $0x10] sm:$0xff] }
 0x129   : > { %v3550_v46 = vpack.c.bf16 %v2196_v40, %v2195_v26  ;;  %v472_v26 = vld [vmem:[#allocation2 + $0x38] sm:$0xff] }
 0x12a   : > { %v1269_v32 = vadd.f32 %v1149_v25, %v467_v21  ;;  %v1152_v33 = vadd.f32 %v3119_v27, %v2991_v31  ;;  %v471_v25 = vld [vmem:[#allocation2 + $0x30] sm:$0xff] }
 0x12b   : > { %v1335_v37 = vld [vmem:[#allocation2] sm:$0xff]  ;;  %3551 = vmatprep.subr.bf16.mxu1 %v3550_v46 }
 0x12c   : > { %1302 = vst.msk [vmem:[#allocation2 + $0x10] sm:$0xff] %vm366_vm2, %v1269_v32  ;;  %v1270_v31 = vadd.f32 %v1152_v33, %v468_v28  ;;  %v3120_v41 = vpop.f32.mrb[24].mxu1  ;;  %v1374_v44 = vadd.f32 %v4235_v29, %v1335_v37  ;;  %v3016_v45 = vpop.f32.mrb[24].mxu0  ;;  %3553 = vmatpush3.bf16.msra.mxu1 %v3550_v46 }
 0x12d   : > { %v3121_v47 = vpop.f32.mrb[25].mxu1  ;;  %v1336_v49 = vld [vmem:[#allocation2 + $0x8] sm:$0xff]  ;;  %v3017_v51 = vpop.f32.mrb[25].mxu0 }
 0x12e   : > { %1303 = vst.msk [vmem:[#allocation2 + $0x18] sm:$0xff] %vm366_vm2, %v1270_v31  ;;  %v3122_v52 = vadd.f32 %v3121_v47, %v3120_v41  ;;  %v3123_v53 = vpop.f32.mrb[26].mxu1  ;;  %v1406_v56 = vmax.f32 %v1374_v44, 0.0  ;;  %v1375_v57 = vadd.f32 %v4235_v29, %v1336_v49  ;;  %v4253_v58 = vadd.f32 %v3017_v51, %v3016_v45  ;;  %v3019_v59 = vpop.f32.mrb[26].mxu0 }
 0x12f   : > { %v3124_v61 = vpop.f32.mrb[27].mxu1  ;;  %v3020_v63 = vpop.f32.mrb[27].mxu0 }
 0x130   : > { %v1157_v0 = vadd.f32 %v3122_v52, %v4208_v38  ;;  %v3125_v1 = vadd.f32 %v3124_v61, %v3123_v53  ;;  %3368 = vmatprep.mubr.msk.f32.mxu0 %vm366_vm2, %v1406_v56  ;;  %v1407_v2 = vmax.f32 %v1375_v57, 0.0  ;;  %v4257_v3 = vadd.f32 %v3020_v63, %v3019_v59  ;;  %v473_v57 = vld [vmem:[#allocation2 + $0x40] sm:$0xff] }
 0x132   : > { %v1271_v6 = vadd.f32 %v1157_v0, %v469_v60  ;;  %v1160_v7 = vadd.f32 %v3125_v1, %v4212_v43  ;;  %3369 = vmatmul.mubr.msk.f32.vlgmr.msra.gmra.mrb[48].mxu0 %vm366_vm2, %v1407_v2  ;;  %v474_v2 = vld [vmem:[#allocation2 + $0x48] sm:$0xff] }
 0x133   : > { %v1337_v8 = vld [vmem:[#allocation2 + $0x10] sm:$0xff] }
 0x134   : > { %1304 = vst.msk [vmem:[#allocation2 + $0x20] sm:$0xff] %vm366_vm2, %v1271_v6  ;;  %v1272_v9 = vadd.f32 %v1160_v7, %v470_v4  ;;  %v3126_v10 = vpop.f32.mrb[28].mxu1  ;;  %v1376_v38 = vadd.f32 %v4235_v29, %v1337_v8  ;;  %v3022_v11 = vpop.f32.mrb[28].mxu0 }
 0x135   : > { %v3127_v13 = vpop.f32.mrb[29].mxu1  ;;  %v1338_v15 = vld [vmem:[#allocation2 + $0x18] sm:$0xff]  ;;  %v3023_v16 = vpop.f32.mrb[29].mxu0 }
 0x136   : > { %1305 = vst.msk [vmem:[#allocation2 + $0x28] sm:$0xff] %vm366_vm2, %v1272_v9  ;;  %v3128_v17 = vadd.f32 %v3127_v13, %v3126_v10  ;;  %v3129_v14 = vpop.f32.mrb[30].mxu1  ;;  %v1408_v21 = vmax.f32 %v1376_v38, 0.0  ;;  %v1377_v43 = vadd.f32 %v4235_v29, %v1338_v15  ;;  %v4265_v22 = vadd.f32 %v3023_v16, %v3022_v11  ;;  %v3025_v23 = vpop.f32.mrb[30].mxu0 }
 0x137   : > { %v3130_v27 = vpop.f32.mrb[31].mxu1  ;;  %v3026_v28 = vpop.f32.mrb[31].mxu0 }
 0x138   : > { %v1165_v32 = vadd.f32 %v3128_v17, %v4216_v50  ;;  %v3131_v33 = vadd.f32 %v3130_v27, %v3129_v14  ;;  %3371 = vmatprep.mubr.msk.f32.mxu0 %vm366_vm2, %v1408_v21  ;;  %v1409_v34 = vmax.f32 %v1377_v43, 0.0  ;;  %v4269_v35 = vadd.f32 %v3026_v28, %v3025_v23  ;;  %v475_v43 = vld [vmem:[#allocation2 + $0x50] sm:$0xff] }
 0x13a   : > { %v1273_v37 = vadd.f32 %v1165_v32, %v471_v25  ;;  %v1168_v39 = vadd.f32 %v3131_v33, %v4220_v55  ;;  %3372 = vmatmul.mubr.msk.f32.gmra.mrb[50].mxu0 %vm366_vm2, %v1409_v34  ;;  %v476_v34 = vld [vmem:[#allocation2 + $0x58] sm:$0xff] }
 0x13b   : > { %v1339_v40 = vld [vmem:[#allocation2 + $0x20] sm:$0xff] }
 0x13c   : > { %1306 = vst.msk [vmem:[#allocation2 + $0x30] sm:$0xff] %vm366_vm2, %v1273_v37  ;;  %v1274_v31 = vadd.f32 %v1168_v39, %v472_v26  ;;  %v3132_v41 = vpop.f32.mrb[32].mxu1  ;;  %v1378_v44 = vadd.f32 %v4235_v29, %v1339_v40  ;;  %v3028_v50 = vpop.f32.mrb[32].mxu0 }
 0x13d   : > { %v3133_v45 = vpop.f32.mrb[33].mxu1  ;;  %v1340_v46 = vld [vmem:[#allocation2 + $0x28] sm:$0xff]  ;;  %v3029_v47 = vpop.f32.mrb[33].mxu0 }
 0x13e   : > { %1307 = vst.msk [vmem:[#allocation2 + $0x38] sm:$0xff] %vm366_vm2, %v1274_v31  ;;  %v3134_v49 = vadd.f32 %v3133_v45, %v3132_v41  ;;  %v3135_v51 = vpop.f32.mrb[34].mxu1  ;;  %v1410_v52 = vmax.f32 %v1378_v44, 0.0  ;;  %v1379_v55 = vadd.f32 %v4235_v29, %v1340_v46  ;;  %v4277_v53 = vadd.f32 %v3029_v47, %v3028_v50  ;;  %v3031_v56 = vpop.f32.mrb[34].mxu0 }
 0x13f   : > { %v3136_v59 = vpop.f32.mrb[35].mxu1  ;;  %v3032_v60 = vpop.f32.mrb[35].mxu0 }
 0x140   : > { %v1173_v61 = vadd.f32 %v3134_v49, %v4222_v62  ;;  %v3137_v63 = vadd.f32 %v3136_v59, %v3135_v51  ;;  %3374 = vmatprep.mubr.msk.f32.mxu0 %vm366_vm2, %v1410_v52  ;;  %v1411_v0 = vmax.f32 %v1379_v55, 0.0  ;;  %v4281_v1 = vadd.f32 %v3032_v60, %v3031_v56  ;;  %v477_v55 = vld [vmem:[#allocation2 + $0x60] sm:$0xff] }
 0x142   : > { %v1275_v4 = vadd.f32 %v1173_v61, %v473_v57  ;;  %v1176_v6 = vadd.f32 %v3137_v63, %v4224_v5  ;;  %3375 = vmatmul.mubr.msk.f32.gmra.mrb[52].mxu0 %vm366_vm2, %v1411_v0  ;;  %v478_v0 = vld [vmem:[#allocation2 + $0x68] sm:$0xff] }
 0x143   : > { %v1341_v7 = vld [vmem:[#allocation2 + $0x30] sm:$0xff] }
 0x144   : > { %1308 = vst.msk [vmem:[#allocation2 + $0x40] sm:$0xff] %vm366_vm2, %v1275_v4  ;;  %v1276_v8 = vadd.f32 %v1176_v6, %v474_v2  ;;  %v3138_v9 = vpop.f32.mrb[36].mxu1  ;;  %v1380_v10 = vadd.f32 %v4235_v29, %v1341_v7  ;;  %v3034_v62 = vpop.f32.mrb[36].mxu0 }
 0x145   : > { %v3139_v38 = vpop.f32.mrb[37].mxu1  ;;  %v1342_v11 = vld [vmem:[#allocation2 + $0x38] sm:$0xff]  ;;  %v3035_v13 = vpop.f32.mrb[37].mxu0 }
 0x146   : > { %1309 = vst.msk [vmem:[#allocation2 + $0x48] sm:$0xff] %vm366_vm2, %v1276_v8  ;;  %v3140_v15 = vadd.f32 %v3139_v38, %v3138_v9  ;;  %v3141_v16 = vpop.f32.mrb[38].mxu1  ;;  %v1412_v17 = vmax.f32 %v1380_v10, 0.0  ;;  %v1381_v5 = vadd.f32 %v4235_v29, %v1342_v11  ;;  %v4289_v14 = vadd.f32 %v3035_v13, %v3034_v62  ;;  %v3037_v21 = vpop.f32.mrb[38].mxu0 }
 0x147   : > { %v3142_v23 = vpop.f32.mrb[39].mxu1  ;;  %v3038_v25 = vpop.f32.mrb[39].mxu0 }
 0x148   : > { %v1181_v27 = vadd.f32 %v3140_v15, %v4228_v20  ;;  %v3143_v28 = vadd.f32 %v3142_v23, %v3141_v16  ;;  %3377 = vmatprep.mubr.msk.f32.mxu0 %vm366_vm2, %v1412_v17  ;;  %v1413_v32 = vmax.f32 %v1381_v5, 0.0  ;;  %v4293_v33 = vadd.f32 %v3038_v25, %v3037_v21  ;;  %v479_v5 = vld [vmem:[#allocation2 + $0x70] sm:$0xff] }
 0x14a   : > { %v1277_v26 = vadd.f32 %v1181_v27, %v475_v43  ;;  %v1184_v37 = vadd.f32 %v3143_v28, %v4230_v19  ;;  %3378 = vmatmul.mubr.msk.f32.gmra.mrb[54].mxu0 %vm366_vm2, %v1413_v32  ;;  %v480_v32 = vld [vmem:[#allocation2 + $0x78] sm:$0xff] }
 0x14b   : > { %v1343_v39 = vld [vmem:[#allocation2 + $0x40] sm:$0xff] }
 0x14c   : > { %1310 = vst.msk [vmem:[#allocation2 + $0x50] sm:$0xff] %vm366_vm2, %v1277_v26  ;;  %v1278_v40 = vadd.f32 %v1184_v37, %v476_v34  ;;  %v3144_v31 = vpop.f32.mrb[40].mxu1  ;;  %v1382_v41 = vadd.f32 %v4235_v29, %v1343_v39  ;;  %v3040_v20 = vpop.f32.mrb[40].mxu0 }
 0x14d   : > { %v3145_v44 = vpop.f32.mrb[41].mxu1  ;;  %v1344_v50 = vld [vmem:[#allocation2 + $0x48] sm:$0xff]  ;;  %v3041_v45 = vpop.f32.mrb[41].mxu0 }
 0x14e   : > { %1311 = vst.msk [vmem:[#allocation2 + $0x58] sm:$0xff] %vm366_vm2, %v1278_v40  ;;  %v3146_v46 = vadd.f32 %v3145_v44, %v3144_v31  ;;  %v3147_v47 = vpop.f32.mrb[42].mxu1  ;;  %v1414_v49 = vmax.f32 %v1382_v41, 0.0  ;;  %v1383_v19 = vadd.f32 %v4235_v29, %v1344_v50  ;;  %v4301_v51 = vadd.f32 %v3041_v45, %v3040_v20  ;;  %v3043_v52 = vpop.f32.mrb[42].mxu0 }
 0x14f   : > { %v3148_v56 = vpop.f32.mrb[43].mxu1  ;;  %v3044_v57 = vpop.f32.mrb[43].mxu0 }
 0x150   : > { %v1189_v59 = vadd.f32 %v3146_v46, %v4253_v58  ;;  %v3149_v60 = vadd.f32 %v3148_v56, %v3147_v47  ;;  %3380 = vmatprep.mubr.msk.f32.mxu0 %vm366_vm2, %v1414_v49  ;;  %v1415_v61 = vmax.f32 %v1383_v19, 0.0  ;;  %v4305_v63 = vadd.f32 %v3044_v57, %v3043_v52  ;;  %v481_v46 = vld [vmem:[#allocation2 + $0x80] sm:$0xff]  ;;  %v482_v52 = vld [vmem:[#allocation2 + $0x88] sm:$0xff] }
 0x152   : > { %v1279_v2 = vadd.f32 %v1189_v59, %v477_v55  ;;  %v1192_v4 = vadd.f32 %v3149_v60, %v4257_v3  ;;  %3381 = vmatmul.mubr.msk.f32.gmra.mrb[56].mxu0 %vm366_vm2, %v1415_v61 }
 0x153   : > { %v1345_v6 = vld [vmem:[#allocation2 + $0x50] sm:$0xff] }
 0x154   : > { %1312 = vst.msk [vmem:[#allocation2 + $0x60] sm:$0xff] %vm366_vm2, %v1279_v2  ;;  %v1280_v7 = vadd.f32 %v1192_v4, %v478_v0  ;;  %v3150_v8 = vpop.f32.mrb[44].mxu1  ;;  %v1384_v9 = vadd.f32 %v4235_v29, %v1345_v6  ;;  %v3046_v58 = vpop.f32.mrb[44].mxu0 }
 0x155   : > { %v3151_v10 = vpop.f32.mrb[45].mxu1  ;;  %v1346_v62 = vld [vmem:[#allocation2 + $0x58] sm:$0xff]  ;;  %v3047_v38 = vpop.f32.mrb[45].mxu0 }
 0x156   : > { %1313 = vst.msk [vmem:[#allocation2 + $0x68] sm:$0xff] %vm366_vm2, %v1280_v7  ;;  %v3152_v11 = vadd.f32 %v3151_v10, %v3150_v8  ;;  %v3153_v13 = vpop.f32.mrb[46].mxu1  ;;  %v1416_v15 = vmax.f32 %v1384_v9, 0.0  ;;  %v1385_v3 = vadd.f32 %v4235_v29, %v1346_v62  ;;  %v4313_v16 = vadd.f32 %v3047_v38, %v3046_v58  ;;  %v3049_v17 = vpop.f32.mrb[46].mxu0  ;;  %v483_v8 = vld [vmem:[#allocation2 + $0x90] sm:$0xff]  ;;  %v484_v62 = vld [vmem:[#allocation2 + $0x98] sm:$0xff] }
 0x157   : > { %v3154_v21 = vpop.f32.mrb[47].mxu1  ;;  %v3050_v43 = vpop.f32.mrb[47].mxu0 }
 0x158   : > { %v1197_v23 = vadd.f32 %v3152_v11, %v4265_v22  ;;  %v3155_v25 = vadd.f32 %v3154_v21, %v3153_v13  ;;  %3383 = vmatprep.mubr.msk.f32.mxu0 %vm366_vm2, %v1416_v15  ;;  %v1417_v27 = vmax.f32 %v1385_v3, 0.0  ;;  %v4317_v28 = vadd.f32 %v3050_v43, %v3049_v17 }
 0x15a   : > { %v1281_v34 = vadd.f32 %v1197_v23, %v479_v5  ;;  %v1200_v26 = vadd.f32 %v3155_v25, %v4269_v35  ;;  %3384 = vmatmul.mubr.msk.f32.gmra.mrb[58].mxu0 %vm366_vm2, %v1417_v27  ;;  %v485_v27 = vld [vmem:[#allocation2 + $0xa0] sm:$0xff] }
 0x15b   : > { %v1347_v37 = vld [vmem:[#allocation2 + $0x60] sm:$0xff] }
 0x15c   : > { %1314 = vst.msk [vmem:[#allocation2 + $0x70] sm:$0xff] %vm366_vm2, %v1281_v34  ;;  %v1282_v39 = vadd.f32 %v1200_v26, %v480_v32  ;;  %v3156_v40 = vpop.f32.mrb[48].mxu1  ;;  %v1386_v31 = vadd.f32 %v4235_v29, %v1347_v37  ;;  %v486_v37 = vld [vmem:[#allocation2 + $0xa8] sm:$0xff] }
 0x15d   : > { %v3157_v22 = vpop.f32.mrb[49].mxu1  ;;  %v1348_v41 = vld [vmem:[#allocation2 + $0x68] sm:$0xff] }
 0x15e   : > { %1315 = vst.msk [vmem:[#allocation2 + $0x78] sm:$0xff] %vm366_vm2, %v1282_v39  ;;  %v3158_v20 = vadd.f32 %v3157_v22, %v3156_v40  ;;  %v3159_v44 = vpop.f32.mrb[50].mxu1  ;;  %v1418_v50 = vmax.f32 %v1386_v31, 0.0  ;;  %v1387_v45 = vadd.f32 %v4235_v29, %v1348_v41 }
 0x15f   : > { %v3160_v35 = vpop.f32.mrb[51].mxu1 }
 0x160   : > { %v1205_v47 = vadd.f32 %v3158_v20, %v4277_v53  ;;  %v3161_v49 = vadd.f32 %v3160_v35, %v3159_v44  ;;  %3386 = vmatprep.mubr.msk.f32.mxu0 %vm366_vm2, %v1418_v50  ;;  %v1419_v19 = vmax.f32 %v1387_v45, 0.0 }
 0x162   : > { %v1283_v55 = vadd.f32 %v1205_v47, %v481_v46  ;;  %v1208_v56 = vadd.f32 %v3161_v49, %v4281_v1  ;;  %3387 = vmatmul.mubr.msk.f32.gmra.mrb[60].mxu0 %vm366_vm2, %v1419_v19  ;;  %v487_v47 = vld [vmem:[#allocation2 + $0xb0] sm:$0xff] }
 0x163   : > { %v1349_v57 = vld [vmem:[#allocation2 + $0x70] sm:$0xff] }
 0x164   : > { %1316 = vst.msk [vmem:[#allocation2 + $0x80] sm:$0xff] %vm366_vm2, %v1283_v55  ;;  %v1284_v59 = vadd.f32 %v1208_v56, %v482_v52  ;;  %v3162_v60 = vpop.f32.mrb[52].mxu1  ;;  %v1388_v61 = vadd.f32 %v4235_v29, %v1349_v57  ;;  %v488_v55 = vld [vmem:[#allocation2 + $0xb8] sm:$0xff] }
 0x165   : > { %v3163_v0 = vpop.f32.mrb[53].mxu1  ;;  %v1350_v2 = vld [vmem:[#allocation2 + $0x78] sm:$0xff] }
 0x166   : > { %1317 = vst.msk [vmem:[#allocation2 + $0x88] sm:$0xff] %vm366_vm2, %v1284_v59  ;;  %v3164_v53 = vadd.f32 %v3163_v0, %v3162_v60  ;;  %v3165_v4 = vpop.f32.mrb[54].mxu1  ;;  %v1420_v6 = vmax.f32 %v1388_v61, 0.0  ;;  %v1389_v7 = vadd.f32 %v4235_v29, %v1350_v2 }
 0x167   : > { %v3166_v1 = vpop.f32.mrb[55].mxu1 }
 0x168   : > { %v1213_v9 = vadd.f32 %v3164_v53, %v4289_v14  ;;  %v3167_v58 = vadd.f32 %v3166_v1, %v3165_v4  ;;  %3389 = vmatprep.mubr.msk.f32.mxu0 %vm366_vm2, %v1420_v6  ;;  %v1421_v10 = vmax.f32 %v1389_v7, 0.0 }
 0x16a   : > { %v1285_v38 = vadd.f32 %v1213_v9, %v483_v8  ;;  %v1216_v11 = vadd.f32 %v3167_v58, %v4293_v33  ;;  %3390 = vmatmul.mubr.msk.f32.gmra.mrb[62].mxu0 %vm366_vm2, %v1421_v10  ;;  %v489_v8 = vld [vmem:[#allocation2 + $0xc0] sm:$0xff]  ;;  %v490_v10 = vld [vmem:[#allocation2 + $0xc8] sm:$0xff] }
 0x16b   : > { %v1351_v13 = vld [vmem:[#allocation2 + $0x80] sm:$0xff] }
 0x16c   : > { %1318 = vst.msk [vmem:[#allocation2 + $0x90] sm:$0xff] %vm366_vm2, %v1285_v38  ;;  %v1286_v15 = vadd.f32 %v1216_v11, %v484_v62  ;;  %v3168_v3 = vpop.f32.mrb[56].mxu1  ;;  %v1390_v17 = vadd.f32 %v4235_v29, %v1351_v13 }
 0x16d   : > { %v3169_v5 = vpop.f32.mrb[57].mxu1  ;;  %v1352_v21 = vld [vmem:[#allocation2 + $0x88] sm:$0xff] }
 0x16e   : > { %1319 = vst.msk [vmem:[#allocation2 + $0x98] sm:$0xff] %vm366_vm2, %v1286_v15  ;;  %v3170_v14 = vadd.f32 %v3169_v5, %v3168_v3  ;;  %v3171_v43 = vpop.f32.mrb[58].mxu1  ;;  %v1422_v23 = vmax.f32 %v1390_v17, 0.0  ;;  %v1391_v25 = vadd.f32 %v4235_v29, %v1352_v21 }
 0x16f   : > { %v3172_v33 = vpop.f32.mrb[59].mxu1 }
 0x170   : > { %v1221_v32 = vadd.f32 %v3170_v14, %v4301_v51  ;;  %v3173_v34 = vadd.f32 %v3172_v33, %v3171_v43  ;;  %3392 = vmatprep.mubr.msk.f32.mxu0 %vm366_vm2, %v1422_v23  ;;  %v1423_v26 = vmax.f32 %v1391_v25, 0.0  ;;  %v491_v23 = vld [vmem:[#allocation2 + $0xd0] sm:$0xff] }
 0x172   : > { %v1287_v39 = vadd.f32 %v1221_v32, %v485_v27  ;;  %v1224_v40 = vadd.f32 %v3173_v34, %v4305_v63  ;;  %3393 = vmatmul.mubr.msk.f32.gmra.mrb[64].mxu0 %vm366_vm2, %v1423_v26  ;;  %v492_v32 = vld [vmem:[#allocation2 + $0xd8] sm:$0xff]  ;;  %v2197_v34 = vld [vmem:[%s4620_s7 + $0x20] sm:$0xf] }
 0x173   : > { %v1353_v31 = vld [vmem:[#allocation2 + $0x90] sm:$0xff]  ;;  %3424 = vmatprep.subr.msk.mxu1 %vm1572_vm0, %v2197_v34 }
 0x174   : > { %1320 = vst.msk [vmem:[#allocation2 + $0xa0] sm:$0xff] %vm366_vm2, %v1287_v39  ;;  %v1288_v22 = vadd.f32 %v1224_v40, %v486_v37  ;;  %v3174_v41 = vpop.f32.mrb[60].mxu1  ;;  %v1392_v20 = vadd.f32 %v4235_v29, %v1353_v31  ;;  %3425 = vmatpush3.msk.msra.mxu1 %vm1572_vm0, %v2197_v34 }
 0x175   : > { %v3175_v44 = vpop.f32.mrb[61].mxu1  ;;  %v1354_v50 = vld [vmem:[#allocation2 + $0x98] sm:$0xff] }
 0x176   : > { %1321 = vst.msk [vmem:[#allocation2 + $0xa8] sm:$0xff] %vm366_vm2, %v1288_v22  ;;  %v3176_v51 = vadd.f32 %v3175_v44, %v3174_v41  ;;  %v3177_v45 = vpop.f32.mrb[62].mxu1  ;;  %v1424_v46 = vmax.f32 %v1392_v20, 0.0  ;;  %v1393_v35 = vadd.f32 %v4235_v29, %v1354_v50 }
 0x177   : > { %v3178_v63 = vpop.f32.mrb[63].mxu1 }
 0x178   : > { %v1229_v49 = vadd.f32 %v3176_v51, %v4313_v16  ;;  %v3179_v19 = vadd.f32 %v3178_v63, %v3177_v45  ;;  %3395 = vmatprep.mubr.msk.f32.mxu0 %vm366_vm2, %v1424_v46  ;;  %v1425_v52 = vmax.f32 %v1393_v35, 0.0  ;;  %v493_v51 = vld [vmem:[#allocation2 + $0xe0] sm:$0xff]  ;;  %v494_v63 = vld [vmem:[#allocation2 + $0xe8] sm:$0xff] }
 0x17a   : > { %v1289_v56 = vadd.f32 %v1229_v49, %v487_v47  ;;  %v1232_v57 = vadd.f32 %v3179_v19, %v4317_v28  ;;  %3396 = vmatmul.mubr.msk.f32.gmra.mrb[66].mxu0 %vm366_vm2, %v1425_v52 }
 0x17b   : > { %v1355_v59 = vld [vmem:[#allocation2 + $0xa0] sm:$0xff] }
 0x17c   : > { %1322 = vst.msk [vmem:[#allocation2 + $0xb0] sm:$0xff] %vm366_vm2, %v1289_v56  ;;  %v1290_v60 = vadd.f32 %v1232_v57, %v488_v55  ;;  %v3180_v61 = vpop.f32.mrb[64].mxu1  ;;  %v1394_v0 = vadd.f32 %v4235_v29, %v1355_v59 }
 0x17d   : > { %v3181_v2 = vpop.f32.mrb[65].mxu1  ;;  %v1356_v53 = vld [vmem:[#allocation2 + $0xa8] sm:$0xff] }
 0x17e   : > { %1323 = vst.msk [vmem:[#allocation2 + $0xb8] sm:$0xff] %vm366_vm2, %v1290_v60  ;;  %v3182_v16 = vadd.f32 %v3181_v2, %v3180_v61  ;;  %v3183_v4 = vpop.f32.mrb[66].mxu1  ;;  %v1426_v6 = vmax.f32 %v1394_v0, 0.0  ;;  %v1395_v7 = vadd.f32 %v4235_v29, %v1356_v53  ;;  %v495_v53 = vld [vmem:[#allocation2 + $0xf0] sm:$0xff] }
 0x17f   : > { %v3184_v28 = vpop.f32.mrb[67].mxu1 }
 0x180   : > { %v1237_v1 = vadd.f32 %v3182_v16, %v4198_v12  ;;  %v3185_v9 = vadd.f32 %v3184_v28, %v3183_v4  ;;  %3398 = vmatprep.mubr.msk.f32.mxu0 %vm366_vm2, %v1426_v6  ;;  %v1427_v58 = vmax.f32 %v1395_v7, 0.0  ;;  %v496_v7 = vld [vmem:[#allocation2 + $0xf8] sm:$0xff] }
 0x182   : > { %v1291_v62 = vadd.f32 %v1237_v1, %v489_v8  ;;  %v1240_v38 = vadd.f32 %v3185_v9, %v4200_v18  ;;  %3399 = vmatmul.mubr.msk.f32.gmra.mrb[68].mxu0 %vm366_vm2, %v1427_v58 }
 0x183   : > { %v1357_v11 = vld [vmem:[#allocation2 + $0xb0] sm:$0xff] }
 0x184   : > { %1324 = vst.msk [vmem:[#allocation2 + $0xc0] sm:$0xff] %vm366_vm2, %v1291_v62  ;;  %v1292_v13 = vadd.f32 %v1240_v38, %v490_v10  ;;  %v3186_v15 = vpop.f32.mrb[68].mxu1  ;;  %v1396_v3 = vadd.f32 %v4235_v29, %v1357_v11 }
 0x185   : > { %v3187_v17 = vpop.f32.mrb[69].mxu1  ;;  %v1358_v5 = vld [vmem:[#allocation2 + $0xb8] sm:$0xff] }
 0x186   : > { %1325 = vst.msk [vmem:[#allocation2 + $0xc8] sm:$0xff] %vm366_vm2, %v1292_v13  ;;  %v3188_v12 = vadd.f32 %v3187_v17, %v3186_v15  ;;  %v3189_v21 = vpop.f32.mrb[70].mxu1  ;;  %v1428_v14 = vmax.f32 %v1396_v3, 0.0  ;;  %v1397_v43 = vadd.f32 %v4235_v29, %v1358_v5  ;;  %v4403_v5 = vld [vmem:[%s4619_s6] ss:$0 sm:$0xff] }
 0x187   : > { %v3190_v18 = vpop.f32.mrb[71].mxu1 }
 0x188   : > { %v1245_v25 = vadd.f32 %v3188_v12, %v4202_v24  ;;  %v3191_v27 = vadd.f32 %v3190_v18, %v3189_v21  ;;  %3401 = vmatprep.mubr.msk.f32.mxu0 %vm366_vm2, %v1428_v14  ;;  %v1429_v33 = vmax.f32 %v1397_v43, 0.0 }
 0x18a   : > { %v1293_v26 = vadd.f32 %v1245_v25, %v491_v23  ;;  %v1248_v37 = vadd.f32 %v3191_v27, %v4204_v30  ;;  %3402 = vmatmul.mubr.msk.f32.gmra.mrb[70].mxu0 %vm366_vm2, %v1429_v33 }
 0x18b   : > { %v1359_v39 = vld [vmem:[#allocation2 + $0xc0] sm:$0xff] }
 0x18c   : > { %1326 = vst.msk [vmem:[#allocation2 + $0xd0] sm:$0xff] %vm366_vm2, %v1293_v26  ;;  %v1294_v24 = vadd.f32 %v1248_v37, %v492_v32  ;;  %v3192_v40 = vpop.f32.mrb[72].mxu1  ;;  %v1398_v31 = vadd.f32 %v4235_v29, %v1359_v39 }
 0x18d   : > { %v3193_v22 = vpop.f32.mrb[73].mxu1  ;;  %v1360_v41 = vld [vmem:[#allocation2 + $0xc8] sm:$0xff] }
 0x18e   : > { %1327 = vst.msk [vmem:[#allocation2 + $0xd8] sm:$0xff] %vm366_vm2, %v1294_v24  ;;  %v3194_v20 = vadd.f32 %v3193_v22, %v3192_v40  ;;  %v3195_v44 = vpop.f32.mrb[74].mxu1  ;;  %v1430_v30 = vmax.f32 %v1398_v31, 0.0  ;;  %v1399_v50 = vadd.f32 %v4235_v29, %v1360_v41 }
 0x18f   : > { %v3196_v45 = vpop.f32.mrb[75].mxu1 }
 0x190   : > { %v1253_v46 = vadd.f32 %v3194_v20, %v4206_v36  ;;  %v3197_v35 = vadd.f32 %v3196_v45, %v3195_v44  ;;  %3404 = vmatprep.mubr.msk.f32.mxu0 %vm366_vm2, %v1430_v30  ;;  %v1431_v47 = vmax.f32 %v1399_v50, 0.0 }
 0x192   : > { %v1295_v49 = vadd.f32 %v1253_v46, %v493_v51  ;;  %v1256_v19 = vadd.f32 %v3197_v35, %v4210_v42  ;;  %3405 = vmatmul.mubr.msk.f32.gmra.mrb[72].mxu0 %vm366_vm2, %v1431_v47 }
 0x193   : > { %v1361_v52 = vld [vmem:[#allocation2 + $0xd0] sm:$0xff] }
 0x194   : > { %1328 = vst.msk [vmem:[#allocation2 + $0xe0] sm:$0xff] %vm366_vm2, %v1295_v49  ;;  %v1296_v55 = vadd.f32 %v1256_v19, %v494_v63  ;;  %v3198_v56 = vpop.f32.mrb[76].mxu1  ;;  %v1400_v57 = vadd.f32 %v4235_v29, %v1361_v52 }
 0x195   : > { %v3199_v59 = vpop.f32.mrb[77].mxu1  ;;  %v1362_v60 = vld [vmem:[#allocation2 + $0xd8] sm:$0xff] }
 0x196   : > { %1329 = vst.msk [vmem:[#allocation2 + $0xe8] sm:$0xff] %vm366_vm2, %v1296_v55  ;;  %v3200_v36 = vadd.f32 %v3199_v59, %v3198_v56  ;;  %v3201_v61 = vpop.f32.mrb[78].mxu1  ;;  %v1432_v0 = vmax.f32 %v1400_v57, 0.0  ;;  %v1401_v2 = vadd.f32 %v4235_v29, %v1362_v60 }
 0x197   : > { %v3202_v42 = vpop.f32.mrb[79].mxu1 }
 0x198   : > { %v1261_v16 = vadd.f32 %v3200_v36, %v4214_v48  ;;  %v3203_v4 = vadd.f32 %v3202_v42, %v3201_v61  ;;  %3407 = vmatprep.mubr.msk.f32.mxu0 %vm366_vm2, %v1432_v0  ;;  %v1433_v6 = vmax.f32 %v1401_v2, 0.0 }
 0x19a   : > { %v1297_v8 = vadd.f32 %v1261_v16, %v495_v53  ;;  %v1264_v28 = vadd.f32 %v3203_v4, %v4218_v54  ;;  %3408 = vmatmul.mubr.msk.f32.gmra.mrb[74].mxu0 %vm366_vm2, %v1433_v6 }
 0x19b   : > { %v1363_v1 = vld [vmem:[#allocation2 + $0xe0] sm:$0xff] }
 0x19c   : > { %1330 = vst.msk [vmem:[#allocation2 + $0xf0] sm:$0xff] %vm366_vm2, %v1297_v8  ;;  %v1298_v9 = vadd.f32 %v1264_v28, %v496_v7  ;;  %v1402_v58 = vadd.f32 %v4235_v29, %v1363_v1 }
 0x19d   : > { %v1364_v10 = vld [vmem:[#allocation2 + $0xe8] sm:$0xff] }
 0x19e   : > { %1331 = vst.msk [vmem:[#allocation2 + $0xf8] sm:$0xff] %vm366_vm2, %v1298_v9  ;;  %v1434_v48 = vmax.f32 %v1402_v58, 0.0  ;;  %v1403_v62 = vadd.f32 %v4235_v29, %v1364_v10 }
 0x1a0   : > { %3410 = vmatprep.mubr.msk.f32.mxu0 %vm366_vm2, %v1434_v48  ;;  %v1435_v38 = vmax.f32 %v1403_v62, 0.0 }
 0x1a2   : > { %3411 = vmatmul.mubr.msk.f32.gmra.mrb[76].mxu0 %vm366_vm2, %v1435_v38 }
 0x1a3   : > { %v1365_v54 = vld [vmem:[#allocation2 + $0xf0] sm:$0xff] }
 0x1a4   : > { %v1404_v11 = vadd.f32 %v4235_v29, %v1365_v54 }
 0x1a5   : > { %v1366_v13 = vld [vmem:[#allocation2 + $0xf8] sm:$0xff] }
 0x1a6   : > { %v1436_v15 = vmax.f32 %v1404_v11, 0.0  ;;  %v1405_v3 = vadd.f32 %v4235_v29, %v1366_v13 }
 0x1a8   : > { %3413 = vmatprep.mubr.msk.f32.mxu0 %vm366_vm2, %v1436_v15  ;;  %v1437_v17 = vmax.f32 %v1405_v3, 0.0 }
 0x1aa   : > { %3414 = vmatmul.mubr.msk.f32.gmra.mrb[78].mxu0 %vm366_vm2, %v1437_v17 }
 0x205   : > { %v3370_v12 = vpop.f32.mrb[48].mxu0 }
 0x206   : > { %v2130_v21 = vadd.f32 %v3370_v12, %v4403_v5  ;;  %v1963_v14 = vpop.f32.mrb[49].mxu0 }
 0x207   : > { %v2129_v43 = vadd.f32 %v4403_v5, %v1963_v14 }
 0x208   : > { %v2162_v23 = vmax.f32 %v2130_v21, 0.0 }
 0x209   : > { %v2161_v18 = vmax.f32 %v2129_v43, 0.0 }
 0x20a   : > { %2525 = vrot.lane.b32.xlu0 %v2162_v23, %s3749_s14 }
 0x20b   : > { %3426 = vmatprep.mubr.msk.f32.mxu1 %vm2198_vm3, %v2161_v18 }
 0x20c   : > { %3427 = vmatmul.mubr.msk.f32.vlgmr.msra.gmra.mrb[80].mxu1 %vm2198_vm3, %v2162_v23 }
 0x20d   : > { %v3373_v29 = vpop.f32.mrb[50].mxu0 }
 0x20e   : > { %v2132_v25 = vadd.f32 %v3373_v29, %v4403_v5  ;;  %2523 = vrot.lane.b32.xlu0 %v2161_v18, %s3749_s14  ;;  %v1973_v27 = vpop.f32.mrb[51].mxu0 }
 0x20f   : > { %v2131_v33 = vadd.f32 %v4403_v5, %v1973_v27 }
 0x210   : > { %v2164_v32 = vmax.f32 %v2132_v25, 0.0 }
 0x211   : > { %v2163_v34 = vmax.f32 %v2131_v33, 0.0 }
 0x212   : > { %2529 = vrot.lane.b32.xlu1 %v2164_v32, %s3749_s14 }
 0x213   : > { %3429 = vmatprep.mubr.msk.f32.mxu1 %vm2198_vm3, %v2163_v34 }
 0x214   : > { %3430 = vmatmul.mubr.msk.f32.gmra.mrb[82].mxu1 %vm2198_vm3, %v2164_v32 }
 0x215   : > { %v3376_v26 = vpop.f32.mrb[52].mxu0 }
 0x216   : > { %v2134_v37 = vadd.f32 %v3376_v26, %v4403_v5  ;;  %2527 = vrot.lane.b32.xlu1 %v2163_v34, %s3749_s14  ;;  %v1983_v39 = vpop.f32.mrb[53].mxu0 }
 0x217   : > { %v2133_v24 = vadd.f32 %v4403_v5, %v1983_v39 }
 0x218   : > { %v2166_v40 = vmax.f32 %v2134_v37, 0.0 }
 0x219   : > { %v2165_v31 = vmax.f32 %v2133_v24, 0.0 }
 0x21a   : > { %2533 = vrot.lane.b32.xlu1 %v2166_v40, %s3749_s14 }
 0x21b   : > { %2531 = vrot.lane.b32.xlu0 %v2165_v31, %s3749_s14  ;;  %3432 = vmatprep.mubr.msk.f32.mxu1 %vm2198_vm3, %v2165_v31 }
 0x21c   : > { %3433 = vmatmul.mubr.msk.f32.gmra.mrb[84].mxu1 %vm2198_vm3, %v2166_v40 }
 0x21d   : > { %v3379_v22 = vpop.f32.mrb[54].mxu0 }
 0x21e   : > { %v2136_v41 = vadd.f32 %v3379_v22, %v4403_v5  ;;  %v1993_v20 = vpop.f32.mrb[55].mxu0 }
 0x21f   : > { %v2135_v44 = vadd.f32 %v4403_v5, %v1993_v20 }
 0x220   : > { %v2168_v30 = vmax.f32 %v2136_v41, 0.0 }
 0x221   : > { %v2167_v50 = vmax.f32 %v2135_v44, 0.0 }
 0x222   : > { %2537 = vrot.lane.b32.xlu1 %v2168_v30, %s3749_s14 }
 0x223   : > { %2535 = vrot.lane.b32.xlu0 %v2167_v50, %s3749_s14  ;;  %3435 = vmatprep.mubr.msk.f32.mxu1 %vm2198_vm3, %v2167_v50 }
 0x224   : > { %3436 = vmatmul.mubr.msk.f32.gmra.mrb[86].mxu1 %vm2198_vm3, %v2168_v30 }
 0x225   : > { %v3382_v51 = vpop.f32.mrb[56].mxu0 }
 0x226   : > { %v2138_v45 = vadd.f32 %v3382_v51, %v4403_v5  ;;  %v2003_v46 = vpop.f32.mrb[57].mxu0 }
 0x227   : > { %v2137_v35 = vadd.f32 %v4403_v5, %v2003_v46 }
 0x228   : > { %v2170_v47 = vmax.f32 %v2138_v45, 0.0 }
 0x229   : > { %v2169_v63 = vmax.f32 %v2137_v35, 0.0 }
 0x22a   : > { %2541 = vrot.lane.b32.xlu1 %v2170_v47, %s3749_s14 }
 0x22b   : > { %2539 = vrot.lane.b32.xlu0 %v2169_v63, %s3749_s14  ;;  %3438 = vmatprep.mubr.msk.f32.mxu1 %vm2198_vm3, %v2169_v63 }
 0x22c   : > { %3439 = vmatmul.mubr.msk.f32.gmra.mrb[88].mxu1 %vm2198_vm3, %v2170_v47 }
 0x22d   : > { %v3385_v49 = vpop.f32.mrb[58].mxu0 }
 0x22e   : > { %v2140_v19 = vadd.f32 %v3385_v49, %v4403_v5  ;;  %v2013_v52 = vpop.f32.mrb[59].mxu0 }
 0x22f   : > { %v2139_v55 = vadd.f32 %v4403_v5, %v2013_v52 }
 0x230   : > { %v2172_v56 = vmax.f32 %v2140_v19, 0.0 }
 0x231   : > { %v2171_v57 = vmax.f32 %v2139_v55, 0.0 }
 0x232   : > { %2545 = vrot.lane.b32.xlu1 %v2172_v56, %s3749_s14 }
 0x233   : > { %2543 = vrot.lane.b32.xlu0 %v2171_v57, %s3749_s14  ;;  %3441 = vmatprep.mubr.msk.f32.mxu1 %vm2198_vm3, %v2171_v57 }
 0x234   : > { %3442 = vmatmul.mubr.msk.f32.gmra.mrb[90].mxu1 %vm2198_vm3, %v2172_v56 }
 0x235   : > { %v3388_v59 = vpop.f32.mrb[60].mxu0 }
 0x236   : > { %v2142_v60 = vadd.f32 %v3388_v59, %v4403_v5  ;;  %v2023_v36 = vpop.f32.mrb[61].mxu0 }
 0x237   : > { %v2141_v61 = vadd.f32 %v4403_v5, %v2023_v36 }
 0x238   : > { %v2174_v0 = vmax.f32 %v2142_v60, 0.0 }
 0x239   : > { %v2173_v2 = vmax.f32 %v2141_v61, 0.0 }
 0x23a   : > { %2549 = vrot.lane.b32.xlu1 %v2174_v0, %s3749_s14 }
 0x23b   : > { %2547 = vrot.lane.b32.xlu0 %v2173_v2, %s3749_s14  ;;  %3444 = vmatprep.mubr.msk.f32.mxu1 %vm2198_vm3, %v2173_v2 }
 0x23c   : > { %3445 = vmatmul.mubr.msk.f32.gmra.mrb[92].mxu1 %vm2198_vm3, %v2174_v0 }
 0x23d   : > { %v3391_v53 = vpop.f32.mrb[62].mxu0 }
 0x23e   : > { %v2144_v42 = vadd.f32 %v3391_v53, %v4403_v5  ;;  %v2033_v16 = vpop.f32.mrb[63].mxu0 }
 0x23f   : > { %v2143_v4 = vadd.f32 %v4403_v5, %v2033_v16 }
 0x240   : > { %v2176_v6 = vmax.f32 %v2144_v42, 0.0 }
 0x241   : > { %v2175_v7 = vmax.f32 %v2143_v4, 0.0 }
 0x242   : > { %2553 = vrot.lane.b32.xlu1 %v2176_v6, %s3749_s14 }
 0x243   : > { %2551 = vrot.lane.b32.xlu0 %v2175_v7, %s3749_s14  ;;  %3447 = vmatprep.mubr.msk.f32.mxu1 %vm2198_vm3, %v2175_v7 }
 0x244   : > { %3448 = vmatmul.mubr.msk.f32.gmra.mrb[94].mxu1 %vm2198_vm3, %v2176_v6 }
 0x245   : > { %v3394_v8 = vpop.f32.mrb[64].mxu0 }
 0x246   : > { %v2146_v28 = vadd.f32 %v3394_v8, %v4403_v5  ;;  %v2043_v1 = vpop.f32.mrb[65].mxu0 }
 0x247   : > { %v2145_v9 = vadd.f32 %v4403_v5, %v2043_v1 }
 0x248   : > { %v2178_v58 = vmax.f32 %v2146_v28, 0.0 }
 0x249   : > { %v2177_v10 = vmax.f32 %v2145_v9, 0.0 }
 0x24a   : > { %2557 = vrot.lane.b32.xlu1 %v2178_v58, %s3749_s14 }
 0x24b   : > { %2555 = vrot.lane.b32.xlu0 %v2177_v10, %s3749_s14  ;;  %3450 = vmatprep.mubr.msk.f32.mxu1 %vm2198_vm3, %v2177_v10 }
 0x24c   : > { %3451 = vmatmul.mubr.msk.f32.gmra.mrb[96].mxu1 %vm2198_vm3, %v2178_v58 }
 0x24d   : > { %v3397_v48 = vpop.f32.mrb[66].mxu0 }
 0x24e   : > { %v2148_v62 = vadd.f32 %v3397_v48, %v4403_v5  ;;  %v2053_v38 = vpop.f32.mrb[67].mxu0 }
 0x24f   : > { %v2147_v54 = vadd.f32 %v4403_v5, %v2053_v38 }
 0x250   : > { %v2180_v11 = vmax.f32 %v2148_v62, 0.0 }
 0x251   : > { %v2179_v13 = vmax.f32 %v2147_v54, 0.0 }
 0x252   : > { %2561 = vrot.lane.b32.xlu1 %v2180_v11, %s3749_s14 }
 0x253   : > { %2559 = vrot.lane.b32.xlu0 %v2179_v13, %s3749_s14  ;;  %3453 = vmatprep.mubr.msk.f32.mxu1 %vm2198_vm3, %v2179_v13 }
 0x254   : > { %3454 = vmatmul.mubr.msk.f32.gmra.mrb[98].mxu1 %vm2198_vm3, %v2180_v11 }
 0x255   : > { %v3400_v15 = vpop.f32.mrb[68].mxu0 }
 0x256   : > { %v2150_v3 = vadd.f32 %v3400_v15, %v4403_v5  ;;  %v2063_v17 = vpop.f32.mrb[69].mxu0 }
 0x257   : > { %v2149_v12 = vadd.f32 %v4403_v5, %v2063_v17 }
 0x258   : > { %v2182_v21 = vmax.f32 %v2150_v3, 0.0 }
 0x259   : > { %v2181_v14 = vmax.f32 %v2149_v12, 0.0 }
 0x25a   : > { %2565 = vrot.lane.b32.xlu1 %v2182_v21, %s3749_s14 }
 0x25b   : > { %2563 = vrot.lane.b32.xlu0 %v2181_v14, %s3749_s14  ;;  %3456 = vmatprep.mubr.msk.f32.mxu1 %vm2198_vm3, %v2181_v14 }
 0x25c   : > { %3457 = vmatmul.mubr.msk.f32.gmra.mrb[100].mxu1 %vm2198_vm3, %v2182_v21 }
 0x25d   : > { %v3403_v43 = vpop.f32.mrb[70].mxu0 }
 0x25e   : > { %v2152_v23 = vadd.f32 %v3403_v43, %v4403_v5  ;;  %v2073_v18 = vpop.f32.mrb[71].mxu0 }
 0x25f   : > { %v2151_v29 = vadd.f32 %v4403_v5, %v2073_v18 }
 0x260   : > { %v2184_v25 = vmax.f32 %v2152_v23, 0.0 }
 0x261   : > { %v2183_v27 = vmax.f32 %v2151_v29, 0.0 }
 0x262   : > { %2569 = vrot.lane.b32.xlu1 %v2184_v25, %s3749_s14 }
 0x263   : > { %2567 = vrot.lane.b32.xlu0 %v2183_v27, %s3749_s14  ;;  %3459 = vmatprep.mubr.msk.f32.mxu1 %vm2198_vm3, %v2183_v27 }
 0x264   : > { %3460 = vmatmul.mubr.msk.f32.gmra.mrb[102].mxu1 %vm2198_vm3, %v2184_v25 }
 0x265   : > { %v3406_v33 = vpop.f32.mrb[72].mxu0 }
 0x266   : > { %v2154_v32 = vadd.f32 %v3406_v33, %v4403_v5  ;;  %v2083_v34 = vpop.f32.mrb[73].mxu0 }
 0x267   : > { %v2153_v26 = vadd.f32 %v4403_v5, %v2083_v34 }
 0x268   : > { %v2186_v37 = vmax.f32 %v2154_v32, 0.0 }
 0x269   : > { %v2185_v39 = vmax.f32 %v2153_v26, 0.0 }
 0x26a   : > { %2573 = vrot.lane.b32.xlu1 %v2186_v37, %s3749_s14 }
 0x26b   : > { %2571 = vrot.lane.b32.xlu0 %v2185_v39, %s3749_s14  ;;  %3462 = vmatprep.mubr.msk.f32.mxu1 %vm2198_vm3, %v2185_v39 }
 0x26c   : > { %3463 = vmatmul.mubr.msk.f32.gmra.mrb[104].mxu1 %vm2198_vm3, %v2186_v37 }
 0x26d   : > { %v3409_v24 = vpop.f32.mrb[74].mxu0 }
 0x26e   : > { %v2156_v40 = vadd.f32 %v3409_v24, %v4403_v5  ;;  %v2093_v31 = vpop.f32.mrb[75].mxu0 }
 0x26f   : > { %v2155_v22 = vadd.f32 %v4403_v5, %v2093_v31 }
 0x270   : > { %v2188_v41 = vmax.f32 %v2156_v40, 0.0 }
 0x271   : > { %v2187_v20 = vmax.f32 %v2155_v22, 0.0 }
 0x272   : > { %2577 = vrot.lane.b32.xlu1 %v2188_v41, %s3749_s14 }
 0x273   : > { %2575 = vrot.lane.b32.xlu0 %v2187_v20, %s3749_s14  ;;  %3465 = vmatprep.mubr.msk.f32.mxu1 %vm2198_vm3, %v2187_v20 }
 0x274   : > { %3466 = vmatmul.mubr.msk.f32.gmra.mrb[106].mxu1 %vm2198_vm3, %v2188_v41 }
 0x275   : > { %v3412_v44 = vpop.f32.mrb[76].mxu0 }
 0x276   : > { %v2158_v30 = vadd.f32 %v3412_v44, %v4403_v5  ;;  %v2103_v50 = vpop.f32.mrb[77].mxu0 }
 0x277   : > { %v2157_v51 = vadd.f32 %v4403_v5, %v2103_v50 }
 0x278   : > { %v2190_v45 = vmax.f32 %v2158_v30, 0.0 }
 0x279   : > { %v2189_v46 = vmax.f32 %v2157_v51, 0.0 }
 0x27a   : > { %2581 = vrot.lane.b32.xlu1 %v2190_v45, %s3749_s14 }
 0x27b   : > { %2579 = vrot.lane.b32.xlu0 %v2189_v46, %s3749_s14  ;;  %3468 = vmatprep.mubr.msk.f32.mxu1 %vm2198_vm3, %v2189_v46 }
 0x27c   : > { %3469 = vmatmul.mubr.msk.f32.gmra.mrb[108].mxu1 %vm2198_vm3, %v2190_v45  ;;  %v2526_v55 = vpop.permute.xlu0 %2525 }
 0x27d   : > { %v3415_v35 = vpop.f32.mrb[78].mxu0 }
 0x27e   : > { %v2160_v47 = vadd.f32 %v3415_v35, %v4403_v5  ;;  %v2113_v63 = vpop.f32.mrb[79].mxu0 }
 0x27f   : > { %v2159_v49 = vadd.f32 %v4403_v5, %v2113_v63 }
 0x280   : > { %v2192_v19 = vmax.f32 %v2160_v47, 0.0  ;;  %v2524_v56 = vpop.permute.xlu0 %2523 }
 0x281   : > { %v2191_v52 = vmax.f32 %v2159_v49, 0.0 }
 0x282   : > { %2585 = vrot.lane.b32.xlu1 %v2192_v19, %s3749_s14 }
 0x283   : > { %2583 = vrot.lane.b32.xlu0 %v2191_v52, %s3749_s14  ;;  %3471 = vmatprep.mubr.msk.f32.mxu1 %vm2198_vm3, %v2191_v52 }
 0x284   : > { %3472 = vmatmul.mubr.msk.f32.gmra.mrb[110].mxu1 %vm2198_vm3, %v2192_v19  ;;  %v2530_v36 = vpop.permute.xlu1 %2529 }
 0x288   : > { %v2528_v0 = vpop.permute.xlu1 %2527 }
 0x28c   : > { %v2534_v16 = vpop.permute.xlu1 %2533 }
 0x28d   : > { %v2532_v6 = vpop.permute.xlu0 %2531 }
 0x294   : > { %v2538_v1 = vpop.permute.xlu1 %2537 }
 0x295   : > { %v2536_v58 = vpop.permute.xlu0 %2535 }
 0x29c   : > { %v2542_v38 = vpop.permute.xlu1 %2541 }
 0x29d   : > { %v2540_v11 = vpop.permute.xlu0 %2539 }
 0x2a4   : > { %v2546_v17 = vpop.permute.xlu1 %2545 }
 0x2a5   : > { %v2544_v21 = vpop.permute.xlu0 %2543 }
 0x2ac   : > { %v2550_v18 = vpop.permute.xlu1 %2549 }
 0x2ad   : > { %v2548_v25 = vpop.permute.xlu0 %2547 }
 0x2b4   : > { %v2554_v34 = vpop.permute.xlu1 %2553 }
 0x2b5   : > { %v2552_v37 = vpop.permute.xlu0 %2551 }
 0x2bc   : > { %v2558_v31 = vpop.permute.xlu1 %2557 }
 0x2bd   : > { %v2556_v41 = vpop.permute.xlu0 %2555 }
 0x2c4   : > { %v2562_v50 = vpop.permute.xlu1 %2561 }
 0x2c5   : > { %v2560_v45 = vpop.permute.xlu0 %2559 }
 0x2cc   : > { %v2566_v63 = vpop.permute.xlu1 %2565 }
 0x2cd   : > { %v2564_v19 = vpop.permute.xlu0 %2563 }
 0x2df   : > { %v3428_v5 = vpop.f32.mrb[80].mxu1 }
 0x2e0   : > { %v2620_v57 = vsel %vm366_vm2, %v3428_v5, %v2526_v55  ;;  %v2364_v59 = vpop.f32.mrb[81].mxu1 }
 0x2e1   : > { %2653 = vst.msk [vmem:[%s4506_s23 + $0x8] sm:$0xff] %vm2651_vm4, %v2620_v57  ;;  %v2619_v60 = vsel %vm366_vm2, %v2364_v59, %v2524_v56  ;;  %v2570_v56 = vpop.permute.xlu1 %2569  ;;  %v2568_v59 = vpop.permute.xlu0 %2567 }
 0x2e2   : > { %2652 = vst.msk [vmem:[%s4506_s23] sm:$0xff] %vm2651_vm4, %v2619_v60 }
 0x2e7   : > { %v3431_v61 = vpop.f32.mrb[82].mxu1 }
 0x2e8   : > { %v2622_v2 = vsel %vm366_vm2, %v3431_v61, %v2530_v36  ;;  %v2374_v53 = vpop.f32.mrb[83].mxu1 }
 0x2e9   : > { %2655 = vst.msk [vmem:[%s4506_s23 + $0x18] sm:$0xff] %vm2651_vm4, %v2622_v2  ;;  %v2621_v42 = vsel %vm366_vm2, %v2374_v53, %v2528_v0  ;;  %v2574_v0 = vpop.permute.xlu1 %2573  ;;  %v2572_v53 = vpop.permute.xlu0 %2571 }
 0x2ea   : > { %2654 = vst.msk [vmem:[%s4506_s23 + $0x10] sm:$0xff] %vm2651_vm4, %v2621_v42 }
 0x2ef   : > { %v3434_v4 = vpop.f32.mrb[84].mxu1 }
 0x2f0   : > { %v2624_v7 = vsel %vm366_vm2, %v3434_v4, %v2534_v16  ;;  %v2384_v8 = vpop.f32.mrb[85].mxu1 }
 0x2f1   : > { %2657 = vst.msk [vmem:[%s4506_s23 + $0x28] sm:$0xff] %vm2651_vm4, %v2624_v7  ;;  %v2623_v28 = vsel %vm366_vm2, %v2384_v8, %v2532_v6  ;;  %v2578_v6 = vpop.permute.xlu1 %2577  ;;  %v2576_v8 = vpop.permute.xlu0 %2575 }
 0x2f2   : > { %2656 = vst.msk [vmem:[%s4506_s23 + $0x20] sm:$0xff] %vm2651_vm4, %v2623_v28 }
 0x2f7   : > { %v3437_v9 = vpop.f32.mrb[86].mxu1 }
 0x2f8   : > { %v2626_v10 = vsel %vm366_vm2, %v3437_v9, %v2538_v1  ;;  %v2394_v48 = vpop.f32.mrb[87].mxu1 }
 0x2f9   : > { %2659 = vst.msk [vmem:[%s4506_s23 + $0x38] sm:$0xff] %vm2651_vm4, %v2626_v10  ;;  %v2625_v62 = vsel %vm366_vm2, %v2394_v48, %v2536_v58  ;;  %v2582_v58 = vpop.permute.xlu1 %2581  ;;  %v2580_v48 = vpop.permute.xlu0 %2579 }
 0x2fa   : > { %2658 = vst.msk [vmem:[%s4506_s23 + $0x30] sm:$0xff] %vm2651_vm4, %v2625_v62 }
 0x2ff   : > { %v3440_v54 = vpop.f32.mrb[88].mxu1 }
 0x300   : > { %v2628_v13 = vsel %vm366_vm2, %v3440_v54, %v2542_v38  ;;  %v2404_v15 = vpop.f32.mrb[89].mxu1 }
 0x301   : > { %2661 = vst.msk [vmem:[%s4506_s23 + $0x48] sm:$0xff] %vm2651_vm4, %v2628_v13  ;;  %v2627_v3 = vsel %vm366_vm2, %v2404_v15, %v2540_v11  ;;  %v2586_v11 = vpop.permute.xlu1 %2585  ;;  %v2584_v15 = vpop.permute.xlu0 %2583 }
 0x302   : > { %2660 = vst.msk [vmem:[%s4506_s23 + $0x40] sm:$0xff] %vm2651_vm4, %v2627_v3 }
 0x307   : > { %v3443_v12 = vpop.f32.mrb[90].mxu1 }
 0x308   : > { %v2630_v14 = vsel %vm366_vm2, %v3443_v12, %v2546_v17  ;;  %v2414_v43 = vpop.f32.mrb[91].mxu1 }
 0x309   : > { %2663 = vst.msk [vmem:[%s4506_s23 + $0x58] sm:$0xff] %vm2651_vm4, %v2630_v14  ;;  %v2629_v23 = vsel %vm366_vm2, %v2414_v43, %v2544_v21 }
 0x30a   : > { %2662 = vst.msk [vmem:[%s4506_s23 + $0x50] sm:$0xff] %vm2651_vm4, %v2629_v23 }
 0x30f   : > { %v3446_v29 = vpop.f32.mrb[92].mxu1 }
 0x310   : > { %v2632_v27 = vsel %vm366_vm2, %v3446_v29, %v2550_v18  ;;  %v2424_v33 = vpop.f32.mrb[93].mxu1 }
 0x311   : > { %2665 = vst.msk [vmem:[%s4506_s23 + $0x68] sm:$0xff] %vm2651_vm4, %v2632_v27  ;;  %v2631_v32 = vsel %vm366_vm2, %v2424_v33, %v2548_v25 }
 0x312   : > { %2664 = vst.msk [vmem:[%s4506_s23 + $0x60] sm:$0xff] %vm2651_vm4, %v2631_v32 }
 0x317   : > { %v3449_v26 = vpop.f32.mrb[94].mxu1 }
 0x318   : > { %v2634_v39 = vsel %vm366_vm2, %v3449_v26, %v2554_v34  ;;  %v2434_v24 = vpop.f32.mrb[95].mxu1 }
 0x319   : > { %2667 = vst.msk [vmem:[%s4506_s23 + $0x78] sm:$0xff] %vm2651_vm4, %v2634_v39  ;;  %v2633_v40 = vsel %vm366_vm2, %v2434_v24, %v2552_v37 }
 0x31a   : > { %2666 = vst.msk [vmem:[%s4506_s23 + $0x70] sm:$0xff] %vm2651_vm4, %v2633_v40 }
 0x31f   : > { %v3452_v22 = vpop.f32.mrb[96].mxu1 }
 0x320   : > { %v2636_v20 = vsel %vm366_vm2, %v3452_v22, %v2558_v31  ;;  %v2444_v44 = vpop.f32.mrb[97].mxu1 }
 0x321   : > { %2669 = vst.msk [vmem:[%s4506_s23 + $0x88] sm:$0xff] %vm2651_vm4, %v2636_v20  ;;  %v2635_v30 = vsel %vm366_vm2, %v2444_v44, %v2556_v41 }
 0x322   : > { %2668 = vst.msk [vmem:[%s4506_s23 + $0x80] sm:$0xff] %vm2651_vm4, %v2635_v30 }
 0x327   : > { %v3455_v51 = vpop.f32.mrb[98].mxu1 }
 0x328   : > { %v2638_v46 = vsel %vm366_vm2, %v3455_v51, %v2562_v50  ;;  %v2454_v35 = vpop.f32.mrb[99].mxu1 }
 0x329   : > { %2671 = vst.msk [vmem:[%s4506_s23 + $0x98] sm:$0xff] %vm2651_vm4, %v2638_v46  ;;  %v2637_v47 = vsel %vm366_vm2, %v2454_v35, %v2560_v45 }
 0x32a   : > { %2670 = vst.msk [vmem:[%s4506_s23 + $0x90] sm:$0xff] %vm2651_vm4, %v2637_v47 }
 0x32f   : > { %v3458_v49 = vpop.f32.mrb[100].mxu1 }
 0x330   : > { %v2640_v52 = vsel %vm366_vm2, %v3458_v49, %v2566_v63  ;;  %v2464_v55 = vpop.f32.mrb[101].mxu1 }
 0x331   : > { %2673 = vst.msk [vmem:[%s4506_s23 + $0xa8] sm:$0xff] %vm2651_vm4, %v2640_v52  ;;  %v2639_v5 = vsel %vm366_vm2, %v2464_v55, %v2564_v19 }
 0x332   : > { %2672 = vst.msk [vmem:[%s4506_s23 + $0xa0] sm:$0xff] %vm2651_vm4, %v2639_v5 }
 0x337   : > { %v3461_v57 = vpop.f32.mrb[102].mxu1 }
 0x338   : > { %v2642_v60 = vsel %vm366_vm2, %v3461_v57, %v2570_v56  ;;  %v2474_v36 = vpop.f32.mrb[103].mxu1 }
 0x339   : > { %2675 = vst.msk [vmem:[%s4506_s23 + $0xb8] sm:$0xff] %vm2651_vm4, %v2642_v60  ;;  %v2641_v61 = vsel %vm366_vm2, %v2474_v36, %v2568_v59 }
 0x33a   : > { %2674 = vst.msk [vmem:[%s4506_s23 + $0xb0] sm:$0xff] %vm2651_vm4, %v2641_v61 }
 0x33f   : > { %v3464_v2 = vpop.f32.mrb[104].mxu1 }
 0x340   : > { %v2644_v42 = vsel %vm366_vm2, %v3464_v2, %v2574_v0  ;;  %v2484_v16 = vpop.f32.mrb[105].mxu1 }
 0x341   : > { %2677 = vst.msk [vmem:[%s4506_s23 + $0xc8] sm:$0xff] %vm2651_vm4, %v2644_v42  ;;  %v2643_v4 = vsel %vm366_vm2, %v2484_v16, %v2572_v53 }
 0x342   : > { %2676 = vst.msk [vmem:[%s4506_s23 + $0xc0] sm:$0xff] %vm2651_vm4, %v2643_v4 }
 0x347   : > { %v3467_v7 = vpop.f32.mrb[106].mxu1 }
 0x348   : > { %v2646_v28 = vsel %vm366_vm2, %v3467_v7, %v2578_v6  ;;  %v2494_v1 = vpop.f32.mrb[107].mxu1 }
 0x349   : > { %2679 = vst.msk [vmem:[%s4506_s23 + $0xd8] sm:$0xff] %vm2651_vm4, %v2646_v28  ;;  %v2645_v9 = vsel %vm366_vm2, %v2494_v1, %v2576_v8 }
 0x34a   : > { %2678 = vst.msk [vmem:[%s4506_s23 + $0xd0] sm:$0xff] %vm2651_vm4, %v2645_v9 }
 0x34f   : > { %v3470_v10 = vpop.f32.mrb[108].mxu1 }
 0x350   : > { %v2648_v62 = vsel %vm366_vm2, %v3470_v10, %v2582_v58  ;;  %v2504_v38 = vpop.f32.mrb[109].mxu1 }
 0x351   : > { %2681 = vst.msk [vmem:[%s4506_s23 + $0xe8] sm:$0xff] %vm2651_vm4, %v2648_v62  ;;  %v2647_v54 = vsel %vm366_vm2, %v2504_v38, %v2580_v48 }
 0x352   : > { %2680 = vst.msk [vmem:[%s4506_s23 + $0xe0] sm:$0xff] %vm2651_vm4, %v2647_v54 }
 0x357   : > { %v3473_v13 = vpop.f32.mrb[110].mxu1 }
 0x358   : > { %v2650_v3 = vsel %vm366_vm2, %v3473_v13, %v2586_v11  ;;  %v2514_v17 = vpop.f32.mrb[111].mxu1 }
 0x359   : > { %2683 = vst.msk [vmem:[%s4506_s23 + $0xf8] sm:$0xff] %vm2651_vm4, %v2650_v3  ;;  %v2649_v12 = vsel %vm366_vm2, %v2514_v17, %v2584_v15 }
 0x35a   : > { %2682 = vst.msk [vmem:[%s4506_s23 + $0xf0] sm:$0xff] %vm2651_vm4, %v2649_v12 }
 0x35b PF: > { %s18_s29 = sadd.s32 1, %s3746_s29   ;;  %s4622_s27 = smov %s3742_s28 }
 0x35c   : > { %p15_p5 = scmp.ge.s32.totalorder %s18_s29, 4   ;;  %s4623_s28 = smov %s4625_s30 }
 0x35e   :  { %17 = sbr.rel (!%p15_p5) target bundleno = 2 (0x2), region = 94 }

// kernel: vgae_forward.7
= control target key start
LH: loop header
LB: loop body
LE: loop exit
PB: predicated region body
PF: predicated region fallthrough
CT: control target
= control target key end

     0   :  { %7 = vsyncpa [#allocation4], 0  ;;  %s1961_s0 = inlined_call_operand.vmem [shape: bf16[512,20], index: 0, kind: input, shape index: {}]   ;;  %s1962_s1 = inlined_call_operand.vmem [shape: bf16[20,512], index: 1, kind: input, shape index: {}]   ;;  %s1963_s2 = inlined_call_operand.hbm [shape: bf16[512,512], index: 2, kind: output, shape index: {}]  }
   0x1   :  { %9 = vsyncpa [#allocation4 + $0x1], 0  ;;  %s1693_s9 = smov 0   ;;  %s1695_s10 = smov 0  }
   0x2   :  { %s1697_s11 = smov 0   ;;  %s1699_s12 = smov 0  }
   0x3   :  { %s1701_s13 = smov 0   ;;  %s1703_s14 = smov 0  }
   0x4   :  { %s1705_s15 = smov 0   ;;  %s1707_s16 = smov 0  }
   0x5   :  { %s1709_s17 = smov 0   ;;  %s1711_s18 = smov 0  }
   0x6 LB: > { %s1195_s19 = sadd.s32 4294967295, %s1671_s18   ;;  %s1196_s20 = sadd.s32 4294967294, %s1671_s18   ;;  %s1671_s18 = sphi %s1711_s18, %s15_s18   ;;  %s1667_s17 = sphi %s1709_s17, %s1975_s17   ;;  %s1663_s16 = sphi %s1707_s16, %s1974_s16   ;;  %s1659_s15 = sphi %s1705_s15, %s1973_s15   ;;  %s1655_s14 = sphi %s1703_s14, %s1972_s14   ;;  %s1651_s13 = sphi %s1701_s13, %s1971_s13   ;;  %s1647_s12 = sphi %s1699_s12, %s1970_s12   ;;  %s1643_s11 = sphi %s1697_s11, %s1969_s11   ;;  %s1639_s10 = sphi %s1695_s10, %s1968_s10   ;;  %s1635_s9 = sphi %s1693_s9, %s1967_s9  }
   0x7   : > { %s24_s21 = sadd.s32 1, %s1663_s16  ;;  %s27_s22 = sadd.s32 1, %s1667_s17 }
   0x8   : > { %p25_p0 = scmp.ge.s32.totalorder %s24_s21, 2  ;;  %s60_s23 = sadd.s32 1, %s1651_s13 }
   0x9   : > { %p67_p1 = scmp.ne.s32.totalorder %s1651_s13, %s1647_s12  ;;  %p68_p2 = scmp.eq.s32.totalorder %s1671_s18, 0 }
   0xa   : > { %s1977_s21 = smov (%p25_p0, %s24_s21), 0  ;;  %s1979_s22 = smov (!%p25_p0, %s27_s22), %s1667_s17 }
   0xb   : > { %s57_s24 = ssub.s32 %s1663_s16, %s1977_s21  ;;  %p1756_p3 = por %p68_p2, %p67_p1 }
   0xc   : > { %p29_p4 = scmp.ge.s32.totalorder %s1979_s22, 2  ;;  %p58_p5 = scmp.eq.s32.totalorder %s57_s24, 0 }
   0xd   : > { %s88_s26 = sadd.s32 1, %s1643_s11  ;;  %p98_p6 = scmp.ne.s32.totalorder %s1643_s11, %s1639_s10 }
   0xe   : > { %s1981_s22 = smov (%p29_p4, %s1979_s22), 0  ;;  %p99_p7 = scmp.eq.s32.totalorder %s1195_s19, 3 }
   0xf   : > { %s1766_s27 = scalar_select %p58_p5, %s1651_s13, %s60_s23  }
  0x10   : > { %s83_s28 = ssub.s32 %s1667_s17, %s1981_s22  ;;  %p104_p8 = scmp.ne.s32.totalorder %s1639_s10, %s1635_s9 }
  0x11   : > { %s85_s29 = sor.u32 %s83_s28, %s57_s24  ;;  %p1772_p10 = por %p99_p7, %p98_p6 }
  0x12   : > { %p86_p9 = scmp.eq.s32.totalorder %s85_s29, 0  ;;  %p105_p11 = scmp.eq.s32.totalorder %s1196_s20, 3 }
  0x13   : > { %p1198_p13 = scmp.ge.s32.totalorder %s1671_s18, 4 }
  0x14   : > { %s1777_s3 = scalar_select %p86_p9, %s1643_s11, %s88_s26  }
  0x15   : > { %p1779_p12 = por %p105_p11, %p104_p8  ;;  %121 = sbr.rel (%p1198_p13) target bundleno = 35 (0x23), region = 16 }
  0x1c   : > { %133 = sbr.rel (!%p1756_p3) target bundleno = 35 (0x23), region = 24  ;;  %s135_s5 = sand.u32 (%p1756_p3), 1, %s1651_s13  }
  0x1d   : > { %s1281_s6 = sshll.u32 (%p1756_p3), %s1663_s16, 3  ;;  %s1319_s7 = smul.u32 (%p1756_p3), 24, %s135_s5 }
  0x1e   : > { %s140_s20 = scalar_lea.vmem (%p1756_p3), %s1962_s1, %s1281_s6 }
  0x1f   : > { %v172_v0 = vld [vmem:[%s140_s20] sm:$0xff] (%p1756_p3)  ;;  %v174_v1 = vld [vmem:[%s140_s20 + $0x10] sm:$0xff] (%p1756_p3)  ;;  %s137_s23 = scalar_lea.vmem (%p1756_p3), [#allocation2], %s1319_s7 }
  0x20   : > { %v176_v2 = vld [vmem:[%s140_s20 + $0x20] sm:$0xff] (%p1756_p3)  ;;  %173 = vst [vmem:[%s137_s23] sm:$0xff] (%p1756_p3), %v172_v0  ;;  %175 = vst [vmem:[%s137_s23 + $0x8] sm:$0xff] (%p1756_p3), %v174_v1 }
  0x21   : > { %177 = vst [vmem:[%s137_s23 + $0x10] sm:$0xff] (%p1756_p3), %v176_v2 }
  0x23 PF: > { %p1201_p0 = scmp.ge.s32.totalorder %s1671_s18, 1  ;;  %p182_p1 = scmp.lt.s32.totalorder %s1671_s18, 5 }
  0x25   : > { %p183_p2 = pnand %p1201_p0, %p182_p1 }
  0x26   : > { %s189_s24 = sand.u32 (!%p183_p2), 1, %s1647_s12   ;;  %s1203_s25 = sshll.u32 (!%p183_p2), %s1659_s15, 5  ;;  %v1673_v3 = vmov (!%p183_p2), 0   ;;  %vm404_vm0 = vcmask (!%p183_p2), 1041408   ;;  %vm355_vm1 = vcmask (!%p183_p2), 162816  }
  0x27   : > { %186 = sbr.rel (%p183_p2) target bundleno = 369 (0x171), region = 62  ;;  %443 = vmatprep.mubr.bf16.mxu0 (!%p183_p2), %v1673_v3  ;;  %523 = vmatprep.mubr.bf16.mxu1 (!%p183_p2), %v1673_v3  ;;  %p216_p3 = scmp.lt.s32.totalorder (!%p183_p2), %s1203_s25, 63 }
  0x28   : > { %s1320_s26 = smul.u32 (!%p183_p2), 24, %s189_s24  ;;  %s212_s7 = sand.u32 (!%p183_p2), 1, %s1639_s10  }
  0x29   : > { %s1851_s8 = sshll.u32 (!%p183_p2), %s212_s7, 8  ;;  %s1276_s20 = sshll.u32 (!%p183_p2), %s1655_s14, 1 }
  0x2a   : > { %s191_s28 = scalar_lea.vmem (!%p183_p2), [#allocation2], %s1320_s26  ;;  %s1854_s19 = scalar_lea.vmem (!%p183_p2), [#allocation3], %s1851_s8 }
  0x2b   : > { %v259_v4 = vld [vmem:[%s191_s28 + $0x10] sm:$0x33] (!%p183_p2)  ;;  %v1412_v5 = vld [vmem:[%s191_s28 + $0x4] ss:$8 sps:$4 sm:$0xff] (!%p183_p2)   ;;  %v1414_v6 = vld [vmem:[%s191_s28] ss:$8 sps:$4 sm:$0xff] (!%p183_p2)  }
  0x2c   : > { %v1224_v7 = vcombine.high (!%p183_p2), %v259_v4, %v259_v4  ;;  %v1223_v8 = vcombine.low (!%p183_p2), %v259_v4, %v259_v4  ;;  %411 = vmatprep.subr.bf16.mxu0 (!%p183_p2), %v1412_v5  ;;  %1315 = vmatprep.subr.bf16.mxu1 (!%p183_p2), %v1412_v5  ;;  %s1314_s23 = sshll.u32 (!%p183_p2), %s1659_s15, 7  ;;  %s1101_s15 = sshll.u32 (!%p183_p2), %s1854_s19, 4  ;;  %s1897_s15 = int_to_ptr.vmem [resolvable:$true] %s1101_s15 }
  0x2d   : > { %412 = vmatpush1.bf16.msra.mxu0 (!%p183_p2), %v1414_v6  ;;  %1317 = vmatpush1.bf16.msra.mxu1 (!%p183_p2), %v1414_v6  ;;  %s1098_s24 = sadd.s32 (!%p183_p2), %s1314_s23, %s1276_s20  ;;  %s1561_s12 = scalar_lea.vmem (!%p183_p2), %s1897_s15, 4096 }
  0x2e   : > { %s1983_s25 = smov (!%p216_p3, %s1203_s25), 63  ;;  %1225 = vmatprep.subr.msk.bf16.mxu0 %vm404_vm0, %v1224_v7  ;;  %1316 = vmatprep.subr.msk.bf16.mxu1 %vm404_vm0, %v1224_v7  ;;  %v406_v9 = vsel %vm404_vm0, %v1223_v8, 0  ;;  %s1278_s14 = sshll.u32 %s1098_s24, 6 }
  0x2f   : > { %s1204_s29 = sshll.u32 %s1983_s25, 2  ;;  %s1895_s28 = scalar_lea.hbm %s1963_s2, %s1278_s14 }
  0x30   : > { %s1800_s6 = scalar_lea.vmem %s1961_s0, %s1204_s29  ;;  %s1903_s29 = scalar_lea.sflag [#allocation4], %s212_s7 }
  0x31   : > { %v1417_v10 = vld [vmem:[%s1800_s6] sm:$0xff]   ;;  %414 = vmatpush1.bf16.msra.mxu0 %v406_v9  ;;  %1318 = vmatpush1.bf16.msra.mxu1 %v406_v9  ;;  %v1419_v12 = vld [vmem:[%s1800_s6 + $0x8] sm:$0xff]   ;;  %v1421_v14 = vld [vmem:[%s1800_s6 + $0x10] sm:$0xff]   ;;  %p1562_p4 = scmp.ne.s32.totalorder %s1897_s15, %s1561_s12  ;;  %s1674_s5 = smov [#allocation3]  }
  0x32   : > { %v1418_v11 = vld [vmem:[%s1800_s6 + $0x40] sm:$0xff]   ;;  %v1420_v13 = vld [vmem:[%s1800_s6 + $0x48] sm:$0xff]   ;;  %v1422_v15 = vld [vmem:[%s1800_s6 + $0x50] sm:$0xff]  }
  0x33   : > { %v1423_v16 = vld [vmem:[%s1800_s6 + $0x18] sm:$0xff]   ;;  %v1425_v18 = vld [vmem:[%s1800_s6 + $0x20] sm:$0xff]   ;;  %v1427_v20 = vld [vmem:[%s1800_s6 + $0x28] sm:$0xff]   ;;  %p1563_p5 = pnand %p1562_p4, %p1772_p10 }
  0x34   : > { %1226 = vmatmul.mubr.msk.bf16.vlgmr.msra.gmra.mrb[0].mxu0 %vm355_vm1, %v1417_v10  ;;  %1234 = vmatmul.mubr.msk.bf16.vlgmr.msra.gmra.mrb[0].mxu1 %vm355_vm1, %v1418_v11  ;;  %v1424_v17 = vld [vmem:[%s1800_s6 + $0x58] sm:$0xff]   ;;  %v1426_v19 = vld [vmem:[%s1800_s6 + $0x60] sm:$0xff]   ;;  %v1428_v21 = vld [vmem:[%s1800_s6 + $0x68] sm:$0xff]  }
  0x35   : > { %453 = vmatprep.mubr.bf16.mxu0 %v1673_v3  ;;  %533 = vmatprep.mubr.bf16.mxu1 %v1673_v3  ;;  %v1429_v22 = vld [vmem:[%s1800_s6 + $0x30] sm:$0xff]   ;;  %v1431_v24 = vld [vmem:[%s1800_s6 + $0x38] sm:$0xff]   ;;  %p1564_p6 = pneg %p1563_p5 }
  0x36   : > { %v1430_v23 = vld [vmem:[%s1800_s6 + $0x70] sm:$0xff]   ;;  %v1432_v25 = vld [vmem:[%s1800_s6 + $0x78] sm:$0xff]   ;;  %s1565_s6 = sshll.u32 %s1674_s5, 4  ;;  %s1566_s6 = int_to_ptr.vmem [resolvable:$false] %s1565_s6 }
  0x37   : > { %s1567_s8 = scalar_lea.vmem %s1566_s6, 8192  ;;  %p1568_p7 = scmp.lt.s32.totalorder %s1897_s15, %s1566_s6 }
  0x38   : > { %p1569_p8 = scmp.lt.s32.totalorder %s1567_s8, %s1561_s12 }
  0x3a   : > { %p1570_p9 = por %p1569_p8, %p1568_p7 }
  0x3c   : > { %1227 = vmatmul.mubr.msk.bf16.gmra.mrb[4].mxu0 %vm355_vm1, %v1419_v12  ;;  %1235 = vmatmul.mubr.msk.bf16.gmra.mrb[4].mxu1 %vm355_vm1, %v1420_v13  ;;  %p1571_p11 = pnand %p1570_p9, %p1564_p6 }
  0x3d   : > { %463 = vmatprep.mubr.bf16.mxu0 %v1673_v3  ;;  %543 = vmatprep.mubr.bf16.mxu1 %v1673_v3 }
  0x44   : > { %1228 = vmatmul.mubr.msk.bf16.gmra.mrb[8].mxu0 %vm355_vm1, %v1421_v14  ;;  %1236 = vmatmul.mubr.msk.bf16.gmra.mrb[8].mxu1 %vm355_vm1, %v1422_v15 }
  0x45   : > { %473 = vmatprep.mubr.bf16.mxu0 %v1673_v3  ;;  %553 = vmatprep.mubr.bf16.mxu1 %v1673_v3 }
  0x4c   : > { %1229 = vmatmul.mubr.msk.bf16.gmra.mrb[12].mxu0 %vm355_vm1, %v1423_v16  ;;  %1237 = vmatmul.mubr.msk.bf16.gmra.mrb[12].mxu1 %vm355_vm1, %v1424_v17 }
  0x4d   : > { %483 = vmatprep.mubr.bf16.mxu0 %v1673_v3  ;;  %563 = vmatprep.mubr.bf16.mxu1 %v1673_v3 }
  0x54   : > { %1230 = vmatmul.mubr.msk.bf16.gmra.mrb[16].mxu0 %vm355_vm1, %v1425_v18  ;;  %1238 = vmatmul.mubr.msk.bf16.gmra.mrb[16].mxu1 %vm355_vm1, %v1426_v19 }
  0x55   : > { %493 = vmatprep.mubr.bf16.mxu0 %v1673_v3  ;;  %573 = vmatprep.mubr.bf16.mxu1 %v1673_v3 }
  0x5c   : > { %1231 = vmatmul.mubr.msk.bf16.gmra.mrb[20].mxu0 %vm355_vm1, %v1427_v20  ;;  %1239 = vmatmul.mubr.msk.bf16.gmra.mrb[20].mxu1 %vm355_vm1, %v1428_v21 }
  0x5d   : > { %503 = vmatprep.mubr.bf16.mxu0 %v1673_v3  ;;  %583 = vmatprep.mubr.bf16.mxu1 %v1673_v3 }
  0x64   : > { %1232 = vmatmul.mubr.msk.bf16.gmra.mrb[24].mxu0 %vm355_vm1, %v1429_v22  ;;  %1240 = vmatmul.mubr.msk.bf16.gmra.mrb[24].mxu1 %vm355_vm1, %v1430_v23 }
  0x65   : > { %513 = vmatprep.mubr.bf16.mxu0 %v1673_v3  ;;  %593 = vmatprep.mubr.bf16.mxu1 %v1673_v3 }
  0x6c   : > { %1233 = vmatmul.mubr.msk.bf16.gmra.mrb[28].mxu0 %vm355_vm1, %v1431_v24  ;;  %1241 = vmatmul.mubr.msk.bf16.gmra.mrb[28].mxu1 %vm355_vm1, %v1432_v25 }
 0x107   : > { %v445_v26 = vpop.f32.mrb[0].mxu0  ;;  %v525_v27 = vpop.f32.mrb[0].mxu1 }
 0x108   : > { %v604_v28 = vmul.f32 0.5, %v445_v26  ;;  %v636_v29 = vmul.f32 0.5, %v525_v27  ;;  %v447_v30 = vpop.f32.mrb[1].mxu0  ;;  %v527_v31 = vpop.f32.mrb[1].mxu1 }
 0x109   : > { %v605_v32 = vmul.f32 0.5, %v447_v30  ;;  %v637_v33 = vmul.f32 0.5, %v527_v31  ;;  %v449_v34 = vpop.f32.mrb[2].mxu0  ;;  %v529_v35 = vpop.f32.mrb[2].mxu1 }
 0x10a   : > { %1433 = vtanh.f32 %v604_v28  ;;  %v606_v36 = vmul.f32 0.5, %v449_v34  ;;  %v451_v37 = vpop.f32.mrb[3].mxu0  ;;  %v531_v38 = vpop.f32.mrb[3].mxu1  ;;  %v638_v39 = vmul.f32 0.5, %v529_v35 }
 0x10b   : > { %1435 = vtanh.f32 %v636_v29  ;;  %v607_v40 = vmul.f32 0.5, %v451_v37  ;;  %v639_v41 = vmul.f32 0.5, %v531_v38 }
 0x10c   : > { %1437 = vtanh.f32 %v605_v32 }
 0x10d   : > { %1439 = vtanh.f32 %v637_v33 }
 0x10e   : > { %1441 = vtanh.f32 %v606_v36 }
 0x10f   : > { %1443 = vtanh.f32 %v638_v39  ;;  %v455_v42 = vpop.f32.mrb[4].mxu0  ;;  %v535_v43 = vpop.f32.mrb[4].mxu1 }
 0x110   : > { %1445 = vtanh.f32 %v607_v40  ;;  %v608_v44 = vmul.f32 0.5, %v455_v42  ;;  %v640_v45 = vmul.f32 0.5, %v535_v43  ;;  %v457_v46 = vpop.f32.mrb[5].mxu0  ;;  %v537_v47 = vpop.f32.mrb[5].mxu1 }
 0x111   : > { %1447 = vtanh.f32 %v639_v41  ;;  %v609_v48 = vmul.f32 0.5, %v457_v46  ;;  %v641_v49 = vmul.f32 0.5, %v537_v47  ;;  %v459_v50 = vpop.f32.mrb[6].mxu0  ;;  %v539_v51 = vpop.f32.mrb[6].mxu1 }
 0x112   : > { %1449 = vtanh.f32 %v608_v44  ;;  %v610_v52 = vmul.f32 0.5, %v459_v50  ;;  %v461_v53 = vpop.f32.mrb[7].mxu0  ;;  %v541_v54 = vpop.f32.mrb[7].mxu1  ;;  %v642_v55 = vmul.f32 0.5, %v539_v51 }
 0x113   : > { %1451 = vtanh.f32 %v640_v45  ;;  %v611_v57 = vmul.f32 0.5, %v461_v53  ;;  %v643_v60 = vmul.f32 0.5, %v541_v54 }
 0x114   : > { %v1434_v56 = vpop.eup %1433  ;;  %1453 = vtanh.f32 %v609_v48 }
 0x115   : > { %v1436_v58 = vpop.eup %1435  ;;  %v732_v59 = vmul.f32 0.5, %v1434_v56  ;;  %1455 = vtanh.f32 %v641_v49 }
 0x116   : > { %v1438_v61 = vpop.eup %1437  ;;  %v764_v62 = vmul.f32 0.5, %v1436_v58  ;;  %1457 = vtanh.f32 %v610_v52 }
 0x117   : > { %v1440_v63 = vpop.eup %1439  ;;  %v796_v0 = vadd.f32 0.5, %v732_v59  ;;  %v733_v1 = vmul.f32 0.5, %v1438_v61  ;;  %1459 = vtanh.f32 %v642_v55  ;;  %v465_v2 = vpop.f32.mrb[8].mxu0 }
 0x118   : > { %v545_v3 = vpop.f32.mrb[8].mxu1  ;;  %v1442_v4 = vpop.eup %1441  ;;  %v828_v5 = vadd.f32 0.5, %v764_v62  ;;  %v765_v6 = vmul.f32 0.5, %v1440_v63  ;;  %1461 = vtanh.f32 %v611_v57  ;;  %v612_v7 = vmul.f32 0.5, %v465_v2 }
 0x119   : > { %v467_v8 = vpop.f32.mrb[9].mxu0  ;;  %v547_v9 = vpop.f32.mrb[9].mxu1  ;;  %v797_v11 = vadd.f32 0.5, %v733_v1  ;;  %v734_v12 = vmul.f32 0.5, %v1442_v4  ;;  %1463 = vtanh.f32 %v643_v60  ;;  %v644_v13 = vmul.f32 0.5, %v545_v3 }
 0x11a   : > { %v1444_v10 = vpop.eup %1443  ;;  %v469_v14 = vpop.f32.mrb[10].mxu0  ;;  %v829_v17 = vadd.f32 0.5, %v765_v6  ;;  %1465 = vtanh.f32 %v612_v7  ;;  %v613_v19 = vmul.f32 0.5, %v467_v8  ;;  %v645_v33 = vmul.f32 0.5, %v547_v9 }
 0x11b   : > { %v549_v15 = vpop.f32.mrb[10].mxu1  ;;  %v1446_v16 = vpop.eup %1445  ;;  %v766_v18 = vmul.f32 0.5, %v1444_v10  ;;  %v1282_v23 = vpack.c.bf16 %v797_v11, %v796_v0  ;;  %v798_v24 = vadd.f32 0.5, %v734_v12  ;;  %1467 = vtanh.f32 %v644_v13 }
 0x11c   : > { %v471_v20 = vpop.f32.mrb[11].mxu0  ;;  %v551_v21 = vpop.f32.mrb[11].mxu1  ;;  %v735_v25 = vmul.f32 0.5, %v1446_v16  ;;  %v1298_v27 = vpack.c.bf16 %v829_v17, %v828_v5  ;;  %1469 = vtanh.f32 %v613_v19  ;;  %v614_v34 = vmul.f32 0.5, %v469_v14 }
 0x11d   : > { %v1448_v22 = vpop.eup %1447  ;;  %v830_v28 = vadd.f32 0.5, %v766_v18  ;;  %1052 = vst [vmem:[%s1854_s19] sm:$0xff] %v1282_v23  ;;  %v646_v38 = vmul.f32 0.5, %v549_v15  ;;  %v615_v39 = vmul.f32 0.5, %v471_v20  ;;  %1471 = vtanh.f32 %v645_v33 }
 0x11e   : > { %v1450_v26 = vpop.eup %1449  ;;  %v767_v29 = vmul.f32 0.5, %v1448_v22  ;;  %v799_v31 = vadd.f32 0.5, %v735_v25  ;;  %1068 = vst [vmem:[%s1854_s19 + $0x80] sm:$0xff] %v1298_v27  ;;  %1473 = vtanh.f32 %v614_v34  ;;  %v647_v55 = vmul.f32 0.5, %v551_v21 }
 0x11f   : > { %v1452_v30 = vpop.eup %1451  ;;  %v736_v32 = vmul.f32 0.5, %v1450_v26  ;;  %v475_v44 = vpop.f32.mrb[12].mxu0  ;;  %1475 = vtanh.f32 %v646_v38 }
 0x120   : > { %v1454_v35 = vpop.eup %1453  ;;  %v831_v36 = vadd.f32 0.5, %v767_v29  ;;  %v768_v37 = vmul.f32 0.5, %v1452_v30  ;;  %v1283_v41 = vpack.c.bf16 %v799_v31, %v798_v24  ;;  %v555_v45 = vpop.f32.mrb[12].mxu1  ;;  %1477 = vtanh.f32 %v615_v39 }
 0x121   : > { %v1456_v40 = vpop.eup %1455  ;;  %v800_v42 = vadd.f32 0.5, %v736_v32  ;;  %v737_v43 = vmul.f32 0.5, %v1454_v35  ;;  %v477_v50 = vpop.f32.mrb[13].mxu0  ;;  %v616_v61 = vmul.f32 0.5, %v475_v44  ;;  %1479 = vtanh.f32 %v647_v55 }
 0x122   : > { %v1458_v46 = vpop.eup %1457  ;;  %v1299_v47 = vpack.c.bf16 %v831_v36, %v830_v28  ;;  %v832_v48 = vadd.f32 0.5, %v768_v37  ;;  %v769_v49 = vmul.f32 0.5, %v1456_v40  ;;  %v557_v51 = vpop.f32.mrb[13].mxu1  ;;  %1053 = vst [vmem:[%s1854_s19 + $0x8] sm:$0xff] %v1283_v41  ;;  %v648_v11 = vmul.f32 0.5, %v555_v45 }
 0x123   : > { %v1460_v52 = vpop.eup %1459  ;;  %v801_v53 = vadd.f32 0.5, %v737_v43  ;;  %v738_v54 = vmul.f32 0.5, %v1458_v46  ;;  %v479_v56 = vpop.f32.mrb[14].mxu0  ;;  %1481 = vtanh.f32 %v616_v61  ;;  %v617_v12 = vmul.f32 0.5, %v477_v50 }
 0x124   : > { %v559_v57 = vpop.f32.mrb[14].mxu1  ;;  %v1462_v58 = vpop.eup %1461  ;;  %1069 = vst [vmem:[%s1854_s19 + $0x88] sm:$0xff] %v1299_v47  ;;  %v833_v59 = vadd.f32 0.5, %v769_v49  ;;  %v770_v60 = vmul.f32 0.5, %v1460_v52  ;;  %v649_v16 = vmul.f32 0.5, %v557_v51  ;;  %v618_v17 = vmul.f32 0.5, %v479_v56 }
 0x125   : > { %v481_v62 = vpop.f32.mrb[15].mxu0  ;;  %v561_v63 = vpop.f32.mrb[15].mxu1  ;;  %v1284_v1 = vpack.c.bf16 %v801_v53, %v800_v42  ;;  %v802_v2 = vadd.f32 0.5, %v738_v54  ;;  %v739_v3 = vmul.f32 0.5, %v1462_v58  ;;  %1483 = vtanh.f32 %v648_v11 }
 0x126   : > { %v1464_v0 = vpop.eup %1463  ;;  %v1300_v5 = vpack.c.bf16 %v833_v59, %v832_v48  ;;  %v834_v6 = vadd.f32 0.5, %v770_v60  ;;  %1485 = vtanh.f32 %v617_v12  ;;  %v650_v25 = vmul.f32 0.5, %v559_v57 }
 0x127   : > { %v1466_v4 = vpop.eup %1465  ;;  %v771_v7 = vmul.f32 0.5, %v1464_v0  ;;  %1054 = vst [vmem:[%s1854_s19 + $0x10] sm:$0xff] %v1284_v1  ;;  %v803_v9 = vadd.f32 0.5, %v739_v3  ;;  %v485_v21 = vpop.f32.mrb[16].mxu0  ;;  %1487 = vtanh.f32 %v649_v16  ;;  %v619_v30 = vmul.f32 0.5, %v481_v62 }
 0x128   : > { %v1468_v8 = vpop.eup %1467  ;;  %v740_v10 = vmul.f32 0.5, %v1466_v4  ;;  %1070 = vst [vmem:[%s1854_s19 + $0x90] sm:$0xff] %v1300_v5  ;;  %v565_v22 = vpop.f32.mrb[16].mxu1  ;;  %v651_v31 = vmul.f32 0.5, %v561_v63  ;;  %1489 = vtanh.f32 %v618_v17  ;;  %v620_v36 = vmul.f32 0.5, %v485_v21 }
 0x129   : > { %v1470_v13 = vpop.eup %1469  ;;  %v835_v14 = vadd.f32 0.5, %v771_v7  ;;  %v772_v15 = vmul.f32 0.5, %v1468_v8  ;;  %v1285_v18 = vpack.c.bf16 %v803_v9, %v802_v2  ;;  %v487_v26 = vpop.f32.mrb[17].mxu0  ;;  %v652_v37 = vmul.f32 0.5, %v565_v22 }
 0x12a   : > { %v804_v19 = vadd.f32 0.5, %v740_v10  ;;  %v741_v20 = vmul.f32 0.5, %v1470_v13  ;;  %v567_v27 = vpop.f32.mrb[17].mxu1  ;;  %v1472_v28 = vpop.eup %1471  ;;  %1491 = vtanh.f32 %v650_v25  ;;  %v621_v43 = vmul.f32 0.5, %v487_v26 }
 0x12b   : > { %v1301_v23 = vpack.c.bf16 %v835_v14, %v834_v6  ;;  %v836_v24 = vadd.f32 0.5, %v772_v15  ;;  %1055 = vst [vmem:[%s1854_s19 + $0x18] sm:$0xff] %v1285_v18  ;;  %v489_v32 = vpop.f32.mrb[18].mxu0  ;;  %v569_v33 = vpop.f32.mrb[18].mxu1  ;;  %v773_v35 = vmul.f32 0.5, %v1472_v28  ;;  %1493 = vtanh.f32 %v619_v30 }
 0x12c   : > { %v805_v29 = vadd.f32 0.5, %v741_v20  ;;  %v1474_v34 = vpop.eup %1473  ;;  %v491_v38 = vpop.f32.mrb[19].mxu0  ;;  %v653_v47 = vmul.f32 0.5, %v567_v27  ;;  %1495 = vtanh.f32 %v651_v31  ;;  %v622_v51 = vmul.f32 0.5, %v489_v32 }
 0x12d   : > { %1071 = vst [vmem:[%s1854_s19 + $0x98] sm:$0xff] %v1301_v23  ;;  %v571_v39 = vpop.f32.mrb[19].mxu1  ;;  %v1476_v40 = vpop.eup %1475  ;;  %v742_v42 = vmul.f32 0.5, %v1474_v34  ;;  %v837_v45 = vadd.f32 0.5, %v773_v35  ;;  %1497 = vtanh.f32 %v620_v36  ;;  %v654_v58 = vmul.f32 0.5, %v569_v33 }
 0x12e   : > { %v1286_v41 = vpack.c.bf16 %v805_v29, %v804_v19  ;;  %v1478_v44 = vpop.eup %1477  ;;  %v774_v46 = vmul.f32 0.5, %v1476_v40  ;;  %1499 = vtanh.f32 %v652_v37  ;;  %v623_v62 = vmul.f32 0.5, %v491_v38 }
 0x12f   : > { %v1480_v48 = vpop.eup %1479  ;;  %v806_v49 = vadd.f32 0.5, %v742_v42  ;;  %v743_v50 = vmul.f32 0.5, %v1478_v44  ;;  %v1302_v53 = vpack.c.bf16 %v837_v45, %v836_v24  ;;  %v495_v59 = vpop.f32.mrb[20].mxu0  ;;  %1501 = vtanh.f32 %v621_v43 }
 0x130   : > { %1056 = vst [vmem:[%s1854_s19 + $0x20] sm:$0xff] %v1286_v41  ;;  %v1482_v52 = vpop.eup %1481  ;;  %v838_v54 = vadd.f32 0.5, %v774_v46  ;;  %v775_v55 = vmul.f32 0.5, %v1480_v48  ;;  %v575_v60 = vpop.f32.mrb[20].mxu1  ;;  %v655_v63 = vmul.f32 0.5, %v571_v39  ;;  %1503 = vtanh.f32 %v653_v47 }
 0x131   : > { %v807_v56 = vadd.f32 0.5, %v743_v50  ;;  %v744_v57 = vmul.f32 0.5, %v1482_v52  ;;  %1072 = vst [vmem:[%s1854_s19 + $0xa0] sm:$0xff] %v1302_v53  ;;  %v497_v0 = vpop.f32.mrb[21].mxu0  ;;  %v577_v1 = vpop.f32.mrb[21].mxu1  ;;  %v624_v5 = vmul.f32 0.5, %v495_v59  ;;  %1505 = vtanh.f32 %v622_v51 }
 0x132   : > { %v839_v61 = vadd.f32 0.5, %v775_v55  ;;  %v1484_v2 = vpop.eup %1483  ;;  %v499_v6 = vpop.f32.mrb[22].mxu0  ;;  %v656_v11 = vmul.f32 0.5, %v575_v60  ;;  %1507 = vtanh.f32 %v654_v58  ;;  %v625_v16 = vmul.f32 0.5, %v497_v0 }
 0x133   : > { %v1287_v3 = vpack.c.bf16 %v807_v56, %v806_v49  ;;  %v808_v4 = vadd.f32 0.5, %v744_v57  ;;  %v579_v7 = vpop.f32.mrb[22].mxu1  ;;  %v1486_v8 = vpop.eup %1485  ;;  %v776_v10 = vmul.f32 0.5, %v1484_v2  ;;  %v657_v17 = vmul.f32 0.5, %v577_v1 }
 0x134   : > { %v1303_v9 = vpack.c.bf16 %v839_v61, %v838_v54  ;;  %v501_v12 = vpop.f32.mrb[23].mxu0  ;;  %v581_v13 = vpop.f32.mrb[23].mxu1  ;;  %v745_v15 = vmul.f32 0.5, %v1486_v8  ;;  %1509 = vtanh.f32 %v623_v62  ;;  %v626_v21 = vmul.f32 0.5, %v499_v6 }
 0x135   : > { %v1488_v14 = vpop.eup %1487  ;;  %1057 = vst [vmem:[%s1854_s19 + $0x28] sm:$0xff] %v1287_v3  ;;  %v840_v19 = vadd.f32 0.5, %v776_v10  ;;  %1511 = vtanh.f32 %v655_v63  ;;  %v658_v25 = vmul.f32 0.5, %v579_v7  ;;  %v627_v29 = vmul.f32 0.5, %v501_v12 }
 0x136   : > { %v1490_v18 = vpop.eup %1489  ;;  %1073 = vst [vmem:[%s1854_s19 + $0xa8] sm:$0xff] %v1303_v9  ;;  %v777_v20 = vmul.f32 0.5, %v1488_v14  ;;  %v809_v23 = vadd.f32 0.5, %v745_v15  ;;  %1513 = vtanh.f32 %v624_v5  ;;  %v659_v45 = vmul.f32 0.5, %v581_v13 }
 0x137   : > { %v1492_v22 = vpop.eup %1491  ;;  %v746_v24 = vmul.f32 0.5, %v1490_v18  ;;  %1515 = vtanh.f32 %v656_v11  ;;  %v505_v34 = vpop.f32.mrb[24].mxu0 }
 0x138   : > { %v1494_v26 = vpop.eup %1493  ;;  %v841_v27 = vadd.f32 0.5, %v777_v20  ;;  %v778_v28 = vmul.f32 0.5, %v1492_v22  ;;  %v1288_v31 = vpack.c.bf16 %v809_v23, %v808_v4  ;;  %v585_v35 = vpop.f32.mrb[24].mxu1  ;;  %1517 = vtanh.f32 %v625_v16 }
 0x139   : > { %v1496_v30 = vpop.eup %1495  ;;  %v810_v32 = vadd.f32 0.5, %v746_v24  ;;  %v747_v33 = vmul.f32 0.5, %v1494_v26  ;;  %v507_v40 = vpop.f32.mrb[25].mxu0  ;;  %1519 = vtanh.f32 %v657_v17  ;;  %v628_v51 = vmul.f32 0.5, %v505_v34 }
 0x13a   : > { %v1498_v36 = vpop.eup %1497  ;;  %v1304_v37 = vpack.c.bf16 %v841_v27, %v840_v19  ;;  %v842_v38 = vadd.f32 0.5, %v778_v28  ;;  %v779_v39 = vmul.f32 0.5, %v1496_v30  ;;  %v587_v41 = vpop.f32.mrb[25].mxu1  ;;  %1058 = vst [vmem:[%s1854_s19 + $0x30] sm:$0xff] %v1288_v31  ;;  %1521 = vtanh.f32 %v626_v21 }
 0x13b   : > { %v1500_v42 = vpop.eup %1499  ;;  %v811_v43 = vadd.f32 0.5, %v747_v33  ;;  %v748_v44 = vmul.f32 0.5, %v1498_v36  ;;  %v509_v46 = vpop.f32.mrb[26].mxu0  ;;  %1523 = vtanh.f32 %v658_v25  ;;  %v660_v1 = vmul.f32 0.5, %v585_v35 }
 0x13c   : > { %v589_v47 = vpop.f32.mrb[26].mxu1  ;;  %v1502_v48 = vpop.eup %1501  ;;  %1074 = vst [vmem:[%s1854_s19 + $0xb0] sm:$0xff] %v1304_v37  ;;  %v843_v49 = vadd.f32 0.5, %v779_v39  ;;  %v780_v50 = vmul.f32 0.5, %v1500_v42  ;;  %1525 = vtanh.f32 %v627_v29  ;;  %v629_v5 = vmul.f32 0.5, %v507_v40 }
 0x13d   : > { %v511_v52 = vpop.f32.mrb[27].mxu0  ;;  %v1870_v53 = vpop.f32.mrb[27].mxu1  ;;  %v1289_v55 = vpack.c.bf16 %v811_v43, %v810_v32  ;;  %v812_v56 = vadd.f32 0.5, %v748_v44  ;;  %v749_v57 = vmul.f32 0.5, %v1502_v48  ;;  %1527 = vtanh.f32 %v659_v45 }
 0x13e   : > { %v1504_v54 = vpop.eup %1503  ;;  %v1305_v59 = vpack.c.bf16 %v843_v49, %v842_v38  ;;  %v844_v60 = vadd.f32 0.5, %v780_v50  ;;  %1529 = vtanh.f32 %v628_v51  ;;  %v661_v21 = vmul.f32 0.5, %v587_v41 }
 0x13f   : > { %v1506_v58 = vpop.eup %1505  ;;  %v781_v61 = vmul.f32 0.5, %v1504_v54  ;;  %1059 = vst [vmem:[%s1854_s19 + $0x38] sm:$0xff] %v1289_v55  ;;  %v813_v63 = vadd.f32 0.5, %v749_v57  ;;  %1531 = vtanh.f32 %v660_v1  ;;  %v515_v10 = vpop.f32.mrb[28].mxu0  ;;  %v630_v22 = vmul.f32 0.5, %v509_v46 }
 0x140   : > { %v1508_v62 = vpop.eup %1507  ;;  %v750_v0 = vmul.f32 0.5, %v1506_v58  ;;  %1075 = vst [vmem:[%s1854_s19 + $0xb8] sm:$0xff] %v1305_v59  ;;  %v595_v11 = vpop.f32.mrb[28].mxu1  ;;  %1533 = vtanh.f32 %v629_v5  ;;  %v662_v28 = vmul.f32 0.5, %v589_v47  ;;  %v631_v29 = vmul.f32 0.5, %v511_v52 }
 0x141   : > { %v1510_v2 = vpop.eup %1509  ;;  %v845_v3 = vadd.f32 0.5, %v781_v61  ;;  %v782_v4 = vmul.f32 0.5, %v1508_v62  ;;  %v1290_v7 = vpack.c.bf16 %v813_v63, %v812_v56  ;;  %v517_v16 = vpop.f32.mrb[29].mxu0  ;;  %1535 = vtanh.f32 %v661_v21 }
 0x142   : > { %v1512_v6 = vpop.eup %1511  ;;  %v814_v8 = vadd.f32 0.5, %v750_v0  ;;  %v751_v9 = vmul.f32 0.5, %v1510_v2  ;;  %v597_v17 = vpop.f32.mrb[29].mxu1  ;;  %1537 = vtanh.f32 %v630_v22  ;;  %v663_v43 = vmul.f32 0.5, %v1870_v53 }
 0x143   : > { %v1514_v12 = vpop.eup %1513  ;;  %v1306_v13 = vpack.c.bf16 %v845_v3, %v844_v60  ;;  %v846_v14 = vadd.f32 0.5, %v782_v4  ;;  %v783_v15 = vmul.f32 0.5, %v1512_v6  ;;  %1060 = vst [vmem:[%s1854_s19 + $0x40] sm:$0xff] %v1290_v7  ;;  %v519_v23 = vpop.f32.mrb[30].mxu0  ;;  %1539 = vtanh.f32 %v662_v28 }
 0x144   : > { %v1516_v18 = vpop.eup %1515  ;;  %v815_v19 = vadd.f32 0.5, %v751_v9  ;;  %v752_v20 = vmul.f32 0.5, %v1514_v12  ;;  %v599_v24 = vpop.f32.mrb[30].mxu1  ;;  %1541 = vtanh.f32 %v631_v29  ;;  %v632_v47 = vmul.f32 0.5, %v515_v10 }
 0x145   : > { %v1518_v25 = vpop.eup %1517  ;;  %1076 = vst [vmem:[%s1854_s19 + $0xc0] sm:$0xff] %v1306_v13  ;;  %v847_v26 = vadd.f32 0.5, %v783_v15  ;;  %v784_v27 = vmul.f32 0.5, %v1516_v18  ;;  %v521_v30 = vpop.f32.mrb[31].mxu0  ;;  %1543 = vtanh.f32 %v663_v43  ;;  %v664_v59 = vmul.f32 0.5, %v595_v11 }
 0x146   : > { %v601_v31 = vpop.f32.mrb[31].mxu1  ;;  %v1520_v32 = vpop.eup %1519  ;;  %v1291_v33 = vpack.c.bf16 %v815_v19, %v814_v8  ;;  %v816_v34 = vadd.f32 0.5, %v752_v20  ;;  %v753_v35 = vmul.f32 0.5, %v1518_v25  ;;  %1545 = vtanh.f32 %v632_v47 }
 0x147   : > { %v1522_v36 = vpop.eup %1521  ;;  %v1307_v37 = vpack.c.bf16 %v847_v26, %v846_v14  ;;  %v848_v38 = vadd.f32 0.5, %v784_v27  ;;  %v785_v39 = vmul.f32 0.5, %v1520_v32  ;;  %v633_v60 = vmul.f32 0.5, %v517_v16 }
 0x148   : > { %v1524_v40 = vpop.eup %1523  ;;  %1061 = vst [vmem:[%s1854_s19 + $0x48] sm:$0xff] %v1291_v33  ;;  %v817_v41 = vadd.f32 0.5, %v753_v35  ;;  %v754_v42 = vmul.f32 0.5, %v1522_v36  ;;  %v665_v0 = vmul.f32 0.5, %v597_v17  ;;  %v634_v1 = vmul.f32 0.5, %v519_v23 }
 0x149   : > { %v1526_v44 = vpop.eup %1525  ;;  %1077 = vst [vmem:[%s1854_s19 + $0xc8] sm:$0xff] %v1307_v37  ;;  %v849_v45 = vadd.f32 0.5, %v785_v39  ;;  %v786_v46 = vmul.f32 0.5, %v1524_v40  ;;  %1547 = vtanh.f32 %v664_v59  ;;  %v666_v6 = vmul.f32 0.5, %v599_v24 }
 0x14a   : > { %v1528_v48 = vpop.eup %1527  ;;  %v1292_v49 = vpack.c.bf16 %v817_v41, %v816_v34  ;;  %v818_v50 = vadd.f32 0.5, %v754_v42  ;;  %v755_v51 = vmul.f32 0.5, %v1526_v44  ;;  %1549 = vtanh.f32 %v633_v60 }
 0x14b   : > { %v1530_v52 = vpop.eup %1529  ;;  %v1308_v54 = vpack.c.bf16 %v849_v45, %v848_v38  ;;  %v850_v55 = vadd.f32 0.5, %v786_v46  ;;  %v787_v56 = vmul.f32 0.5, %v1528_v48  ;;  %1551 = vtanh.f32 %v665_v0 }
 0x14c   : > { %v1532_v57 = vpop.eup %1531  ;;  %1062 = vst [vmem:[%s1854_s19 + $0x50] sm:$0xff] %v1292_v49  ;;  %v819_v53 = vadd.f32 0.5, %v755_v51  ;;  %v756_v58 = vmul.f32 0.5, %v1530_v52  ;;  %v635_v9 = vmul.f32 0.5, %v521_v30  ;;  %v667_v10 = vmul.f32 0.5, %v601_v31 }
 0x14d   : > { %v1534_v61 = vpop.eup %1533  ;;  %1078 = vst [vmem:[%s1854_s19 + $0xd0] sm:$0xff] %v1308_v54  ;;  %v851_v62 = vadd.f32 0.5, %v787_v56  ;;  %v788_v63 = vmul.f32 0.5, %v1532_v57  ;;  %1553 = vtanh.f32 %v634_v1 }
 0x14e   : > { %v1293_v2 = vpack.c.bf16 %v819_v53, %v818_v50  ;;  %v820_v3 = vadd.f32 0.5, %v756_v58  ;;  %v757_v4 = vmul.f32 0.5, %v1534_v61  ;;  %v1536_v7 = vpop.eup %1535  ;;  %1555 = vtanh.f32 %v666_v6 }
 0x14f   : > { %v1309_v5 = vpack.c.bf16 %v851_v62, %v850_v55  ;;  %v1538_v11 = vpop.eup %1537  ;;  %v852_v12 = vadd.f32 0.5, %v788_v63  ;;  %v789_v13 = vmul.f32 0.5, %v1536_v7  ;;  %1557 = vtanh.f32 %v635_v9 }
 0x150   : > { %1063 = vst [vmem:[%s1854_s19 + $0x58] sm:$0xff] %v1293_v2  ;;  %v821_v8 = vadd.f32 0.5, %v757_v4  ;;  %v1540_v14 = vpop.eup %1539  ;;  %v758_v16 = vmul.f32 0.5, %v1538_v11  ;;  %1559 = vtanh.f32 %v667_v10 }
 0x151   : > { %1079 = vst [vmem:[%s1854_s19 + $0xd8] sm:$0xff] %v1309_v5  ;;  %v1542_v17 = vpop.eup %1541  ;;  %v853_v18 = vadd.f32 0.5, %v789_v13  ;;  %v790_v19 = vmul.f32 0.5, %v1540_v14 }
 0x152   : > { %v1294_v15 = vpack.c.bf16 %v821_v8, %v820_v3  ;;  %v1544_v20 = vpop.eup %1543  ;;  %v822_v21 = vadd.f32 0.5, %v758_v16  ;;  %v759_v22 = vmul.f32 0.5, %v1542_v17 }
 0x153   : > { %v1546_v23 = vpop.eup %1545  ;;  %v1310_v24 = vpack.c.bf16 %v853_v18, %v852_v12  ;;  %v854_v25 = vadd.f32 0.5, %v790_v19  ;;  %v791_v26 = vmul.f32 0.5, %v1544_v20 }
 0x154   : > { %1064 = vst [vmem:[%s1854_s19 + $0x60] sm:$0xff] %v1294_v15  ;;  %v823_v27 = vadd.f32 0.5, %v759_v22  ;;  %v760_v28 = vmul.f32 0.5, %v1546_v23  ;;  %v1548_v30 = vpop.eup %1547 }
 0x155   : > { %1080 = vst [vmem:[%s1854_s19 + $0xe0] sm:$0xff] %v1310_v24  ;;  %v855_v29 = vadd.f32 0.5, %v791_v26  ;;  %v1550_v32 = vpop.eup %1549  ;;  %v792_v34 = vmul.f32 0.5, %v1548_v30 }
 0x156   : > { %v1295_v31 = vpack.c.bf16 %v823_v27, %v822_v21  ;;  %v1552_v35 = vpop.eup %1551  ;;  %v824_v36 = vadd.f32 0.5, %v760_v28  ;;  %v761_v37 = vmul.f32 0.5, %v1550_v32 }
 0x157   : > { %v1311_v33 = vpack.c.bf16 %v855_v29, %v854_v25  ;;  %v1554_v38 = vpop.eup %1553  ;;  %v856_v39 = vadd.f32 0.5, %v792_v34  ;;  %v793_v40 = vmul.f32 0.5, %v1552_v35 }
 0x158   : > { %1065 = vst [vmem:[%s1854_s19 + $0x68] sm:$0xff] %v1295_v31  ;;  %v1556_v41 = vpop.eup %1555  ;;  %v825_v42 = vadd.f32 0.5, %v761_v37  ;;  %v762_v43 = vmul.f32 0.5, %v1554_v38 }
 0x159   : > { %1081 = vst [vmem:[%s1854_s19 + $0xe8] sm:$0xff] %v1311_v33  ;;  %v1558_v44 = vpop.eup %1557  ;;  %v857_v45 = vadd.f32 0.5, %v793_v40  ;;  %v794_v46 = vmul.f32 0.5, %v1556_v41 }
 0x15a   : > { %v1560_v47 = vpop.eup %1559  ;;  %v1296_v48 = vpack.c.bf16 %v825_v42, %v824_v36  ;;  %v826_v49 = vadd.f32 0.5, %v762_v43  ;;  %v763_v50 = vmul.f32 0.5, %v1558_v44 }
 0x15b   : > { %v1312_v51 = vpack.c.bf16 %v857_v45, %v856_v39  ;;  %v858_v52 = vadd.f32 0.5, %v794_v46  ;;  %v795_v54 = vmul.f32 0.5, %v1560_v47 }
 0x15c   : > { %1066 = vst [vmem:[%s1854_s19 + $0x70] sm:$0xff] %v1296_v48  ;;  %v827_v55 = vadd.f32 0.5, %v763_v50 }
 0x15d   : > { %1082 = vst [vmem:[%s1854_s19 + $0xf0] sm:$0xff] %v1312_v51  ;;  %v859_v56 = vadd.f32 0.5, %v795_v54 }
 0x15e   : > { %v1297_v57 = vpack.c.bf16 %v827_v55, %v826_v49 }
 0x15f   : > { %v1313_v53 = vpack.c.bf16 %v859_v56, %v858_v52 }
 0x160   : > { %1067 = vst [vmem:[%s1854_s19 + $0x78] sm:$0xff] %v1297_v57 }
 0x161   : > { %1083 = vst [vmem:[%s1854_s19 + $0xf8] sm:$0xff] %v1313_v53 }
 0x162   : > { %1574 = shalt.err (!%p1571_p11)
}
 0x163   : > { %s1575_s7 = scalar_lea.hbm %s1895_s28, 4096  ;;  %s1579_s23 = scalar_lea.hbm %s1963_s2, 16384 }
 0x164   : > { %p1576_p13 = scmp.ne.s32.totalorder %s1895_s28, %s1575_s7  ;;  %p1580_p2 = scmp.lt.u32.totalorder %s1895_s28, %s1963_s2 }
 0x165   : > { %p1581_p3 = scmp.lt.u32.totalorder %s1579_s23, %s1575_s7  ;;  %p1583_p5 = scmp.lt.u32.totalorder %s1575_s7, %s1895_s28 }
 0x166   : > { %p1577_p0 = pnand %p1576_p13, %p1772_p10 }
 0x167   : > { %p1582_p4 = por %p1581_p3, %p1580_p2 }
 0x168   : > { %p1578_p1 = pneg %p1577_p0 }
 0x169   : > { %p1584_p6 = por %p1583_p5, %p1582_p4 }
 0x16b   : > { %p1585_p7 = pnand %p1584_p6, %p1578_p1 }
 0x16d   : > { %1588 = shalt.err (!%p1585_p7)
}
 0x16e   : > { %s1675_s25 = smov 128   ;;  %s1676_s26 = smov 256  }
 0x16f   : > { %s1677_s12 = smov 8  }
 0x170   : > { %1321 = dma.vmem_to_hbm [thread:$0]  (%p1772_p10), %s1897_s15, 4096, %s1895_s28, %s1903_s29, %s1675_s25, %s1676_s26, %s1677_s12  }
 0x171 PF: > { %p1327_p8 = scmp.ge.s32.totalorder %s1671_s18, 2  ;;  %s1116_s5 = sand.u32 1, %s1635_s9  }
 0x172   : > { %s1117_s6 = scalar_lea.sflag [#allocation4], %s1116_s5 }
 0x173   : > { %p1324_p9 = pnand %p1327_p8, %p1779_p12 }
 0x175   : > { %1630 = dma.done.wait (!%p1324_p9), %s1117_s6, 4096  }
 0x176   : > { %1632 = vsyncadd (!%p1324_p9), %s1117_s6, 4294963200  ;;  %s15_s18 = sadd.s32 1, %s1671_s18   ;;  %s1967_s9 = smov %s1639_s10 }
 0x177   : > { %p12_p11 = scmp.ge.s32.totalorder %s15_s18, 6   ;;  %s1968_s10 = smov %s1643_s11 }
 0x178   : > { %s1969_s11 = smov %s1777_s3  ;;  %s1970_s12 = smov %s1651_s13 }
 0x179   : > { %s1971_s13 = smov %s1766_s27  ;;  %s1972_s14 = smov %s1663_s16 }
 0x17a   : > { %s1973_s15 = smov %s1667_s17  ;;  %s1974_s16 = smov %s1977_s21 }
 0x17b   : > { %s1975_s17 = smov %s1981_s22  ;;  %14 = sbr.rel (!%p12_p11) target bundleno = 6 (0x6), region = 109 }
 0x182   :  { %1122 = vsyncpa [#allocation4], 1 }
 0x183   :  { %1124 = vsyncpa [#allocation4 + $0x1], 1 }

// kernel: vgae_forward.6
= control target key start
LH: loop header
LB: loop body
LE: loop exit
PB: predicated region body
PF: predicated region fallthrough
CT: control target
= control target key end

     0   :  { %s5629_s30 = smov 0   ;;  %s5631_s10 = smov 0   ;;  %s8243_s0 = inlined_call_operand.vmem [shape: bf16[512,512], index: 0, kind: input, shape index: {}]   ;;  %s8244_s1 = inlined_call_operand.vmem [shape: f32[512,68], index: 1, kind: input, shape index: {}]   ;;  %s8245_s2 = inlined_call_operand.vmem [shape: f32[512,4], index: 2, kind: input, shape index: {}]   ;;  %s8246_s3 = inlined_call_operand.vmem [shape: f32[512,16], index: 3, kind: input, shape index: {}]   ;;  %s8247_s4 = inlined_call_operand.vmem [shape: f32[512,16], index: 4, kind: input, shape index: {}]   ;;  %s8248_s5 = inlined_call_operand.vmem [shape: f32[1,32], index: 5, kind: input, shape index: {}]   ;;  %s8249_s6 = inlined_call_operand.vmem [shape: f32[16,32], index: 6, kind: input, shape index: {}]   ;;  %s8250_s7 = inlined_call_operand.vmem [shape: f32[4,32], index: 7, kind: input, shape index: {}]   ;;  %s8251_s8 = inlined_call_operand.vmem [shape: f32[1,32], index: 8, kind: input, shape index: {}]   ;;  %s8252_s9 = inlined_call_operand.vmem [shape: f32[512,128], index: 9, kind: output, shape index: {}]  }
   0x1   :  { %s5633_s11 = smov 0  }
   0x2 LB: > { %s31_s12 = sadd.s32 1, %s5567_s10  ;;  %p4460_p0 = scmp.ge.s32.totalorder %s5571_s11, 1  ;;  %s5571_s11 = sphi %s5633_s11, %s19_s11   ;;  %s5567_s10 = sphi %s5631_s10, %s8601_s10   ;;  %s5563_s30 = sphi %s5629_s30, %s8600_s30  }
   0x3   : > { %p33_p1 = scmp.ge.s32.totalorder %s31_s12, 2  ;;  %p341_p2 = scmp.lt.s32.totalorder %s5571_s11, 3 }
   0x5   : > { %s8603_s12 = smov (%p33_p1, %s31_s12), 0  ;;  %p342_p3 = pnand %p4460_p0, %p341_p2 }
   0x7   : > { %345 = sbr.rel (%p342_p3) target bundleno = 2182 (0x886), region = 56 }
   0xe   : > { %v488_v0 = vld [vmem:[%s8244_s1 + $0x80] sm:$0xff]  ;;  %v489_v1 = vld [vmem:[%s8244_s1 + $0x88] sm:$0xff]  ;;  %s4461_s19 = sshll.u32 %s5563_s30, 5  ;;  %v490_v5 = vld [vmem:[%s8244_s1 + $0x90] sm:$0xff]  ;;  %vm437_vm0 = vcmask 261120   ;;  %s5574_s17 = smov 112  }
   0xf   : > { %v472_v2 = vld [vmem:[%s8244_s1] sm:$0xff]  ;;  %v5149_v3 = vpack.c.bf16 %v489_v1, %v488_v0  ;;  %v473_v4 = vld [vmem:[%s8244_s1 + $0x8] sm:$0xff]  ;;  %v491_v6 = vld [vmem:[%s8244_s1 + $0x98] sm:$0xff]  ;;  %p399_p4 = scmp.lt.s32.totalorder %s4461_s19, 63  ;;  %vm1509_vm1 = vcmask 130048   ;;  %vm2538_vm2 = vcmask 1043456  }
  0x10   : > { %v5151_v7 = vpack.c.bf16 %v473_v4, %v472_v2  ;;  %v5153_v8 = vpack.c.bf16 %v491_v6, %v490_v5  ;;  %v474_v9 = vld [vmem:[%s8244_s1 + $0x10] sm:$0xff]  ;;  %v475_v10 = vld [vmem:[%s8244_s1 + $0x18] sm:$0xff]  ;;  %v492_v11 = vld [vmem:[%s8244_s1 + $0xa0] sm:$0xff]  ;;  %vm2441_vm3 = vcmask 31744   ;;  %s5576_s20 = smov 16   ;;  %vm4216_vm4 = vcmask 392192  }
  0x11   : > { %5221 = vmatprep.subr.bf16.mxu1 %v5149_v3  ;;  %v493_v12 = vld [vmem:[%s8244_s1 + $0xa8] sm:$0xff]  ;;  %5150 = vmatprep.subr.bf16.mxu0 %v5149_v3  ;;  %s8605_s19 = smov (!%p399_p4, %s4461_s19), 63  ;;  %v5155_v13 = vpack.c.bf16 %v475_v10, %v474_v9  ;;  %v476_v15 = vld [vmem:[%s8244_s1 + $0x20] sm:$0xff]  ;;  %v494_v17 = vld [vmem:[%s8244_s1 + $0xb0] sm:$0xff]  ;;  %s5578_s22 = smov 96   ;;  %vm4249_vm5 = vcmask 523264  }
  0x12   : > { %5229 = vmatpush3.bf16.msra.mxu1 %v5151_v7  ;;  %5152 = vmatpush3.bf16.msra.mxu0 %v5151_v7  ;;  %v5157_v14 = vpack.c.bf16 %v493_v12, %v492_v11  ;;  %v477_v16 = vld [vmem:[%s8244_s1 + $0x28] sm:$0xff]  ;;  %s4637_s21 = sshll.u32 %s8605_s19, 4  ;;  %v495_v18 = vld [vmem:[%s8244_s1 + $0xb8] sm:$0xff]  ;;  %v478_v21 = vld [vmem:[%s8244_s1 + $0x30] sm:$0xff]  ;;  %s6431_s18 = sshll.u32 %s8605_s19, 3  ;;  %vm4282_vm6 = vcmask 785408  }
  0x13   : > { %5222 = vmatprep.subr.bf16.mxu1 %v5153_v8  ;;  %5154 = vmatprep.subr.bf16.mxu0 %v5153_v8  ;;  %v5159_v19 = vpack.c.bf16 %v477_v16, %v476_v15  ;;  %s5695_s28 = scalar_lea.vmem %s8243_s0, %s4637_s21  ;;  %v5161_v20 = vpack.c.bf16 %v495_v18, %v494_v17  ;;  %v479_v22 = vld [vmem:[%s8244_s1 + $0x38] sm:$0xff]  ;;  %v496_v23 = vld [vmem:[%s8244_s1 + $0xc0] sm:$0xff]  ;;  %v497_v24 = vld [vmem:[%s8244_s1 + $0xc8] sm:$0xff]  ;;  %s6440_s24 = scalar_lea.vmem %s8245_s2, %s6431_s18 }
  0x14   : > { %v5269_v25 = vld [vmem:[%s5695_s28 + $0x184] ss:$16 sps:$4 sm:$0xff]   ;;  %v5163_v26 = vpack.c.bf16 %v479_v22, %v478_v21  ;;  %v5165_v27 = vpack.c.bf16 %v497_v24, %v496_v23  ;;  %v481_v29 = vld [vmem:[%s8244_s1 + $0x48] sm:$0xff]  ;;  %v499_v31 = vld [vmem:[%s8244_s1 + $0xd8] sm:$0xff]  ;;  %s6640_s13 = scalar_lea.vmem %s8246_s3, %s6431_s18  ;;  %s6646_s16 = scalar_lea.vmem %s8247_s4, %s6431_s18 }
  0x15   : > { %v480_v28 = vld [vmem:[%s8244_s1 + $0x40] sm:$0xff]  ;;  %1112 = vmatprep.mubr.bf16.mxu1 %v5269_v25  ;;  %v498_v30 = vld [vmem:[%s8244_s1 + $0xd0] sm:$0xff]  ;;  %v483_v35 = vld [vmem:[%s8244_s1 + $0x58] sm:$0xff]  ;;  %s5577_s21 = smov 64   ;;  %s7884_s19 = scalar_lea.vmem %s8252_s9, %s6431_s18 }
  0x16   : > { %5230 = vmatpush3.bf16.msra.mxu1 %v5155_v13  ;;  %5156 = vmatpush3.bf16.msra.mxu0 %v5155_v13  ;;  %v5167_v32 = vpack.c.bf16 %v481_v29, %v480_v28  ;;  %v5169_v33 = vpack.c.bf16 %v499_v31, %v498_v30  ;;  %v482_v34 = vld [vmem:[%s8244_s1 + $0x50] sm:$0xff]  ;;  %v500_v36 = vld [vmem:[%s8244_s1 + $0xe0] sm:$0xff]  ;;  %v501_v37 = vld [vmem:[%s8244_s1 + $0xe8] sm:$0xff] }
  0x17   : > { %5223 = vmatprep.subr.bf16.mxu1 %v5157_v14  ;;  %5158 = vmatprep.subr.bf16.mxu0 %v5157_v14  ;;  %v5171_v38 = vpack.c.bf16 %v483_v35, %v482_v34  ;;  %v5173_v39 = vpack.c.bf16 %v501_v37, %v500_v36  ;;  %v484_v40 = vld [vmem:[%s8244_s1 + $0x60] sm:$0xff]  ;;  %v485_v41 = vld [vmem:[%s8244_s1 + $0x68] sm:$0xff]  ;;  %v502_v42 = vld [vmem:[%s8244_s1 + $0xf0] sm:$0xff] }
  0x18   : > { %v503_v43 = vld [vmem:[%s8244_s1 + $0xf8] sm:$0xff]  ;;  %v5175_v44 = vpack.c.bf16 %v485_v41, %v484_v40  ;;  %v486_v46 = vld [vmem:[%s8244_s1 + $0x70] sm:$0xff]  ;;  %v520_v48 = vld [vmem:[%s8244_s1 + $0x180] sm:$0xff] }
  0x19   : > { %v5177_v45 = vpack.c.bf16 %v503_v43, %v502_v42  ;;  %v487_v47 = vld [vmem:[%s8244_s1 + $0x78] sm:$0xff]  ;;  %v521_v49 = vld [vmem:[%s8244_s1 + $0x188] sm:$0xff]  ;;  %v5281_v50 = vld [vmem:[%s5695_s28 + $0x4] ss:$16 sps:$4 sm:$0xff]  }
  0x1a   : > { %5231 = vmatpush3.bf16.msra.mxu1 %v5159_v19  ;;  %5160 = vmatpush3.bf16.msra.mxu0 %v5159_v19  ;;  %v5179_v51 = vpack.c.bf16 %v487_v47, %v486_v46  ;;  %v504_v52 = vld [vmem:[%s8244_s1 + $0x100] sm:$0xff]  ;;  %v5181_v54 = vpack.c.bf16 %v521_v49, %v520_v48  ;;  %v505_v55 = vld [vmem:[%s8244_s1 + $0x108] sm:$0xff]  ;;  %v522_v56 = vld [vmem:[%s8244_s1 + $0x190] sm:$0xff] }
  0x1b   : > { %5224 = vmatprep.subr.bf16.mxu1 %v5161_v20  ;;  %5162 = vmatprep.subr.bf16.mxu0 %v5161_v20  ;;  %v5267_v53 = vld [vmem:[%s5695_s28 + $0x180] ss:$16 sps:$4 sm:$0xff]   ;;  %v523_v57 = vld [vmem:[%s8244_s1 + $0x198] sm:$0xff]  ;;  %v5183_v61 = vpack.c.bf16 %v505_v55, %v504_v52  ;;  %v5270_v62 = vld [vmem:[%s5695_s28 + $0x1a4] ss:$16 sps:$4 sm:$0xff]  }
  0x1c   : > { %1016 = vmatprep.mubr.bf16.mxu0 %v5281_v50  ;;  %v506_v58 = vld [vmem:[%s8244_s1 + $0x110] sm:$0xff]  ;;  %v507_v59 = vld [vmem:[%s8244_s1 + $0x118] sm:$0xff]  ;;  %v5185_v63 = vpack.c.bf16 %v523_v57, %v522_v56  ;;  %v524_v1 = vld [vmem:[%s8244_s1 + $0x1a0] sm:$0xff] }
  0x1d   : > { %v5279_v60 = vld [vmem:[%s5695_s28] ss:$16 sps:$4 sm:$0xff]   ;;  %v5285_v0 = vld [vmem:[%s5695_s28 + $0x24] ss:$16 sps:$4 sm:$0xff]   ;;  %v525_v2 = vld [vmem:[%s8244_s1 + $0x1a8] sm:$0xff]  ;;  %v5187_v3 = vpack.c.bf16 %v507_v59, %v506_v58 }
  0x1e   : > { %5232 = vmatpush3.bf16.msra.mxu1 %v5163_v26  ;;  %5164 = vmatpush3.bf16.msra.mxu0 %v5163_v26  ;;  %v508_v4 = vld [vmem:[%s8244_s1 + $0x120] sm:$0xff]  ;;  %v5189_v6 = vpack.c.bf16 %v525_v2, %v524_v1  ;;  %v509_v7 = vld [vmem:[%s8244_s1 + $0x128] sm:$0xff]  ;;  %v526_v8 = vld [vmem:[%s8244_s1 + $0x1b0] sm:$0xff] }
  0x1f   : > { %5225 = vmatprep.subr.bf16.mxu1 %v5165_v27  ;;  %5166 = vmatprep.subr.bf16.mxu0 %v5165_v27  ;;  %v5272_v5 = vld [vmem:[%s5695_s28 + $0x1a0] ss:$16 sps:$4 sm:$0xff]   ;;  %v527_v9 = vld [vmem:[%s8244_s1 + $0x1b8] sm:$0xff]  ;;  %v5191_v12 = vpack.c.bf16 %v509_v7, %v508_v4  ;;  %v5273_v14 = vld [vmem:[%s5695_s28 + $0x1c4] ss:$16 sps:$4 sm:$0xff]  }
  0x20   : > { %v510_v10 = vld [vmem:[%s8244_s1 + $0x130] sm:$0xff]  ;;  %v511_v13 = vld [vmem:[%s8244_s1 + $0x138] sm:$0xff]  ;;  %v5193_v15 = vpack.c.bf16 %v527_v9, %v526_v8  ;;  %v528_v17 = vld [vmem:[%s8244_s1 + $0x1c0] sm:$0xff]  ;;  %v5573_v9 = vmov 0.0  }
  0x21   : > { %v5287_v11 = vld [vmem:[%s5695_s28 + $0x20] ss:$16 sps:$4 sm:$0xff]   ;;  %v5308_v16 = vld [vmem:[%s5695_s28 + $0x44] ss:$16 sps:$4 sm:$0xff]   ;;  %v529_v18 = vld [vmem:[%s8244_s1 + $0x1c8] sm:$0xff]  ;;  %v5195_v19 = vpack.c.bf16 %v511_v13, %v510_v10  ;;  %438 = vst.msk [vmem:[#allocation2] sm:$0xff] %vm437_vm0, %v5573_v9 }
  0x22   : > { %5233 = vmatpush3.bf16.msra.mxu1 %v5167_v32  ;;  %5168 = vmatpush3.bf16.msra.mxu0 %v5167_v32  ;;  %v512_v20 = vld [vmem:[%s8244_s1 + $0x140] sm:$0xff]  ;;  %v5197_v22 = vpack.c.bf16 %v529_v18, %v528_v17  ;;  %v513_v23 = vld [vmem:[%s8244_s1 + $0x148] sm:$0xff]  ;;  %v530_v24 = vld [vmem:[%s8244_s1 + $0x1d0] sm:$0xff]  ;;  %439 = vst.msk [vmem:[#allocation2 + $0x8] sm:$0xff] %vm437_vm0, %v5573_v9 }
  0x23   : > { %5226 = vmatprep.subr.bf16.mxu1 %v5169_v33  ;;  %5170 = vmatprep.subr.bf16.mxu0 %v5169_v33  ;;  %v5275_v21 = vld [vmem:[%s5695_s28 + $0x1c0] ss:$16 sps:$4 sm:$0xff]   ;;  %v531_v25 = vld [vmem:[%s8244_s1 + $0x1d8] sm:$0xff]  ;;  %v5199_v29 = vpack.c.bf16 %v513_v23, %v512_v20  ;;  %v5276_v30 = vld [vmem:[%s5695_s28 + $0x1e4] ss:$16 sps:$4 sm:$0xff]   ;;  %440 = vst.msk [vmem:[#allocation2 + $0x10] sm:$0xff] %vm437_vm0, %v5573_v9 }
  0x24   : > { %v514_v26 = vld [vmem:[%s8244_s1 + $0x150] sm:$0xff]  ;;  %v515_v27 = vld [vmem:[%s8244_s1 + $0x158] sm:$0xff]  ;;  %v5201_v31 = vpack.c.bf16 %v531_v25, %v530_v24  ;;  %v532_v32 = vld [vmem:[%s8244_s1 + $0x1e0] sm:$0xff]  ;;  %441 = vst.msk [vmem:[#allocation2 + $0x18] sm:$0xff] %vm437_vm0, %v5573_v9 }
  0x25   : > { %v5311_v28 = vld [vmem:[%s5695_s28 + $0x40] ss:$16 sps:$4 sm:$0xff]   ;;  %v533_v33 = vld [vmem:[%s8244_s1 + $0x1e8] sm:$0xff]  ;;  %v5330_v34 = vld [vmem:[%s5695_s28 + $0x64] ss:$16 sps:$4 sm:$0xff]   ;;  %v5203_v36 = vpack.c.bf16 %v515_v27, %v514_v26  ;;  %442 = vst.msk [vmem:[#allocation2 + $0x20] sm:$0xff] %vm437_vm0, %v5573_v9 }
  0x26   : > { %5234 = vmatpush3.bf16.msra.mxu1 %v5171_v38  ;;  %5172 = vmatpush3.bf16.msra.mxu0 %v5171_v38  ;;  %v516_v35 = vld [vmem:[%s8244_s1 + $0x160] sm:$0xff]  ;;  %v517_v37 = vld [vmem:[%s8244_s1 + $0x168] sm:$0xff]  ;;  %v5205_v38 = vpack.c.bf16 %v533_v33, %v532_v32  ;;  %v535_v40 = vld [vmem:[%s8244_s1 + $0x1f8] sm:$0xff]  ;;  %443 = vst.msk [vmem:[#allocation2 + $0x28] sm:$0xff] %vm437_vm0, %v5573_v9 }
  0x27   : > { %5227 = vmatprep.subr.bf16.mxu1 %v5173_v39  ;;  %5174 = vmatprep.subr.bf16.mxu0 %v5173_v39  ;;  %v534_v39 = vld [vmem:[%s8244_s1 + $0x1f0] sm:$0xff]  ;;  %v5207_v43 = vpack.c.bf16 %v517_v37, %v516_v35  ;;  %v519_v47 = vld [vmem:[%s8244_s1 + $0x178] sm:$0xff]  ;;  %444 = vst.msk [vmem:[#allocation2 + $0x30] sm:$0xff] %vm437_vm0, %v5573_v9  ;;  %445 = vst.msk [vmem:[#allocation2 + $0x38] sm:$0xff] %vm437_vm0, %v5573_v9 }
  0x28   : > { %v5278_v41 = vld [vmem:[%s5695_s28 + $0x1e0] ss:$16 sps:$4 sm:$0xff]   ;;  %v5339_v48 = vld [vmem:[%s5695_s28 + $0x84] ss:$16 sps:$4 sm:$0xff]   ;;  %v5282_v50 = vld [vmem:[%s5695_s28 + $0x8] ss:$16 sps:$4 sm:$0xff]  }
  0x29   : > { %v5332_v42 = vld [vmem:[%s5695_s28 + $0x60] ss:$16 sps:$4 sm:$0xff]   ;;  %v5288_v52 = vld [vmem:[%s5695_s28 + $0x2c] ss:$16 sps:$4 sm:$0xff]   ;;  %v5293_v55 = vld [vmem:[%s5695_s28 + $0x48] ss:$16 sps:$4 sm:$0xff]  }
  0x2a   : > { %5235 = vmatpush3.bf16.msra.mxu1 %v5175_v44  ;;  %5176 = vmatpush3.bf16.msra.mxu0 %v5175_v44  ;;  %v5284_v44 = vld [vmem:[%s5695_s28 + $0xc] ss:$16 sps:$4 sm:$0xff]   ;;  %v518_v46 = vld [vmem:[%s8244_s1 + $0x170] sm:$0xff]  ;;  %v5296_v57 = vld [vmem:[%s5695_s28 + $0x68] ss:$16 sps:$4 sm:$0xff]   ;;  %446 = vst.msk [vmem:[#allocation2 + $0x40] sm:$0xff] %vm437_vm0, %v5573_v9 }
  0x2b   : > { %5228 = vmatprep.subr.bf16.mxu1 %v5177_v45  ;;  %5178 = vmatprep.subr.bf16.mxu0 %v5177_v45  ;;  %v5209_v45 = vpack.c.bf16 %v535_v40, %v534_v39  ;;  %v5211_v49 = vpack.c.bf16 %v519_v47, %v518_v46  ;;  %v5294_v56 = vld [vmem:[%s5695_s28 + $0x6c] ss:$16 sps:$4 sm:$0xff]   ;;  %v5299_v59 = vld [vmem:[%s5695_s28 + $0x88] ss:$16 sps:$4 sm:$0xff]   ;;  %447 = vst.msk [vmem:[#allocation2 + $0x48] sm:$0xff] %vm437_vm0, %v5573_v9  ;;  %448 = vst.msk [vmem:[#allocation2 + $0x50] sm:$0xff] %vm437_vm0, %v5573_v9 }
  0x2c   : > { %v5297_v58 = vld [vmem:[%s5695_s28 + $0x8c] ss:$16 sps:$4 sm:$0xff]   ;;  %v5310_v1 = vld [vmem:[%s5695_s28 + $0xe8] ss:$16 sps:$4 sm:$0xff]   ;;  %449 = vst.msk [vmem:[#allocation2 + $0x58] sm:$0xff] %vm437_vm0, %v5573_v9  ;;  %450 = vst.msk [vmem:[#allocation2 + $0x60] sm:$0xff] %vm437_vm0, %v5573_v9 }
  0x2d   : > { %v5312_v2 = vld [vmem:[%s5695_s28 + $0x10c] ss:$16 sps:$4 sm:$0xff]   ;;  %v5320_v7 = vld [vmem:[%s5695_s28 + $0x148] ss:$16 sps:$4 sm:$0xff]   ;;  %451 = vst.msk [vmem:[#allocation2 + $0x68] sm:$0xff] %vm437_vm0, %v5573_v9  ;;  %452 = vst.msk [vmem:[#allocation2 + $0x70] sm:$0xff] %vm437_vm0, %v5573_v9 }
  0x2e   : > { %5236 = vmatpush3.bf16.msra.mxu1 %v5179_v51  ;;  %5180 = vmatpush3.bf16.msra.mxu0 %v5179_v51  ;;  %v5341_v51 = vld [vmem:[%s5695_s28 + $0x80] ss:$16 sps:$4 sm:$0xff]   ;;  %v5315_v4 = vld [vmem:[%s5695_s28 + $0x12c] ss:$16 sps:$4 sm:$0xff]   ;;  %453 = vst.msk [vmem:[#allocation2 + $0x78] sm:$0xff] %vm437_vm0, %v5573_v9  ;;  %454 = vst.msk [vmem:[#allocation2 + $0x80] sm:$0xff] %vm437_vm0, %v5573_v9 }
  0x2f   : > { %5182 = vmatprep.subr.bf16.mxu1 %v5181_v54  ;;  %v5291_v54 = vld [vmem:[%s5695_s28 + $0x4c] ss:$16 sps:$4 sm:$0xff]   ;;  %455 = vst.msk [vmem:[#allocation2 + $0x88] sm:$0xff] %vm437_vm0, %v5573_v9  ;;  %456 = vst.msk [vmem:[#allocation2 + $0x90] sm:$0xff] %vm437_vm0, %v5573_v9  ;;  %v5323_v10 = vld [vmem:[%s5695_s28 + $0x168] ss:$16 sps:$4 sm:$0xff]  }
  0x30   : > { %v5321_v8 = vld [vmem:[%s5695_s28 + $0x16c] ss:$16 sps:$4 sm:$0xff]   ;;  %457 = vst.msk [vmem:[#allocation2 + $0x98] sm:$0xff] %vm437_vm0, %v5573_v9  ;;  %458 = vst.msk [vmem:[#allocation2 + $0xa0] sm:$0xff] %vm437_vm0, %v5573_v9  ;;  %v5344_v13 = vld [vmem:[%s5695_s28 + $0xa0] ss:$16 sps:$4 sm:$0xff]  }
  0x31   : > { %1113 = vmatmul.mubr.bf16.vlgmr.msra.gmra.mrb[0].mxu1 %v5267_v53  ;;  %1017 = vmatmul.mubr.bf16.vlgmr.msra.gmra.mrb[0].mxu0 %v5279_v60  ;;  %v5290_v53 = vld [vmem:[%s5695_s28 + $0x28] ss:$16 sps:$4 sm:$0xff]   ;;  %v5300_v60 = vld [vmem:[%s5695_s28 + $0xac] ss:$16 sps:$4 sm:$0xff]   ;;  %459 = vst.msk [vmem:[#allocation2 + $0xa8] sm:$0xff] %vm437_vm0, %v5573_v9  ;;  %460 = vst.msk [vmem:[#allocation2 + $0xb0] sm:$0xff] %vm437_vm0, %v5573_v9 }
  0x32   : > { %5184 = vmatpush3.bf16.msra.mxu1 %v5183_v61  ;;  %1120 = vmatprep.mubr.bf16.mxu1 %v5270_v62  ;;  %v5302_v61 = vld [vmem:[%s5695_s28 + $0xa8] ss:$16 sps:$4 sm:$0xff]   ;;  %v5303_v62 = vld [vmem:[%s5695_s28 + $0xcc] ss:$16 sps:$4 sm:$0xff]   ;;  %461 = vst.msk [vmem:[#allocation2 + $0xb8] sm:$0xff] %vm437_vm0, %v5573_v9  ;;  %462 = vst.msk [vmem:[#allocation2 + $0xc0] sm:$0xff] %vm437_vm0, %v5573_v9 }
  0x33   : > { %5186 = vmatprep.subr.bf16.mxu1 %v5185_v63  ;;  %1024 = vmatprep.mubr.bf16.mxu0 %v5285_v0  ;;  %v5305_v63 = vld [vmem:[%s5695_s28 + $0xc8] ss:$16 sps:$4 sm:$0xff]   ;;  %v5306_v0 = vld [vmem:[%s5695_s28 + $0xec] ss:$16 sps:$4 sm:$0xff]   ;;  %463 = vst.msk [vmem:[#allocation2 + $0xc8] sm:$0xff] %vm437_vm0, %v5573_v9  ;;  %464 = vst.msk [vmem:[#allocation2 + $0xd0] sm:$0xff] %vm437_vm0, %v5573_v9 }
  0x34   : > { %465 = vst.msk [vmem:[#allocation2 + $0xd8] sm:$0xff] %vm437_vm0, %v5573_v9  ;;  %466 = vst.msk [vmem:[#allocation2 + $0xe0] sm:$0xff] %vm437_vm0, %v5573_v9  ;;  %v5333_v17 = vld [vmem:[%s5695_s28 + $0x1cc] ss:$16 sps:$4 sm:$0xff]   ;;  %v5335_v18 = vld [vmem:[%s5695_s28 + $0x1c8] ss:$16 sps:$4 sm:$0xff]  }
  0x35   : > { %467 = vst.msk [vmem:[#allocation2 + $0xe8] sm:$0xff] %vm437_vm0, %v5573_v9  ;;  %468 = vst.msk [vmem:[#allocation2 + $0xf0] sm:$0xff] %vm437_vm0, %v5573_v9  ;;  %v5338_v20 = vld [vmem:[%s5695_s28 + $0x1e8] ss:$16 sps:$4 sm:$0xff]   ;;  %v5345_v23 = vld [vmem:[%s5695_s28 + $0xc4] ss:$16 sps:$4 sm:$0xff]  }
  0x36   : > { %5188 = vmatpush3.bf16.msra.mxu1 %v5187_v3  ;;  %v5314_v3 = vld [vmem:[%s5695_s28 + $0x108] ss:$16 sps:$4 sm:$0xff]   ;;  %469 = vst.msk [vmem:[#allocation2 + $0xf8] sm:$0xff] %vm437_vm0, %v5573_v9 }
  0x37   : > { %5190 = vmatprep.subr.bf16.mxu1 %v5189_v6  ;;  %v5318_v6 = vld [vmem:[%s5695_s28 + $0x14c] ss:$16 sps:$4 sm:$0xff]  }
  0x39   : > { %1121 = vmatmul.mubr.bf16.gmra.mrb[4].mxu1 %v5272_v5  ;;  %1025 = vmatmul.mubr.bf16.gmra.mrb[4].mxu0 %v5287_v11  ;;  %v5317_v5 = vld [vmem:[%s5695_s28 + $0x128] ss:$16 sps:$4 sm:$0xff]   ;;  %v5324_v11 = vld [vmem:[%s5695_s28 + $0x18c] ss:$16 sps:$4 sm:$0xff]  }
  0x3a   : > { %5192 = vmatpush3.bf16.msra.mxu1 %v5191_v12  ;;  %1128 = vmatprep.mubr.bf16.mxu1 %v5273_v14  ;;  %v5342_v12 = vld [vmem:[%s5695_s28 + $0xa4] ss:$16 sps:$4 sm:$0xff]   ;;  %v5326_v14 = vld [vmem:[%s5695_s28 + $0x188] ss:$16 sps:$4 sm:$0xff]  }
  0x3b   : > { %5194 = vmatprep.subr.bf16.mxu1 %v5193_v15  ;;  %1032 = vmatprep.mubr.bf16.mxu0 %v5308_v16  ;;  %v5327_v15 = vld [vmem:[%s5695_s28 + $0x1ac] ss:$16 sps:$4 sm:$0xff]   ;;  %v5329_v16 = vld [vmem:[%s5695_s28 + $0x1a8] ss:$16 sps:$4 sm:$0xff]  }
  0x3e   : > { %5196 = vmatpush3.bf16.msra.mxu1 %v5195_v19  ;;  %v5336_v19 = vld [vmem:[%s5695_s28 + $0x1ec] ss:$16 sps:$4 sm:$0xff]  }
  0x3f   : > { %5198 = vmatprep.subr.bf16.mxu1 %v5197_v22  ;;  %v594_v22 = vld [vmem:[%s5695_s28 + $0xd0] sm:$0xff] }
  0x41   : > { %1129 = vmatmul.mubr.bf16.gmra.mrb[8].mxu1 %v5275_v21  ;;  %1033 = vmatmul.mubr.bf16.gmra.mrb[8].mxu0 %v5311_v28  ;;  %v592_v21 = vld [vmem:[%s5695_s28 + $0xc0] sm:$0xff] }
  0x42   : > { %5200 = vmatpush3.bf16.msra.mxu1 %v5199_v29  ;;  %1136 = vmatprep.mubr.bf16.mxu1 %v5276_v30  ;;  %v4496_v24 = vcombine.low %v592_v21, %v594_v22 }
  0x43   : > { %5202 = vmatprep.subr.bf16.mxu1 %v5201_v31  ;;  %1040 = vmatprep.mubr.bf16.mxu0 %v5330_v34 }
  0x46   : > { %5204 = vmatpush3.bf16.msra.mxu1 %v5203_v36 }
  0x47   : > { %5206 = vmatprep.subr.bf16.mxu1 %v5205_v38 }
  0x49   : > { %1137 = vmatmul.mubr.bf16.gmra.mrb[12].mxu1 %v5278_v41  ;;  %1041 = vmatmul.mubr.bf16.gmra.mrb[12].mxu0 %v5332_v42 }
  0x4a   : > { %5208 = vmatpush3.bf16.msra.mxu1 %v5207_v43  ;;  %1209 = vmatprep.mubr.bf16.mxu1 %v5284_v44 }
  0x4b   : > { %5210 = vmatprep.subr.bf16.mxu1 %v5209_v45  ;;  %1048 = vmatprep.mubr.bf16.mxu0 %v5339_v48 }
  0x4e   : > { %5212 = vmatpush3.bf16.msra.mxu1 %v5211_v49  ;;  %v596_v49 = vld [vmem:[%s5695_s28 + $0xe0] sm:$0xff] }
  0x51   : > { %1210 = vmatmul.mubr.bf16.vlgmr.msra.gmra.mrb[16].mxu1 %v5282_v50  ;;  %1049 = vmatmul.mubr.bf16.gmra.mrb[16].mxu0 %v5341_v51  ;;  %v598_v50 = vld [vmem:[%s5695_s28 + $0xf0] sm:$0xff] }
  0x52   : > { %1217 = vmatprep.mubr.bf16.mxu1 %v5288_v52  ;;  %1056 = vmatprep.mubr.bf16.mxu0 %v5342_v12  ;;  %v5347_v51 = vld [vmem:[%s5695_s28 + $0xe4] ss:$16 sps:$4 sm:$0xff]   ;;  %v4500_v52 = vcombine.low %v596_v49, %v598_v50 }
  0x53   : > { %v540_v49 = vld [vmem:[#allocation2 + $0x20] sm:$0xff] }
  0x59   : > { %1218 = vmatmul.mubr.bf16.gmra.mrb[20].mxu1 %v5290_v53  ;;  %1057 = vmatmul.mubr.bf16.gmra.mrb[20].mxu0 %v5344_v13 }
  0x5a   : > { %1225 = vmatprep.mubr.bf16.mxu1 %v5291_v54  ;;  %1064 = vmatprep.mubr.bf16.mxu0 %v5345_v23 }
  0x61   : > { %1226 = vmatmul.mubr.bf16.gmra.mrb[24].mxu1 %v5293_v55  ;;  %1065 = vmatmul.mubr.bf16.gmra.mrb[24].mxu0 %v4496_v24 }
  0x62   : > { %1233 = vmatprep.mubr.bf16.mxu1 %v5294_v56  ;;  %1072 = vmatprep.mubr.bf16.mxu0 %v5347_v51 }
  0x69   : > { %1234 = vmatmul.mubr.bf16.gmra.mrb[28].mxu1 %v5296_v57  ;;  %1073 = vmatmul.mubr.bf16.gmra.mrb[28].mxu0 %v4500_v52 }
  0x6a   : > { %1241 = vmatprep.mubr.bf16.mxu1 %v5297_v58 }
  0x71   : > { %1242 = vmatmul.mubr.bf16.gmra.mrb[32].mxu1 %v5299_v59 }
  0x72   : > { %1249 = vmatprep.mubr.bf16.mxu1 %v5300_v60 }
  0x79   : > { %1250 = vmatmul.mubr.bf16.gmra.mrb[36].mxu1 %v5302_v61 }
  0x7a   : > { %1257 = vmatprep.mubr.bf16.mxu1 %v5303_v62 }
  0x81   : > { %1258 = vmatmul.mubr.bf16.gmra.mrb[40].mxu1 %v5305_v63 }
  0x82   : > { %1265 = vmatprep.mubr.bf16.mxu1 %v5306_v0 }
  0x89   : > { %1266 = vmatmul.mubr.bf16.gmra.mrb[44].mxu1 %v5310_v1 }
  0x8a   : > { %1273 = vmatprep.mubr.bf16.mxu1 %v5312_v2 }
  0x91   : > { %1274 = vmatmul.mubr.bf16.gmra.mrb[48].mxu1 %v5314_v3 }
  0x92   : > { %1281 = vmatprep.mubr.bf16.mxu1 %v5315_v4 }
  0x99   : > { %1282 = vmatmul.mubr.bf16.gmra.mrb[52].mxu1 %v5317_v5 }
  0x9a   : > { %1289 = vmatprep.mubr.bf16.mxu1 %v5318_v6 }
  0xa1   : > { %1290 = vmatmul.mubr.bf16.gmra.mrb[56].mxu1 %v5320_v7 }
  0xa2   : > { %1297 = vmatprep.mubr.bf16.mxu1 %v5321_v8 }
  0xa9   : > { %1298 = vmatmul.mubr.bf16.gmra.mrb[60].mxu1 %v5323_v10 }
  0xaa   : > { %1305 = vmatprep.mubr.bf16.mxu1 %v5324_v11 }
  0xb1   : > { %1306 = vmatmul.mubr.bf16.gmra.mrb[64].mxu1 %v5326_v14  ;;  %v536_v14 = vld [vmem:[#allocation2] sm:$0xff] }
  0xb2   : > { %1313 = vmatprep.mubr.bf16.mxu1 %v5327_v15 }
  0xb9   : > { %1314 = vmatmul.mubr.bf16.gmra.mrb[68].mxu1 %v5329_v16 }
  0xba   : > { %1321 = vmatprep.mubr.bf16.mxu1 %v5333_v17 }
  0xc1   : > { %1322 = vmatmul.mubr.bf16.gmra.mrb[72].mxu1 %v5335_v18  ;;  %v537_v18 = vld [vmem:[#allocation2 + $0x8] sm:$0xff] }
  0xc2   : > { %1329 = vmatprep.mubr.bf16.mxu1 %v5336_v19 }
  0xc9   : > { %1330 = vmatmul.mubr.bf16.gmra.mrb[76].mxu1 %v5338_v20 }
 0x104   : > { %v4742_v25 = vpop.f32.mrb[0].mxu1  ;;  %v4670_v26 = vpop.f32.mrb[0].mxu0 }
 0x105   : > { %v4743_v27 = vpop.f32.mrb[1].mxu1  ;;  %v4671_v28 = vpop.f32.mrb[1].mxu0 }
 0x106   : > { %v5934_v29 = vadd.f32 %v4743_v27, %v4742_v25  ;;  %v4745_v30 = vpop.f32.mrb[2].mxu1  ;;  %v4672_v31 = vadd.f32 %v4671_v28, %v4670_v26  ;;  %v4673_v32 = vpop.f32.mrb[2].mxu0  ;;  %v538_v26 = vld [vmem:[#allocation2 + $0x10] sm:$0xff] }
 0x107   : > { %v4746_v33 = vpop.f32.mrb[3].mxu1  ;;  %v4674_v34 = vpop.f32.mrb[3].mxu0 }
 0x108   : > { %v5936_v35 = vadd.f32 %v4746_v33, %v4745_v30  ;;  %v4675_v36 = vadd.f32 %v4674_v34, %v4673_v32  ;;  %v539_v32 = vld [vmem:[#allocation2 + $0x18] sm:$0xff] }
 0x10c   : > { %v4748_v37 = vpop.f32.mrb[4].mxu1  ;;  %v4676_v38 = vpop.f32.mrb[4].mxu0 }
 0x10d   : > { %v4749_v39 = vpop.f32.mrb[5].mxu1  ;;  %v4677_v40 = vpop.f32.mrb[5].mxu0 }
 0x10e   : > { %v5938_v41 = vadd.f32 %v4749_v39, %v4748_v37  ;;  %v4751_v42 = vpop.f32.mrb[6].mxu1  ;;  %v4678_v43 = vadd.f32 %v4677_v40, %v4676_v38  ;;  %v4679_v44 = vpop.f32.mrb[6].mxu0 }
 0x10f   : > { %v4752_v45 = vpop.f32.mrb[7].mxu1  ;;  %v4680_v46 = vpop.f32.mrb[7].mxu0 }
 0x110   : > { %v5940_v47 = vadd.f32 %v4752_v45, %v4751_v42  ;;  %v4681_v48 = vadd.f32 %v4680_v46, %v4679_v44 }
 0x114   : > { %v4754_v53 = vpop.f32.mrb[8].mxu1  ;;  %v4682_v54 = vpop.f32.mrb[8].mxu0 }
 0x115   : > { %v4755_v55 = vpop.f32.mrb[9].mxu1  ;;  %v4683_v56 = vpop.f32.mrb[9].mxu0 }
 0x116   : > { %v5945_v57 = vadd.f32 %v4755_v55, %v4754_v53  ;;  %v4757_v58 = vpop.f32.mrb[10].mxu1  ;;  %v4684_v59 = vadd.f32 %v4683_v56, %v4682_v54  ;;  %v4685_v60 = vpop.f32.mrb[10].mxu0  ;;  %v541_v54 = vld [vmem:[#allocation2 + $0x28] sm:$0xff] }
 0x117   : > { %v4758_v61 = vpop.f32.mrb[11].mxu1  ;;  %v4686_v62 = vpop.f32.mrb[11].mxu0 }
 0x118   : > { %v5947_v63 = vadd.f32 %v4758_v61, %v4757_v58  ;;  %v4687_v0 = vadd.f32 %v4686_v62, %v4685_v60 }
 0x11c   : > { %v4760_v1 = vpop.f32.mrb[12].mxu1  ;;  %v4688_v2 = vpop.f32.mrb[12].mxu0 }
 0x11d   : > { %v4761_v3 = vpop.f32.mrb[13].mxu1  ;;  %v4689_v4 = vpop.f32.mrb[13].mxu0 }
 0x11e   : > { %v5949_v5 = vadd.f32 %v4761_v3, %v4760_v1  ;;  %v4763_v6 = vpop.f32.mrb[14].mxu1  ;;  %v5951_v7 = vadd.f32 %v4689_v4, %v4688_v2 }
 0x11f   : > { %v4764_v8 = vpop.f32.mrb[15].mxu1 }
 0x120   : > { %v5953_v9 = vadd.f32 %v4764_v8, %v4763_v6 }
 0x124   : > { %v4798_v10 = vpop.f32.mrb[16].mxu1 }
 0x125   : > { %v4799_v11 = vpop.f32.mrb[17].mxu1 }
 0x126   : > { %v4800_v12 = vadd.f32 %v4799_v11, %v4798_v10  ;;  %v4801_v13 = vpop.f32.mrb[18].mxu1 }
 0x127   : > { %v4802_v15 = vpop.f32.mrb[19].mxu1 }
 0x128   : > { %v1212_v16 = vadd.f32 %v4800_v12, %v4672_v31  ;;  %v4803_v17 = vadd.f32 %v4802_v15, %v4801_v13  ;;  %v5960_v31 = vld [vmem:[%s8248_s5] ss:$0 sm:$0xff] }
 0x12a   : > { %v1338_v19 = vadd.f32 %v1212_v16, %v536_v14  ;;  %v1215_v20 = vadd.f32 %v4803_v17, %v4675_v36  ;;  %v4691_v36 = vpop.f32.mrb[14].mxu0  ;;  %v600_v14 = vld [vmem:[%s5695_s28 + $0x100] sm:$0xff] }
 0x12b   : > { %v4692_v13 = vpop.f32.mrb[15].mxu0 }
 0x12c   : > { %1371 = vst.msk [vmem:[#allocation2] sm:$0xff] %vm437_vm0, %v1338_v19  ;;  %v1339_v21 = vadd.f32 %v1215_v20, %v537_v18  ;;  %v4804_v22 = vpop.f32.mrb[20].mxu1  ;;  %v4693_v17 = vadd.f32 %v4692_v13, %v4691_v36  ;;  %v4694_v18 = vpop.f32.mrb[16].mxu0  ;;  %v602_v19 = vld [vmem:[%s5695_s28 + $0x110] sm:$0xff] }
 0x12d   : > { %v4805_v23 = vpop.f32.mrb[21].mxu1  ;;  %v5349_v20 = vld [vmem:[%s5695_s28 + $0x104] ss:$16 sps:$4 sm:$0xff]  }
 0x12e   : > { %1372 = vst.msk [vmem:[#allocation2 + $0x8] sm:$0xff] %vm437_vm0, %v1339_v21  ;;  %v4806_v24 = vadd.f32 %v4805_v23, %v4804_v22  ;;  %v4807_v25 = vpop.f32.mrb[22].mxu1  ;;  %v543_v22 = vld [vmem:[#allocation2 + $0x38] sm:$0xff]  ;;  %v4695_v23 = vpop.f32.mrb[17].mxu0  ;;  %1080 = vmatprep.mubr.bf16.mxu0 %v5349_v20 }
 0x12f   : > { %v4808_v27 = vpop.f32.mrb[23].mxu1 }
 0x130   : > { %v1220_v28 = vadd.f32 %v4806_v24, %v4678_v43  ;;  %v4809_v30 = vadd.f32 %v4808_v27, %v4807_v25  ;;  %v4504_v24 = vcombine.low %v600_v14, %v602_v19 }
 0x132   : > { %v1340_v33 = vadd.f32 %v1220_v28, %v538_v26  ;;  %v1223_v34 = vadd.f32 %v4809_v30, %v4681_v48  ;;  %v4696_v26 = vadd.f32 %v4695_v23, %v4694_v18  ;;  %1081 = vmatmul.mubr.bf16.gmra.mrb[32].mxu0 %v4504_v24  ;;  %v544_v28 = vld [vmem:[#allocation2 + $0x40] sm:$0xff] }
 0x133   : > { %v1406_v37 = vld [vmem:[#allocation2] sm:$0xff] }
 0x134   : > { %1373 = vst.msk [vmem:[#allocation2 + $0x10] sm:$0xff] %vm437_vm0, %v1340_v33  ;;  %v1341_v38 = vadd.f32 %v1223_v34, %v539_v32  ;;  %v5964_v39 = vadd.f32 %v5960_v31, %v1406_v37  ;;  %v4810_v40 = vpop.f32.mrb[24].mxu1 }
 0x135   : > { %v1407_v42 = vld [vmem:[#allocation2 + $0x8] sm:$0xff]  ;;  %v4811_v43 = vpop.f32.mrb[25].mxu1 }
 0x136   : > { %1374 = vst.msk [vmem:[#allocation2 + $0x18] sm:$0xff] %vm437_vm0, %v1341_v38  ;;  %v5969_v44 = vmul.f32 %v5964_v39, %v5964_v39  ;;  %v5972_v45 = vadd.f32 %v5960_v31, %v1407_v42  ;;  %v4812_v46 = vadd.f32 %v4811_v43, %v4810_v40  ;;  %v4813_v48 = vpop.f32.mrb[26].mxu1 }
 0x137   : > { %v4814_v50 = vpop.f32.mrb[27].mxu1 }
 0x138   : > { %1734 = vrot.lane.b32.xlu0 %v5969_v44, %s5574_s17  ;;  %v5978_v51 = vmul.f32 %v5972_v45, %v5972_v45  ;;  %v1228_v52 = vadd.f32 %v4812_v46, %v4684_v59  ;;  %v4815_v53 = vadd.f32 %v4814_v50, %v4813_v48  ;;  %v1510_v46 = vsel %vm1509_vm1, %v5969_v44, 0.0 }
 0x13a   : > { %1736 = vrot.lane.b32.xlu1 %v5978_v51, %s5574_s17  ;;  %v1342_v55 = vadd.f32 %v1228_v52, %v540_v49  ;;  %v1231_v56 = vadd.f32 %v4815_v53, %v4687_v0  ;;  %v542_v0 = vld [vmem:[#allocation2 + $0x30] sm:$0xff]  ;;  %v1513_v53 = vsel %vm1509_vm1, %v5978_v51, 0.0 }
 0x13b   : > { %v1408_v58 = vld [vmem:[#allocation2 + $0x10] sm:$0xff] }
 0x13c   : > { %v5983_v60 = vadd.f32 %v5960_v31, %v1408_v58  ;;  %1375 = vst.msk [vmem:[#allocation2 + $0x20] sm:$0xff] %vm437_vm0, %v1342_v55  ;;  %v4816_v61 = vpop.f32.mrb[28].mxu1  ;;  %v1343_v62 = vadd.f32 %v1231_v56, %v541_v54 }
 0x13d   : > { %v4817_v1 = vpop.f32.mrb[29].mxu1 }
 0x13e   : > { %v1479_v59 = vmul.f32 %v5983_v60, %v5983_v60  ;;  %v4818_v2 = vadd.f32 %v4817_v1, %v4816_v61  ;;  %v4819_v3 = vpop.f32.mrb[30].mxu1  ;;  %1376 = vst.msk [vmem:[#allocation2 + $0x28] sm:$0xff] %vm437_vm0, %v1343_v62 }
 0x13f   : > { %v4820_v4 = vpop.f32.mrb[31].mxu1 }
 0x140   : > { %1738 = vrot.lane.b32.xlu1 %v1479_v59, %s5574_s17  ;;  %v4821_v6 = vadd.f32 %v4820_v4, %v4819_v3  ;;  %v1236_v8 = vadd.f32 %v4818_v2, %v5951_v7  ;;  %v1516_v44 = vsel %vm1509_vm1, %v1479_v59, 0.0 }
 0x142   : > { %v1344_v10 = vadd.f32 %v1236_v8, %v542_v0  ;;  %v1239_v7 = vadd.f32 %v4821_v6, %v4693_v17 }
 0x143   : > { %v1410_v3 = vld [vmem:[#allocation2 + $0x20] sm:$0xff] }
 0x144   : > { %v4822_v11 = vpop.f32.mrb[32].mxu1  ;;  %1377 = vst.msk [vmem:[#allocation2 + $0x30] sm:$0xff] %vm437_vm0, %v1344_v10  ;;  %v1345_v27 = vadd.f32 %v1239_v7, %v543_v22  ;;  %v6021_v8 = vadd.f32 %v5960_v31, %v1410_v3  ;;  %v1409_v10 = vld [vmem:[#allocation2 + $0x18] sm:$0xff] }
 0x145   : > { %v4823_v12 = vpop.f32.mrb[33].mxu1 }
 0x146   : > { %v4824_v15 = vadd.f32 %v4823_v12, %v4822_v11  ;;  %v4825_v16 = vpop.f32.mrb[34].mxu1  ;;  %1378 = vst.msk [vmem:[#allocation2 + $0x38] sm:$0xff] %vm437_vm0, %v1345_v27  ;;  %v1481_v12 = vmul.f32 %v6021_v8, %v6021_v8  ;;  %v604_v27 = vld [vmem:[%s5695_s28 + $0x120] sm:$0xff] }
 0x147   : > { %v4826_v21 = vpop.f32.mrb[35].mxu1 }
 0x148   : > { %v5995_v25 = vadd.f32 %v4826_v21, %v4825_v16  ;;  %v1244_v30 = vadd.f32 %v4824_v15, %v4696_v26  ;;  %v6028_v15 = vadd.f32 %v5960_v31, %v1409_v10  ;;  %v4697_v21 = vpop.f32.mrb[18].mxu0 }
 0x149   : > { %v4698_v26 = vpop.f32.mrb[19].mxu0 }
 0x14a   : > { %v1346_v34 = vadd.f32 %v1244_v30, %v544_v28  ;;  %v6035_v18 = vmul.f32 %v6028_v15, %v6028_v15  ;;  %v606_v28 = vld [vmem:[%s5695_s28 + $0x130] sm:$0xff]  ;;  %v4699_v30 = vadd.f32 %v4698_v26, %v4697_v21 }
 0x14c   : > { %v4828_v32 = vpop.f32.mrb[36].mxu1  ;;  %1379 = vst.msk [vmem:[#allocation2 + $0x40] sm:$0xff] %vm437_vm0, %v1346_v34 }
 0x14d   : > { %v4829_v33 = vpop.f32.mrb[37].mxu1 }
 0x14e   : > { %v5998_v36 = vadd.f32 %v4829_v33, %v4828_v32  ;;  %v4831_v37 = vpop.f32.mrb[38].mxu1  ;;  %v5351_v32 = vld [vmem:[%s5695_s28 + $0x124] ss:$16 sps:$4 sm:$0xff]   ;;  %v4508_v33 = vcombine.low %v604_v27, %v606_v28 }
 0x14f   : > { %v4832_v38 = vpop.f32.mrb[39].mxu1  ;;  %1088 = vmatprep.mubr.bf16.mxu0 %v5351_v32  ;;  %v562_v27 = vld [vmem:[#allocation2 + $0xd0] sm:$0xff]  ;;  %v563_v32 = vld [vmem:[#allocation2 + $0xd8] sm:$0xff] }
 0x150   : > { %v6001_v40 = vadd.f32 %v4832_v38, %v4831_v37  ;;  %v545_v37 = vld [vmem:[#allocation2 + $0x48] sm:$0xff]  ;;  %v4700_v38 = vpop.f32.mrb[20].mxu0  ;;  %1089 = vmatmul.mubr.bf16.gmra.mrb[36].mxu0 %v4508_v33 }
 0x154   : > { %v4834_v42 = vpop.f32.mrb[40].mxu1 }
 0x155   : > { %v4835_v43 = vpop.f32.mrb[41].mxu1 }
 0x156   : > { %v6005_v48 = vadd.f32 %v4835_v43, %v4834_v42  ;;  %v4837_v49 = vpop.f32.mrb[42].mxu1  ;;  %v1247_v43 = vadd.f32 %v5995_v25, %v4699_v30 }
 0x157   : > { %1511 = vadd.xlane.f32.xlu0 %v1510_v46  ;;  %v4838_v50 = vpop.f32.mrb[43].mxu1  ;;  %v4701_v46 = vpop.f32.mrb[21].mxu0 }
 0x158   : > { %v6007_v52 = vadd.f32 %v4838_v50, %v4837_v49 }
 0x15b   : > { %1514 = vadd.xlane.f32.xlu0 %v1513_v53  ;;  %v4702_v53 = vadd.f32 %v4701_v46, %v4700_v38 }
 0x15c   : > { %v4840_v54 = vpop.f32.mrb[44].mxu1 }
 0x15d   : > { %v4841_v55 = vpop.f32.mrb[45].mxu1 }
 0x15e   : > { %v6011_v56 = vadd.f32 %v4841_v55, %v4840_v54  ;;  %v4843_v58 = vpop.f32.mrb[46].mxu1  ;;  %v1347_v55 = vadd.f32 %v1247_v43, %v545_v37  ;;  %v564_v43 = vld [vmem:[#allocation2 + $0xe0] sm:$0xff] }
 0x15f   : > { %v4844_v61 = vpop.f32.mrb[47].mxu1 }
 0x160   : > { %v6013_v62 = vadd.f32 %v4844_v61, %v4843_v58  ;;  %v546_v58 = vld [vmem:[#allocation2 + $0x50] sm:$0xff]  ;;  %1380 = vst.msk [vmem:[#allocation2 + $0x48] sm:$0xff] %vm437_vm0, %v1347_v55 }
 0x164   : > { %1517 = vadd.xlane.f32.xlu1 %v1516_v44  ;;  %v4846_v1 = vpop.f32.mrb[48].mxu1  ;;  %v1252_v44 = vadd.f32 %v5998_v36, %v4702_v53  ;;  %v1519_v53 = vsel %vm1509_vm1, %v6035_v18, 0.0 }
 0x165   : > { %v4847_v2 = vpop.f32.mrb[49].mxu1 }
 0x166   : > { %v6016_v4 = vadd.f32 %v4847_v2, %v4846_v1  ;;  %v4849_v0 = vpop.f32.mrb[50].mxu1  ;;  %v1348_v1 = vadd.f32 %v1252_v44, %v546_v58  ;;  %v1412_v58 = vld [vmem:[#allocation2 + $0x30] sm:$0xff] }
 0x167   : > { %v4850_v6 = vpop.f32.mrb[51].mxu1 }
 0x168   : > { %v6018_v51 = vadd.f32 %v4850_v6, %v4849_v0  ;;  %1381 = vst.msk [vmem:[#allocation2 + $0x50] sm:$0xff] %vm437_vm0, %v1348_v1  ;;  %v560_v6 = vld [vmem:[#allocation2 + $0xc0] sm:$0xff] }
 0x16c   : > { %v4852_v11 = vpop.f32.mrb[52].mxu1 }
 0x16d   : > { %v4853_v13 = vpop.f32.mrb[53].mxu1 }
 0x16e   : > { %v6025_v59 = vadd.f32 %v4853_v13, %v4852_v11  ;;  %v4855_v14 = vpop.f32.mrb[54].mxu1 }
 0x16f   : > { %v4856_v16 = vpop.f32.mrb[55].mxu1 }
 0x170   : > { %v6030_v17 = vadd.f32 %v4856_v16, %v4855_v14  ;;  %v561_v14 = vld [vmem:[#allocation2 + $0xc8] sm:$0xff] }
 0x171   : > { %1742 = vrot.lane.b32.xlu0 %v1481_v12, %s5574_s17 }
 0x174   : > { %v4858_v19 = vpop.f32.mrb[56].mxu1 }
 0x175   : > { %1740 = vrot.lane.b32.xlu1 %v6035_v18, %s5574_s17  ;;  %v4859_v20 = vpop.f32.mrb[57].mxu1 }
 0x176   : > { %v6039_v22 = vadd.f32 %v4859_v20, %v4858_v19  ;;  %v4861_v23 = vpop.f32.mrb[58].mxu1 }
 0x177   : > { %v4862_v24 = vpop.f32.mrb[59].mxu1 }
 0x178   : > { %v6041_v7 = vadd.f32 %v4862_v24, %v4861_v23  ;;  %v1522_v23 = vsel %vm1509_vm1, %v1481_v12, 0.0 }
 0x17c   : > { %v4864_v34 = vpop.f32.mrb[60].mxu1 }
 0x17d   : > { %v4865_v42 = vpop.f32.mrb[61].mxu1 }
 0x17e   : > { %v6047_v49 = vadd.f32 %v4865_v42, %v4864_v34  ;;  %v4867_v50 = vpop.f32.mrb[62].mxu1 }
 0x17f   : > { %v4868_v54 = vpop.f32.mrb[63].mxu1 }
 0x180   : > { %v6049_v61 = vadd.f32 %v4868_v54, %v4867_v50  ;;  %v565_v54 = vld [vmem:[#allocation2 + $0xe8] sm:$0xff] }
 0x184   : > { %v4870_v2 = vpop.f32.mrb[64].mxu1 }
 0x185   : > { %v4871_v25 = vpop.f32.mrb[65].mxu1 }
 0x186   : > { %v4872_v3 = vadd.f32 %v4871_v25, %v4870_v2  ;;  %v4873_v0 = vpop.f32.mrb[66].mxu1 }
 0x187   : > { %v4874_v10 = vpop.f32.mrb[67].mxu1 }
 0x188   : > { %v1308_v11 = vadd.f32 %v4872_v3, %v5934_v29  ;;  %v4875_v13 = vadd.f32 %v4874_v10, %v4873_v0  ;;  %v566_v0 = vld [vmem:[#allocation2 + $0xf0] sm:$0xff] }
 0x18a   : > { %v1362_v16 = vadd.f32 %v1308_v11, %v560_v6  ;;  %v1311_v19 = vadd.f32 %v4875_v13, %v5936_v35  ;;  %v1411_v11 = vld [vmem:[#allocation2 + $0x28] sm:$0xff] }
 0x18c   : > { %1395 = vst.msk [vmem:[#allocation2 + $0xc0] sm:$0xff] %vm437_vm0, %v1362_v16  ;;  %v1363_v36 = vadd.f32 %v1311_v19, %v561_v14  ;;  %v4876_v20 = vpop.f32.mrb[68].mxu1 }
 0x18d   : > { %v4877_v21 = vpop.f32.mrb[69].mxu1 }
 0x18e   : > { %1396 = vst.msk [vmem:[#allocation2 + $0xc8] sm:$0xff] %vm437_vm0, %v1363_v36  ;;  %v4878_v24 = vadd.f32 %v4877_v21, %v4876_v20  ;;  %v4879_v26 = vpop.f32.mrb[70].mxu1  ;;  %v6078_v36 = vadd.f32 %v5960_v31, %v1411_v11  ;;  %v4703_v20 = vpop.f32.mrb[22].mxu0  ;;  %v608_v21 = vld [vmem:[%s5695_s28 + $0x140] sm:$0xff] }
 0x18f   : > { %v4880_v28 = vpop.f32.mrb[71].mxu1 }
 0x190   : > { %v1316_v29 = vadd.f32 %v4878_v24, %v5938_v41  ;;  %v4881_v30 = vadd.f32 %v4880_v28, %v4879_v26  ;;  %1523 = vadd.xlane.f32.xlu0 %v1522_v23  ;;  %v610_v23 = vld [vmem:[%s5695_s28 + $0x150] sm:$0xff]  ;;  %v547_v28 = vld [vmem:[#allocation2 + $0x58] sm:$0xff] }
 0x191   : > { %v5353_v26 = vld [vmem:[%s5695_s28 + $0x144] ss:$16 sps:$4 sm:$0xff]  }
 0x192   : > { %v1364_v33 = vadd.f32 %v1316_v29, %v562_v27  ;;  %v1319_v35 = vadd.f32 %v4881_v30, %v5940_v47  ;;  %v4512_v27 = vcombine.low %v608_v21, %v610_v23  ;;  %1096 = vmatprep.mubr.bf16.mxu0 %v5353_v26 }
 0x194   : > { %1397 = vst.msk [vmem:[#allocation2 + $0xd0] sm:$0xff] %vm437_vm0, %v1364_v33  ;;  %v1365_v34 = vadd.f32 %v1319_v35, %v563_v32  ;;  %v4882_v37 = vpop.f32.mrb[72].mxu1  ;;  %1097 = vmatmul.mubr.bf16.gmra.mrb[40].mxu0 %v4512_v27 }
 0x195   : > { %v4883_v38 = vpop.f32.mrb[73].mxu1 }
 0x196   : > { %1398 = vst.msk [vmem:[#allocation2 + $0xd8] sm:$0xff] %vm437_vm0, %v1365_v34  ;;  %v4884_v12 = vadd.f32 %v4883_v38, %v4882_v37  ;;  %v4885_v42 = vpop.f32.mrb[74].mxu1  ;;  %v548_v34 = vld [vmem:[#allocation2 + $0x60] sm:$0xff] }
 0x197   : > { %v4886_v46 = vpop.f32.mrb[75].mxu1 }
 0x198   : > { %v1324_v50 = vadd.f32 %v4884_v12, %v5945_v57  ;;  %v4887_v41 = vadd.f32 %v4886_v46, %v4885_v42  ;;  %v6070_v57 = vadd.f32 %v5960_v31, %v1412_v58  ;;  %v1414_v42 = vld [vmem:[#allocation2 + $0x40] sm:$0xff]  ;;  %v1413_v46 = vld [vmem:[#allocation2 + $0x38] sm:$0xff] }
 0x199   : > { %1520 = vadd.xlane.f32.xlu1 %v1519_v53 }
 0x19a   : > { %v1366_v47 = vadd.f32 %v1324_v50, %v564_v43  ;;  %v1327_v55 = vadd.f32 %v4887_v41, %v5947_v63  ;;  %v567_v63 = vld [vmem:[#allocation2 + $0xf8] sm:$0xff]  ;;  %v1483_v16 = vmul.f32 %v6070_v57, %v6070_v57  ;;  %v6095_v43 = vadd.f32 %v5960_v31, %v1414_v42 }
 0x19b   : > { %v6100_v50 = vadd.f32 %v5960_v31, %v1413_v46 }
 0x19c   : > { %1399 = vst.msk [vmem:[#allocation2 + $0xe0] sm:$0xff] %vm437_vm0, %v1366_v47  ;;  %v1367_v44 = vadd.f32 %v1327_v55, %v565_v54  ;;  %v4888_v1 = vpop.f32.mrb[76].mxu1  ;;  %v1528_v12 = vsel %vm1509_vm1, %v1483_v16, 0.0  ;;  %v612_v47 = vld [vmem:[%s5695_s28 + $0x160] sm:$0xff]  ;;  %v614_v55 = vld [vmem:[%s5695_s28 + $0x170] sm:$0xff] }
 0x19d   : > { %v4889_v2 = vpop.f32.mrb[77].mxu1  ;;  %v1484_v41 = vmul.f32 %v6100_v50, %v6100_v50 }
 0x19e   : > { %1400 = vst.msk [vmem:[#allocation2 + $0xe8] sm:$0xff] %vm437_vm0, %v1367_v44  ;;  %v4890_v25 = vadd.f32 %v4889_v2, %v4888_v1  ;;  %v4891_v3 = vpop.f32.mrb[78].mxu1  ;;  %v5355_v44 = vld [vmem:[%s5695_s28 + $0x164] ss:$16 sps:$4 sm:$0xff]   ;;  %v4516_v1 = vcombine.low %v612_v47, %v614_v55  ;;  %v549_v2 = vld [vmem:[#allocation2 + $0x68] sm:$0xff]  ;;  %s5575_s28 = smov 32  }
 0x19f   : > { %v4892_v18 = vpop.f32.mrb[79].mxu1  ;;  %1104 = vmatprep.mubr.bf16.mxu0 %v5355_v44 }
 0x1a0   : > { %v1332_v6 = vadd.f32 %v4890_v25, %v5949_v5  ;;  %v4893_v10 = vadd.f32 %v4892_v18, %v4891_v3  ;;  %v1482_v5 = vmul.f32 %v6078_v36, %v6078_v36  ;;  %1105 = vmatmul.mubr.bf16.gmra.mrb[44].mxu0 %v4516_v1  ;;  %v554_v1 = vld [vmem:[#allocation2 + $0x90] sm:$0xff] }
 0x1a2   : > { %v1368_v13 = vadd.f32 %v1332_v6, %v566_v0  ;;  %v1335_v14 = vadd.f32 %v4893_v10, %v5953_v9  ;;  %v4704_v9 = vpop.f32.mrb[23].mxu0  ;;  %v550_v10 = vld [vmem:[#allocation2 + $0x70] sm:$0xff] }
 0x1a3   : > { %v4705_v24 = vadd.f32 %v4704_v9, %v4703_v20  ;;  %v4706_v29 = vpop.f32.mrb[24].mxu0 }
 0x1a4   : > { %1401 = vst.msk [vmem:[#allocation2 + $0xf0] sm:$0xff] %vm437_vm0, %v1368_v13  ;;  %v1369_v19 = vadd.f32 %v1335_v14, %v567_v63  ;;  %v4707_v32 = vpop.f32.mrb[25].mxu0  ;;  %v1531_v14 = vsel %vm1509_vm1, %v1484_v41, 0.0 }
 0x1a5   : > { %v1255_v30 = vadd.f32 %v6001_v40, %v4705_v24  ;;  %v4708_v33 = vadd.f32 %v4707_v32, %v4706_v29  ;;  %v1525_v40 = vsel %vm1509_vm1, %v1482_v5, 0.0  ;;  %v4709_v53 = vpop.f32.mrb[26].mxu0  ;;  %v551_v24 = vld [vmem:[#allocation2 + $0x78] sm:$0xff]  ;;  %v552_v32 = vld [vmem:[#allocation2 + $0x80] sm:$0xff] }
 0x1a6   : > { %1402 = vst.msk [vmem:[#allocation2 + $0xf8] sm:$0xff] %vm437_vm0, %v1369_v19  ;;  %1746 = vrot.lane.b32.xlu0 %v1483_v16, %s5574_s17  ;;  %v4710_v54 = vpop.f32.mrb[27].mxu0  ;;  %v1415_v19 = vld [vmem:[#allocation2 + $0x48] sm:$0xff] }
 0x1a7   : > { %v1349_v35 = vadd.f32 %v1255_v30, %v547_v28  ;;  %v1260_v37 = vadd.f32 %v6005_v48, %v4708_v33  ;;  %v1485_v48 = vmul.f32 %v6095_v43, %v6095_v43  ;;  %v4711_v58 = vadd.f32 %v4710_v54, %v4709_v53  ;;  %v4712_v25 = vpop.f32.mrb[28].mxu0  ;;  %v553_v53 = vld [vmem:[#allocation2 + $0x88] sm:$0xff] }
 0x1a8   : > { %v4713_v0 = vpop.f32.mrb[29].mxu0 }
 0x1a9   : > { %1382 = vst.msk [vmem:[#allocation2 + $0x58] sm:$0xff] %vm437_vm0, %v1349_v35  ;;  %v1350_v38 = vadd.f32 %v1260_v37, %v548_v34  ;;  %v1263_v3 = vadd.f32 %v6007_v52, %v4711_v58  ;;  %v4714_v18 = vadd.f32 %v4713_v0, %v4712_v25  ;;  %v1534_v13 = vsel %vm1509_vm1, %v1485_v48, 0.0  ;;  %v1416_v52 = vld [vmem:[#allocation2 + $0x50] sm:$0xff]  ;;  %v4715_v9 = vpop.f32.mrb[30].mxu0 }
 0x1aa   : > { %1744 = vrot.lane.b32.xlu1 %v1482_v5, %s5574_s17  ;;  %v6116_v16 = vadd.f32 %v5960_v31, %v1416_v52  ;;  %v4716_v21 = vpop.f32.mrb[31].mxu0  ;;  %v555_v52 = vld [vmem:[#allocation2 + $0x98] sm:$0xff] }
 0x1ab   : > { %1383 = vst.msk [vmem:[#allocation2 + $0x60] sm:$0xff] %vm437_vm0, %v1350_v38  ;;  %v1351_v6 = vadd.f32 %v1263_v3, %v549_v2  ;;  %v1268_v63 = vadd.f32 %v6011_v56, %v4714_v18  ;;  %v6121_v56 = vadd.f32 %v5960_v31, %v1415_v19  ;;  %v4717_v23 = vadd.f32 %v4716_v21, %v4715_v9 }
 0x1ac   : > { %v1487_v5 = vmul.f32 %v6116_v16, %v6116_v16 }
 0x1ad   : > { %1384 = vst.msk [vmem:[#allocation2 + $0x68] sm:$0xff] %vm437_vm0, %v1351_v6  ;;  %v1352_v11 = vadd.f32 %v1268_v63, %v550_v10  ;;  %v1486_v20 = vmul.f32 %v6121_v56, %v6121_v56  ;;  %v1271_v26 = vadd.f32 %v6013_v62, %v4717_v23  ;;  %v556_v23 = vld [vmem:[#allocation2 + $0xa0] sm:$0xff] }
 0x1ae   : > { %v1540_v34 = vsel %vm1509_vm1, %v1487_v5, 0.0 }
 0x1af   : > { %1385 = vst.msk [vmem:[#allocation2 + $0x70] sm:$0xff] %vm437_vm0, %v1352_v11  ;;  %v1353_v29 = vadd.f32 %v1271_v26, %v551_v24  ;;  %v1537_v37 = vsel %vm1509_vm1, %v1486_v20, 0.0 }
 0x1b1   : > { %1386 = vst.msk [vmem:[#allocation2 + $0x78] sm:$0xff] %vm437_vm0, %v1353_v29 }
 0x1b2   : > { %v1418_v38 = vld [vmem:[#allocation2 + $0x60] sm:$0xff] }
 0x1b3   : > { %v6134_v62 = vadd.f32 %v5960_v31, %v1418_v38  ;;  %v557_v38 = vld [vmem:[#allocation2 + $0xa8] sm:$0xff] }
 0x1b4   : > { %v1419_v6 = vld [vmem:[#allocation2 + $0x68] sm:$0xff] }
 0x1b5   : > { %v6157_v63 = vadd.f32 %v5960_v31, %v1419_v6 }
 0x1b6   : > { %v1420_v18 = vld [vmem:[#allocation2 + $0x70] sm:$0xff] }
 0x1c5   : > { %1529 = vadd.xlane.f32.xlu0 %v1528_v12  ;;  %v1417_v12 = vld [vmem:[#allocation2 + $0x58] sm:$0xff] }
 0x1c6   : > { %v6139_v42 = vadd.f32 %v5960_v31, %v1417_v12 }
 0x1ce   : > { %1526 = vadd.xlane.f32.xlu1 %v1525_v40  ;;  %v1489_v40 = vmul.f32 %v6134_v62, %v6134_v62 }
 0x1d0   : > { %v1546_v3 = vsel %vm1509_vm1, %v1489_v40, 0.0 }
 0x1db   : > { %1750 = vrot.lane.b32.xlu0 %v1485_v48, %s5574_s17 }
 0x1df   : > { %1748 = vrot.lane.b32.xlu1 %v1484_v41, %s5574_s17 }
 0x1fa   : > { %1535 = vadd.xlane.f32.xlu0 %v1534_v13 }
 0x203   : > { %1532 = vadd.xlane.f32.xlu1 %v1531_v14 }
 0x205   : > { %v4718_v27 = vpop.f32.mrb[32].mxu0 }
 0x206   : > { %v4719_v28 = vpop.f32.mrb[33].mxu0 }
 0x207   : > { %v4720_v30 = vadd.f32 %v4719_v28, %v4718_v27  ;;  %v4721_v46 = vpop.f32.mrb[34].mxu0 }
 0x208   : > { %v4722_v48 = vpop.f32.mrb[35].mxu0 }
 0x209   : > { %v1276_v33 = vadd.f32 %v6016_v4, %v4720_v30  ;;  %v1488_v4 = vmul.f32 %v6139_v42, %v6139_v42  ;;  %v4723_v41 = vadd.f32 %v4722_v48, %v4721_v46  ;;  %v1421_v30 = vld [vmem:[#allocation2 + $0x78] sm:$0xff] }
 0x20b   : > { %v1354_v35 = vadd.f32 %v1276_v33, %v552_v32  ;;  %v1279_v54 = vadd.f32 %v6018_v51, %v4723_v41  ;;  %v1543_v0 = vsel %vm1509_vm1, %v1488_v4, 0.0  ;;  %v6152_v51 = vadd.f32 %v5960_v31, %v1420_v18  ;;  %v558_v41 = vld [vmem:[#allocation2 + $0xb0] sm:$0xff]  ;;  %v559_v18 = vld [vmem:[#allocation2 + $0xb8] sm:$0xff] }
 0x20c   : > { %v6175_v33 = vadd.f32 %v5960_v31, %v1421_v30 }
 0x20d   : > { %1387 = vst.msk [vmem:[#allocation2 + $0x80] sm:$0xff] %vm437_vm0, %v1354_v35  ;;  %v1355_v58 = vadd.f32 %v1279_v54, %v553_v53  ;;  %v1491_v10 = vmul.f32 %v6152_v51, %v6152_v51 }
 0x20f   : > { %1388 = vst.msk [vmem:[#allocation2 + $0x88] sm:$0xff] %vm437_vm0, %v1355_v58  ;;  %v1552_v27 = vsel %vm1509_vm1, %v1491_v10, 0.0 }
 0x210   : > { %1754 = vrot.lane.b32.xlu0 %v1487_v5, %s5574_s17 }
 0x214   : > { %1752 = vrot.lane.b32.xlu1 %v1486_v20, %s5574_s17  ;;  %v1422_v29 = vld [vmem:[#allocation2 + $0x80] sm:$0xff] }
 0x223   : > { %v4724_v47 = vpop.f32.mrb[36].mxu0 }
 0x224   : > { %v4725_v55 = vpop.f32.mrb[37].mxu0 }
 0x225   : > { %v4726_v44 = vadd.f32 %v4725_v55, %v4724_v47  ;;  %v4727_v11 = vpop.f32.mrb[38].mxu0 }
 0x226   : > { %v4728_v13 = vpop.f32.mrb[39].mxu0 }
 0x227   : > { %v1284_v2 = vadd.f32 %v6025_v59, %v4726_v44  ;;  %v1490_v59 = vmul.f32 %v6157_v63, %v6157_v63  ;;  %v4729_v14 = vadd.f32 %v4728_v13, %v4727_v11  ;;  %v1423_v44 = vld [vmem:[#allocation2 + $0x88] sm:$0xff] }
 0x229   : > { %v1356_v25 = vadd.f32 %v1284_v2, %v554_v1  ;;  %v1287_v19 = vadd.f32 %v6030_v17, %v4729_v14  ;;  %v1549_v28 = vsel %vm1509_vm1, %v1490_v59, 0.0  ;;  %v6170_v17 = vadd.f32 %v5960_v31, %v1422_v29 }
 0x22a   : > { %v6193_v2 = vadd.f32 %v5960_v31, %v1423_v44 }
 0x22b   : > { %1389 = vst.msk [vmem:[#allocation2 + $0x90] sm:$0xff] %vm437_vm0, %v1356_v25  ;;  %v1357_v9 = vadd.f32 %v1287_v19, %v555_v52  ;;  %v1493_v32 = vmul.f32 %v6170_v17, %v6170_v17 }
 0x22c   : > { %8336 = vst [vmem:[#allocation3_spill] sm:$0xff] %v6193_v2 }
 0x22d   : > { %1390 = vst.msk [vmem:[#allocation2 + $0x98] sm:$0xff] %vm437_vm0, %v1357_v9  ;;  %v1558_v47 = vsel %vm1509_vm1, %v1493_v32, 0.0 }
 0x22f   : > { %1541 = vadd.xlane.f32.xlu0 %v1540_v34 }
 0x232   : > { %v1424_v58 = vld [vmem:[#allocation2 + $0x90] sm:$0xff] }
 0x234   : > { %v1425_v52 = vld [vmem:[#allocation2 + $0x98] sm:$0xff] }
 0x238   : > { %1538 = vadd.xlane.f32.xlu1 %v1537_v37 }
 0x245   : > { %1758 = vrot.lane.b32.xlu0 %v1489_v40, %s5574_s17 }
 0x249   : > { %1756 = vrot.lane.b32.xlu1 %v1488_v4, %s5574_s17 }
 0x264   : > { %1547 = vadd.xlane.f32.xlu0 %v1546_v3 }
 0x267   : > { %v4730_v5 = vpop.f32.mrb[40].mxu0 }
 0x268   : > { %v4731_v20 = vpop.f32.mrb[41].mxu0 }
 0x269   : > { %v4732_v21 = vadd.f32 %v4731_v20, %v4730_v5  ;;  %v4733_v35 = vpop.f32.mrb[42].mxu0  ;;  %v6209_v5 = vadd.f32 %v5960_v31, %v1425_v52  ;;  %v1435_v52 = vld [vmem:[#allocation2 + $0xe8] sm:$0xff] }
 0x26a   : > { %v4734_v34 = vpop.f32.mrb[43].mxu0 }
 0x26b   : > { %v1292_v24 = vadd.f32 %v6039_v22, %v4732_v21  ;;  %v1492_v22 = vmul.f32 %v6175_v33, %v6175_v33  ;;  %v4735_v37 = vadd.f32 %v4734_v34, %v4733_v35 }
 0x26d   : > { %1544 = vadd.xlane.f32.xlu1 %v1543_v0  ;;  %v1358_v26 = vadd.f32 %v1292_v24, %v556_v23  ;;  %v1295_v12 = vadd.f32 %v6041_v7, %v4735_v37  ;;  %v1555_v55 = vsel %vm1509_vm1, %v1492_v22, 0.0  ;;  %v6188_v7 = vadd.f32 %v5960_v31, %v1424_v58 }
 0x26f   : > { %1391 = vst.msk [vmem:[#allocation2 + $0xa0] sm:$0xff] %vm437_vm0, %v1358_v26  ;;  %v1359_v46 = vadd.f32 %v1295_v12, %v557_v38  ;;  %v1495_v1 = vmul.f32 %v6188_v7, %v6188_v7 }
 0x271   : > { %1392 = vst.msk [vmem:[#allocation2 + $0xa8] sm:$0xff] %vm437_vm0, %v1359_v46 }
 0x273   : > { %v4736_v40 = vpop.f32.mrb[44].mxu0 }
 0x274   : > { %v4737_v4 = vpop.f32.mrb[45].mxu0 }
 0x275   : > { %v4738_v48 = vadd.f32 %v4737_v4, %v4736_v40  ;;  %v4739_v25 = vpop.f32.mrb[46].mxu0  ;;  %v1432_v4 = vld [vmem:[#allocation2 + $0xd0] sm:$0xff] }
 0x276   : > { %v4740_v3 = vpop.f32.mrb[47].mxu0  ;;  %v1426_v13 = vld [vmem:[#allocation2 + $0xa0] sm:$0xff]  ;;  %v6246_v46 = vadd.f32 %v5960_v31, %v1432_v4 }
 0x277   : > { %v1300_v53 = vadd.f32 %v6047_v49, %v4738_v48  ;;  %v1494_v49 = vmul.f32 %v6193_v2, %v6193_v2  ;;  %v4741_v0 = vadd.f32 %v4740_v3, %v4739_v25  ;;  %v6204_v14 = vadd.f32 %v5960_v31, %v1426_v13  ;;  %v1431_v48 = vld [vmem:[#allocation2 + $0xc8] sm:$0xff]  ;;  %v1434_v25 = vld [vmem:[#allocation2 + $0xe0] sm:$0xff] }
 0x278   : > { %v1427_v24 = vld [vmem:[#allocation2 + $0xa8] sm:$0xff]  ;;  %v6266_v3 = vadd.f32 %v5960_v31, %v1434_v25 }
 0x279   : > { %v1360_v54 = vadd.f32 %v1300_v53, %v558_v41  ;;  %v1303_v6 = vadd.f32 %v6049_v61, %v4741_v0  ;;  %v1561_v11 = vsel %vm1509_vm1, %v1494_v49, 0.0  ;;  %v1497_v19 = vmul.f32 %v6204_v14, %v6204_v14 }
 0x27a   : > { %1762 = vrot.lane.b32.xlu0 %v1491_v10, %s5574_s17  ;;  %v1496_v61 = vmul.f32 %v6209_v5, %v6209_v5  ;;  %v1503_v41 = vmul.f32 %v6246_v46, %v6246_v46  ;;  %v6251_v53 = vadd.f32 %v5960_v31, %v1431_v48  ;;  %v1505_v0 = vmul.f32 %v6266_v3, %v6266_v3 }
 0x27b   : > { %1393 = vst.msk [vmem:[#allocation2 + $0xb0] sm:$0xff] %vm437_vm0, %v1360_v54  ;;  %v1361_v10 = vadd.f32 %v1303_v6, %v559_v18  ;;  %v1570_v20 = vsel %vm1509_vm1, %v1497_v19, 0.0  ;;  %v1735_v18 = vpop.permute.xlu0 %1734 }
 0x27c   : > { %v1567_v9 = vsel %vm1509_vm1, %v1496_v61, 0.0  ;;  %8340 = vst [vmem:[#allocation7_spill] sm:$0xff] %v6251_v53  ;;  %v1502_v54 = vmul.f32 %v6251_v53, %v6251_v53  ;;  %v1830_v6 = vsel %vm1509_vm1, %v1735_v18, 0.0 }
 0x27d   : > { %1394 = vst.msk [vmem:[#allocation2 + $0xb8] sm:$0xff] %vm437_vm0, %v1361_v10  ;;  %v1594_v10 = vsel %vm1509_vm1, %v1505_v0, 0.0 }
 0x27e   : > { %1760 = vrot.lane.b32.xlu1 %v1490_v59, %s5574_s17  ;;  %v1564_v59 = vsel %vm1509_vm1, %v1495_v1, 0.0 }
 0x282   : > { %v1428_v21 = vld [vmem:[#allocation2 + $0xb0] sm:$0xff] }
 0x283   : > { %v6218_v23 = vadd.f32 %v5960_v31, %v1428_v21 }
 0x284   : > { %v1429_v35 = vld [vmem:[#allocation2 + $0xb8] sm:$0xff] }
 0x285   : > { %8337 = vst [vmem:[#allocation4_spill] sm:$0xff] %v6218_v23  ;;  %v1499_v26 = vmul.f32 %v6218_v23, %v6218_v23  ;;  %v6237_v37 = vadd.f32 %v5960_v31, %v1429_v35  ;;  %v2421_v23 = vld [vmem:[%s6440_s24 + $0x68] sm:$0xff] }
 0x287   : > { %v1576_v29 = vsel %vm1509_vm1, %v1499_v26, 0.0  ;;  %8339 = vst [vmem:[#allocation6_spill] sm:$0xff] %v6237_v37  ;;  %v1500_v38 = vmul.f32 %v6237_v37, %v6237_v37 }
 0x289   : > { %v1579_v40 = vsel %vm1509_vm1, %v1500_v38, 0.0 }
 0x299   : > { %1553 = vadd.xlane.f32.xlu0 %v1552_v27  ;;  %v6223_v27 = vadd.f32 %v5960_v31, %v1427_v24 }
 0x29b   : > { %8338 = vst [vmem:[#allocation5_spill] sm:$0xff] %v6223_v27 }
 0x2a2   : > { %1550 = vadd.xlane.f32.xlu1 %v1549_v28  ;;  %v1498_v28 = vmul.f32 %v6223_v27, %v6223_v27 }
 0x2a4   : > { %v1573_v30 = vsel %vm1509_vm1, %v1498_v28, 0.0 }
 0x2af   : > { %1766 = vrot.lane.b32.xlu0 %v1493_v32, %s5574_s17  ;;  %v1430_v32 = vld [vmem:[#allocation2 + $0xc0] sm:$0xff] }
 0x2b3   : > { %1764 = vrot.lane.b32.xlu1 %v1492_v22, %s5574_s17  ;;  %v6232_v22 = vadd.f32 %v5960_v31, %v1430_v32 }
 0x2b5   : > { %v1501_v34 = vmul.f32 %v6232_v22, %v6232_v22 }
 0x2b7   : > { %v1582_v12 = vsel %vm1509_vm1, %v1501_v34, 0.0 }
 0x2ce   : > { %1559 = vadd.xlane.f32.xlu0 %v1558_v47  ;;  %v1433_v47 = vld [vmem:[#allocation2 + $0xd8] sm:$0xff] }
 0x2d7   : > { %1556 = vadd.xlane.f32.xlu1 %v1555_v55  ;;  %v6258_v55 = vadd.f32 %v5960_v31, %v1433_v47 }
 0x2d9   : > { %8341 = vst [vmem:[#allocation8_spill] sm:$0xff] %v6258_v55  ;;  %v1504_v58 = vmul.f32 %v6258_v55, %v6258_v55 }
 0x2db   : > { %v1591_v44 = vsel %vm1509_vm1, %v1504_v58, 0.0 }
 0x2e4   : > { %1770 = vrot.lane.b32.xlu0 %v1495_v1, %s5574_s17  ;;  %v1585_v1 = vsel %vm1509_vm1, %v1502_v54, 0.0 }
 0x2e8   : > { %1768 = vrot.lane.b32.xlu1 %v1494_v49, %s5574_s17  ;;  %v1588_v49 = vsel %vm1509_vm1, %v1503_v41, 0.0 }
 0x303   : > { %1565 = vadd.xlane.f32.xlu0 %v1564_v59  ;;  %v1437_v59 = vld [vmem:[#allocation2 + $0xf8] sm:$0xff] }
 0x30c   : > { %1562 = vadd.xlane.f32.xlu1 %v1561_v11  ;;  %v6275_v11 = vadd.f32 %v5960_v31, %v1437_v59 }
 0x30e   : > { %8342 = vst [vmem:[#allocation9_spill] sm:$0xff] %v6275_v11  ;;  %v1508_v13 = vmul.f32 %v6275_v11, %v6275_v11 }
 0x319   : > { %1774 = vrot.lane.b32.xlu0 %v1497_v19, %s5574_s17  ;;  %v6281_v19 = vadd.f32 %v5960_v31, %v1435_v52 }
 0x31b   : > { %8343 = vst [vmem:[#allocation10_spill] sm:$0xff] %v6281_v19 }
 0x31d   : > { %1772 = vrot.lane.b32.xlu1 %v1496_v61, %s5574_s17  ;;  %v1737_v61 = vpop.permute.xlu1 %1736 }
 0x31e   : > { %v1833_v48 = vsel %vm1509_vm1, %v1737_v61, 0.0 }
 0x338   : > { %1571 = vadd.xlane.f32.xlu0 %v1570_v20  ;;  %v1506_v20 = vmul.f32 %v6281_v19, %v6281_v19 }
 0x341   : > { %1568 = vadd.xlane.f32.xlu1 %v1567_v9  ;;  %v1739_v9 = vpop.permute.xlu1 %1738 }
 0x345   : > { %v6286_v21 = vpop.xlane.xlu1 %1517 }
 0x349   : > { %v1741_v24 = vpop.permute.xlu1 %1740 }
 0x34e   : > { %1778 = vrot.lane.b32.xlu0 %v1499_v26, %s5574_s17  ;;  %v1521_v26 = vpop.xlane.xlu1 %1520 }
 0x352   : > { %1776 = vrot.lane.b32.xlu1 %v1498_v28, %s5574_s17  ;;  %v6288_v28 = vpop.xlane.xlu0 %1511 }
 0x36d   : > { %1577 = vadd.xlane.f32.xlu0 %v1576_v29  ;;  %v1745_v29 = vpop.permute.xlu1 %1744 }
 0x36e   : > { %v1845_v32 = vsel %vm1509_vm1, %v1745_v29, 0.0 }
 0x376   : > { %1574 = vadd.xlane.f32.xlu1 %v1573_v30  ;;  %v1515_v30 = vpop.xlane.xlu0 %1514 }
 0x377   : > { %v1607_v35 = vmax.f32 %v1515_v30, 1e-24  ;;  %v1603_v30 = vsel %vm1509_vm1, %v1508_v13, 0.0 }
 0x379   : > { %5357 = vrsqrt.f32 %v1607_v35  ;;  %v1836_v35 = vsel %vm1509_vm1, %v1739_v9, 0.0 }
 0x383   : > { %1782 = vrot.lane.b32.xlu0 %v1501_v34, %s5574_s17  ;;  %v1743_v34 = vpop.permute.xlu0 %1742 }
 0x387   : > { %1780 = vrot.lane.b32.xlu1 %v1500_v38, %s5574_s17  ;;  %v1609_v38 = vmax.f32 %v1521_v26, 1e-24  ;;  %v1527_v26 = vpop.xlane.xlu1 %1526 }
 0x389   : > { %5359 = vrsqrt.f32 %v1609_v38 }
 0x3a2   : > { %1583 = vadd.xlane.f32.xlu0 %v1582_v12  ;;  %v6291_v12 = vpop.xlane.xlu0 %1523 }
 0x3a6   : > { %v1747_v4 = vpop.permute.xlu0 %1746 }
 0x3ab   : > { %1580 = vadd.xlane.f32.xlu1 %v1579_v40  ;;  %v1597_v40 = vsel %vm1509_vm1, %v1506_v20, 0.0 }
 0x3b8   : > { %1786 = vrot.lane.b32.xlu0 %v1503_v41, %s5574_s17  ;;  %v5358_v41 = vpop.eup %5357 }
 0x3b9   : > { %v6298_v47 = vmul.f32 %v5358_v41, %v5972_v45  ;;  %v1749_v41 = vpop.permute.xlu1 %1748 }
 0x3ba   : > { %v1851_v9 = vsel %vm1509_vm1, %v1749_v41, 0.0 }
 0x3bb   : > { %8344 = vst [vmem:[#allocation11_spill] sm:$0xff] %v6298_v47 }
 0x3bc   : > { %1784 = vrot.lane.b32.xlu1 %v1502_v54, %s5574_s17  ;;  %v6295_v54 = vpop.xlane.xlu0 %1529 }
 0x3d7   : > { %1592 = vadd.xlane.f32.xlu0 %v1591_v44  ;;  %v1751_v44 = vpop.permute.xlu0 %1750 }
 0x3e0   : > { %1586 = vadd.xlane.f32.xlu1 %v1585_v1 }
 0x3e4   : > { %1589 = vadd.xlane.f32.xlu1 %v1588_v49  ;;  %v1436_v49 = vld [vmem:[#allocation2 + $0xf0] sm:$0xff] }
 0x3e5   : > { %v6308_v25 = vadd.f32 %v5960_v31, %v1436_v49  ;;  %v1611_v31 = vmax.f32 %v1527_v26, 1e-24 }
 0x3e7   : > { %v1507_v18 = vmul.f32 %v6308_v25, %v6308_v25  ;;  %5361 = vrsqrt.f32 %v1611_v31 }
 0x3e9   : > { %v1600_v29 = vsel %vm1509_vm1, %v1507_v18, 0.0 }
 0x3ed   : > { %1790 = vrot.lane.b32.xlu0 %v1505_v0, %s5574_s17  ;;  %v6310_v0 = vpop.xlane.xlu0 %1535 }
 0x3f5   : > { %1788 = vrot.lane.b32.xlu1 %v1504_v58, %s5574_s17  ;;  %v5360_v58 = vpop.eup %5359 }
 0x3f6   : > { %v6303_v1 = vmul.f32 %v5360_v58, %v6028_v15  ;;  %v1533_v58 = vpop.xlane.xlu1 %1532 }
 0x3f8   : > { %8345 = vst [vmem:[#allocation12_spill] sm:$0xff] %v6303_v1 }
 0x3fa   : > { %v1753_v49 = vpop.permute.xlu1 %1752 }
 0x40c   : > { %1831 = vadd.xlane.f32.xlu0 %v1830_v6  ;;  %v1755_v6 = vpop.permute.xlu0 %1754 }
 0x419   : > { %1595 = vadd.xlane.f32.xlu1 %v1594_v10  ;;  %v6315_v10 = vpop.xlane.xlu0 %1541 }
 0x41d   : > { %v6317_v59 = vpop.permute.xlu0 %1758 }
 0x421   : > { %v6319_v52 = vpop.xlane.xlu0 %1547 }
 0x422   : > { %1796 = vrot.lane.b32.xlu0 %v1508_v13, %s5574_s17  ;;  %v1848_v13 = vsel %vm1509_vm1, %v1747_v4, 0.0  ;;  %v1606_v4 = vmax.f32 %v6288_v28, 1e-24 }
 0x424   : > { %5363 = vrsqrt.f32 %v1606_v4 }
 0x425   : > { %v1763_v61 = vpop.permute.xlu0 %1762 }
 0x42a   : > { %1792 = vrot.lane.b32.xlu1 %v1506_v20, %s5574_s17  ;;  %v1872_v20 = vsel %vm1509_vm1, %v1763_v61, 0.0  ;;  %v1539_v61 = vpop.xlane.xlu1 %1538 }
 0x42e   : > { %v1757_v26 = vpop.permute.xlu1 %1756 }
 0x441   : > { %1846 = vadd.xlane.f32.xlu0 %v1845_v32  ;;  %v5362_v32 = vpop.eup %5361 }
 0x442   : > { %v6326_v38 = vmul.f32 %v5362_v32, %v6078_v36  ;;  %v5364_v32 = vpop.eup %5363 }
 0x444   : > { %8346 = vst [vmem:[#allocation13_spill] sm:$0xff] %v6326_v38 }
 0x44e   : > { %1598 = vadd.xlane.f32.xlu1 %v1597_v40  ;;  %v1839_v40 = vsel %vm1509_vm1, %v1741_v24, 0.0  ;;  %v6336_v24 = vpop.xlane.xlu0 %1553 }
 0x452   : > { %1834 = vadd.xlane.f32.xlu1 %v1833_v48  ;;  %v1842_v48 = vsel %vm1509_vm1, %v1743_v34, 0.0  ;;  %v1860_v34 = vsel %vm1509_vm1, %v1755_v6, 0.0  ;;  %v1767_v31 = vpop.permute.xlu0 %1766 }
 0x457   : > { %3674 = vrot.lane.b32.xlu0 %v6298_v47, %s5575_s28  ;;  %v2412_v47 = vld [vmem:[%s6440_s24 + $0x20] sm:$0xff] }
 0x45b   : > { %3678 = vrot.lane.b32.xlu0 %v6303_v1, %s5575_s28 }
 0x463   : > { %1794 = vrot.lane.b32.xlu1 %v1507_v18, %s5574_s17  ;;  %v1854_v18 = vsel %vm1509_vm1, %v1751_v44, 0.0  ;;  %v1613_v44 = vmax.f32 %v1533_v58, 1e-24 }
 0x465   : > { %5365 = vrsqrt.f32 %v1613_v44 }
 0x46f   : > { %v5366_v6 = vpop.eup %5365 }
 0x470   : > { %v6348_v28 = vmul.f32 %v5366_v6, %v6100_v50 }
 0x472   : > { %8347 = vst [vmem:[#allocation14_spill] sm:$0xff] %v6348_v28 }
 0x47a   : > { %1873 = vadd.xlane.f32.xlu0 %v1872_v20  ;;  %v1857_v20 = vsel %vm1509_vm1, %v1753_v49, 0.0 }
 0x487   : > { %1601 = vadd.xlane.f32.xlu1 %v1600_v29  ;;  %v1863_v29 = vsel %vm1509_vm1, %v1757_v26, 0.0 }
 0x48b   : > { %1604 = vadd.xlane.f32.xlu1 %v1603_v30  ;;  %v1878_v30 = vsel %vm1509_vm1, %v1767_v31, 0.0  ;;  %v1866_v31 = vsel %vm1509_vm1, %v6317_v59, 0.0 }
 0x48f   : > { %1837 = vadd.xlane.f32.xlu1 %v1836_v35  ;;  %v1545_v35 = vpop.xlane.xlu1 %1544 }
 0x490   : > { %3682 = vrot.lane.b32.xlu0 %v6326_v38, %s5575_s28 }
 0x493   : > { %1840 = vadd.xlane.f32.xlu1 %v1839_v40  ;;  %v6343_v40 = vmul.f32 %v5364_v32, %v5964_v39 }
 0x497   : > { %1843 = vadd.xlane.f32.xlu1 %v1842_v48  ;;  %v1761_v48 = vpop.permute.xlu1 %1760 }
 0x498   : > { %v1869_v44 = vsel %vm1509_vm1, %v1761_v48, 0.0 }
 0x49b   : > { %1849 = vadd.xlane.f32.xlu1 %v1848_v13  ;;  %v6350_v41 = vpop.xlane.xlu1 %1550 }
 0x49f   : > { %1852 = vadd.xlane.f32.xlu1 %v1851_v9  ;;  %v1765_v13 = vpop.permute.xlu1 %1764 }
 0x4a3   : > { %1855 = vadd.xlane.f32.xlu1 %v1854_v18  ;;  %v6354_v58 = vpop.xlane.xlu1 %1556  ;;  %v6360_v18 = vpop.xlane.xlu0 %1559 }
 0x4a7   : > { %1858 = vadd.xlane.f32.xlu1 %v1857_v20  ;;  %v6356_v9 = vpop.permute.xlu1 %1768 }
 0x4ab   : > { %1861 = vadd.xlane.f32.xlu1 %v1860_v34  ;;  %v6358_v49 = vpop.xlane.xlu1 %1562  ;;  %v1771_v34 = vpop.permute.xlu0 %1770 }
 0x4ac   : > { %8348 = vst [vmem:[#allocation15_spill] sm:$0xff] %v6358_v49  ;;  %v1884_v4 = vsel %vm1509_vm1, %v1771_v34, 0.0 }
 0x4af   : > { %1864 = vadd.xlane.f32.xlu1 %v1863_v29  ;;  %1879 = vadd.xlane.f32.xlu0 %v1878_v30  ;;  %v6362_v20 = vpop.permute.xlu1 %1772  ;;  %v1608_v29 = vmax.f32 %v6286_v21, 1e-24  ;;  %v1615_v30 = vmax.f32 %v1539_v61, 1e-24 }
 0x4b1   : > { %5367 = vrsqrt.f32 %v1608_v29  ;;  %v6397_v29 = vpop.xlane.xlu0 %1565 }
 0x4b2   : > { %5369 = vrsqrt.f32 %v1615_v30 }
 0x4b3   : > { %v6364_v26 = vpop.xlane.xlu1 %1568 }
 0x4b4   : > { %8349 = vst [vmem:[#allocation16_spill] sm:$0xff] %v6364_v26 }
 0x4b5   : > { %v1775_v30 = vpop.permute.xlu0 %1774 }
 0x4b7   : > { %v6371_v32 = vpop.permute.xlu1 %1776 }
 0x4b9   : > { %v6410_v11 = vpop.xlane.xlu0 %1571 }
 0x4bb   : > { %v6373_v6 = vpop.xlane.xlu1 %1574 }
 0x4bc   : > { %8350 = vst [vmem:[#allocation17_spill] sm:$0xff] %v6373_v6 }
 0x4bd   : > { %v1779_v1 = vpop.permute.xlu0 %1778 }
 0x4be   : > { %v1896_v27 = vsel %vm1509_vm1, %v1779_v1, 0.0 }
 0x4bf   : > { %v6375_v26 = vpop.permute.xlu1 %1780 }
 0x4c0   : > { %3672 = vrot.lane.b32.xlu1 %v6343_v40, %s5575_s28 }
 0x4c3   : > { %v6377_v49 = vpop.xlane.xlu1 %1580 }
 0x4c4   : > { %8351 = vst [vmem:[#allocation18_spill] sm:$0xff] %v6377_v49  ;;  %v1610_v49 = vmax.f32 %v6291_v12, 1e-24 }
 0x4c5   : > { %3686 = vrot.lane.b32.xlu0 %v6348_v28, %s5575_s28  ;;  %v5368_v28 = vpop.eup %5367 }
 0x4c6   : > { %v5370_v59 = vpop.eup %5369  ;;  %v6380_v34 = vmul.f32 %v5368_v28, %v5983_v60  ;;  %5371 = vrsqrt.f32 %v1610_v49 }
 0x4c7   : > { %v6383_v21 = vmul.f32 %v5370_v59, %v6121_v56  ;;  %v6389_v61 = vpop.permute.xlu1 %1784  ;;  %v1890_v59 = vsel %vm1509_vm1, %v1775_v30, 0.0 }
 0x4c8   : > { %8352 = vst [vmem:[#allocation19_spill] sm:$0xff] %v6380_v34 }
 0x4c9   : > { %8353 = vst [vmem:[#allocation20_spill] sm:$0xff] %v6383_v21 }
 0x4cb   : > { %v6391_v48 = vpop.xlane.xlu1 %1586 }
 0x4cc   : > { %8354 = vst [vmem:[#allocation21_spill] sm:$0xff] %v6391_v48  ;;  %v1875_v48 = vsel %vm1509_vm1, %v1765_v13, 0.0 }
 0x4d0   : > { %v5372_v30 = vpop.eup %5371 }
 0x4d1   : > { %v6417_v12 = vmul.f32 %v5372_v30, %v6021_v8  ;;  %v2408_v30 = vld [vmem:[%s6440_s24] sm:$0xff] }
 0x4d2   : > { %4997 = vmatprep.mubr.msk.f32.mxu0 %vm2441_vm3, %v2408_v30  ;;  %v2414_v30 = vld [vmem:[%s6440_s24 + $0x30] sm:$0xff] }
 0x4d3   : > { %8359 = vst [vmem:[#allocation26_spill] sm:$0xff] %v6417_v12 }
 0x4e4   : > { %1867 = vadd.xlane.f32.xlu1 %v1866_v31  ;;  %1885 = vadd.xlane.f32.xlu0 %v1884_v4  ;;  %v6393_v31 = vpop.xlane.xlu1 %1589 }
 0x4e5   : > { %8355 = vst [vmem:[#allocation22_spill] sm:$0xff] %v6393_v31 }
 0x4e8   : > { %1870 = vadd.xlane.f32.xlu1 %v1869_v44  ;;  %v6395_v4 = vpop.permute.xlu1 %1788 }
 0x4ec   : > { %v6399_v28 = vpop.xlane.xlu1 %1595 }
 0x4ed   : > { %8356 = vst [vmem:[#allocation23_spill] sm:$0xff] %v6399_v28  ;;  %v2418_v28 = vld [vmem:[%s6440_s24 + $0x50] sm:$0xff] }
 0x4f0   : > { %v6401_v44 = vpop.permute.xlu1 %1792 }
 0x4f4   : > { %v6405_v6 = vpop.xlane.xlu1 %1598 }
 0x4f5   : > { %8357 = vst [vmem:[#allocation24_spill] sm:$0xff] %v6405_v6  ;;  %v2409_v6 = vld [vmem:[%s6440_s24 + $0x8] sm:$0xff] }
 0x4f8   : > { %v6408_v38 = vpop.xlane.xlu1 %1834 }
 0x4f9   : > { %3676 = vrot.lane.b32.xlu1 %v6380_v34, %s5575_s28 }
 0x4fa   : > { %3690 = vrot.lane.b32.xlu0 %v6383_v21, %s5575_s28  ;;  %v1617_v21 = vmax.f32 %v1545_v35, 1e-24  ;;  %v6419_v35 = vpop.xlane.xlu0 %1577 }
 0x4fc   : > { %5373 = vrsqrt.f32 %v1617_v21  ;;  %v6412_v34 = vpop.permute.xlu1 %1794 }
 0x4fe   : > { %v1783_v21 = vpop.permute.xlu0 %1782 }
 0x4ff   : > { %v1902_v1 = vsel %vm1509_vm1, %v1783_v21, 0.0  ;;  %v2425_v21 = vld [vmem:[%s6440_s24 + $0x88] sm:$0xff] }
 0x514   : > { %v6414_v19 = vpop.xlane.xlu1 %1601 }
 0x515   : > { %8358 = vst [vmem:[#allocation25_spill] sm:$0xff] %v6414_v19 }
 0x518   : > { %v6428_v49 = vpop.xlane.xlu1 %1604 }
 0x519   : > { %1891 = vadd.xlane.f32.xlu0 %v1890_v59  ;;  %v5374_v59 = vpop.eup %5373  ;;  %8361 = vst [vmem:[#allocation28_spill] sm:$0xff] %v6428_v49 }
 0x51a   : > { %v6422_v13 = vmul.f32 %v5374_v59, %v6139_v42  ;;  %v6443_v59 = vpop.xlane.xlu0 %1583 }
 0x51b   : > { %8362 = vst [vmem:[#allocation29_spill] sm:$0xff] %v6443_v59 }
 0x51c   : > { %8360 = vst [vmem:[#allocation27_spill] sm:$0xff] %v6422_v13  ;;  %v6445_v49 = vpop.xlane.xlu1 %1837 }
 0x51d   : > { %1876 = vadd.xlane.f32.xlu1 %v1875_v48  ;;  %v2440_v48 = vld [vmem:[%s8250_s7] sm:$0xf] }
 0x51e   : > { %4995 = vmatprep.subr.msk.mxu0 %vm2538_vm2, %v2440_v48  ;;  %v1787_v55 = vpop.permute.xlu0 %1786 }
 0x51f   : > { %4996 = vmatpush3.msk.msra.mxu0 %vm2538_vm2, %v2440_v48  ;;  %v2413_v48 = vld [vmem:[%s6440_s24 + $0x28] sm:$0xff] }
 0x520   : > { %4998 = vmatmul.mubr.msk.f32.vlgmr.msra.gmra.mrb[48].mxu0 %vm2441_vm3, %v2409_v6  ;;  %v1841_v53 = vpop.xlane.xlu1 %1840  ;;  %v2415_v6 = vld [vmem:[%s6440_s24 + $0x38] sm:$0xff] }
 0x522   : > { %v6459_v37 = vpop.xlane.xlu0 %1592 }
 0x523   : > { %8363 = vst [vmem:[#allocation30_spill] sm:$0xff] %v6459_v37 }
 0x526   : > { %v1791_v19 = vpop.permute.xlu0 %1790 }
 0x52a   : > { %v1832_v37 = vpop.xlane.xlu0 %1831 }
 0x52b   : > { %v1926_v59 = vmax.f32 %v1832_v37, 1e-24  ;;  %v1929_v37 = vmax.f32 %v1841_v53, 1e-24  ;;  %v1914_v53 = vsel %vm1509_vm1, %v1791_v19, 0.0  ;;  %v2429_v19 = vld [vmem:[%s6440_s24 + $0xa8] sm:$0xff] }
 0x52e   : > { %3680 = vrot.lane.b32.xlu1 %v6417_v12, %s5575_s28  ;;  %v2411_v12 = vld [vmem:[%s6440_s24 + $0x18] sm:$0xff] }
 0x52f   : > { %3694 = vrot.lane.b32.xlu0 %v6422_v13, %s5575_s28  ;;  %v2410_v13 = vld [vmem:[%s6440_s24 + $0x10] sm:$0xff] }
 0x530   : > { %5000 = vmatprep.mubr.msk.f32.mxu0 %vm2441_vm3, %v2410_v13  ;;  %v2416_v13 = vld [vmem:[%s6440_s24 + $0x40] sm:$0xff] }
 0x531   : > { %5001 = vmatmul.mubr.msk.f32.gmra.mrb[50].mxu0 %vm2441_vm3, %v2411_v12  ;;  %v6464_v12 = vpop.xlane.xlu1 %1843 }
 0x532   : > { %5003 = vmatprep.mubr.msk.f32.mxu0 %vm2441_vm3, %v2412_v47  ;;  %v2417_v47 = vld [vmem:[%s6440_s24 + $0x48] sm:$0xff] }
 0x535   : > { %5004 = vmatmul.mubr.msk.f32.gmra.mrb[52].mxu0 %vm2441_vm3, %v2413_v48  ;;  %v6471_v48 = vpop.xlane.xlu1 %1849 }
 0x536   : > { %5006 = vmatprep.mubr.msk.f32.mxu0 %vm2441_vm3, %v2414_v30  ;;  %v2419_v30 = vld [vmem:[%s6440_s24 + $0x58] sm:$0xff] }
 0x539   : > { %5007 = vmatmul.mubr.msk.f32.gmra.mrb[54].mxu0 %vm2441_vm3, %v2415_v6  ;;  %v2420_v6 = vld [vmem:[%s6440_s24 + $0x60] sm:$0xff]  ;;  %v1853_v31 = vpop.xlane.xlu1 %1852 }
 0x53a   : > { %5009 = vmatprep.mubr.msk.f32.mxu0 %vm2441_vm3, %v2416_v13  ;;  %v2422_v13 = vld [vmem:[%s6440_s24 + $0x70] sm:$0xff] }
 0x53d   : > { %5010 = vmatmul.mubr.msk.f32.gmra.mrb[56].mxu0 %vm2441_vm3, %v2417_v47  ;;  %v1612_v47 = vmax.f32 %v6295_v54, 1e-24  ;;  %v6492_v54 = vpop.xlane.xlu1 %1855 }
 0x53e   : > { %5012 = vmatprep.mubr.msk.f32.mxu0 %vm2441_vm3, %v2418_v28  ;;  %v6483_v28 = vpop.permute.xlu0 %1796 }
 0x53f   : > { %5375 = vrsqrt.f32 %v1612_v47 }
 0x540   : > { %5377 = vrsqrt.f32 %v1926_v59  ;;  %v2427_v59 = vld [vmem:[%s6440_s24 + $0x98] sm:$0xff] }
 0x541   : > { %5013 = vmatmul.mubr.msk.f32.gmra.mrb[58].mxu0 %vm2441_vm3, %v2419_v30  ;;  %v1881_v30 = vsel %vm1509_vm1, %v6356_v9, 0.0  ;;  %v1908_v9 = vsel %vm1509_vm1, %v1787_v55, 0.0  ;;  %5379 = vrsqrt.f32 %v1929_v37  ;;  %v1859_v47 = vpop.xlane.xlu1 %1858  ;;  %v1933_v55 = vmax.f32 %v1853_v31, 1e-24  ;;  %v2428_v37 = vld [vmem:[%s6440_s24 + $0xa0] sm:$0xff] }
 0x542   : > { %5015 = vmatprep.mubr.msk.f32.mxu0 %vm2441_vm3, %v2420_v6  ;;  %v2424_v6 = vld [vmem:[%s6440_s24 + $0x80] sm:$0xff] }
 0x545   : > { %5016 = vmatmul.mubr.msk.f32.gmra.mrb[60].mxu0 %vm2441_vm3, %v2421_v23  ;;  %v1847_v23 = vpop.xlane.xlu0 %1846 }
 0x546   : > { %5018 = vmatprep.mubr.msk.f32.mxu0 %vm2441_vm3, %v2422_v13  ;;  %v2426_v13 = vld [vmem:[%s6440_s24 + $0x90] sm:$0xff] }
 0x54e   : > { %1897 = vadd.xlane.f32.xlu0 %v1896_v27  ;;  %v2423_v27 = vld [vmem:[%s6440_s24 + $0x78] sm:$0xff] }
 0x54f   : > { %5019 = vmatmul.mubr.msk.f32.gmra.mrb[62].mxu0 %vm2441_vm3, %v2423_v27  ;;  %v1920_v27 = vsel %vm1509_vm1, %v6412_v34, 0.0 }
 0x550   : > { %5021 = vmatprep.mubr.msk.f32.mxu0 %vm2441_vm3, %v2424_v6 }
 0x552   : > { %1882 = vadd.xlane.f32.xlu1 %v1881_v30  ;;  %1903 = vadd.xlane.f32.xlu0 %v1902_v1  ;;  %v1931_v30 = vmax.f32 %v1847_v23, 1e-24  ;;  %v5376_v1 = vpop.eup %5375  ;;  %v1935_v23 = vmax.f32 %v1859_v47, 1e-24  ;;  %v2432_v47 = vld [vmem:[%s6440_s24 + $0xc0] sm:$0xff] }
 0x553   : > { %5022 = vmatmul.mubr.msk.f32.gmra.mrb[64].mxu0 %vm2441_vm3, %v2425_v21  ;;  %v5378_v6 = vpop.eup %5377  ;;  %v6515_v34 = vmul.f32 %v5376_v1, %v6070_v57  ;;  %v2433_v1 = vld [vmem:[%s6440_s24 + $0xc8] sm:$0xff] }
 0x554   : > { %5024 = vmatprep.mubr.msk.f32.mxu0 %vm2441_vm3, %v2426_v13  ;;  %5381 = vrsqrt.f32 %v1931_v30  ;;  %v6510_v31 = vmul.f32 %v5378_v6, %v5964_v39  ;;  %v5380_v21 = vpop.eup %5379  ;;  %v2430_v13 = vld [vmem:[%s6440_s24 + $0xb0] sm:$0xff]  ;;  %v2431_v30 = vld [vmem:[%s6440_s24 + $0xb8] sm:$0xff] }
 0x555   : > { %5383 = vrsqrt.f32 %v1933_v55 }
 0x556   : > { %1909 = vadd.xlane.f32.xlu0 %v1908_v9  ;;  %v6512_v9 = vpop.xlane.xlu1 %1861  ;;  %5385 = vrsqrt.f32 %v1935_v23  ;;  %v2022_v39 = vmul.f32 1.442695, %v6510_v31 }
 0x557   : > { %5025 = vmatmul.mubr.msk.f32.gmra.mrb[66].mxu0 %vm2441_vm3, %v2427_v59 }
 0x558   : > { %5027 = vmatprep.mubr.msk.f32.mxu0 %vm2441_vm3, %v2428_v37  ;;  %5387 = vpow2.f32 %v2022_v39  ;;  %v2437_v39 = vld [vmem:[%s6440_s24 + $0xe8] sm:$0xff] }
 0x55a   : > { %1915 = vadd.xlane.f32.xlu0 %v1914_v53  ;;  %v6525_v53 = vmul.f32 %v5380_v21, %v6028_v15  ;;  %v6528_v55 = vpop.xlane.xlu1 %1864  ;;  %v2434_v15 = vld [vmem:[%s6440_s24 + $0xd0] sm:$0xff] }
 0x55b   : > { %5028 = vmatmul.mubr.msk.f32.gmra.mrb[68].mxu0 %vm2441_vm3, %v2429_v19  ;;  %v2435_v19 = vld [vmem:[%s6440_s24 + $0xd8] sm:$0xff] }
 0x55c   : > { %5030 = vmatprep.mubr.msk.f32.mxu0 %vm2441_vm3, %v2430_v13  ;;  %8364 = vst [vmem:[#allocation31_spill] sm:$0xff] %v6525_v53  ;;  %v2028_v6 = vmul.f32 1.442695, %v6525_v53  ;;  %v1621_v53 = vmax.f32 %v6354_v58, 1e-24  ;;  %v1905_v58 = vsel %vm1509_vm1, %v6389_v61, 0.0 }
 0x55d   : > { %v1917_v61 = vsel %vm1509_vm1, %v6401_v44, 0.0  ;;  %v1936_v44 = vmax.f32 %v6512_v9, 1e-24 }
 0x55e   : > { %1921 = vadd.xlane.f32.xlu0 %v1920_v27  ;;  %v5382_v59 = vpop.eup %5381  ;;  %5389 = vpow2.f32 %v2028_v6  ;;  %v6545_v13 = vpop.permute.xlu1 %3672 }
 0x55f   : > { %5031 = vmatmul.mubr.msk.f32.gmra.mrb[70].mxu0 %vm2441_vm3, %v2431_v30  ;;  %v6534_v27 = vmul.f32 %v5382_v59, %v6078_v36  ;;  %v5384_v37 = vpop.eup %5383  ;;  %8367 = vst [vmem:[#allocation34_spill] sm:$0xff] %v6545_v13  ;;  %v2436_v30 = vld [vmem:[%s6440_s24 + $0xe0] sm:$0xff] }
 0x560   : > { %5033 = vmatprep.mubr.msk.f32.mxu0 %vm2441_vm3, %v2432_v47  ;;  %v6543_v21 = vmul.f32 %v5384_v37, %v6100_v50  ;;  %v5386_v36 = vpop.eup %5385  ;;  %v2439_v37 = vld [vmem:[%s6440_s24 + $0xf8] sm:$0xff] }
 0x561   : > { %8365 = vst [vmem:[#allocation32_spill] sm:$0xff] %v6534_v27  ;;  %v2032_v23 = vmul.f32 1.442695, %v6534_v27  ;;  %v6553_v47 = vmul.f32 %v5386_v36, %v6121_v56 }
 0x562   : > { %8366 = vst [vmem:[#allocation33_spill] sm:$0xff] %v6543_v21  ;;  %v2036_v59 = vmul.f32 1.442695, %v6543_v21  ;;  %v5388_v50 = vpop.eup %5387 }
 0x563   : > { %3684 = vrot.lane.b32.xlu1 %v6515_v34, %s5575_s28  ;;  %5034 = vmatmul.mubr.msk.f32.gmra.mrb[72].mxu0 %vm2441_vm3, %v2433_v1  ;;  %5391 = vpow2.f32 %v2032_v23  ;;  %8368 = vst [vmem:[#allocation35_spill] sm:$0xff] %v6553_v47 }
 0x564   : > { %5036 = vmatprep.mubr.msk.f32.mxu0 %vm2441_vm3, %v2434_v15  ;;  %v2438_v15 = vld [vmem:[%s6440_s24 + $0xf0] sm:$0xff] }
 0x567   : > { %5037 = vmatmul.mubr.msk.f32.gmra.mrb[74].mxu0 %vm2441_vm3, %v2435_v19  ;;  %v2040_v19 = vmul.f32 1.442695, %v6553_v47 }
 0x568   : > { %5039 = vmatprep.mubr.msk.f32.mxu0 %vm2441_vm3, %v2436_v30  ;;  %v5390_v23 = vpop.eup %5389  ;;  %v1619_v30 = vmax.f32 %v6350_v41, 1e-24 }
 0x56b   : > { %5040 = vmatmul.mubr.msk.f32.gmra.mrb[76].mxu0 %vm2441_vm3, %v2437_v39 }
 0x56c   : > { %5042 = vmatprep.mubr.msk.f32.mxu0 %vm2441_vm3, %v2438_v15  ;;  %v1614_v15 = vmax.f32 %v6310_v0, 1e-24 }
 0x56d   : > { %v5392_v56 = vpop.eup %5391 }
 0x56f   : > { %5043 = vmatmul.mubr.msk.f32.gmra.mrb[78].mxu0 %vm2441_vm3, %v2439_v37 }
 0x571   : > { %v1868_v1 = vpop.xlane.xlu1 %1867 }
 0x572   : > { %v1938_v6 = vmax.f32 %v1868_v1, 1e-24 }
 0x574   : > { %5393 = vrsqrt.f32 %v1938_v6  ;;  %2150 = vrot.lane.b32.xlu0 %v5388_v50, %s5574_s17  ;;  %v1887_v50 = vsel %vm1509_vm1, %v6362_v20, 0.0 }
 0x575   : > { %5395 = vpow2.f32 %v2036_v59 }
 0x576   : > { %5397 = vpow2.f32 %v2040_v19  ;;  %v6574_v19 = vpop.permute.xlu0 %3674 }
 0x577   : > { %5399 = vrsqrt.f32 %v1619_v30  ;;  %8369 = vst [vmem:[#allocation36_spill] sm:$0xff] %v6574_v19 }
 0x578   : > { %2156 = vrot.lane.b32.xlu0 %v5390_v23, %s5574_s17 }
 0x57c   : > { %2160 = vrot.lane.b32.xlu0 %v5392_v56, %s5574_s17 }
 0x57e   : > { %v5394_v36 = vpop.eup %5393 }
 0x57f   : > { %v5396_v39 = vpop.eup %5395  ;;  %v6565_v1 = vmul.f32 %v5394_v36, %v6134_v62  ;;  %v6581_v36 = vpop.permute.xlu0 %3678 }
 0x580   : > { %2164 = vrot.lane.b32.xlu0 %v5396_v39, %s5574_s17  ;;  %v5398_v6 = vpop.eup %5397  ;;  %8371 = vst [vmem:[#allocation38_spill] sm:$0xff] %v6581_v36  ;;  %v6592_v39 = vpop.xlane.xlu1 %1870 }
 0x581   : > { %v2046_v59 = vmul.f32 1.442695, %v6565_v1  ;;  %v5400_v41 = vpop.eup %5399 }
 0x582   : > { %v6577_v23 = vmul.f32 %v5400_v41, %v6157_v63 }
 0x583   : > { %5401 = vpow2.f32 %v2046_v59  ;;  %v6588_v20 = vpop.xlane.xlu0 %1873 }
 0x584   : > { %2168 = vrot.lane.b32.xlu0 %v5398_v6, %s5574_s17  ;;  %5403 = vrsqrt.f32 %v1614_v15  ;;  %8370 = vst [vmem:[#allocation37_spill] sm:$0xff] %v6577_v23  ;;  %v6594_v6 = vpop.permute.xlu1 %3676 }
 0x585   : > { %8374 = vst [vmem:[#allocation41_spill] sm:$0xff] %v6594_v6  ;;  %v1893_v6 = vsel %vm1509_vm1, %v6371_v32, 0.0 }
 0x587   : > { %1888 = vadd.xlane.f32.xlu1 %v1887_v50  ;;  %v6590_v30 = vpop.permute.xlu0 %3682 }
 0x588   : > { %8373 = vst [vmem:[#allocation40_spill] sm:$0xff] %v6590_v30  ;;  %v1616_v30 = vmax.f32 %v6315_v10, 1e-24 }
 0x58b   : > { %v1880_v59 = vpop.xlane.xlu0 %1879 }
 0x58c   : > { %v1942_v15 = vmax.f32 %v1880_v59, 1e-24 }
 0x58d   : > { %v5402_v37 = vpop.eup %5401 }
 0x58e   : > { %2174 = vrot.lane.b32.xlu0 %v5402_v37, %s5574_s17  ;;  %v5404_v56 = vpop.eup %5403  ;;  %5405 = vrsqrt.f32 %v1942_v15  ;;  %v2406_v15 = vld [vmem:[%s8249_s6] sm:$0xff] }
 0x58f   : > { %v6584_v0 = vmul.f32 %v5404_v56, %v6095_v43  ;;  %v6613_v10 = vpop.permute.xlu0 %3686 }
 0x590   : > { %8376 = vst [vmem:[#allocation43_spill] sm:$0xff] %v6613_v10 }
 0x591   : > { %8372 = vst [vmem:[#allocation39_spill] sm:$0xff] %v6584_v0 }
 0x592   : > { %3698 = vrot.lane.b32.xlu0 %v6577_v23, %s5575_s28 }
 0x598   : > { %3688 = vrot.lane.b32.xlu1 %v6584_v0, %s5575_s28  ;;  %v5406_v37 = vpop.eup %5405  ;;  %v1899_v0 = vsel %vm1509_vm1, %v6375_v26, 0.0 }
 0x599   : > { %v6597_v36 = vmul.f32 %v5406_v37, %v6170_v17 }
 0x59b   : > { %v2054_v59 = vmul.f32 1.442695, %v6597_v36 }
 0x5aa   : > { %v1877_v50 = vpop.xlane.xlu1 %1876 }
 0x5ab   : > { %v1941_v41 = vmax.f32 %v1877_v50, 1e-24  ;;  %v2407_v50 = vld [vmem:[%s8249_s6 + $0x8] sm:$0xff] }
 0x5ad   : > { %5407 = vrsqrt.f32 %v1941_v41  ;;  %v5213_v41 = vpack.c.bf16 %v2407_v50, %v2406_v15 }
 0x5ae   : > { %v6626_v50 = vpop.permute.xlu1 %3680 }
 0x5af   : > { %5214 = vmatprep.subr.bf16.mxu1 %v5213_v41  ;;  %5218 = vmatprep.subr.bf16.mxu0 %v5213_v41  ;;  %8380 = vst [vmem:[#allocation47_spill] sm:$0xff] %v6626_v50 }
 0x5b0   : > { %5216 = vmatpush3.bf16.msra.mxu1 %v5213_v41  ;;  %5220 = vmatpush3.bf16.msra.mxu0 %v5213_v41 }
 0x5b7   : > { %v5408_v56 = vpop.eup %5407 }
 0x5b8   : > { %v6600_v19 = vmul.f32 %v5408_v56, %v6175_v33 }
 0x5ba   : > { %8375 = vst [vmem:[#allocation42_spill] sm:$0xff] %v6600_v19  ;;  %v2052_v13 = vmul.f32 1.442695, %v6600_v19 }
 0x5bc   : > { %5409 = vpow2.f32 %v2052_v13  ;;  %1894 = vadd.xlane.f32.xlu1 %v1893_v6  ;;  %v1886_v13 = vpop.xlane.xlu0 %1885 }
 0x5bd   : > { %5411 = vrsqrt.f32 %v1616_v30 }
 0x5be   : > { %5413 = vpow2.f32 %v2054_v59 }
 0x5c0   : > { %v6620_v15 = vpop.permute.xlu0 %3690 }
 0x5c1   : > { %8378 = vst [vmem:[#allocation45_spill] sm:$0xff] %v6620_v15 }
 0x5c4   : > { %v1892_v30 = vpop.xlane.xlu0 %1891 }
 0x5c5   : > { %v1946_v19 = vmax.f32 %v1892_v30, 1e-24 }
 0x5c6   : > { %v5410_v32 = vpop.eup %5409 }
 0x5c7   : > { %2180 = vrot.lane.b32.xlu0 %v5410_v32, %s5574_s17  ;;  %v5412_v6 = vpop.eup %5411  ;;  %v1944_v32 = vmax.f32 %v1886_v13, 1e-24 }
 0x5c8   : > { %v5414_v37 = vpop.eup %5413  ;;  %v6618_v56 = vmul.f32 %v5412_v6, %v6116_v16  ;;  %v6624_v59 = vpop.permute.xlu0 %3694 }
 0x5c9   : > { %8379 = vst [vmem:[#allocation46_spill] sm:$0xff] %v6624_v59  ;;  %5415 = vrsqrt.f32 %v1944_v32  ;;  %v2086_v32 = vld [vmem:[%s6640_s13] sm:$0xff]  ;;  %v1927_v59 = vmax.f32 %v6408_v38, 1e-24 }
 0x5ca   : > { %8377 = vst [vmem:[#allocation44_spill] sm:$0xff] %v6618_v56 }
 0x5cb   : > { %2182 = vrot.lane.b32.xlu0 %v5414_v37, %s5574_s17 }
 0x5cd   : > { %3692 = vrot.lane.b32.xlu1 %v6618_v56, %s5575_s28 }
 0x5d3   : > { %v5416_v21 = vpop.eup %5415 }
 0x5d4   : > { %v6651_v30 = vmul.f32 %v5416_v21, %v6188_v7 }
 0x5d6   : > { %v2058_v21 = vmul.f32 1.442695, %v6651_v30 }
 0x5db   : > { %v6628_v41 = vpop.xlane.xlu0 %1897 }
 0x5df   : > { %v1883_v10 = vpop.xlane.xlu1 %1882  ;;  %v6630_v37 = vpop.xlane.xlu0 %1903 }
 0x5e0   : > { %v1943_v6 = vmax.f32 %v1883_v10, 1e-24 }
 0x5e2   : > { %5417 = vrsqrt.f32 %v1943_v6  ;;  %v2310_v6 = vld [vmem:[%s6646_s16] sm:$0xff] }
 0x5e3   : > { %v6632_v15 = vpop.xlane.xlu0 %1909  ;;  %5419 = vrsqrt.f32 %v1946_v19 }
 0x5e7   : > { %v6634_v47 = vpop.xlane.xlu0 %1915 }
 0x5eb   : > { %v6648_v10 = vpop.xlane.xlu0 %1921 }
 0x5ec   : > { %v5418_v13 = vpop.eup %5417 }
 0x5ed   : > { %v6654_v19 = vmul.f32 %v5418_v13, %v6193_v2  ;;  %v5420_v13 = vpop.eup %5419  ;;  %v1928_v2 = vmax.f32 %v6445_v49, 1e-24  ;;  %v1930_v49 = vmax.f32 %v6464_v12, 1e-24  ;;  %v1934_v12 = vmax.f32 %v6492_v54, 1e-24 }
 0x5ee   : > { %v6678_v26 = vmul.f32 %v5420_v13, %v6204_v14 }
 0x5ef   : > { %8381 = vst [vmem:[#allocation48_spill] sm:$0xff] %v6654_v19  ;;  %v2056_v50 = vmul.f32 1.442695, %v6654_v19  ;;  %v2151_v27 = vpop.permute.xlu0 %2150 }
 0x5f0   : > { %v2246_v23 = vmul.f32 %v2151_v27, %v2086_v32  ;;  %v2342_v56 = vmul.f32 %v2310_v6, %v2151_v27  ;;  %v1932_v27 = vmax.f32 %v6471_v48, 1e-24  ;;  %v1923_v48 = vsel %vm1509_vm1, %v6483_v28, 0.0 }
 0x5f1   : > { %5421 = vpow2.f32 %v2056_v50  ;;  %1900 = vadd.xlane.f32.xlu1 %v1899_v0  ;;  %v1937_v6 = vmax.f32 %v6528_v55, 1e-24 }
 0x5f2   : > { %5423 = vrsqrt.f32 %v1927_v59  ;;  %v6666_v38 = vadd.f32 %v2246_v23, %v6343_v40  ;;  %v6669_v19 = vadd.f32 %v2342_v56, %v6343_v40  ;;  %v1911_v40 = vsel %vm1509_vm1, %v6395_v4, 0.0 }
 0x5f3   : > { %5425 = vrsqrt.f32 %v1621_v53  ;;  %v2062_v53 = vmul.f32 1.442695, %v6678_v26 }
 0x5f4   : > { %8382 = vst [vmem:[#allocation49_spill] sm:$0xff] %v6666_v38  ;;  %5049 = vmatprep.mubr.msk.f32.mxu1 %vm1509_vm1, %v6666_v38  ;;  %5101 = vmatprep.mubr.msk.f32.mxu0 %vm1509_vm1, %v6669_v19  ;;  %5427 = vpow2.f32 %v2058_v21 }
 0x5f5   : > { %1906 = vadd.xlane.f32.xlu1 %v1905_v58  ;;  %5429 = vrsqrt.f32 %v1928_v2 }
 0x5f6   : > { %5431 = vrsqrt.f32 %v1930_v49  ;;  %v1940_v49 = vmax.f32 %v6588_v20, 1e-24 }
 0x5f7   : > { %5433 = vpow2.f32 %v2062_v53 }
 0x5f8   : > { %5435 = vrsqrt.f32 %v1932_v27  ;;  %v6721_v27 = vpop.permute.xlu1 %3684 }
 0x5f9   : > { %1912 = vadd.xlane.f32.xlu1 %v1911_v40  ;;  %5437 = vrsqrt.f32 %v1934_v12  ;;  %8383 = vst [vmem:[#allocation50_spill] sm:$0xff] %v6721_v27  ;;  %v2095_v27 = vld [vmem:[%s6640_s13 + $0x48] sm:$0xff] }
 0x5fa   : > { %5439 = vrsqrt.f32 %v1936_v44 }
 0x5fb   : > { %v5422_v23 = vpop.eup %5421 }
 0x5fc   : > { %v5424_v0 = vpop.eup %5423  ;;  %2184 = vrot.lane.b32.xlu0 %v5422_v23, %s5574_s17 }
 0x5fd   : > { %1918 = vadd.xlane.f32.xlu1 %v1917_v61  ;;  %v5426_v2 = vpop.eup %5425  ;;  %v6690_v56 = vmul.f32 %v5424_v0, %v5972_v45 }
 0x5fe   : > { %v5428_v4 = vpop.eup %5427  ;;  %v6697_v50 = vmul.f32 %v5426_v2, %v6175_v33 }
 0x5ff   : > { %v5430_v59 = vpop.eup %5429  ;;  %v2024_v32 = vmul.f32 1.442695, %v6690_v56 }
 0x600   : > { %2186 = vrot.lane.b32.xlu0 %v5428_v4, %s5574_s17  ;;  %v6701_v54 = vmul.f32 %v5430_v59, %v5983_v60  ;;  %v5432_v45 = vpop.eup %5431  ;;  %v1939_v60 = vmax.f32 %v6592_v39, 1e-24 }
 0x601   : > { %1924 = vadd.xlane.f32.xlu1 %v1923_v48  ;;  %v5434_v28 = vpop.eup %5433  ;;  %5441 = vpow2.f32 %v2024_v32  ;;  %v6708_v9 = vmul.f32 %v5432_v45, %v6021_v8  ;;  %v1950_v45 = vmax.f32 %v6630_v37, 1e-24 }
 0x602   : > { %v2026_v21 = vmul.f32 1.442695, %v6701_v54  ;;  %v5436_v33 = vpop.eup %5435  ;;  %5443 = vrsqrt.f32 %v1937_v6 }
 0x603   : > { %v2030_v13 = vmul.f32 1.442695, %v6708_v9  ;;  %v6714_v58 = vmul.f32 %v5436_v33, %v6070_v57  ;;  %v5438_v55 = vpop.eup %5437  ;;  %v1952_v33 = vmax.f32 %v6632_v15, 1e-24  ;;  %v1620_v15 = vmax.f32 %v6336_v24, 1e-24 }
 0x604   : > { %3702 = vrot.lane.b32.xlu0 %v6697_v50, %s5575_s28  ;;  %5445 = vpow2.f32 %v2026_v21  ;;  %v6719_v40 = vmul.f32 %v5438_v55, %v6095_v43  ;;  %v5440_v53 = vpop.eup %5439  ;;  %v1618_v21 = vmax.f32 %v6319_v52, 1e-24 }
 0x605   : > { %5447 = vrsqrt.f32 %v1939_v60  ;;  %v2034_v8 = vmul.f32 1.442695, %v6714_v58  ;;  %v6726_v23 = vmul.f32 %v5440_v53, %v6116_v16 }
 0x606   : > { %5449 = vpow2.f32 %v2030_v13  ;;  %v2038_v57 = vmul.f32 1.442695, %v6719_v40  ;;  %v1954_v13 = vmax.f32 %v6634_v47, 1e-24 }
 0x607   : > { %5451 = vrsqrt.f32 %v1940_v49  ;;  %v2042_v43 = vmul.f32 1.442695, %v6726_v23 }
 0x608   : > { %2190 = vrot.lane.b32.xlu0 %v5434_v28, %s5574_s17  ;;  %5453 = vpow2.f32 %v2034_v8 }
 0x609   : > { %5455 = vpow2.f32 %v2038_v57 }
 0x60b   : > { %v5442_v39 = vpop.eup %5441 }
 0x60c   : > { %v5444_v20 = vpop.eup %5443 }
 0x60d   : > { %v6731_v12 = vmul.f32 %v5444_v20, %v6139_v42 }
 0x60e   : > { %v5446_v61 = vpop.eup %5445 }
 0x60f   : > { %v5448_v4 = vpop.eup %5447  ;;  %v2044_v16 = vmul.f32 1.442695, %v6731_v12 }
 0x610   : > { %v5450_v59 = vpop.eup %5449  ;;  %v6736_v48 = vmul.f32 %v5448_v4, %v6157_v63 }
 0x611   : > { %v5452_v44 = vpop.eup %5451 }
 0x612   : > { %2152 = vrot.lane.b32.xlu1 %v5442_v39, %s5574_s17  ;;  %v5454_v32 = vpop.eup %5453  ;;  %v6741_v42 = vmul.f32 %v5452_v44, %v6152_v51  ;;  %v2048_v6 = vmul.f32 1.442695, %v6736_v48  ;;  %v1956_v39 = vmax.f32 %v6648_v10, 1e-24 }
 0x613   : > { %v5456_v28 = vpop.eup %5455 }
 0x614   : > { %v1889_v0 = vpop.xlane.xlu1 %1888  ;;  %v2050_v63 = vmul.f32 1.442695, %v6741_v42 }
 0x615   : > { %v1945_v2 = vmax.f32 %v1889_v0, 1e-24 }
 0x616   : > { %2154 = vrot.lane.b32.xlu1 %v5446_v61, %s5574_s17 }
 0x617   : > { %5457 = vrsqrt.f32 %v1945_v2 }
 0x618   : > { %5459 = vpow2.f32 %v2042_v43 }
 0x619   : > { %5461 = vpow2.f32 %v2044_v16 }
 0x61a   : > { %2158 = vrot.lane.b32.xlu1 %v5450_v59, %s5574_s17  ;;  %5463 = vrsqrt.f32 %v1950_v45 }
 0x61b   : > { %5465 = vpow2.f32 %v2048_v6 }
 0x61c   : > { %5467 = vrsqrt.f32 %v1618_v21 }
 0x61d   : > { %5469 = vrsqrt.f32 %v1952_v33 }
 0x61e   : > { %2162 = vrot.lane.b32.xlu1 %v5454_v32, %s5574_s17  ;;  %5471 = vpow2.f32 %v2050_v63  ;;  %v6788_v63 = vpop.permute.xlu1 %3688 }
 0x61f   : > { %5473 = vrsqrt.f32 %v1954_v13  ;;  %8384 = vst [vmem:[#allocation51_spill] sm:$0xff] %v6788_v63 }
 0x620   : > { %5475 = vrsqrt.f32 %v1620_v15 }
 0x621   : > { %v5458_v37 = vpop.eup %5457 }
 0x622   : > { %2166 = vrot.lane.b32.xlu1 %v5456_v28, %s5574_s17  ;;  %v5460_v60 = vpop.eup %5459  ;;  %v6751_v55 = vmul.f32 %v5458_v37, %v6209_v5  ;;  %v1622_v28 = vmax.f32 %v6360_v18, 1e-24  ;;  %v1624_v37 = vmax.f32 %v6397_v29, 1e-24  ;;  %v1626_v18 = vmax.f32 %v6410_v11, 1e-24 }
 0x623   : > { %v5462_v52 = vpop.eup %5461 }
 0x624   : > { %v2060_v49 = vmul.f32 1.442695, %v6751_v55  ;;  %v5464_v8 = vpop.eup %5463 }
 0x625   : > { %v5466_v53 = vpop.eup %5465  ;;  %v6759_v57 = vmul.f32 %v5464_v8, %v6232_v22 }
 0x626   : > { %2170 = vrot.lane.b32.xlu1 %v5460_v60, %s5574_s17  ;;  %v5468_v47 = vpop.eup %5467  ;;  %5477 = vpow2.f32 %v2060_v49  ;;  %v8385_v49 = vld [vmem:[#allocation29_spill] sm:$0xff] }
 0x627   : > { %v5470_v20 = vpop.eup %5469  ;;  %5479 = vrsqrt.f32 %v1956_v39  ;;  %v2070_v24 = vmul.f32 1.442695, %v6759_v57  ;;  %v6767_v10 = vmul.f32 %v5468_v47, %v6134_v62  ;;  %v1630_v8 = vmax.f32 %v8385_v49, 1e-24 }
 0x628   : > { %v5472_v0 = vpop.eup %5471  ;;  %v6764_v61 = vmul.f32 %v5470_v20, %v6246_v46  ;;  %v8386_v20 = vld [vmem:[#allocation22_spill] sm:$0xff] }
 0x629   : > { %v5474_v2 = vpop.eup %5473  ;;  %5481 = vpow2.f32 %v2070_v24  ;;  %v8388_v24 = vld [vmem:[#allocation5_spill] sm:$0xff] }
 0x62a   : > { %2172 = vrot.lane.b32.xlu1 %v5462_v52, %s5574_s17  ;;  %v2074_v43 = vmul.f32 1.442695, %v6764_v61  ;;  %v6773_v4 = vmul.f32 %v5474_v2, %v6266_v3  ;;  %v5476_v59 = vpop.eup %5475 }
 0x62b   : > { %v6778_v62 = vmul.f32 %v5476_v59, %v6152_v51  ;;  %v1948_v51 = vmax.f32 %v6628_v41, 1e-24  ;;  %v1628_v41 = vmax.f32 %v6419_v35, 1e-24  ;;  %v8387_v35 = vld [vmem:[#allocation4_spill] sm:$0xff] }
 0x62c   : > { %5483 = vpow2.f32 %v2074_v43  ;;  %v2078_v44 = vmul.f32 1.442695, %v6773_v4 }
 0x62e   : > { %2176 = vrot.lane.b32.xlu1 %v5466_v53, %s5574_s17  ;;  %5485 = vpow2.f32 %v2078_v44 }
 0x62f   : > { %5487 = vrsqrt.f32 %v1622_v28 }
 0x630   : > { %v5478_v16 = vpop.eup %5477 }
 0x631   : > { %v5480_v32 = vpop.eup %5479 }
 0x632   : > { %2178 = vrot.lane.b32.xlu1 %v5472_v0, %s5574_s17  ;;  %v6783_v45 = vmul.f32 %v5480_v32, %v6308_v25  ;;  %v1632_v0 = vmax.f32 %v8386_v20, 1e-24 }
 0x633   : > { %v5482_v6 = vpop.eup %5481 }
 0x634   : > { %v2082_v21 = vmul.f32 1.442695, %v6783_v45 }
 0x636   : > { %3696 = vrot.lane.b32.xlu1 %v6767_v10, %s5575_s28  ;;  %v5484_v33 = vpop.eup %5483  ;;  %5489 = vpow2.f32 %v2082_v21 }
 0x637   : > { %5491 = vrsqrt.f32 %v1948_v51 }
 0x638   : > { %v5486_v60 = vpop.eup %5485  ;;  %5493 = vrsqrt.f32 %v1624_v37 }
 0x639   : > { %v5488_v15 = vpop.eup %5487 }
 0x63a   : > { %2188 = vrot.lane.b32.xlu1 %v5478_v16, %s5574_s17  ;;  %v6801_v39 = vmul.f32 %v5488_v15, %v6170_v17  ;;  %v8389_v16 = vld [vmem:[#allocation23_spill] sm:$0xff] }
 0x63b   : > { %v1634_v44 = vmax.f32 %v8389_v16, 1e-24 }
 0x63e   : > { %3700 = vrot.lane.b32.xlu1 %v6778_v62, %s5575_s28 }
 0x640   : > { %v5490_v29 = vpop.eup %5489 }
 0x641   : > { %v5492_v53 = vpop.eup %5491 }
 0x642   : > { %2198 = vrot.lane.b32.xlu1 %v5482_v6, %s5574_s17  ;;  %v5494_v11 = vpop.eup %5493 }
 0x643   : > { %v6813_v43 = vmul.f32 %v5494_v11, %v6188_v7  ;;  %v8390_v7 = vld [vmem:[#allocation25_spill] sm:$0xff] }
 0x644   : > { %v1636_v21 = vmax.f32 %v8390_v7, 1e-24 }
 0x646   : > { %2202 = vrot.lane.b32.xlu1 %v5484_v33, %s5574_s17 }
 0x649   : > { %v1895_v13 = vpop.xlane.xlu1 %1894 }
 0x64a   : > { %v1947_v52 = vmax.f32 %v1895_v13, 1e-24  ;;  %2206 = vrot.lane.b32.xlu1 %v5486_v60, %s5574_s17 }
 0x64c   : > { %5495 = vrsqrt.f32 %v1947_v52 }
 0x64d   : > { %5497 = vrsqrt.f32 %v1626_v18 }
 0x64e   : > { %3544 = vrot.lane.b32.xlu1 %v6669_v19, %s5576_s20  ;;  %5499 = vrsqrt.f32 %v1628_v41  ;;  %v6807_v19 = vmul.f32 %v5492_v53, %v8387_v35 }
 0x64f   : > { %5501 = vrsqrt.f32 %v1630_v8 }
 0x650   : > { %5503 = vrsqrt.f32 %v1632_v0  ;;  %v2066_v32 = vmul.f32 1.442695, %v6807_v19 }
 0x652   : > { %2210 = vrot.lane.b32.xlu1 %v5490_v29, %s5574_s17  ;;  %v6855_v29 = vpop.permute.xlu1 %3692 }
 0x653   : > { %8391 = vst [vmem:[#allocation29_spill] sm:$0xff] %v6855_v29 }
 0x656   : > { %v5496_v47 = vpop.eup %5495  ;;  %3704 = vrot.lane.b32.xlu1 %v6801_v39, %s5575_s28 }
 0x657   : > { %v6810_v2 = vmul.f32 %v5496_v47, %v8388_v24  ;;  %v5498_v59 = vpop.eup %5497 }
 0x658   : > { %v6821_v6 = vmul.f32 %v5498_v59, %v6204_v14  ;;  %v5500_v28 = vpop.eup %5499 }
 0x659   : > { %v2064_v17 = vmul.f32 1.442695, %v6810_v2  ;;  %v6827_v33 = vmul.f32 %v5500_v28, %v8387_v35  ;;  %v5502_v51 = vpop.eup %5501  ;;  %v2311_v28 = vld [vmem:[%s6646_s16 + $0x8] sm:$0xff] }
 0x65a   : > { %3708 = vrot.lane.b32.xlu1 %v6813_v43, %s5575_s28  ;;  %v5504_v37 = vpop.eup %5503  ;;  %v6832_v14 = vmul.f32 %v5502_v51, %v6232_v22 }
 0x65b   : > { %5505 = vpow2.f32 %v2064_v17  ;;  %v6838_v52 = vmul.f32 %v5504_v37, %v6246_v46  ;;  %v2157_v46 = vpop.permute.xlu0 %2156  ;;  %v2089_v37 = vld [vmem:[%s6640_s13 + $0x18] sm:$0xff] }
 0x65c   : > { %5507 = vrsqrt.f32 %v1634_v44 }
 0x65d   : > { %5509 = vpow2.f32 %v2066_v32  ;;  %v2087_v32 = vld [vmem:[%s6640_s13 + $0x8] sm:$0xff] }
 0x65e   : > { %3712 = vrot.lane.b32.xlu1 %v6821_v6, %s5575_s28  ;;  %5511 = vrsqrt.f32 %v1636_v21 }
 0x65f   : > { %v6861_v8 = vpop.permute.xlu0 %2160 }
 0x662   : > { %3716 = vrot.lane.b32.xlu1 %v6827_v33, %s5575_s28 }
 0x665   : > { %v5506_v60 = vpop.eup %5505 }
 0x666   : > { %2192 = vrot.lane.b32.xlu0 %v5506_v60, %s5574_s17  ;;  %3720 = vrot.lane.b32.xlu1 %v6832_v14, %s5575_s28  ;;  %v5508_v13 = vpop.eup %5507  ;;  %v2313_v60 = vld [vmem:[%s6646_s16 + $0x18] sm:$0xff] }
 0x667   : > { %v5510_v18 = vpop.eup %5509  ;;  %v6844_v41 = vmul.f32 %v5508_v13, %v6266_v3 }
 0x668   : > { %v5512_v22 = vpop.eup %5511 }
 0x669   : > { %v6849_v15 = vmul.f32 %v5512_v22, %v6308_v25  ;;  %v8394_v22 = vld [vmem:[#allocation8_spill] sm:$0xff] }
 0x66a   : > { %2194 = vrot.lane.b32.xlu0 %v5510_v18, %s5574_s17  ;;  %3724 = vrot.lane.b32.xlu1 %v6838_v52, %s5575_s28 }
 0x66e   : > { %3728 = vrot.lane.b32.xlu1 %v6844_v41, %s5575_s28 }
 0x672   : > { %3732 = vrot.lane.b32.xlu1 %v6849_v15, %s5575_s28 }
 0x676   : > { %3800 = vrot.lane.b32.xlu1 %v6510_v31, %s5575_s28  ;;  %v6865_v31 = vpop.permute.xlu0 %2164 }
 0x67a   : > { %3804 = vrot.lane.b32.xlu1 %v6701_v54, %s5575_s28  ;;  %v6871_v0 = vpop.permute.xlu0 %2168 }
 0x67e   : > { %v1901_v3 = vpop.xlane.xlu1 %1900  ;;  %3808 = vrot.lane.b32.xlu1 %v6708_v9, %s5575_s28  ;;  %v6884_v7 = vpop.permute.xlu0 %2174 }
 0x67f   : > { %v1949_v49 = vmax.f32 %v1901_v3, 1e-24 }
 0x681   : > { %5513 = vrsqrt.f32 %v1949_v49  ;;  %v2088_v49 = vld [vmem:[%s6640_s13 + $0x10] sm:$0xff] }
 0x682   : > { %v1907_v25 = vpop.xlane.xlu1 %1906  ;;  %3812 = vrot.lane.b32.xlu1 %v6714_v58, %s5575_s28  ;;  %v8392_v58 = vld [vmem:[#allocation6_spill] sm:$0xff] }
 0x683   : > { %v1951_v53 = vmax.f32 %v1907_v25, 1e-24  ;;  %v2312_v25 = vld [vmem:[%s6646_s16 + $0x10] sm:$0xff] }
 0x685   : > { %5515 = vrsqrt.f32 %v1951_v53  ;;  %v8395_v53 = vld [vmem:[#allocation11_spill] sm:$0xff] }
 0x686   : > { %v1913_v11 = vpop.xlane.xlu1 %1912  ;;  %3816 = vrot.lane.b32.xlu1 %v6719_v40, %s5575_s28 }
 0x687   : > { %v1953_v54 = vmax.f32 %v1913_v11, 1e-24 }
 0x689   : > { %5517 = vrsqrt.f32 %v1953_v54 }
 0x68a   : > { %v1919_v9 = vpop.xlane.xlu1 %1918  ;;  %3820 = vrot.lane.b32.xlu1 %v6726_v23, %s5575_s28  ;;  %v8393_v23 = vld [vmem:[#allocation7_spill] sm:$0xff] }
 0x68b   : > { %v5514_v47 = vpop.eup %5513  ;;  %v1955_v20 = vmax.f32 %v1919_v9, 1e-24  ;;  %v2345_v9 = vmul.f32 %v2313_v60, %v2157_v46 }
 0x68c   : > { %v6874_v35 = vmul.f32 %v5514_v47, %v8392_v58 }
 0x68d   : > { %5519 = vrsqrt.f32 %v1955_v20 }
 0x68e   : > { %v2068_v59 = vmul.f32 1.442695, %v6874_v35  ;;  %v1925_v40 = vpop.xlane.xlu1 %1924  ;;  %3824 = vrot.lane.b32.xlu1 %v6565_v1, %s5575_s28 }
 0x68f   : > { %v5516_v17 = vpop.eup %5515  ;;  %v1957_v16 = vmax.f32 %v1925_v40, 1e-24  ;;  %v2091_v40 = vld [vmem:[%s6640_s13 + $0x28] sm:$0xff] }
 0x690   : > { %5521 = vpow2.f32 %v2068_v59  ;;  %v6880_v44 = vmul.f32 %v5516_v17, %v8393_v23 }
 0x691   : > { %5523 = vrsqrt.f32 %v1957_v16 }
 0x692   : > { %v2072_v21 = vmul.f32 1.442695, %v6880_v44  ;;  %v2153_v51 = vpop.permute.xlu1 %2152  ;;  %3828 = vrot.lane.b32.xlu1 %v6741_v42, %s5575_s28  ;;  %v2249_v42 = vmul.f32 %v2157_v46, %v2089_v37  ;;  %v8398_v46 = vld [vmem:[#allocation10_spill] sm:$0xff] }
 0x693   : > { %v5518_v1 = vpop.eup %5517  ;;  %v2247_v13 = vmul.f32 %v2153_v51, %v2087_v32  ;;  %v2343_v18 = vmul.f32 %v2311_v28, %v2153_v51  ;;  %v2315_v32 = vld [vmem:[%s6646_s16 + $0x28] sm:$0xff]  ;;  %v6911_v28 = vpop.permute.xlu0 %3698  ;;  %v2314_v51 = vld [vmem:[%s6646_s16 + $0x20] sm:$0xff] }
 0x694   : > { %5525 = vpow2.f32 %v2072_v21  ;;  %v6892_v3 = vmul.f32 %v5518_v1, %v8394_v22  ;;  %8397 = vst [vmem:[#allocation4_spill] sm:$0xff] %v6911_v28  ;;  %v8399_v1 = vld [vmem:[#allocation19_spill] sm:$0xff] }
 0x695   : > { %v6897_v11 = vadd.f32 %v2247_v13, %v8395_v53  ;;  %v6900_v54 = vadd.f32 %v2343_v18, %v8395_v53  ;;  %v8401_v18 = vld [vmem:[#allocation12_spill] sm:$0xff]  ;;  %v2251_v53 = vmul.f32 %v6861_v8, %v2091_v40  ;;  %v8403_v40 = vld [vmem:[#allocation9_spill] sm:$0xff] }
 0x696   : > { %v2076_v47 = vmul.f32 1.442695, %v6892_v3  ;;  %v2155_v20 = vpop.permute.xlu1 %2154  ;;  %3832 = vrot.lane.b32.xlu1 %v6597_v36, %s5575_s28  ;;  %v2090_v36 = vld [vmem:[%s6640_s13 + $0x20] sm:$0xff] }
 0x697   : > { %8396 = vst [vmem:[#allocation22_spill] sm:$0xff] %v6897_v11  ;;  %v5520_v59 = vpop.eup %5519  ;;  %v2248_v17 = vmul.f32 %v2155_v20, %v2088_v49  ;;  %v2344_v16 = vmul.f32 %v2312_v25, %v2155_v20  ;;  %5050 = vmatmul.mubr.msk.f32.vlgmr.msra.gmra.mrb[80].mxu1 %vm1509_vm1, %v6897_v11  ;;  %5102 = vmatmul.mubr.msk.f32.vlgmr.msra.gmra.mrb[80].mxu0 %vm1509_vm1, %v6900_v54 }
 0x698   : > { %5527 = vpow2.f32 %v2076_v47  ;;  %v6914_v21 = vmul.f32 %v5520_v59, %v8398_v46  ;;  %v6925_v49 = vadd.f32 %v2249_v42, %v8401_v18  ;;  %v6928_v25 = vadd.f32 %v2345_v9, %v8401_v18  ;;  %v6940_v9 = vpop.permute.xlu0 %2180 }
 0x699   : > { %v6919_v37 = vadd.f32 %v2248_v17, %v8399_v1  ;;  %v6922_v60 = vadd.f32 %v2344_v16, %v8399_v1  ;;  %v2347_v17 = vmul.f32 %v2315_v32, %v6861_v8  ;;  %v2093_v16 = vld [vmem:[%s6640_s13 + $0x38] sm:$0xff]  ;;  %v2316_v8 = vld [vmem:[%s6646_s16 + $0x30] sm:$0xff] }
 0x69a   : > { %v5522_v13 = vpop.eup %5521  ;;  %8402 = vst [vmem:[#allocation23_spill] sm:$0xff] %v6925_v49  ;;  %v2080_v47 = vmul.f32 1.442695, %v6914_v21  ;;  %v2159_v20 = vpop.permute.xlu1 %2158  ;;  %3836 = vrot.lane.b32.xlu1 %v6651_v30, %s5575_s28  ;;  %v2317_v1 = vld [vmem:[%s6646_s16 + $0x38] sm:$0xff]  ;;  %v2092_v30 = vld [vmem:[%s6640_s13 + $0x30] sm:$0xff] }
 0x69b   : > { %8400 = vst [vmem:[#allocation5_spill] sm:$0xff] %v6919_v37  ;;  %v5524_v59 = vpop.eup %5523  ;;  %v2250_v42 = vmul.f32 %v2159_v20, %v2090_v36  ;;  %v2346_v28 = vmul.f32 %v2314_v51, %v2159_v20  ;;  %2196 = vrot.lane.b32.xlu0 %v5522_v13, %s5574_s17  ;;  %5052 = vmatprep.mubr.msk.f32.mxu1 %vm1509_vm1, %v6919_v37  ;;  %v8404_v32 = vld [vmem:[#allocation26_spill] sm:$0xff] }
 0x69c   : > { %5529 = vpow2.f32 %v2080_v47  ;;  %v6943_v18 = vmul.f32 %v5524_v59, %v8403_v40  ;;  %5104 = vmatprep.mubr.msk.f32.mxu0 %vm1509_vm1, %v6922_v60  ;;  %5053 = vmatmul.mubr.msk.f32.gmra.mrb[82].mxu1 %vm1509_vm1, %v6925_v49  ;;  %v8406_v47 = vld [vmem:[#allocation13_spill] sm:$0xff]  ;;  %v2253_v59 = vmul.f32 %v6865_v31, %v2093_v16  ;;  %v2349_v29 = vmul.f32 %v2317_v1, %v6865_v31 }
 0x69d   : > { %v6952_v36 = vadd.f32 %v2250_v42, %v8404_v32  ;;  %v6955_v51 = vadd.f32 %v2346_v28, %v8404_v32  ;;  %5105 = vmatmul.mubr.msk.f32.gmra.mrb[82].mxu0 %vm1509_vm1, %v6928_v25  ;;  %v6960_v20 = vadd.f32 %v2251_v53, %v8406_v47  ;;  %v8408_v42 = vld [vmem:[#allocation15_spill] sm:$0xff]  ;;  %v6968_v32 = vadd.f32 %v2347_v17, %v8406_v47  ;;  %v2319_v53 = vld [vmem:[%s6646_s16 + $0x48] sm:$0xff] }
 0x69e   : > { %v5526_v13 = vpop.eup %5525  ;;  %v2163_v63 = vpop.permute.xlu1 %2162  ;;  %3840 = vrot.lane.b32.xlu1 %v6678_v26, %s5575_s28  ;;  %v1623_v28 = vmax.f32 %v8408_v42, 1e-24  ;;  %v2084_v31 = vmul.f32 1.442695, %v6943_v18  ;;  %v2094_v26 = vld [vmem:[%s6640_s13 + $0x40] sm:$0xff]  ;;  %v2255_v47 = vmul.f32 %v6871_v0, %v2095_v27  ;;  %v2096_v27 = vld [vmem:[%s6640_s13 + $0x50] sm:$0xff] }
 0x69f   : > { %8405 = vst [vmem:[#allocation25_spill] sm:$0xff] %v6952_v36  ;;  %8407 = vst [vmem:[#allocation6_spill] sm:$0xff] %v6960_v20  ;;  %v2252_v49 = vmul.f32 %v2163_v63, %v2092_v30  ;;  %v2348_v37 = vmul.f32 %v2316_v8, %v2163_v63  ;;  %2200 = vrot.lane.b32.xlu0 %v5526_v13, %s5574_s17  ;;  %5055 = vmatprep.mubr.msk.f32.mxu1 %vm1509_vm1, %v6952_v36  ;;  %v2318_v17 = vld [vmem:[%s6646_s16 + $0x40] sm:$0xff]  ;;  %v8410_v30 = vld [vmem:[#allocation14_spill] sm:$0xff]  ;;  %v6997_v42 = vpop.permute.xlu0 %2182 }
 0x6a0   : > { %5107 = vmatprep.mubr.msk.f32.mxu0 %vm1509_vm1, %v6955_v51  ;;  %5056 = vmatmul.mubr.msk.f32.gmra.mrb[84].mxu1 %vm1509_vm1, %v6960_v20  ;;  %v6991_v8 = vadd.f32 %v2253_v59, %v8410_v30  ;;  %v6994_v13 = vadd.f32 %v2349_v29, %v8410_v30  ;;  %5531 = vrsqrt.f32 %v1623_v28  ;;  %v8412_v29 = vld [vmem:[#allocation16_spill] sm:$0xff] }
 0x6a1   : > { %v6983_v16 = vadd.f32 %v2252_v49, %v6515_v34  ;;  %v6986_v63 = vadd.f32 %v2348_v37, %v6515_v34  ;;  %5108 = vmatmul.mubr.msk.f32.gmra.mrb[84].mxu0 %vm1509_vm1, %v6968_v32  ;;  %v2351_v34 = vmul.f32 %v2319_v53, %v6871_v0  ;;  %v1625_v59 = vmax.f32 %v8412_v29, 1e-24  ;;  %v8413_v0 = vld [vmem:[#allocation39_spill] sm:$0xff] }
 0x6a2   : > { %v5528_v1 = vpop.eup %5527  ;;  %8411 = vst [vmem:[#allocation8_spill] sm:$0xff] %v6991_v8  ;;  %v2167_v49 = vpop.permute.xlu1 %2166  ;;  %3844 = vrot.lane.b32.xlu1 %v6807_v19, %s5575_s28  ;;  %5533 = vpow2.f32 %v2084_v31  ;;  %v2320_v19 = vld [vmem:[%s6646_s16 + $0x50] sm:$0xff]  ;;  %v8415_v31 = vld [vmem:[#allocation20_spill] sm:$0xff] }
 0x6a3   : > { %8409 = vst [vmem:[#allocation7_spill] sm:$0xff] %v6983_v16  ;;  %v2254_v37 = vmul.f32 %v2167_v49, %v2094_v26  ;;  %v2350_v36 = vmul.f32 %v2318_v17, %v2167_v49  ;;  %2204 = vrot.lane.b32.xlu0 %v5528_v1, %s5574_s17  ;;  %5058 = vmatprep.mubr.msk.f32.mxu1 %vm1509_vm1, %v6983_v16  ;;  %v7023_v1 = vpop.permute.xlu0 %2184  ;;  %5535 = vrsqrt.f32 %v1625_v59  ;;  %v2322_v16 = vld [vmem:[%s6646_s16 + $0x60] sm:$0xff] }
 0x6a4   : > { %5110 = vmatprep.mubr.msk.f32.mxu0 %vm1509_vm1, %v6986_v63  ;;  %5059 = vmatmul.mubr.msk.f32.gmra.mrb[86].mxu1 %vm1509_vm1, %v6991_v8  ;;  %v7021_v17 = vadd.f32 %v2255_v47, %v8415_v31  ;;  %v7028_v49 = vadd.f32 %v2351_v34, %v8415_v31  ;;  %v8417_v47 = vld [vmem:[#allocation17_spill] sm:$0xff]  ;;  %v2321_v34 = vld [vmem:[%s6646_s16 + $0x58] sm:$0xff]  ;;  %v8418_v31 = vld [vmem:[#allocation44_spill] sm:$0xff] }
 0x6a5   : > { %v7013_v28 = vadd.f32 %v2254_v37, %v8413_v0  ;;  %v7016_v53 = vadd.f32 %v2350_v36, %v8413_v0  ;;  %5111 = vmatmul.mubr.msk.f32.gmra.mrb[86].mxu0 %vm1509_vm1, %v6994_v13  ;;  %v2098_v36 = vld [vmem:[%s6640_s13 + $0x60] sm:$0xff]  ;;  %v1627_v0 = vmax.f32 %v8417_v47, 1e-24 }
 0x6a6   : > { %v5530_v26 = vpop.eup %5529  ;;  %8416 = vst [vmem:[#allocation10_spill] sm:$0xff] %v7021_v17  ;;  %v2171_v30 = vpop.permute.xlu1 %2170  ;;  %3848 = vrot.lane.b32.xlu1 %v6759_v57, %s5575_s28  ;;  %v2097_v57 = vld [vmem:[%s6640_s13 + $0x58] sm:$0xff]  ;;  %v2258_v59 = vmul.f32 %v6884_v7, %v2098_v36 }
 0x6a7   : > { %8414 = vst [vmem:[#allocation11_spill] sm:$0xff] %v7013_v28  ;;  %v2256_v37 = vmul.f32 %v2171_v30, %v2096_v27  ;;  %v2352_v29 = vmul.f32 %v2320_v19, %v2171_v30  ;;  %2208 = vrot.lane.b32.xlu0 %v5530_v26, %s5574_s17  ;;  %5061 = vmatprep.mubr.msk.f32.mxu1 %vm1509_vm1, %v7013_v28  ;;  %5537 = vrsqrt.f32 %v1627_v0  ;;  %v7059_v36 = vpop.permute.xlu0 %2186 }
 0x6a8   : > { %5113 = vmatprep.mubr.msk.f32.mxu0 %vm1509_vm1, %v7016_v53  ;;  %5062 = vmatmul.mubr.msk.f32.gmra.mrb[88].mxu1 %vm1509_vm1, %v7021_v17  ;;  %v2354_v30 = vmul.f32 %v2322_v16, %v6884_v7  ;;  %v2323_v7 = vld [vmem:[%s6646_s16 + $0x68] sm:$0xff]  ;;  %v7072_v0 = vadd.f32 %v2258_v59, %v6767_v10 }
 0x6a9   : > { %v7043_v27 = vadd.f32 %v2256_v37, %v8418_v31  ;;  %v7046_v19 = vadd.f32 %v2352_v29, %v8418_v31  ;;  %5114 = vmatmul.mubr.msk.f32.gmra.mrb[88].mxu0 %vm1509_vm1, %v7028_v49  ;;  %v8420_v37 = vld [vmem:[#allocation18_spill] sm:$0xff] }
 0x6aa   : > { %v2173_v26 = vpop.permute.xlu1 %2172  ;;  %3852 = vrot.lane.b32.xlu1 %v6764_v61, %s5575_s28  ;;  %v1629_v29 = vmax.f32 %v8420_v37, 1e-24  ;;  %v2099_v61 = vld [vmem:[%s6640_s13 + $0x68] sm:$0xff]  ;;  %v5532_v16 = vpop.eup %5531  ;;  %8423 = vst [vmem:[#allocation9_spill] sm:$0xff] %v7072_v0  ;;  %v7077_v37 = vadd.f32 %v2354_v30, %v6767_v10  ;;  %v2100_v10 = vld [vmem:[%s6640_s13 + $0x70] sm:$0xff]  ;;  %v2326_v30 = vld [vmem:[%s6646_s16 + $0x80] sm:$0xff] }
 0x6ab   : > { %8419 = vst [vmem:[#allocation19_spill] sm:$0xff] %v7043_v27  ;;  %v2257_v47 = vmul.f32 %v2173_v26, %v2097_v57  ;;  %v2353_v28 = vmul.f32 %v2321_v34, %v2173_v26  ;;  %3546 = vrot.lane.b32.xlu0 %v6900_v54, %s5576_s20  ;;  %5064 = vmatprep.mubr.msk.f32.mxu1 %vm1509_vm1, %v7043_v27  ;;  %v8421_v57 = vld [vmem:[#allocation27_spill] sm:$0xff]  ;;  %v2101_v27 = vld [vmem:[%s6640_s13 + $0x78] sm:$0xff]  ;;  %v7104_v20 = vpop.permute.xlu0 %3702 }
 0x6ac   : > { %5116 = vmatprep.mubr.msk.f32.mxu0 %vm1509_vm1, %v7046_v19  ;;  %v5534_v31 = vpop.eup %5533  ;;  %5539 = vrsqrt.f32 %v1629_v29  ;;  %8428 = vst [vmem:[#allocation13_spill] sm:$0xff] %v7104_v20  ;;  %v2104_v20 = vld [vmem:[%s6640_s13 + $0x90] sm:$0xff] }
 0x6ad   : > { %v7066_v34 = vadd.f32 %v2257_v47, %v8421_v57  ;;  %v7069_v54 = vadd.f32 %v2353_v28, %v8421_v57  ;;  %v2325_v47 = vld [vmem:[%s6646_s16 + $0x78] sm:$0xff]  ;;  %v8424_v28 = vld [vmem:[#allocation21_spill] sm:$0xff]  ;;  %v2102_v57 = vld [vmem:[%s6640_s13 + $0x80] sm:$0xff] }
 0x6ae   : > { %v2177_v26 = vpop.permute.xlu1 %2176  ;;  %3856 = vrot.lane.b32.xlu1 %v6773_v4, %s5575_s28  ;;  %v1631_v59 = vmax.f32 %v8424_v28, 1e-24  ;;  %v2324_v4 = vld [vmem:[%s6646_s16 + $0x70] sm:$0xff]  ;;  %v5536_v28 = vpop.eup %5535 }
 0x6af   : > { %8422 = vst [vmem:[#allocation12_spill] sm:$0xff] %v7066_v34  ;;  %v2259_v17 = vmul.f32 %v2177_v26, %v2099_v61  ;;  %v2355_v8 = vmul.f32 %v2323_v7, %v2177_v26  ;;  %2212 = vrot.lane.b32.xlu0 %v5534_v31, %s5574_s17  ;;  %5065 = vmatmul.mubr.msk.f32.gmra.mrb[90].mxu1 %vm1509_vm1, %v7066_v34  ;;  %v8425_v61 = vld [vmem:[#allocation3_spill] sm:$0xff]  ;;  %v8426_v31 = vld [vmem:[#allocation37_spill] sm:$0xff] }
 0x6b0   : > { %5117 = vmatmul.mubr.msk.f32.gmra.mrb[90].mxu0 %vm1509_vm1, %v7069_v54  ;;  %5067 = vmatprep.mubr.msk.f32.mxu1 %vm1509_vm1, %v7072_v0  ;;  %v1687_v7 = vmul.f32 %v5532_v16, %v8425_v61  ;;  %v2261_v34 = vmul.f32 %v6940_v9, %v2101_v27  ;;  %v2357_v0 = vmul.f32 %v2325_v47, %v6940_v9  ;;  %v2327_v16 = vld [vmem:[%s6646_s16 + $0x88] sm:$0xff]  ;;  %v8429_v27 = vld [vmem:[#allocation30_spill] sm:$0xff]  ;;  %5541 = vrsqrt.f32 %v1631_v59 }
 0x6b1   : > { %v7095_v26 = vadd.f32 %v2259_v17, %v8426_v31  ;;  %v7098_v29 = vadd.f32 %v2355_v8, %v8426_v31  ;;  %5119 = vmatprep.mubr.msk.f32.mxu0 %vm1509_vm1, %v7077_v37  ;;  %v2262_v17 = vmul.f32 %v6997_v42, %v2102_v57  ;;  %v2103_v8 = vld [vmem:[%s6640_s13 + $0x88] sm:$0xff]  ;;  %v1633_v9 = vmax.f32 %v8429_v27, 1e-24 }
 0x6b2   : > { %v2179_v11 = vpop.permute.xlu1 %2178  ;;  %3860 = vrot.lane.b32.xlu1 %v6783_v45, %s5575_s28  ;;  %v2358_v47 = vmul.f32 %v2326_v30, %v6997_v42  ;;  %v2328_v45 = vld [vmem:[%s6646_s16 + $0x90] sm:$0xff]  ;;  %v7128_v27 = vadd.f32 %v2261_v34, %v6697_v50  ;;  %v2263_v42 = vmul.f32 %v7023_v1, %v2103_v8  ;;  %v2359_v59 = vmul.f32 %v2327_v16, %v7023_v1  ;;  %v8434_v1 = vld [vmem:[#allocation24_spill] sm:$0xff]  ;;  %v2330_v16 = vld [vmem:[%s6646_s16 + $0xa0] sm:$0xff] }
 0x6b3   : > { %8427 = vst [vmem:[#allocation26_spill] sm:$0xff] %v7095_v26  ;;  %v2260_v61 = vmul.f32 %v2179_v11, %v2100_v10  ;;  %v2356_v31 = vmul.f32 %v2324_v4, %v2179_v11  ;;  %3706 = vrot.lane.b32.xlu0 %v1687_v7, %s5575_s28  ;;  %5068 = vmatmul.mubr.msk.f32.gmra.mrb[92].mxu1 %vm1509_vm1, %v7095_v26  ;;  %v5538_v4 = vpop.eup %5537  ;;  %5543 = vrsqrt.f32 %v1633_v9 }
 0x6b4   : > { %5120 = vmatmul.mubr.msk.f32.gmra.mrb[92].mxu0 %vm1509_vm1, %v7098_v29  ;;  %v1689_v10 = vmul.f32 %v5536_v28, %v6209_v5  ;;  %8431 = vst [vmem:[#allocation14_spill] sm:$0xff] %v7128_v27  ;;  %v7140_v5 = vadd.f32 %v2262_v17, %v6801_v39  ;;  %v2264_v34 = vmul.f32 %v7059_v36, %v2104_v20  ;;  %v1635_v28 = vmax.f32 %v8434_v1, 1e-24  ;;  %v2105_v20 = vld [vmem:[%s6640_s13 + $0x98] sm:$0xff] }
 0x6b5   : > { %v7121_v57 = vadd.f32 %v2260_v61, %v6778_v62  ;;  %v7124_v11 = vadd.f32 %v2356_v31, %v6778_v62  ;;  %v7137_v62 = vadd.f32 %v2357_v0, %v6697_v50  ;;  %v7148_v8 = vadd.f32 %v2358_v47, %v6801_v39  ;;  %v2106_v50 = vld [vmem:[%s6640_s13 + $0xa0] sm:$0xff]  ;;  %v2191_v0 = vpop.permute.xlu0 %2190  ;;  %v2329_v17 = vld [vmem:[%s6646_s16 + $0x98] sm:$0xff] }
 0x6b6   : > { %v7132_v30 = vpop.permute.xlu1 %3696  ;;  %3548 = vrot.lane.b32.xlu1 %v6922_v60, %s5576_s20  ;;  %8433 = vst [vmem:[#allocation39_spill] sm:$0xff] %v7140_v5  ;;  %v2360_v60 = vmul.f32 %v2328_v45, %v7059_v36  ;;  %v7164_v39 = vmul.f32 %v5538_v4, %v8388_v24  ;;  %v5540_v36 = vpop.eup %5539  ;;  %v7166_v61 = vadd.f32 %v2263_v42, %v1687_v7  ;;  %5545 = vrsqrt.f32 %v1635_v28  ;;  %v8437_v24 = vld [vmem:[#allocation28_spill] sm:$0xff] }
 0x6b7   : > { %8430 = vst [vmem:[#allocation15_spill] sm:$0xff] %v7121_v57  ;;  %8432 = vst [vmem:[#allocation16_spill] sm:$0xff] %v7132_v30  ;;  %3710 = vrot.lane.b32.xlu0 %v1689_v10, %s5575_s28  ;;  %5070 = vmatprep.mubr.msk.f32.mxu1 %vm1509_vm1, %v7121_v57  ;;  %v7168_v31 = vadd.f32 %v2359_v59, %v1687_v7  ;;  %v7175_v47 = vadd.f32 %v2264_v34, %v6813_v43  ;;  %v1637_v7 = vmax.f32 %v8437_v24, 1e-24  ;;  %v8446_v30 = vld [vmem:[#allocation32_spill] sm:$0xff] }
 0x6b8   : > { %5122 = vmatprep.mubr.msk.f32.mxu0 %vm1509_vm1, %v7124_v11  ;;  %5071 = vmatmul.mubr.msk.f32.gmra.mrb[94].mxu1 %vm1509_vm1, %v7128_v27  ;;  %8435 = vst [vmem:[#allocation20_spill] sm:$0xff] %v7166_v61  ;;  %v2266_v45 = vmul.f32 %v2191_v0, %v2106_v50  ;;  %v2392_v4 = vadd.f32 %v2360_v60, %v6813_v43 }
 0x6b9   : > { %5123 = vmatmul.mubr.msk.f32.gmra.mrb[94].mxu0 %vm1509_vm1, %v7137_v62  ;;  %5073 = vmatprep.mubr.msk.f32.mxu1 %vm1509_vm1, %v7140_v5  ;;  %8436 = vst [vmem:[#allocation17_spill] sm:$0xff] %v7175_v47  ;;  %v2362_v42 = vmul.f32 %v2330_v16, %v2191_v0  ;;  %v7192_v34 = vmul.f32 %v5540_v36, %v8392_v58  ;;  %5547 = vrsqrt.f32 %v1637_v7 }
 0x6ba   : > { %5125 = vmatprep.mubr.msk.f32.mxu0 %vm1509_vm1, %v7148_v8  ;;  %v2189_v9 = vpop.permute.xlu1 %2188  ;;  %3552 = vrot.lane.b32.xlu1 %v6955_v51, %s5576_s20  ;;  %v5542_v28 = vpop.eup %5541 }
 0x6bb   : > { %v2265_v1 = vmul.f32 %v2189_v9, %v2105_v20  ;;  %v2361_v5 = vmul.f32 %v2329_v17, %v2189_v9  ;;  %3714 = vrot.lane.b32.xlu0 %v7164_v39, %s5575_s28  ;;  %v7212_v58 = vmul.f32 %v5542_v28, %v8393_v23  ;;  %v7233_v20 = vpop.f32.mrb[48].mxu0  ;;  %v2107_v28 = vld [vmem:[%s6640_s13 + $0xa8] sm:$0xff] }
 0x6bc   : > { %5074 = vmatmul.mubr.msk.f32.gmra.mrb[96].mxu1 %vm1509_vm1, %v7166_v61 }
 0x6bd   : > { %v7183_v59 = vadd.f32 %v2265_v1, %v1689_v10  ;;  %v7185_v51 = vadd.f32 %v2361_v5, %v1689_v10  ;;  %5126 = vmatmul.mubr.msk.f32.gmra.mrb[96].mxu0 %vm1509_vm1, %v7168_v31  ;;  %5076 = vmatprep.mubr.msk.f32.mxu1 %vm1509_vm1, %v7175_v47  ;;  %v7200_v10 = vadd.f32 %v2266_v45, %v6821_v6 }
 0x6be   : > { %5128 = vmatprep.mubr.msk.f32.mxu0 %vm1509_vm1, %v2392_v4  ;;  %v7195_v43 = vpop.permute.xlu1 %3700  ;;  %3556 = vrot.lane.b32.xlu1 %v6986_v63, %s5576_s20  ;;  %v2394_v5 = vadd.f32 %v2362_v42, %v6821_v6  ;;  %v5544_v63 = vpop.eup %5543 }
 0x6bf   : > { %8438 = vst [vmem:[#allocation44_spill] sm:$0xff] %v7183_v59  ;;  %8439 = vst [vmem:[#allocation18_spill] sm:$0xff] %v7195_v43  ;;  %3718 = vrot.lane.b32.xlu0 %v7192_v34, %s5575_s28  ;;  %v7222_v6 = vmul.f32 %v5544_v63, %v8394_v22  ;;  %v7241_v22 = vpop.f32.mrb[49].mxu0  ;;  %v2331_v63 = vld [vmem:[%s6646_s16 + $0xa8] sm:$0xff]  ;;  %v2332_v43 = vld [vmem:[%s6646_s16 + $0xb0] sm:$0xff] }
 0x6c0   : > { %8440 = vst [vmem:[#allocation27_spill] sm:$0xff] %v7200_v10  ;;  %5077 = vmatmul.mubr.msk.f32.gmra.mrb[98].mxu1 %vm1509_vm1, %v7183_v59  ;;  %v5546_v50 = vpop.eup %5545  ;;  %v7246_v16 = vpop.f32.mrb[50].mxu0 }
 0x6c1   : > { %5129 = vmatmul.mubr.msk.f32.gmra.mrb[98].mxu0 %vm1509_vm1, %v7185_v51  ;;  %5079 = vmatprep.mubr.msk.f32.mxu1 %vm1509_vm1, %v7200_v10  ;;  %v7231_v23 = vmul.f32 %v5546_v50, %v8398_v46  ;;  %v7252_v36 = vpop.f32.mrb[51].mxu0  ;;  %v8443_v50 = vld [vmem:[#allocation31_spill] sm:$0xff] }
 0x6c2   : > { %5131 = vmatprep.mubr.msk.f32.mxu0 %vm1509_vm1, %v2394_v5  ;;  %v7215_v60 = vpop.permute.xlu1 %2198  ;;  %3560 = vrot.lane.b32.xlu1 %v7016_v53, %s5576_s20 }
 0x6c3   : > { %3722 = vrot.lane.b32.xlu0 %v7212_v58, %s5575_s28  ;;  %v5548_v53 = vpop.eup %5547 }
 0x6c6   : > { %v7224_v0 = vpop.permute.xlu1 %2202  ;;  %3564 = vrot.lane.b32.xlu1 %v7046_v19, %s5576_s20  ;;  %v7244_v19 = vmul.f32 %v5548_v53, %v8403_v40 }
 0x6c7   : > { %3726 = vrot.lane.b32.xlu0 %v7222_v6, %s5575_s28 }
 0x6ca   : > { %v7235_v17 = vpop.permute.xlu1 %2206  ;;  %3568 = vrot.lane.b32.xlu1 %v7077_v37, %s5576_s20  ;;  %v7256_v37 = vpop.f32.mrb[52].mxu0 }
 0x6cb   : > { %3730 = vrot.lane.b32.xlu0 %v7231_v23, %s5575_s28  ;;  %v7258_v9 = vpop.f32.mrb[53].mxu0 }
 0x6cc   : > { %v7260_v40 = vpop.f32.mrb[54].mxu0 }
 0x6cd   : > { %v7266_v1 = vpop.f32.mrb[55].mxu0 }
 0x6ce   : > { %v7248_v46 = vpop.permute.xlu1 %3544  ;;  %3572 = vrot.lane.b32.xlu1 %v7124_v11, %s5576_s20  ;;  %v7270_v11 = vpop.f32.mrb[56].mxu0 }
 0x6cf   : > { %8441 = vst [vmem:[#allocation21_spill] sm:$0xff] %v7248_v46  ;;  %3734 = vrot.lane.b32.xlu0 %v7244_v19, %s5575_s28  ;;  %v7272_v24 = vpop.f32.mrb[57].mxu0 }
 0x6d0   : > { %v7274_v7 = vpop.f32.mrb[58].mxu0 }
 0x6d2   : > { %v7262_v45 = vpop.permute.xlu1 %2210  ;;  %3576 = vrot.lane.b32.xlu1 %v7148_v8, %s5576_s20  ;;  %v7281_v8 = vpop.f32.mrb[59].mxu0 }
 0x6d3   : > { %3802 = vrot.lane.b32.xlu0 %v6690_v56, %s5575_s28  ;;  %v7285_v56 = vpop.f32.mrb[60].mxu0 }
 0x6d4   : > { %v7287_v10 = vpop.f32.mrb[61].mxu0 }
 0x6d5   : > { %v7289_v61 = vpop.f32.mrb[62].mxu0 }
 0x6d6   : > { %v7276_v42 = vpop.permute.xlu1 %3704  ;;  %3580 = vrot.lane.b32.xlu1 %v2392_v4, %s5576_s20  ;;  %v2108_v4 = vld [vmem:[%s6640_s13 + $0xb0] sm:$0xff]  ;;  %v7296_v57 = vpop.f32.mrb[63].mxu0 }
 0x6d7   : > { %8442 = vst [vmem:[#allocation3_spill] sm:$0xff] %v7276_v42  ;;  %3806 = vrot.lane.b32.xlu0 %v8443_v50, %s5575_s28 }
 0x6d8   : > { %v2193_v53 = vpop.permute.xlu0 %2192 }
 0x6d9   : > { %v2267_v47 = vmul.f32 %v2193_v53, %v2107_v28  ;;  %v2363_v59 = vmul.f32 %v2331_v63, %v2193_v53  ;;  %v7306_v28 = vpop.f32.mrb[64].mxu0  ;;  %v2334_v63 = vld [vmem:[%s6646_s16 + $0xc0] sm:$0xff] }
 0x6da   : > { %v7291_v42 = vpop.permute.xlu1 %3708  ;;  %3584 = vrot.lane.b32.xlu1 %v2394_v5, %s5576_s20 }
 0x6db   : > { %8444 = vst [vmem:[#allocation37_spill] sm:$0xff] %v7291_v42  ;;  %v7299_v50 = vadd.f32 %v2267_v47, %v7164_v39  ;;  %v7302_v27 = vadd.f32 %v2363_v59, %v7164_v39  ;;  %3810 = vrot.lane.b32.xlu0 %v8446_v30, %s5575_s28  ;;  %v7309_v42 = vpop.f32.mrb[65].mxu0  ;;  %v2366_v59 = vmul.f32 %v2334_v63, %v7215_v60 }
 0x6dc   : > { %v2195_v53 = vpop.permute.xlu0 %2194  ;;  %v7315_v39 = vpop.f32.mrb[66].mxu0 }
 0x6dd   : > { %8445 = vst [vmem:[#allocation30_spill] sm:$0xff] %v7299_v50  ;;  %v2268_v5 = vmul.f32 %v2195_v53, %v2108_v4  ;;  %v2364_v26 = vmul.f32 %v2332_v43, %v2195_v53  ;;  %5080 = vmatmul.mubr.msk.f32.gmra.mrb[100].mxu1 %vm1509_vm1, %v7299_v50  ;;  %5132 = vmatmul.mubr.msk.f32.gmra.mrb[100].mxu0 %vm1509_vm1, %v7302_v27  ;;  %v7319_v30 = vpop.f32.mrb[67].mxu0  ;;  %v8449_v4 = vld [vmem:[#allocation33_spill] sm:$0xff] }
 0x6de   : > { %v7317_v47 = vpop.permute.xlu1 %3712  ;;  %v7328_v53 = vpop.f32.mrb[68].mxu0  ;;  %v2336_v50 = vld [vmem:[%s6646_s16 + $0xd0] sm:$0xff] }
 0x6df   : > { %8447 = vst [vmem:[#allocation24_spill] sm:$0xff] %v7317_v47  ;;  %v7323_v38 = vadd.f32 %v2268_v5, %v6827_v33  ;;  %v2396_v43 = vadd.f32 %v2364_v26, %v6827_v33  ;;  %3814 = vrot.lane.b32.xlu0 %v8449_v4, %s5575_s28  ;;  %8450 = vst [vmem:[#allocation31_spill] sm:$0xff] %v7328_v53  ;;  %v7331_v46 = vpop.f32.mrb[69].mxu0  ;;  %v7344_v26 = vadd.f32 %v2366_v59, %v6832_v14  ;;  %v8454_v47 = vld [vmem:[#allocation35_spill] sm:$0xff] }
 0x6e0   : > { %8451 = vst [vmem:[#allocation32_spill] sm:$0xff] %v7331_v46  ;;  %v7336_v63 = vpop.f32.mrb[70].mxu0  ;;  %v2368_v4 = vmul.f32 %v2336_v50, %v7224_v0  ;;  %v2338_v46 = vld [vmem:[%s6646_s16 + $0xe0] sm:$0xff] }
 0x6e1   : > { %8448 = vst [vmem:[#allocation28_spill] sm:$0xff] %v7323_v38  ;;  %5082 = vmatprep.mubr.msk.f32.mxu1 %vm1509_vm1, %v7323_v38  ;;  %3588 = vrot.lane.b32.xlu1 %v2396_v43, %s5576_s20  ;;  %v7341_v33 = vpop.f32.mrb[71].mxu0  ;;  %v2370_v50 = vmul.f32 %v2338_v46, %v7235_v17 }
 0x6e2   : > { %5134 = vmatprep.mubr.msk.f32.mxu0 %vm1509_vm1, %v2396_v43  ;;  %v7339_v5 = vpop.permute.xlu1 %3716  ;;  %8453 = vst [vmem:[#allocation52_spill] sm:$0xff] %v7341_v33  ;;  %v7349_v38 = vpop.f32.mrb[72].mxu0  ;;  %v7363_v59 = vadd.f32 %v2368_v4, %v6838_v52 }
 0x6e3   : > { %8452 = vst [vmem:[#allocation33_spill] sm:$0xff] %v7339_v5  ;;  %3818 = vrot.lane.b32.xlu0 %v8454_v47, %s5575_s28  ;;  %8455 = vst [vmem:[#allocation35_spill] sm:$0xff] %v7349_v38  ;;  %v7352_v53 = vpop.f32.mrb[73].mxu0  ;;  %v7382_v4 = vadd.f32 %v2370_v50, %v6844_v41 }
 0x6e4   : > { %8456 = vst [vmem:[#allocation53_spill] sm:$0xff] %v7352_v53  ;;  %v7356_v43 = vpop.f32.mrb[74].mxu0  ;;  %v2340_v53 = vld [vmem:[%s6646_s16 + $0xf0] sm:$0xff] }
 0x6e5   : > { %3592 = vrot.lane.b32.xlu1 %v7344_v26, %s5576_s20  ;;  %8457 = vst [vmem:[#allocation54_spill] sm:$0xff] %v7356_v43  ;;  %v7360_v33 = vpop.f32.mrb[75].mxu0  ;;  %v2372_v46 = vmul.f32 %v2340_v53, %v7262_v45 }
 0x6e6   : > { %v7358_v5 = vpop.permute.xlu1 %3720  ;;  %8459 = vst [vmem:[#allocation56_spill] sm:$0xff] %v7360_v33  ;;  %v7368_v47 = vpop.f32.mrb[76].mxu0 }
 0x6e7   : > { %8458 = vst [vmem:[#allocation55_spill] sm:$0xff] %v7358_v5  ;;  %3822 = vrot.lane.b32.xlu0 %v6731_v12, %s5575_s28  ;;  %8460 = vst [vmem:[#allocation57_spill] sm:$0xff] %v7368_v47  ;;  %v7371_v38 = vpop.f32.mrb[77].mxu0 }
 0x6e8   : > { %8461 = vst [vmem:[#allocation58_spill] sm:$0xff] %v7371_v38  ;;  %v7375_v43 = vpop.f32.mrb[78].mxu0  ;;  %v2112_v38 = vld [vmem:[%s6640_s13 + $0xd0] sm:$0xff] }
 0x6e9   : > { %3596 = vrot.lane.b32.xlu1 %v7363_v59, %s5576_s20  ;;  %8462 = vst [vmem:[#allocation59_spill] sm:$0xff] %v7375_v43  ;;  %v7379_v33 = vpop.f32.mrb[79].mxu0  ;;  %v7392_v43 = vadd.f32 %v2372_v46, %v6849_v15 }
 0x6ea   : > { %v7377_v5 = vpop.permute.xlu1 %3724  ;;  %8464 = vst [vmem:[#allocation61_spill] sm:$0xff] %v7379_v33 }
 0x6eb   : > { %8463 = vst [vmem:[#allocation60_spill] sm:$0xff] %v7377_v5  ;;  %3826 = vrot.lane.b32.xlu0 %v6736_v48, %s5575_s28  ;;  %v8465_v5 = vld [vmem:[#allocation42_spill] sm:$0xff]  ;;  %v8467_v48 = vld [vmem:[#allocation48_spill] sm:$0xff] }
 0x6ed   : > { %3600 = vrot.lane.b32.xlu1 %v7382_v4, %s5576_s20 }
 0x6ee   : > { %v7389_v12 = vpop.permute.xlu1 %3728 }
 0x6ef   : > { %3830 = vrot.lane.b32.xlu0 %v8465_v5, %s5575_s28 }
 0x6f1   : > { %3604 = vrot.lane.b32.xlu1 %v7392_v43, %s5576_s20 }
 0x6f2   : > { %v7398_v53 = vpop.permute.xlu1 %3732 }
 0x6f3   : > { %8466 = vst [vmem:[#allocation42_spill] sm:$0xff] %v7398_v53  ;;  %3834 = vrot.lane.b32.xlu0 %v8467_v48, %s5575_s28 }
 0x6f6   : > { %v7402_v50 = vpop.permute.xlu1 %3800 }
 0x6f7   : > { %3838 = vrot.lane.b32.xlu0 %v6751_v55, %s5575_s28  ;;  %v2110_v55 = vld [vmem:[%s6640_s13 + $0xc0] sm:$0xff] }
 0x6fa   : > { %v7406_v46 = vpop.permute.xlu1 %3804 }
 0x6fb   : > { %8468 = vst [vmem:[#allocation48_spill] sm:$0xff] %v7406_v46  ;;  %3842 = vrot.lane.b32.xlu0 %v6810_v2, %s5575_s28  ;;  %v2109_v2 = vld [vmem:[%s6640_s13 + $0xb8] sm:$0xff] }
 0x6fe   : > { %v7410_v5 = vpop.permute.xlu1 %3808 }
 0x6ff   : > { %8469 = vst [vmem:[#allocation62_spill] sm:$0xff] %v7410_v5  ;;  %3846 = vrot.lane.b32.xlu0 %v6874_v35, %s5575_s28  ;;  %v2333_v35 = vld [vmem:[%s6646_s16 + $0xb8] sm:$0xff] }
 0x702   : > { %v7414_v53 = vpop.permute.xlu1 %3812 }
 0x703   : > { %8470 = vst [vmem:[#allocation63_spill] sm:$0xff] %v7414_v53  ;;  %3850 = vrot.lane.b32.xlu0 %v6880_v44, %s5575_s28  ;;  %v2270_v53 = vmul.f32 %v7215_v60, %v2110_v55 }
 0x705   : > { %v7444_v60 = vadd.f32 %v2270_v53, %v6832_v14  ;;  %v2337_v14 = vld [vmem:[%s6646_s16 + $0xd8] sm:$0xff]  ;;  %v2116_v53 = vld [vmem:[%s6640_s13 + $0xf0] sm:$0xff] }
 0x706   : > { %v7418_v48 = vpop.permute.xlu1 %3816 }
 0x707   : > { %8471 = vst [vmem:[#allocation64_spill] sm:$0xff] %v7418_v48  ;;  %3854 = vrot.lane.b32.xlu0 %v6892_v3, %s5575_s28  ;;  %v2111_v3 = vld [vmem:[%s6640_s13 + $0xc8] sm:$0xff]  ;;  %8475 = vst [vmem:[#allocation68_spill] sm:$0xff] %v7444_v60 }
 0x70a   : > { %v7423_v33 = vpop.permute.xlu1 %3820 }
 0x70b   : > { %8472 = vst [vmem:[#allocation65_spill] sm:$0xff] %v7423_v33  ;;  %3858 = vrot.lane.b32.xlu0 %v6914_v21, %s5575_s28  ;;  %v2335_v33 = vld [vmem:[%s6646_s16 + $0xc8] sm:$0xff] }
 0x70d   : > { %v2197_v5 = vpop.permute.xlu0 %2196 }
 0x70e   : > { %v2269_v44 = vmul.f32 %v2197_v5, %v2109_v2  ;;  %v2365_v47 = vmul.f32 %v2333_v35, %v2197_v5  ;;  %v7431_v46 = vpop.permute.xlu1 %3824  ;;  %v2272_v5 = vmul.f32 %v7224_v0, %v2112_v38  ;;  %v2114_v2 = vld [vmem:[%s6640_s13 + $0xe0] sm:$0xff]  ;;  %v2113_v38 = vld [vmem:[%s6640_s13 + $0xd8] sm:$0xff] }
 0x70f   : > { %8473 = vst [vmem:[#allocation66_spill] sm:$0xff] %v7431_v46  ;;  %3862 = vrot.lane.b32.xlu0 %v6943_v18, %s5575_s28 }
 0x710   : > { %v7438_v21 = vadd.f32 %v2269_v44, %v7192_v34  ;;  %v7441_v48 = vadd.f32 %v2365_v47, %v7192_v34 }
 0x711   : > { %v2201_v55 = vpop.permute.xlu0 %2200 }
 0x712   : > { %8474 = vst [vmem:[#allocation67_spill] sm:$0xff] %v7438_v21  ;;  %v2271_v35 = vmul.f32 %v2201_v55, %v2111_v3  ;;  %v2367_v18 = vmul.f32 %v2335_v33, %v2201_v55  ;;  %v7448_v46 = vpop.permute.xlu1 %3828  ;;  %5083 = vmatmul.mubr.msk.f32.gmra.mrb[102].mxu1 %vm1509_vm1, %v7438_v21  ;;  %5135 = vmatmul.mubr.msk.f32.gmra.mrb[102].mxu0 %vm1509_vm1, %v7441_v48 }
 0x713   : > { %3550 = vrot.lane.b32.xlu0 %v6928_v25, %s5576_s20  ;;  %5085 = vmatprep.mubr.msk.f32.mxu1 %vm1509_vm1, %v7444_v60  ;;  %v7469_v33 = vadd.f32 %v2272_v5, %v6838_v52  ;;  %v2274_v25 = vmul.f32 %v7235_v17, %v2114_v2  ;;  %v2115_v52 = vld [vmem:[%s6640_s13 + $0xe8] sm:$0xff]  ;;  %v2276_v2 = vmul.f32 %v7262_v45, %v2116_v53 }
 0x714   : > { %v7461_v34 = vadd.f32 %v2271_v35, %v7212_v58  ;;  %v7464_v0 = vadd.f32 %v2367_v18, %v7212_v58  ;;  %5137 = vmatprep.mubr.msk.f32.mxu0 %vm1509_vm1, %v7344_v26  ;;  %v2339_v58 = vld [vmem:[%s6646_s16 + $0xe8] sm:$0xff] }
 0x715   : > { %8477 = vst [vmem:[#allocation70_spill] sm:$0xff] %v7469_v33  ;;  %v2205_v47 = vpop.permute.xlu0 %2204  ;;  %v7492_v5 = vadd.f32 %v2274_v25, %v6844_v41  ;;  %v7511_v45 = vadd.f32 %v2276_v2, %v6849_v15 }
 0x716   : > { %8476 = vst [vmem:[#allocation69_spill] sm:$0xff] %v7461_v34  ;;  %v2273_v44 = vmul.f32 %v2205_v47, %v2113_v38  ;;  %v2369_v3 = vmul.f32 %v2337_v14, %v2205_v47  ;;  %v7473_v55 = vpop.permute.xlu1 %3832  ;;  %5086 = vmatmul.mubr.msk.f32.gmra.mrb[104].mxu1 %vm1509_vm1, %v7461_v34  ;;  %5138 = vmatmul.mubr.msk.f32.gmra.mrb[104].mxu0 %vm1509_vm1, %v7464_v0 }
 0x717   : > { %8478 = vst [vmem:[#allocation71_spill] sm:$0xff] %v7473_v55  ;;  %3554 = vrot.lane.b32.xlu0 %v6968_v32, %s5576_s20  ;;  %5088 = vmatprep.mubr.msk.f32.mxu1 %vm1509_vm1, %v7469_v33  ;;  %8481 = vst [vmem:[#allocation74_spill] sm:$0xff] %v7511_v45 }
 0x718   : > { %v7486_v17 = vadd.f32 %v2273_v44, %v7222_v6  ;;  %v2401_v26 = vadd.f32 %v2369_v3, %v7222_v6  ;;  %5140 = vmatprep.mubr.msk.f32.mxu0 %vm1509_vm1, %v7363_v59 }
 0x719   : > { %v2209_v35 = vpop.permute.xlu0 %2208 }
 0x71a   : > { %8479 = vst [vmem:[#allocation72_spill] sm:$0xff] %v7486_v17  ;;  %v2275_v32 = vmul.f32 %v2209_v35, %v2115_v52  ;;  %v2371_v18 = vmul.f32 %v2339_v58, %v2209_v35  ;;  %v7495_v38 = vpop.permute.xlu1 %3836  ;;  %5089 = vmatmul.mubr.msk.f32.gmra.mrb[106].mxu1 %vm1509_vm1, %v7486_v17  ;;  %5141 = vmatmul.mubr.msk.f32.gmra.mrb[106].mxu0 %vm1509_vm1, %v2401_v26 }
 0x71b   : > { %8480 = vst [vmem:[#allocation73_spill] sm:$0xff] %v7495_v38  ;;  %3558 = vrot.lane.b32.xlu0 %v6994_v13, %s5576_s20  ;;  %5091 = vmatprep.mubr.msk.f32.mxu1 %vm1509_vm1, %v7492_v5  ;;  %v2117_v13 = vld [vmem:[%s6640_s13 + $0xf8] sm:$0xff] }
 0x71c   : > { %v7505_v41 = vadd.f32 %v2275_v32, %v7231_v23  ;;  %v2403_v6 = vadd.f32 %v2371_v18, %v7231_v23  ;;  %5143 = vmatprep.mubr.msk.f32.mxu0 %vm1509_vm1, %v7382_v4  ;;  %v2341_v23 = vld [vmem:[%s6646_s16 + $0xf8] sm:$0xff] }
 0x71d   : > { %v7513_v59 = vpop.permute.xlu0 %3546 }
 0x71e   : > { %v7515_v14 = vpop.permute.xlu1 %3840  ;;  %5092 = vmatmul.mubr.msk.f32.gmra.mrb[108].mxu1 %vm1509_vm1, %v7505_v41  ;;  %5144 = vmatmul.mubr.msk.f32.gmra.mrb[108].mxu0 %vm1509_vm1, %v2403_v6 }
 0x71f   : > { %8482 = vst [vmem:[#allocation75_spill] sm:$0xff] %v7515_v14  ;;  %3562 = vrot.lane.b32.xlu0 %v7028_v49, %s5576_s20  ;;  %5094 = vmatprep.mubr.msk.f32.mxu1 %vm1509_vm1, %v7511_v45 }
 0x720   : > { %5146 = vmatprep.mubr.msk.f32.mxu0 %vm1509_vm1, %v7392_v43 }
 0x721   : > { %v2213_v15 = vpop.permute.xlu0 %2212 }
 0x722   : > { %v2277_v4 = vmul.f32 %v2213_v15, %v2117_v13  ;;  %v2373_v25 = vmul.f32 %v2341_v23, %v2213_v15  ;;  %v7528_v47 = vpop.permute.xlu1 %3844 }
 0x723   : > { %8483 = vst [vmem:[#allocation76_spill] sm:$0xff] %v7528_v47  ;;  %3566 = vrot.lane.b32.xlu0 %v7069_v54, %s5576_s20  ;;  %v7627_v47 = vld [vmem:[%s8251_s8] ss:$0 sm:$0xff] }
 0x724   : > { %v7533_v53 = vadd.f32 %v2277_v4, %v7244_v19  ;;  %v2405_v49 = vadd.f32 %v2373_v25, %v7244_v19 }
 0x725   : > { %v7536_v44 = vpop.permute.xlu0 %3706 }
 0x726   : > { %8484 = vst [vmem:[#allocation77_spill] sm:$0xff] %v7536_v44  ;;  %v7538_v3 = vpop.permute.xlu1 %3848  ;;  %5095 = vmatmul.mubr.msk.f32.gmra.mrb[110].mxu1 %vm1509_vm1, %v7533_v53  ;;  %5147 = vmatmul.mubr.msk.f32.gmra.mrb[110].mxu0 %vm1509_vm1, %v2405_v49 }
 0x727   : > { %8485 = vst [vmem:[#allocation78_spill] sm:$0xff] %v7538_v3  ;;  %3570 = vrot.lane.b32.xlu0 %v7098_v29, %s5576_s20 }
 0x729   : > { %v7545_v43 = vpop.permute.xlu0 %3710 }
 0x72a   : > { %8486 = vst [vmem:[#allocation79_spill] sm:$0xff] %v7545_v43  ;;  %v7547_v54 = vpop.permute.xlu1 %3852 }
 0x72b   : > { %8487 = vst [vmem:[#allocation80_spill] sm:$0xff] %v7547_v54  ;;  %3574 = vrot.lane.b32.xlu0 %v7137_v62, %s5576_s20 }
 0x72d   : > { %v7551_v19 = vpop.permute.xlu0 %3714 }
 0x72e   : > { %8488 = vst [vmem:[#allocation81_spill] sm:$0xff] %v7551_v19  ;;  %v3857_v52 = vpop.permute.xlu1 %3856 }
 0x72f   : > { %3578 = vrot.lane.b32.xlu0 %v7168_v31, %s5576_s20 }
 0x731   : > { %v7555_v58 = vpop.permute.xlu0 %3718 }
 0x732   : > { %8489 = vst [vmem:[#allocation82_spill] sm:$0xff] %v7555_v58  ;;  %v7557_v2 = vpop.permute.xlu1 %3860 }
 0x733   : > { %8490 = vst [vmem:[#allocation83_spill] sm:$0xff] %v7557_v2  ;;  %3582 = vrot.lane.b32.xlu0 %v7185_v51, %s5576_s20 }
 0x735   : > { %v7561_v29 = vpop.permute.xlu0 %3722 }
 0x736   : > { %8491 = vst [vmem:[#allocation84_spill] sm:$0xff] %v7561_v29  ;;  %v7563_v35 = vpop.permute.xlu1 %3548 }
 0x737   : > { %3586 = vrot.lane.b32.xlu0 %v7302_v27, %s5576_s20 }
 0x739   : > { %v7567_v62 = vpop.permute.xlu0 %3726 }
 0x73a   : > { %8492 = vst [vmem:[#allocation85_spill] sm:$0xff] %v7567_v62  ;;  %v7569_v32 = vpop.permute.xlu1 %3552 }
 0x73b   : > { %3590 = vrot.lane.b32.xlu0 %v7441_v48, %s5576_s20 }
 0x73d   : > { %v7573_v31 = vpop.permute.xlu0 %3730 }
 0x73e   : > { %v7575_v18 = vpop.permute.xlu1 %3556 }
 0x73f   : > { %3594 = vrot.lane.b32.xlu0 %v7464_v0, %s5576_s20 }
 0x741   : > { %v7579_v51 = vpop.permute.xlu0 %3734 }
 0x742   : > { %v7581_v13 = vpop.permute.xlu1 %3560 }
 0x743   : > { %3598 = vrot.lane.b32.xlu0 %v2401_v26, %s5576_s20 }
 0x745   : > { %v7584_v27 = vpop.permute.xlu0 %3802 }
 0x746   : > { %v7586_v23 = vpop.permute.xlu1 %3564 }
 0x747   : > { %3602 = vrot.lane.b32.xlu0 %v2403_v6, %s5576_s20 }
 0x749   : > { %v7589_v48 = vpop.permute.xlu0 %3806 }
 0x74a   : > { %v7591_v15 = vpop.permute.xlu1 %3568 }
 0x74b   : > { %3606 = vrot.lane.b32.xlu0 %v2405_v49, %s5576_s20 }
 0x74d   : > { %v7594_v4 = vpop.permute.xlu0 %3810 }
 0x74e   : > { %v7596_v0 = vpop.permute.xlu1 %3572 }
 0x751   : > { %v7598_v25 = vpop.permute.xlu0 %3814 }
 0x752   : > { %v7600_v2 = vpop.permute.xlu1 %3576 }
 0x755   : > { %v7602_v26 = vpop.permute.xlu0 %3818 }
 0x756   : > { %v7604_v45 = vpop.permute.xlu1 %3580 }
 0x757   : > { %8493 = vst [vmem:[#allocation86_spill] sm:$0xff] %v7604_v45 }
 0x759   : > { %v7606_v54 = vpop.permute.xlu0 %3822 }
 0x75a   : > { %v7608_v6 = vpop.permute.xlu1 %3584 }
 0x75b   : > { %8494 = vst [vmem:[#allocation87_spill] sm:$0xff] %v7608_v6 }
 0x75d   : > { %v7610_v62 = vpop.permute.xlu0 %3826 }
 0x75e   : > { %v7612_v33 = vpop.permute.xlu1 %3588 }
 0x75f   : > { %8495 = vst [vmem:[#allocation88_spill] sm:$0xff] %v7612_v33 }
 0x761   : > { %v7614_v49 = vpop.permute.xlu0 %3830 }
 0x762   : > { %v7616_v17 = vpop.permute.xlu1 %3592 }
 0x763   : > { %8496 = vst [vmem:[#allocation89_spill] sm:$0xff] %v7616_v17 }
 0x765   : > { %v7618_v3 = vpop.permute.xlu0 %3834 }
 0x766   : > { %8497 = vst [vmem:[#allocation90_spill] sm:$0xff] %v7618_v3  ;;  %v7620_v29 = vpop.permute.xlu1 %3596 }
 0x767   : > { %8498 = vst [vmem:[#allocation91_spill] sm:$0xff] %v7620_v29 }
 0x769   : > { %v7622_v60 = vpop.permute.xlu0 %3838 }
 0x76a   : > { %8499 = vst [vmem:[#allocation92_spill] sm:$0xff] %v7622_v60  ;;  %v5051_v34 = vpop.f32.mrb[80].mxu1  ;;  %v5103_v58 = vpop.f32.mrb[80].mxu0 }
 0x76b   : > { %v2935_v21 = vadd.f32 %v5051_v34, %v7233_v20  ;;  %v3327_v33 = vadd.f32 %v5103_v58, %v7233_v20  ;;  %v3601_v14 = vpop.permute.xlu1 %3600  ;;  %v2929_v19 = vpop.f32.mrb[81].mxu1 }
 0x76c   : > { %v4180_v17 = vsel %vm1509_vm1, %v7492_v5, %v3601_v14  ;;  %v2930_v29 = vadd.f32 %v2929_v19, %v7241_v22  ;;  %v3321_v6 = vpop.f32.mrb[81].mxu0 }
 0x76d   : > { %v3096_v38 = vadd.f32 %v7627_v47, %v2935_v21  ;;  %v4212_v60 = vsel %vm437_vm0, %v4180_v17, %v7389_v12  ;;  %v3322_v43 = vadd.f32 %v3321_v6, %v7241_v22  ;;  %v7638_v45 = vpop.permute.xlu0 %3842  ;;  %v3481_v5 = vadd.f32 %v7627_v47, %v3327_v33 }
 0x76e   : > { %8500 = vst [vmem:[#allocation93_spill] sm:$0xff] %v7638_v45  ;;  %v3095_v20 = vadd.f32 %v7627_v47, %v2930_v29  ;;  %v7642_v34 = vsel %vm4216_vm4, %v4212_v60, %v3857_v52 }
 0x76f   : > { %8501 = vst [vmem:[#allocation94_spill] sm:$0xff] %v7642_v34  ;;  %v3128_v58 = vmax.f32 %v3096_v38, 0.0  ;;  %v5054_v14 = vpop.f32.mrb[82].mxu1  ;;  %v3480_v55 = vadd.f32 %v7627_v47, %v3322_v43  ;;  %v3513_v38 = vmax.f32 %v3481_v5, 0.0 }
 0x770   : > { %v3127_v19 = vmax.f32 %v3095_v20, 0.0  ;;  %v2945_v21 = vadd.f32 %v5054_v14, %v7246_v16  ;;  %v5106_v3 = vpop.f32.mrb[82].mxu0  ;;  %v2939_v12 = vpop.f32.mrb[83].mxu1 }
 0x771   : > { %v3337_v22 = vadd.f32 %v5106_v3, %v7246_v16  ;;  %v2940_v17 = vadd.f32 %v2939_v12, %v7252_v36  ;;  %v3331_v6 = vpop.f32.mrb[83].mxu0  ;;  %3930 = vrot.lane.b32.xlu0 %v3128_v58, %s5577_s21  ;;  %v7650_v60 = vpop.permute.xlu0 %3846  ;;  %v3512_v29 = vmax.f32 %v3480_v55, 0.0 }
 0x772   : > { %8502 = vst [vmem:[#allocation95_spill] sm:$0xff] %v7650_v60  ;;  %v3332_v33 = vadd.f32 %v3331_v6, %v7252_v36  ;;  %3928 = vrot.lane.b32.xlu1 %v3127_v19, %s5577_s21  ;;  %v3098_v43 = vadd.f32 %v7627_v47, %v2945_v21 }
 0x773   : > { %v5057_v52 = vpop.f32.mrb[84].mxu1  ;;  %v3097_v20 = vadd.f32 %v7627_v47, %v2940_v17  ;;  %v3483_v19 = vadd.f32 %v7627_v47, %v3337_v22 }
 0x774   : > { %v2955_v16 = vadd.f32 %v5057_v52, %v7256_v37  ;;  %v5109_v3 = vpop.f32.mrb[84].mxu0  ;;  %v2949_v14 = vpop.f32.mrb[85].mxu1  ;;  %v3130_v55 = vmax.f32 %v3098_v43, 0.0  ;;  %v3482_v6 = vadd.f32 %v7627_v47, %v3332_v33 }
 0x775   : > { %v3347_v12 = vadd.f32 %v5109_v3, %v7256_v37  ;;  %v2950_v58 = vadd.f32 %v2949_v14, %v7258_v9  ;;  %v3341_v34 = vpop.f32.mrb[85].mxu0  ;;  %4058 = vrot.lane.b32.xlu0 %v3513_v38, %s5578_s22  ;;  %v7660_v36 = vpop.permute.xlu0 %3850  ;;  %v3129_v17 = vmax.f32 %v3097_v20, 0.0  ;;  %v3515_v22 = vmax.f32 %v3483_v19, 0.0 }
 0x776   : > { %8503 = vst [vmem:[#allocation96_spill] sm:$0xff] %v7660_v36  ;;  %v3342_v5 = vadd.f32 %v3341_v34, %v7258_v9  ;;  %4056 = vrot.lane.b32.xlu1 %v3512_v29, %s5578_s22  ;;  %v3100_v33 = vadd.f32 %v7627_v47, %v2955_v16  ;;  %v3514_v29 = vmax.f32 %v3482_v6, 0.0 }
 0x777   : > { %v5060_v21 = vpop.f32.mrb[86].mxu1  ;;  %v3099_v20 = vadd.f32 %v7627_v47, %v2950_v58  ;;  %v3485_v58 = vadd.f32 %v7627_v47, %v3347_v12 }
 0x778   : > { %v2965_v37 = vadd.f32 %v5060_v21, %v7260_v40  ;;  %v5112_v52 = vpop.f32.mrb[86].mxu0  ;;  %v2959_v3 = vpop.f32.mrb[87].mxu1  ;;  %v3132_v16 = vmax.f32 %v3100_v33, 0.0 }
 0x779   : > { %v3357_v14 = vadd.f32 %v5112_v52, %v7260_v40  ;;  %v2960_v38 = vadd.f32 %v2959_v3, %v7266_v1  ;;  %v3351_v36 = vpop.f32.mrb[87].mxu0  ;;  %3934 = vrot.lane.b32.xlu0 %v3130_v55, %s5577_s21  ;;  %v7670_v9 = vpop.permute.xlu0 %3854  ;;  %v3131_v19 = vmax.f32 %v3099_v20, 0.0 }
 0x77a   : > { %8504 = vst [vmem:[#allocation97_spill] sm:$0xff] %v7670_v9  ;;  %v3352_v34 = vadd.f32 %v3351_v36, %v7266_v1  ;;  %3932 = vrot.lane.b32.xlu1 %v3129_v17, %s5577_s21  ;;  %v3484_v17 = vadd.f32 %v7627_v47, %v3342_v5 }
 0x77b   : > { %v5063_v43 = vpop.f32.mrb[88].mxu1  ;;  %v3101_v12 = vadd.f32 %v7627_v47, %v2960_v38 }
 0x77c   : > { %v2975_v40 = vadd.f32 %v5063_v43, %v7270_v11  ;;  %v5115_v21 = vpop.f32.mrb[88].mxu0  ;;  %v2969_v52 = vpop.f32.mrb[89].mxu1  ;;  %v3102_v43 = vadd.f32 %v7627_v47, %v2965_v37  ;;  %v3516_v33 = vmax.f32 %v3484_v17, 0.0 }
 0x77d   : > { %v3367_v3 = vadd.f32 %v5115_v21, %v7270_v11  ;;  %v2970_v55 = vadd.f32 %v2969_v52, %v7272_v24  ;;  %v3361_v9 = vpop.f32.mrb[89].mxu0  ;;  %4062 = vrot.lane.b32.xlu0 %v3515_v22, %s5578_s22  ;;  %v7680_v1 = vpop.permute.xlu0 %3858  ;;  %v3517_v22 = vmax.f32 %v3485_v58, 0.0 }
 0x77e   : > { %v3362_v36 = vadd.f32 %v3361_v9, %v7272_v24  ;;  %4060 = vrot.lane.b32.xlu1 %v3514_v29, %s5578_s22  ;;  %v3134_v58 = vmax.f32 %v3102_v43, 0.0 }
 0x781   : > { %3938 = vrot.lane.b32.xlu0 %v3132_v16, %s5577_s21  ;;  %v7687_v11 = vpop.permute.xlu0 %3862 }
 0x782   : > { %v5066_v6 = vpop.f32.mrb[90].mxu1  ;;  %3936 = vrot.lane.b32.xlu1 %v3131_v19, %s5577_s21  ;;  %v3487_v19 = vadd.f32 %v7627_v47, %v3357_v14 }
 0x783   : > { %v2985_v24 = vadd.f32 %v5066_v6, %v7274_v7  ;;  %v5118_v9 = vpop.f32.mrb[90].mxu0  ;;  %v2979_v29 = vpop.f32.mrb[91].mxu1  ;;  %v3133_v6 = vmax.f32 %v3101_v12, 0.0 }
 0x784   : > { %v7694_v20 = vadd.f32 %v5118_v9, %v7274_v7  ;;  %v2980_v5 = vadd.f32 %v2979_v29, %v7281_v8  ;;  %v3371_v21 = vpop.f32.mrb[91].mxu0  ;;  %v3486_v9 = vadd.f32 %v7627_v47, %v3352_v34  ;;  %v3519_v43 = vmax.f32 %v3487_v19, 0.0 }
 0x785   : > { %v7698_v52 = vadd.f32 %v3371_v21, %v7281_v8  ;;  %4066 = vrot.lane.b32.xlu0 %v3517_v22, %s5578_s22  ;;  %v7701_v16 = vpop.permute.xlu0 %3550  ;;  %v3489_v19 = vadd.f32 %v7627_v47, %v3367_v3 }
 0x786   : > { %v5069_v37 = vpop.f32.mrb[92].mxu1  ;;  %4064 = vrot.lane.b32.xlu1 %v3516_v33, %s5578_s22  ;;  %v3104_v33 = vadd.f32 %v7627_v47, %v2975_v40  ;;  %v3518_v34 = vmax.f32 %v3486_v9, 0.0 }
 0x787   : > { %v7706_v38 = vadd.f32 %v5069_v37, %v7285_v56  ;;  %v5121_v7 = vpop.f32.mrb[92].mxu0  ;;  %v2989_v17 = vpop.f32.mrb[93].mxu1 }
 0x788   : > { %v7710_v8 = vadd.f32 %v5121_v7, %v7285_v56  ;;  %v2990_v22 = vadd.f32 %v2989_v17, %v7287_v10  ;;  %v3381_v29 = vpop.f32.mrb[93].mxu0  ;;  %v3103_v56 = vadd.f32 %v7627_v47, %v2970_v55  ;;  %v3136_v55 = vmax.f32 %v3104_v33, 0.0 }
 0x789   : > { %v7714_v21 = vadd.f32 %v3381_v29, %v7287_v10  ;;  %3942 = vrot.lane.b32.xlu0 %v3134_v58, %s5577_s21  ;;  %v7717_v14 = vpop.permute.xlu0 %3554  ;;  %v3521_v33 = vmax.f32 %v3489_v19, 0.0 }
 0x78a   : > { %3940 = vrot.lane.b32.xlu1 %v3133_v6, %s5577_s21 }
 0x78b   : > { %v5072_v12 = vpop.f32.mrb[94].mxu1 }
 0x78c   : > { %v3005_v37 = vadd.f32 %v5072_v12, %v7289_v61  ;;  %v5124_v7 = vpop.f32.mrb[94].mxu0  ;;  %v2999_v17 = vpop.f32.mrb[95].mxu1  ;;  %v3135_v12 = vmax.f32 %v3103_v56, 0.0 }
 0x78d   : > { %v7724_v10 = vadd.f32 %v5124_v7, %v7289_v61  ;;  %v3000_v58 = vadd.f32 %v2999_v17, %v7296_v57  ;;  %v3391_v29 = vpop.f32.mrb[95].mxu0  ;;  %4070 = vrot.lane.b32.xlu0 %v3519_v43, %s5578_s22  ;;  %v7728_v6 = vpop.permute.xlu0 %3558  ;;  %v3488_v61 = vadd.f32 %v7627_v47, %v3362_v36  ;;  %v3106_v36 = vadd.f32 %v7627_v47, %v2985_v24 }
 0x78e   : > { %v7731_v40 = vadd.f32 %v3391_v29, %v7296_v57  ;;  %4068 = vrot.lane.b32.xlu1 %v3518_v34, %s5578_s22 }
 0x78f   : > { %v5075_v9 = vpop.f32.mrb[96].mxu1  ;;  %v3520_v29 = vmax.f32 %v3488_v61, 0.0 }
 0x790   : > { %v3015_v7 = vadd.f32 %v5075_v9, %v7306_v28  ;;  %v5127_v17 = vpop.f32.mrb[96].mxu0  ;;  %v3009_v60 = vpop.f32.mrb[97].mxu1  ;;  %v3105_v9 = vadd.f32 %v7627_v47, %v2980_v5  ;;  %v3138_v5 = vmax.f32 %v3106_v36, 0.0  ;;  %v3107_v36 = vadd.f32 %v7627_v47, %v2990_v22 }
 0x791   : > { %v7738_v43 = vadd.f32 %v5127_v17, %v7306_v28  ;;  %v3010_v45 = vadd.f32 %v3009_v60, %v7309_v42  ;;  %v3401_v57 = vpop.f32.mrb[97].mxu0  ;;  %3946 = vrot.lane.b32.xlu0 %v3136_v55, %s5577_s21  ;;  %v7742_v34 = vpop.permute.xlu0 %3562 }
 0x792   : > { %v3402_v3 = vadd.f32 %v3401_v57, %v7309_v42  ;;  %3944 = vrot.lane.b32.xlu1 %v3135_v12, %s5577_s21  ;;  %v3491_v12 = vadd.f32 %v7627_v47, %v7694_v20  ;;  %v3137_v61 = vmax.f32 %v3105_v9, 0.0  ;;  %v3139_v9 = vmax.f32 %v3107_v36, 0.0 }
 0x793   : > { %v5078_v56 = vpop.f32.mrb[98].mxu1 }
 0x794   : > { %v7749_v28 = vadd.f32 %v5078_v56, %v7315_v39  ;;  %v5130_v60 = vpop.f32.mrb[98].mxu0  ;;  %v3019_v17 = vpop.f32.mrb[99].mxu1 }
 0x795   : > { %v7752_v55 = vadd.f32 %v5130_v60, %v7315_v39  ;;  %v7755_v44 = vadd.f32 %v3019_v17, %v7319_v30  ;;  %v3411_v42 = vpop.f32.mrb[99].mxu0  ;;  %4074 = vrot.lane.b32.xlu0 %v3521_v33, %s5578_s22  ;;  %v7758_v19 = vpop.permute.xlu0 %3566  ;;  %v3490_v39 = vadd.f32 %v7627_v47, %v7698_v52  ;;  %v3523_v33 = vmax.f32 %v3491_v12, 0.0 }
 0x796   : > { %v7761_v24 = vadd.f32 %v3411_v42, %v7319_v30  ;;  %4072 = vrot.lane.b32.xlu1 %v3520_v29, %s5578_s22  ;;  %v3108_v30 = vadd.f32 %v7627_v47, %v7706_v38  ;;  %v3493_v29 = vadd.f32 %v7627_v47, %v7710_v8  ;;  %v3492_v60 = vadd.f32 %v7627_v47, %v7714_v21 }
 0x797   : > { %v3522_v56 = vmax.f32 %v3490_v39, 0.0  ;;  %v3110_v17 = vadd.f32 %v7627_v47, %v3005_v37  ;;  %v3495_v21 = vadd.f32 %v7627_v47, %v7724_v10  ;;  %v3494_v39 = vadd.f32 %v7627_v47, %v7731_v40 }
 0x798   : > { %v3140_v52 = vmax.f32 %v3108_v30, 0.0  ;;  %v3525_v22 = vmax.f32 %v3493_v29, 0.0  ;;  %v3524_v42 = vmax.f32 %v3492_v60, 0.0  ;;  %v3497_v40 = vadd.f32 %v7627_v47, %v7738_v43 }
 0x799   : > { %3950 = vrot.lane.b32.xlu0 %v3138_v5, %s5577_s21  ;;  %v7769_v57 = vpop.permute.xlu0 %3570  ;;  %v3109_v5 = vadd.f32 %v7627_v47, %v3000_v58  ;;  %v3142_v8 = vmax.f32 %v3110_v17, 0.0  ;;  %v3527_v58 = vmax.f32 %v3495_v21, 0.0  ;;  %v3526_v30 = vmax.f32 %v3494_v39, 0.0 }
 0x79a   : > { %3948 = vrot.lane.b32.xlu1 %v3137_v61, %s5577_s21  ;;  %v3496_v29 = vadd.f32 %v7627_v47, %v3402_v3  ;;  %v3529_v43 = vmax.f32 %v3497_v40, 0.0  ;;  %v3114_v3 = vadd.f32 %v7627_v47, %v7749_v28  ;;  %v3498_v40 = vadd.f32 %v7627_v47, %v7761_v24 }
 0x79b   : > { %v3141_v61 = vmax.f32 %v3109_v5, 0.0  ;;  %v8506_v5 = vld [vmem:[#allocation32_spill] sm:$0xff] }
 0x79c   : > { %v3528_v39 = vmax.f32 %v3496_v29, 0.0 }
 0x79d   : > { %4078 = vrot.lane.b32.xlu0 %v3523_v33, %s5578_s22  ;;  %v7776_v20 = vpop.permute.xlu0 %3574  ;;  %v3112_v33 = vadd.f32 %v7627_v47, %v3015_v7 }
 0x79e   : > { %4076 = vrot.lane.b32.xlu1 %v3522_v56, %s5578_s22  ;;  %v3111_v56 = vadd.f32 %v7627_v47, %v3010_v45 }
 0x79f   : > { %v3144_v10 = vmax.f32 %v3112_v33, 0.0 }
 0x7a1   : > { %3954 = vrot.lane.b32.xlu0 %v3140_v52, %s5577_s21  ;;  %v7784_v38 = vpop.permute.xlu0 %3578  ;;  %v3143_v52 = vmax.f32 %v3111_v56, 0.0  ;;  %v3499_v56 = vadd.f32 %v7627_v47, %v7752_v55 }
 0x7a2   : > { %3952 = vrot.lane.b32.xlu1 %v3139_v9, %s5577_s21 }
 0x7a5   : > { %4082 = vrot.lane.b32.xlu0 %v3525_v22, %s5578_s22  ;;  %v7790_v12 = vpop.permute.xlu0 %3582  ;;  %v8505_v22 = vld [vmem:[#allocation31_spill] sm:$0xff] }
 0x7a6   : > { %4080 = vrot.lane.b32.xlu1 %v3524_v42, %s5578_s22 }
 0x7a9   : > { %3958 = vrot.lane.b32.xlu0 %v3142_v8, %s5577_s21  ;;  %v7798_v37 = vpop.permute.xlu0 %3586 }
 0x7aa   : > { %3956 = vrot.lane.b32.xlu1 %v3141_v61, %s5577_s21 }
 0x7ad   : > { %4086 = vrot.lane.b32.xlu0 %v3527_v58, %s5578_s22  ;;  %v7804_v36 = vpop.permute.xlu0 %3590  ;;  %v3113_v58 = vadd.f32 %v7627_v47, %v7755_v44  ;;  %v3531_v44 = vmax.f32 %v3499_v56, 0.0 }
 0x7ae   : > { %4084 = vrot.lane.b32.xlu1 %v3526_v30, %s5578_s22  ;;  %v3146_v30 = vmax.f32 %v3114_v3, 0.0  ;;  %v8509_v3 = vld [vmem:[#allocation22_spill] sm:$0xff] }
 0x7b0   : > { %v5081_v9 = vpop.f32.mrb[100].mxu1  ;;  %v5133_v60 = vpop.f32.mrb[100].mxu0 }
 0x7b1   : > { %v3035_v7 = vadd.f32 %v5081_v9, %v8505_v22  ;;  %v3427_v17 = vadd.f32 %v5133_v60, %v8505_v22  ;;  %v3029_v45 = vpop.f32.mrb[101].mxu1  ;;  %v3421_v42 = vpop.f32.mrb[101].mxu0  ;;  %3962 = vrot.lane.b32.xlu0 %v3144_v10, %s5577_s21  ;;  %v3145_v10 = vmax.f32 %v3113_v58, 0.0  ;;  %v3530_v9 = vmax.f32 %v3498_v40, 0.0 }
 0x7b2   : > { %v3030_v8 = vadd.f32 %v3029_v45, %v8506_v5  ;;  %v3422_v21 = vadd.f32 %v3421_v42, %v8506_v5  ;;  %v7815_v61 = vpop.permute.xlu0 %3594  ;;  %3960 = vrot.lane.b32.xlu1 %v3143_v52, %s5577_s21 }
 0x7b3   : > { %v3116_v52 = vadd.f32 %v7627_v47, %v3035_v7  ;;  %v3501_v7 = vadd.f32 %v7627_v47, %v3427_v17  ;;  %v8507_v17 = vld [vmem:[#allocation21_spill] sm:$0xff] }
 0x7b4   : > { %v3115_v60 = vadd.f32 %v7627_v47, %v3030_v8  ;;  %v3500_v5 = vadd.f32 %v7627_v47, %v3422_v21  ;;  %v8508_v21 = vld [vmem:[#allocation49_spill] sm:$0xff] }
 0x7b5   : > { %4090 = vrot.lane.b32.xlu0 %v3529_v43, %s5578_s22  ;;  %v3148_v45 = vmax.f32 %v3116_v52, 0.0  ;;  %v3533_v8 = vmax.f32 %v3501_v7, 0.0 }
 0x7b6   : > { %v7823_v33 = vpop.permute.xlu0 %3598  ;;  %4088 = vrot.lane.b32.xlu1 %v3528_v39, %s5578_s22  ;;  %v3147_v42 = vmax.f32 %v3115_v60, 0.0  ;;  %v3532_v43 = vmax.f32 %v3500_v5, 0.0  ;;  %v4153_v39 = vsel %vm1509_vm1, %v8509_v3, %v7513_v59 }
 0x7b9   : > { %3966 = vrot.lane.b32.xlu0 %v3146_v30, %s5577_s21  ;;  %v8510_v30 = vld [vmem:[#allocation34_spill] sm:$0xff] }
 0x7ba   : > { %v3603_v28 = vpop.permute.xlu0 %3602  ;;  %3964 = vrot.lane.b32.xlu1 %v3145_v10, %s5577_s21  ;;  %v8511_v10 = vld [vmem:[#allocation5_spill] sm:$0xff] }
 0x7bb   : > { %v4181_v29 = vsel %vm1509_vm1, %v7505_v41, %v3603_v28  ;;  %v4154_v40 = vsel %vm1509_vm1, %v8511_v10, %v7563_v35  ;;  %v8512_v28 = vld [vmem:[#allocation36_spill] sm:$0xff] }
 0x7bc   : > { %v4213_v55 = vsel %vm437_vm0, %v4181_v29, %v7573_v31 }
 0x7bd   : > { %4094 = vrot.lane.b32.xlu0 %v3531_v44, %s5578_s22  ;;  %v7841_v24 = vsel %vm4216_vm4, %v4213_v55, %v7680_v1  ;;  %v4185_v44 = vsel %vm437_vm0, %v4153_v39, %v8512_v28 }
 0x7be   : > { %v3607_v22 = vpop.permute.xlu0 %3606  ;;  %4092 = vrot.lane.b32.xlu1 %v3530_v9, %s5578_s22  ;;  %v4218_v59 = vsel %vm4216_vm4, %v4185_v44, %v7584_v27  ;;  %v8513_v9 = vld [vmem:[#allocation23_spill] sm:$0xff] }
 0x7bf   : > { %v4183_v41 = vsel %vm1509_vm1, %v7533_v53, %v3607_v22  ;;  %v7858_v53 = vpop.permute.xlu1 %3604  ;;  %v4155_v60 = vsel %vm1509_vm1, %v8513_v9, %v7701_v16  ;;  %v8518_v9 = vld [vmem:[#allocation53_spill] sm:$0xff] }
 0x7c0   : > { %v4215_v31 = vsel %vm437_vm0, %v4183_v41, %v7579_v51  ;;  %v4152_v51 = vsel %vm1509_vm1, %v8508_v21, %v8507_v17  ;;  %v8514_v41 = vld [vmem:[#allocation52_spill] sm:$0xff] }
 0x7c1   : > { %3970 = vrot.lane.b32.xlu0 %v3148_v45, %s5577_s21  ;;  %v7853_v1 = vsel %vm4216_vm4, %v4215_v31, %v7687_v11  ;;  %v4184_v56 = vsel %vm437_vm0, %v4152_v51, %v8510_v30  ;;  %v8516_v51 = vld [vmem:[#allocation38_spill] sm:$0xff] }
 0x7c2   : > { %3968 = vrot.lane.b32.xlu1 %v3147_v42, %s5577_s21  ;;  %v4217_v35 = vsel %vm4216_vm4, %v4184_v56, %v7402_v50  ;;  %v4187_v50 = vsel %vm437_vm0, %v4155_v60, %v8516_v51 }
 0x7c5   : > { %4098 = vrot.lane.b32.xlu0 %v3533_v8, %s5578_s22 }
 0x7c6   : > { %4096 = vrot.lane.b32.xlu1 %v3532_v43, %s5578_s22 }
 0x7e3   : > { %v3931_v11 = vpop.permute.xlu0 %3930 }
 0x7e4   : > { %v3929_v58 = vpop.permute.xlu1 %3928  ;;  %v4251_v27 = vsel %vm4249_vm5, %v4218_v59, %v3931_v11 }
 0x7e5   : > { %v5084_v52 = vpop.f32.mrb[102].mxu1  ;;  %v5136_v29 = vpop.f32.mrb[102].mxu0  ;;  %v4250_v8 = vsel %vm4249_vm5, %v4217_v35, %v3929_v58 }
 0x7e6   : > { %v3045_v55 = vadd.f32 %v5084_v52, %v7336_v63  ;;  %v3437_v22 = vadd.f32 %v5136_v29, %v7336_v63  ;;  %v3039_v45 = vpop.f32.mrb[103].mxu1  ;;  %v3431_v7 = vpop.f32.mrb[103].mxu0  ;;  %v8515_v63 = vld [vmem:[#allocation41_spill] sm:$0xff] }
 0x7e7   : > { %v3040_v42 = vadd.f32 %v3039_v45, %v8514_v41  ;;  %v3432_v16 = vadd.f32 %v3431_v7, %v8514_v41  ;;  %v4059_v5 = vpop.permute.xlu0 %4058  ;;  %v4186_v31 = vsel %vm437_vm0, %v4154_v40, %v8515_v63  ;;  %v8517_v40 = vld [vmem:[#allocation35_spill] sm:$0xff]  ;;  %v8519_v7 = vld [vmem:[#allocation6_spill] sm:$0xff]  ;;  %v4220_v41 = vsel %vm4216_vm4, %v4187_v50, %v7589_v48  ;;  %v8522_v50 = vld [vmem:[#allocation56_spill] sm:$0xff] }
 0x7e8   : > { %v3118_v43 = vadd.f32 %v7627_v47, %v3045_v55  ;;  %v4284_v17 = vsel %vm4282_vm6, %v4251_v27, %v4059_v5  ;;  %v4057_v21 = vpop.permute.xlu1 %4056  ;;  %v3503_v3 = vadd.f32 %v7627_v47, %v3437_v22  ;;  %v4157_v35 = vsel %vm1509_vm1, %v8519_v7, %v7717_v14  ;;  %v8525_v7 = vld [vmem:[#allocation57_spill] sm:$0xff] }
 0x7e9   : > { %v3117_v39 = vadd.f32 %v7627_v47, %v3040_v42  ;;  %4316 = vst [vmem:[%s7884_s19 + $0x8] sm:$0xff] %v4284_v17  ;;  %v4283_v11 = vsel %vm4282_vm6, %v4250_v8, %v4057_v21  ;;  %v5087_v30 = vpop.f32.mrb[104].mxu1  ;;  %v5139_v56 = vpop.f32.mrb[104].mxu0  ;;  %v3502_v58 = vadd.f32 %v7627_v47, %v3432_v16  ;;  %v8520_v42 = vld [vmem:[#allocation48_spill] sm:$0xff]  ;;  %v8521_v17 = vld [vmem:[#allocation54_spill] sm:$0xff] }
 0x7ea   : > { %v3150_v10 = vmax.f32 %v3118_v43, 0.0  ;;  %4315 = vst [vmem:[%s7884_s19] sm:$0xff] %v4283_v11  ;;  %v3055_v28 = vadd.f32 %v5087_v30, %v8517_v40  ;;  %v3447_v44 = vadd.f32 %v5139_v56, %v8517_v40  ;;  %v3049_v52 = vpop.f32.mrb[105].mxu1  ;;  %v3441_v29 = vpop.f32.mrb[105].mxu0  ;;  %v3535_v27 = vmax.f32 %v3503_v3, 0.0  ;;  %v8523_v40 = vld [vmem:[#allocation25_spill] sm:$0xff] }
 0x7eb   : > { %v3149_v59 = vmax.f32 %v3117_v39, 0.0  ;;  %v3050_v60 = vadd.f32 %v3049_v52, %v8518_v9  ;;  %v3442_v55 = vadd.f32 %v3441_v29, %v8518_v9  ;;  %v3935_v22 = vpop.permute.xlu0 %3934  ;;  %v4219_v16 = vsel %vm4216_vm4, %v4186_v31, %v8520_v42  ;;  %v8524_v52 = vld [vmem:[#allocation40_spill] sm:$0xff] }
 0x7ec   : > { %v3933_v45 = vpop.permute.xlu1 %3932  ;;  %3974 = vrot.lane.b32.xlu0 %v3150_v10, %s5577_s21  ;;  %v3534_v8 = vmax.f32 %v3502_v58, 0.0  ;;  %v3120_v43 = vadd.f32 %v7627_v47, %v3055_v28  ;;  %v4253_v48 = vsel %vm4249_vm5, %v4220_v41, %v3935_v22  ;;  %v4156_v28 = vsel %vm1509_vm1, %v8523_v40, %v7569_v32 }
 0x7ed   : > { %3972 = vrot.lane.b32.xlu1 %v3149_v59, %s5577_s21  ;;  %v5090_v5 = vpop.f32.mrb[106].mxu1  ;;  %v5142_v63 = vpop.f32.mrb[106].mxu0  ;;  %v3119_v39 = vadd.f32 %v7627_v47, %v3050_v60  ;;  %v4252_v56 = vsel %vm4249_vm5, %v4219_v16, %v3933_v45  ;;  %v4189_v29 = vsel %vm437_vm0, %v4157_v35, %v8524_v52  ;;  %v3505_v45 = vadd.f32 %v7627_v47, %v3447_v44 }
 0x7ee   : > { %v3065_v21 = vadd.f32 %v5090_v5, %v8521_v17  ;;  %v3457_v51 = vadd.f32 %v5142_v63, %v8521_v17  ;;  %v3059_v14 = vpop.f32.mrb[107].mxu1  ;;  %v3451_v3 = vpop.f32.mrb[107].mxu0  ;;  %v3152_v22 = vmax.f32 %v3120_v43, 0.0  ;;  %v3504_v35 = vadd.f32 %v7627_v47, %v3442_v55  ;;  %v8526_v5 = vld [vmem:[#allocation58_spill] sm:$0xff]  ;;  %v8527_v43 = vld [vmem:[#allocation47_spill] sm:$0xff] }
 0x7ef   : > { %v3060_v31 = vadd.f32 %v3059_v14, %v8522_v50  ;;  %v3452_v11 = vadd.f32 %v3451_v3, %v8522_v50  ;;  %v4063_v30 = vpop.permute.xlu0 %4062  ;;  %v3151_v16 = vmax.f32 %v3119_v39, 0.0  ;;  %v4188_v44 = vsel %vm437_vm0, %v4156_v28, %v8527_v43  ;;  %v8528_v3 = vld [vmem:[#allocation8_spill] sm:$0xff]  ;;  %v8533_v43 = vld [vmem:[#allocation61_spill] sm:$0xff] }
 0x7f0   : > { %v4286_v10 = vsel %vm4282_vm6, %v4253_v48, %v4063_v30  ;;  %v4061_v58 = vpop.permute.xlu1 %4060  ;;  %4102 = vrot.lane.b32.xlu0 %v3535_v27, %s5578_s22  ;;  %v4159_v39 = vsel %vm1509_vm1, %v8528_v3, %v7728_v6  ;;  %v3537_v55 = vmax.f32 %v3505_v45, 0.0  ;;  %v3122_v48 = vadd.f32 %v7627_v47, %v3065_v21  ;;  %v8530_v21 = vld [vmem:[#allocation7_spill] sm:$0xff] }
 0x7f1   : > { %4318 = vst [vmem:[%s7884_s19 + $0x18] sm:$0xff] %v4286_v10  ;;  %v4285_v59 = vsel %vm4282_vm6, %v4252_v56, %v4061_v58  ;;  %4100 = vrot.lane.b32.xlu1 %v3534_v8, %s5578_s22  ;;  %v5093_v9 = vpop.f32.mrb[108].mxu1  ;;  %v5145_v60 = vpop.f32.mrb[108].mxu0  ;;  %v4222_v50 = vsel %vm4216_vm4, %v4189_v29, %v7594_v4  ;;  %v3536_v30 = vmax.f32 %v3504_v35, 0.0  ;;  %v3121_v56 = vadd.f32 %v7627_v47, %v3060_v31  ;;  %v8529_v58 = vld [vmem:[#allocation62_spill] sm:$0xff]  ;;  %v8531_v29 = vld [vmem:[#allocation43_spill] sm:$0xff] }
 0x7f2   : > { %4317 = vst [vmem:[%s7884_s19 + $0x10] sm:$0xff] %v4285_v59  ;;  %v3075_v27 = vadd.f32 %v5093_v9, %v8525_v7  ;;  %v7939_v41 = vadd.f32 %v5145_v60, %v8525_v7  ;;  %v3069_v32 = vpop.f32.mrb[109].mxu1  ;;  %v3461_v42 = vpop.f32.mrb[109].mxu0  ;;  %v4221_v40 = vsel %vm4216_vm4, %v4188_v44, %v8529_v58  ;;  %v4158_v4 = vsel %vm1509_vm1, %v8530_v21, %v7575_v18  ;;  %v8535_v58 = vld [vmem:[#allocation63_spill] sm:$0xff] }
 0x7f3   : > { %v3070_v63 = vadd.f32 %v3069_v32, %v8526_v5  ;;  %v7944_v8 = vadd.f32 %v3461_v42, %v8526_v5  ;;  %v3939_v17 = vpop.permute.xlu0 %3938  ;;  %v4191_v31 = vsel %vm437_vm0, %v4159_v39, %v8531_v29  ;;  %v3154_v45 = vmax.f32 %v3122_v48, 0.0  ;;  %v8532_v32 = vld [vmem:[#allocation59_spill] sm:$0xff]  ;;  %v8534_v39 = vld [vmem:[#allocation50_spill] sm:$0xff] }
 0x7f4   : > { %v3937_v14 = vpop.permute.xlu1 %3936  ;;  %3978 = vrot.lane.b32.xlu0 %v3152_v22, %s5577_s21  ;;  %v4255_v10 = vsel %vm4249_vm5, %v4222_v50, %v3939_v17  ;;  %v3507_v7 = vadd.f32 %v7627_v47, %v3457_v51  ;;  %v3153_v5 = vmax.f32 %v3121_v56, 0.0  ;;  %v3506_v17 = vadd.f32 %v7627_v47, %v3452_v11 }
 0x7f5   : > { %3976 = vrot.lane.b32.xlu1 %v3151_v16, %s5577_s21  ;;  %v4254_v52 = vsel %vm4249_vm5, %v4221_v40, %v3937_v14  ;;  %v3124_v50 = vadd.f32 %v7627_v47, %v3075_v27  ;;  %v4224_v11 = vsel %vm4216_vm4, %v4191_v31, %v7598_v25  ;;  %v3123_v56 = vadd.f32 %v7627_v47, %v3070_v63  ;;  %v8537_v25 = vld [vmem:[#allocation11_spill] sm:$0xff]  ;;  %v8538_v31 = vld [vmem:[#allocation45_spill] sm:$0xff] }
 0x7f6   : > { %v3539_v51 = vmax.f32 %v3507_v7, 0.0  ;;  %v4160_v63 = vsel %vm1509_vm1, %v8537_v25, %v7581_v13  ;;  %v8539_v7 = vld [vmem:[#allocation51_spill] sm:$0xff]  ;;  %v8545_v25 = vld [vmem:[#allocation65_spill] sm:$0xff] }
 0x7f7   : > { %v4067_v28 = vpop.permute.xlu0 %4066  ;;  %v3156_v29 = vmax.f32 %v3124_v50, 0.0  ;;  %v4192_v13 = vsel %vm437_vm0, %v4160_v63, %v8539_v7  ;;  %v8546_v63 = vld [vmem:[#allocation26_spill] sm:$0xff]  ;;  %v8549_v7 = vld [vmem:[#allocation16_spill] sm:$0xff] }
 0x7f8   : > { %v4288_v6 = vsel %vm4282_vm6, %v4255_v10, %v4067_v28  ;;  %v4065_v59 = vpop.permute.xlu1 %4064  ;;  %4106 = vrot.lane.b32.xlu0 %v3537_v55, %s5578_s22  ;;  %v4190_v55 = vsel %vm437_vm0, %v4158_v4, %v8534_v39 }
 0x7f9   : > { %4320 = vst [vmem:[%s7884_s19 + $0x28] sm:$0xff] %v4288_v6  ;;  %v4287_v9 = vsel %vm4282_vm6, %v4254_v52, %v4065_v59  ;;  %4104 = vrot.lane.b32.xlu1 %v3536_v30, %s5578_s22  ;;  %v5096_v60 = vpop.f32.mrb[110].mxu1  ;;  %v5148_v22 = vpop.f32.mrb[110].mxu0  ;;  %v3538_v30 = vmax.f32 %v3506_v17, 0.0  ;;  %v4223_v40 = vsel %vm4216_vm4, %v4190_v55, %v8535_v58  ;;  %v8536_v52 = vld [vmem:[#allocation10_spill] sm:$0xff]  ;;  %v8541_v55 = vld [vmem:[#allocation12_spill] sm:$0xff] }
 0x7fa   : > { %4319 = vst [vmem:[%s7884_s19 + $0x20] sm:$0xff] %v4287_v9  ;;  %v3085_v42 = vadd.f32 %v5096_v60, %v8532_v32  ;;  %v3477_v16 = vadd.f32 %v5148_v22, %v8532_v32  ;;  %v3079_v35 = vpop.f32.mrb[111].mxu1  ;;  %v3471_v18 = vpop.f32.mrb[111].mxu0  ;;  %v4161_v6 = vsel %vm1509_vm1, %v8536_v52, %v7742_v34  ;;  %v3509_v34 = vadd.f32 %v7627_v47, %v7939_v41  ;;  %v8544_v52 = vld [vmem:[#allocation29_spill] sm:$0xff] }
 0x7fb   : > { %v3080_v44 = vadd.f32 %v3079_v35, %v8533_v43  ;;  %v3472_v14 = vadd.f32 %v3471_v18, %v8533_v43  ;;  %v3943_v3 = vpop.permute.xlu0 %3942  ;;  %v4193_v9 = vsel %vm437_vm0, %v4161_v6, %v8538_v31  ;;  %v3155_v60 = vmax.f32 %v3123_v56, 0.0  ;;  %v8540_v43 = vld [vmem:[#allocation64_spill] sm:$0xff] }
 0x7fc   : > { %v3941_v48 = vpop.permute.xlu1 %3940  ;;  %3982 = vrot.lane.b32.xlu0 %v3154_v45, %s5577_s21  ;;  %v4257_v10 = vsel %vm4249_vm5, %v4224_v11, %v3943_v3  ;;  %v3508_v22 = vadd.f32 %v7627_v47, %v7944_v8  ;;  %v3541_v35 = vmax.f32 %v3509_v34, 0.0  ;;  %v3126_v41 = vadd.f32 %v7627_v47, %v3085_v42 }
 0x7fd   : > { %3980 = vrot.lane.b32.xlu1 %v3153_v5, %s5577_s21  ;;  %v4256_v59 = vsel %vm4249_vm5, %v4223_v40, %v3941_v48  ;;  %v4226_v18 = vsel %vm4216_vm4, %v4193_v9, %v7602_v26  ;;  %v3125_v8 = vadd.f32 %v7627_v47, %v3080_v44  ;;  %v4225_v3 = vsel %vm4216_vm4, %v4192_v13, %v8540_v43  ;;  %v8542_v26 = vld [vmem:[#allocation19_spill] sm:$0xff] }
 0x7fe   : > { %v3540_v5 = vmax.f32 %v3508_v22, 0.0  ;;  %v4163_v48 = vsel %vm1509_vm1, %v8541_v55, %v7758_v19  ;;  %v4162_v44 = vsel %vm1509_vm1, %v8542_v26, %v7586_v23  ;;  %v3511_v56 = vadd.f32 %v7627_v47, %v3477_v16  ;;  %v8543_v19 = vld [vmem:[#allocation46_spill] sm:$0xff]  ;;  %v8548_v22 = vld [vmem:[#allocation4_spill] sm:$0xff]  ;;  %v8552_v55 = vld [vmem:[#allocation15_spill] sm:$0xff] }
 0x7ff   : > { %v4071_v28 = vpop.permute.xlu0 %4070  ;;  %v3157_v58 = vmax.f32 %v3125_v8, 0.0  ;;  %v3510_v40 = vadd.f32 %v7627_v47, %v3472_v14  ;;  %v4194_v6 = vsel %vm437_vm0, %v4162_v44, %v8544_v52  ;;  %v8551_v8 = vld [vmem:[#allocation14_spill] sm:$0xff]  ;;  %v8556_v52 = vld [vmem:[#allocation39_spill] sm:$0xff] }
 0x800   : > { %v4290_v27 = vsel %vm4282_vm6, %v4257_v10, %v4071_v28  ;;  %v4069_v21 = vpop.permute.xlu1 %4068  ;;  %4110 = vrot.lane.b32.xlu0 %v3539_v51, %s5578_s22  ;;  %v4195_v10 = vsel %vm437_vm0, %v4163_v48, %v8543_v19  ;;  %v4227_v47 = vsel %vm4216_vm4, %v4194_v6, %v8545_v25  ;;  %v4166_v48 = vsel %vm1509_vm1, %v8552_v55, %v7596_v0  ;;  %v8555_v19 = vld [vmem:[#allocation20_spill] sm:$0xff] }
 0x801   : > { %4322 = vst [vmem:[%s7884_s19 + $0x38] sm:$0xff] %v4290_v27  ;;  %v4289_v4 = vsel %vm4282_vm6, %v4256_v59, %v4069_v21  ;;  %4108 = vrot.lane.b32.xlu1 %v3538_v30, %s5578_s22  ;;  %v3158_v30 = vmax.f32 %v3126_v41, 0.0  ;;  %v3543_v59 = vmax.f32 %v3511_v56, 0.0  ;;  %v4228_v16 = vsel %vm4216_vm4, %v4195_v10, %v7606_v54  ;;  %v8547_v54 = vld [vmem:[#allocation9_spill] sm:$0xff]  ;;  %v8550_v41 = vld [vmem:[#allocation66_spill] sm:$0xff] }
 0x802   : > { %4321 = vst [vmem:[%s7884_s19 + $0x30] sm:$0xff] %v4289_v4  ;;  %v3542_v27 = vmax.f32 %v3510_v40, 0.0  ;;  %v4165_v4 = vsel %vm1509_vm1, %v8546_v63, %v7769_v57  ;;  %v4164_v9 = vsel %vm1509_vm1, %v8547_v54, %v7591_v15  ;;  %v4169_v10 = vsel %vm1509_vm1, %v8555_v19, %v7784_v38  ;;  %v8558_v38 = vld [vmem:[#allocation3_spill] sm:$0xff] }
 0x803   : > { %v3947_v45 = vpop.permute.xlu0 %3946  ;;  %v4197_v57 = vsel %vm437_vm0, %v4165_v4, %v8548_v22  ;;  %v4196_v13 = vsel %vm437_vm0, %v4164_v9, %v8549_v7  ;;  %v4168_v6 = vsel %vm1509_vm1, %v8556_v52, %v7600_v2  ;;  %v8560_v2 = vld [vmem:[#allocation71_spill] sm:$0xff]  ;;  %v8561_v4 = vld [vmem:[#allocation44_spill] sm:$0xff]  ;;  %v8562_v9 = vld [vmem:[#allocation86_spill] sm:$0xff] }
 0x804   : > { %v3945_v32 = vpop.permute.xlu1 %3944  ;;  %3986 = vrot.lane.b32.xlu0 %v3156_v29, %s5577_s21  ;;  %v4259_v17 = vsel %vm4249_vm5, %v4226_v18, %v3947_v45  ;;  %v4229_v18 = vsel %vm4216_vm4, %v4196_v13, %v8550_v41 }
 0x805   : > { %3984 = vrot.lane.b32.xlu1 %v3155_v60, %s5577_s21  ;;  %v4258_v51 = vsel %vm4249_vm5, %v4225_v3, %v3945_v32 }
 0x807   : > { %v4075_v39 = vpop.permute.xlu0 %4074 }
 0x808   : > { %v4292_v42 = vsel %vm4282_vm6, %v4259_v17, %v4075_v39  ;;  %v4073_v50 = vpop.permute.xlu1 %4072  ;;  %4114 = vrot.lane.b32.xlu0 %v3541_v35, %s5578_s22  ;;  %v4230_v35 = vsel %vm4216_vm4, %v4197_v57, %v7610_v62  ;;  %v4167_v17 = vsel %vm1509_vm1, %v8551_v8, %v7776_v20  ;;  %v8554_v20 = vld [vmem:[#allocation18_spill] sm:$0xff] }
 0x809   : > { %4324 = vst [vmem:[%s7884_s19 + $0x48] sm:$0xff] %v4292_v42  ;;  %v4291_v11 = vsel %vm4282_vm6, %v4258_v51, %v4073_v50  ;;  %4112 = vrot.lane.b32.xlu1 %v3540_v5, %s5578_s22  ;;  %v8553_v51 = vld [vmem:[#allocation13_spill] sm:$0xff]  ;;  %v4198_v26 = vsel %vm437_vm0, %v4166_v48, %v8554_v20 }
 0x80a   : > { %4323 = vst [vmem:[%s7884_s19 + $0x40] sm:$0xff] %v4291_v11  ;;  %v4199_v42 = vsel %vm437_vm0, %v4167_v17, %v8553_v51  ;;  %v4231_v0 = vsel %vm4216_vm4, %v4198_v26, %v7448_v46  ;;  %v8557_v46 = vld [vmem:[#allocation77_spill] sm:$0xff]  ;;  %v8570_v51 = vld [vmem:[#allocation27_spill] sm:$0xff] }
 0x80b   : > { %v3951_v28 = vpop.permute.xlu0 %3950  ;;  %v4232_v11 = vsel %vm4216_vm4, %v4199_v42, %v7614_v49  ;;  %v8571_v20 = vld [vmem:[#allocation81_spill] sm:$0xff] }
 0x80c   : > { %v3949_v23 = vpop.permute.xlu1 %3948  ;;  %3990 = vrot.lane.b32.xlu0 %v3158_v30, %s5577_s21  ;;  %v4261_v21 = vsel %vm4249_vm5, %v4228_v16, %v3951_v28  ;;  %v4200_v16 = vsel %vm437_vm0, %v4168_v6, %v8558_v38  ;;  %v8577_v38 = vld [vmem:[#allocation28_spill] sm:$0xff] }
 0x80d   : > { %3988 = vrot.lane.b32.xlu1 %v3157_v58, %s5577_s21  ;;  %v4260_v29 = vsel %vm4249_vm5, %v4227_v47, %v3949_v23  ;;  %v4201_v23 = vsel %vm437_vm0, %v4169_v10, %v8557_v46  ;;  %v8574_v10 = vld [vmem:[#allocation75_spill] sm:$0xff] }
 0x80e   : > { %v8575_v46 = vld [vmem:[#allocation67_spill] sm:$0xff] }
 0x80f   : > { %v4079_v14 = vpop.permute.xlu0 %4078 }
 0x810   : > { %v4294_v34 = vsel %vm4282_vm6, %v4261_v21, %v4079_v14  ;;  %v4077_v31 = vpop.permute.xlu1 %4076  ;;  %4118 = vrot.lane.b32.xlu0 %v3543_v59, %s5578_s22  ;;  %v8559_v21 = vld [vmem:[#allocation90_spill] sm:$0xff]  ;;  %v4233_v14 = vsel %vm4216_vm4, %v4200_v16, %v8560_v2 }
 0x811   : > { %4326 = vst [vmem:[%s7884_s19 + $0x58] sm:$0xff] %v4294_v34  ;;  %v4293_v60 = vsel %vm4282_vm6, %v4260_v29, %v4077_v31  ;;  %4116 = vrot.lane.b32.xlu1 %v3542_v27, %s5578_s22  ;;  %v4234_v25 = vsel %vm4216_vm4, %v4201_v23, %v8559_v21  ;;  %v4171_v29 = vsel %vm1509_vm1, %v8561_v4, %v7790_v12  ;;  %v8565_v12 = vld [vmem:[#allocation37_spill] sm:$0xff] }
 0x812   : > { %4325 = vst [vmem:[%s7884_s19 + $0x50] sm:$0xff] %v4293_v60  ;;  %v8563_v60 = vld [vmem:[#allocation17_spill] sm:$0xff]  ;;  %v4175_v23 = vsel %vm1509_vm1, %v8575_v46, %v7804_v36 }
 0x813   : > { %v3955_v45 = vpop.permute.xlu0 %3954  ;;  %v4170_v22 = vsel %vm1509_vm1, %v8563_v60, %v8562_v9 }
 0x814   : > { %v3953_v32 = vpop.permute.xlu1 %3952  ;;  %v4263_v15 = vsel %vm4249_vm5, %v4230_v35, %v3955_v45  ;;  %v8564_v45 = vld [vmem:[#allocation79_spill] sm:$0xff] }
 0x815   : > { %v4262_v43 = vsel %vm4249_vm5, %v4229_v18, %v3953_v32  ;;  %v4203_v7 = vsel %vm437_vm0, %v4171_v29, %v8564_v45  ;;  %v4202_v32 = vsel %vm437_vm0, %v4170_v22, %v8565_v12  ;;  %v8583_v45 = vld [vmem:[#allocation89_spill] sm:$0xff] }
 0x817   : > { %v4083_v5 = vpop.permute.xlu0 %4082 }
 0x818   : > { %v4296_v3 = vsel %vm4282_vm6, %v4263_v15, %v4083_v5  ;;  %v4081_v39 = vpop.permute.xlu1 %4080  ;;  %v8566_v15 = vld [vmem:[#allocation92_spill] sm:$0xff]  ;;  %v8567_v5 = vld [vmem:[#allocation73_spill] sm:$0xff] }
 0x819   : > { %4328 = vst [vmem:[%s7884_s19 + $0x68] sm:$0xff] %v4296_v3  ;;  %v4295_v62 = vsel %vm4282_vm6, %v4262_v43, %v4081_v39  ;;  %v4236_v41 = vsel %vm4216_vm4, %v4203_v7, %v8566_v15  ;;  %v4235_v8 = vsel %vm4216_vm4, %v4202_v32, %v8567_v5  ;;  %v8568_v43 = vld [vmem:[#allocation30_spill] sm:$0xff]  ;;  %v8584_v7 = vld [vmem:[#allocation68_spill] sm:$0xff] }
 0x81a   : > { %4327 = vst [vmem:[%s7884_s19 + $0x60] sm:$0xff] %v4295_v62  ;;  %v4173_v3 = vsel %vm1509_vm1, %v8568_v43, %v7798_v37  ;;  %v8569_v62 = vld [vmem:[#allocation87_spill] sm:$0xff]  ;;  %v8572_v37 = vld [vmem:[#allocation24_spill] sm:$0xff]  ;;  %v8588_v43 = vld [vmem:[#allocation78_spill] sm:$0xff] }
 0x81b   : > { %v3959_v50 = vpop.permute.xlu0 %3958  ;;  %v4172_v42 = vsel %vm1509_vm1, %v8570_v51, %v8569_v62  ;;  %v4205_v26 = vsel %vm437_vm0, %v4173_v3, %v8571_v20  ;;  %v8585_v32 = vld [vmem:[#allocation84_spill] sm:$0xff]  ;;  %v8591_v20 = vld [vmem:[#allocation70_spill] sm:$0xff] }
 0x81c   : > { %v3957_v44 = vpop.permute.xlu1 %3956  ;;  %v4265_v30 = vsel %vm4249_vm5, %v4232_v11, %v3959_v50  ;;  %v4204_v11 = vsel %vm437_vm0, %v4172_v42, %v8572_v37  ;;  %v8587_v5 = vld [vmem:[#allocation96_spill] sm:$0xff]  ;;  %v8592_v37 = vld [vmem:[#allocation85_spill] sm:$0xff] }
 0x81d   : > { %v4264_v58 = vsel %vm4249_vm5, %v4231_v0, %v3957_v44  ;;  %v8573_v0 = vld [vmem:[#allocation93_spill] sm:$0xff] }
 0x81f   : > { %v4087_v56 = vpop.permute.xlu0 %4086 }
 0x820   : > { %v4298_v40 = vsel %vm4282_vm6, %v4265_v30, %v4087_v56  ;;  %v4085_v28 = vpop.permute.xlu1 %4084  ;;  %v4238_v56 = vsel %vm4216_vm4, %v4205_v26, %v8573_v0 }
 0x821   : > { %4330 = vst [vmem:[%s7884_s19 + $0x78] sm:$0xff] %v4298_v40  ;;  %v4297_v49 = vsel %vm4282_vm6, %v4264_v58, %v4085_v28  ;;  %v4237_v58 = vsel %vm4216_vm4, %v4204_v11, %v8574_v10 }
 0x822   : > { %4329 = vst [vmem:[%s7884_s19 + $0x70] sm:$0xff] %v4297_v49 }
 0x823   : > { %v3963_v59 = vpop.permute.xlu0 %3962 }
 0x824   : > { %v3961_v27 = vpop.permute.xlu1 %3960  ;;  %v4267_v47 = vsel %vm4249_vm5, %v4234_v25, %v3963_v59  ;;  %v8576_v59 = vld [vmem:[#allocation88_spill] sm:$0xff] }
 0x825   : > { %v4266_v34 = vsel %vm4249_vm5, %v4233_v14, %v3961_v27  ;;  %v4174_v16 = vsel %vm1509_vm1, %v8577_v38, %v8576_v59  ;;  %v8578_v27 = vld [vmem:[#allocation82_spill] sm:$0xff] }
 0x826   : > { %v4207_v21 = vsel %vm437_vm0, %v4175_v23, %v8578_v27 }
 0x827   : > { %v4091_v63 = vpop.permute.xlu0 %4090 }
 0x828   : > { %v4300_v31 = vsel %vm4282_vm6, %v4267_v47, %v4091_v63  ;;  %v4089_v54 = vpop.permute.xlu1 %4088  ;;  %v8579_v47 = vld [vmem:[#allocation33_spill] sm:$0xff]  ;;  %v8580_v63 = vld [vmem:[#allocation95_spill] sm:$0xff] }
 0x829   : > { %4332 = vst [vmem:[%s7884_s19 + $0x88] sm:$0xff] %v4300_v31  ;;  %v4299_v57 = vsel %vm4282_vm6, %v4266_v34, %v4089_v54  ;;  %v4206_v2 = vsel %vm437_vm0, %v4174_v16, %v8579_v47  ;;  %v4240_v4 = vsel %vm4216_vm4, %v4207_v21, %v8580_v63  ;;  %v8581_v34 = vld [vmem:[#allocation76_spill] sm:$0xff]  ;;  %v8582_v54 = vld [vmem:[#allocation69_spill] sm:$0xff]  ;;  %v8596_v21 = vld [vmem:[#allocation94_spill] sm:$0xff] }
 0x82a   : > { %4331 = vst [vmem:[%s7884_s19 + $0x80] sm:$0xff] %v4299_v57  ;;  %v4239_v36 = vsel %vm4216_vm4, %v4206_v2, %v8581_v34  ;;  %v4177_v9 = vsel %vm1509_vm1, %v8582_v54, %v7815_v61  ;;  %v8586_v61 = vld [vmem:[#allocation55_spill] sm:$0xff]  ;;  %v8598_v34 = vld [vmem:[#allocation42_spill] sm:$0xff] }
 0x82b   : > { %v3967_v13 = vpop.permute.xlu0 %3966  ;;  %v8599_v54 = vld [vmem:[#allocation83_spill] sm:$0xff] }
 0x82c   : > { %v3965_v35 = vpop.permute.xlu1 %3964  ;;  %v4269_v18 = vsel %vm4249_vm5, %v4236_v41, %v3967_v13  ;;  %v4176_v13 = vsel %vm1509_vm1, %v8584_v7, %v8583_v45 }
 0x82d   : > { %v4268_v39 = vsel %vm4249_vm5, %v4235_v8, %v3965_v35  ;;  %v4209_v35 = vsel %vm437_vm0, %v4177_v9, %v8585_v32  ;;  %v4208_v41 = vsel %vm437_vm0, %v4176_v13, %v8586_v61 }
 0x82e   : > { %v4242_v8 = vsel %vm4216_vm4, %v4209_v35, %v8587_v5  ;;  %v4241_v3 = vsel %vm4216_vm4, %v4208_v41, %v8588_v43 }
 0x82f   : > { %v4095_v17 = vpop.permute.xlu0 %4094 }
 0x830   : > { %v4302_v55 = vsel %vm4282_vm6, %v4269_v18, %v4095_v17  ;;  %v4093_v48 = vpop.permute.xlu1 %4092 }
 0x831   : > { %4334 = vst [vmem:[%s7884_s19 + $0x98] sm:$0xff] %v4302_v55  ;;  %v4301_v50 = vsel %vm4282_vm6, %v4268_v39, %v4093_v48  ;;  %v8589_v55 = vld [vmem:[#allocation72_spill] sm:$0xff] }
 0x832   : > { %4333 = vst [vmem:[%s7884_s19 + $0x90] sm:$0xff] %v4301_v50  ;;  %v4179_v48 = vsel %vm1509_vm1, %v8589_v55, %v7823_v33  ;;  %v8590_v50 = vld [vmem:[#allocation91_spill] sm:$0xff]  ;;  %v8593_v33 = vld [vmem:[#allocation60_spill] sm:$0xff] }
 0x833   : > { %v3971_v44 = vpop.permute.xlu0 %3970  ;;  %v4178_v26 = vsel %vm1509_vm1, %v8591_v20, %v8590_v50  ;;  %v4211_v11 = vsel %vm437_vm0, %v4179_v48, %v8592_v37 }
 0x834   : > { %v3969_v30 = vpop.permute.xlu1 %3968  ;;  %v4271_v19 = vsel %vm4249_vm5, %v4238_v56, %v3971_v44  ;;  %v4210_v0 = vsel %vm437_vm0, %v4178_v26, %v8593_v33 }
 0x835   : > { %v4270_v28 = vsel %vm4249_vm5, %v4237_v58, %v3969_v30 }
 0x837   : > { %v4099_v40 = vpop.permute.xlu0 %4098 }
 0x838   : > { %v4304_v52 = vsel %vm4282_vm6, %v4271_v19, %v4099_v40  ;;  %v4097_v6 = vpop.permute.xlu1 %4096  ;;  %v8594_v19 = vld [vmem:[#allocation97_spill] sm:$0xff]  ;;  %v8595_v40 = vld [vmem:[#allocation80_spill] sm:$0xff] }
 0x839   : > { %4336 = vst [vmem:[%s7884_s19 + $0xa8] sm:$0xff] %v4304_v52  ;;  %v4303_v49 = vsel %vm4282_vm6, %v4270_v28, %v4097_v6  ;;  %v4244_v10 = vsel %vm4216_vm4, %v4211_v11, %v8594_v19  ;;  %v4243_v28 = vsel %vm4216_vm4, %v4210_v0, %v8595_v40 }
 0x83a   : > { %4335 = vst [vmem:[%s7884_s19 + $0xa0] sm:$0xff] %v4303_v49 }
 0x85e   : > { %v3975_v25 = vpop.permute.xlu0 %3974 }
 0x85f   : > { %v3973_v14 = vpop.permute.xlu1 %3972  ;;  %v4273_v29 = vsel %vm4249_vm5, %v4240_v4, %v3975_v25 }
 0x860   : > { %v4272_v60 = vsel %vm4249_vm5, %v4239_v36, %v3973_v14  ;;  %v8597_v14 = vld [vmem:[#allocation74_spill] sm:$0xff] }
 0x861   : > { %v4182_v63 = vsel %vm1509_vm1, %v8597_v14, %v7858_v53 }
 0x862   : > { %v4103_v31 = vpop.permute.xlu0 %4102 }
 0x863   : > { %v4306_v22 = vsel %vm4282_vm6, %v4273_v29, %v4103_v31  ;;  %v4101_v57 = vpop.permute.xlu1 %4100 }
 0x864   : > { %4338 = vst [vmem:[%s7884_s19 + $0xb8] sm:$0xff] %v4306_v22  ;;  %v4305_v12 = vsel %vm4282_vm6, %v4272_v60, %v4101_v57 }
 0x865   : > { %4337 = vst [vmem:[%s7884_s19 + $0xb0] sm:$0xff] %v4305_v12 }
 0x866   : > { %v3979_v15 = vpop.permute.xlu0 %3978 }
 0x867   : > { %v3977_v18 = vpop.permute.xlu1 %3976  ;;  %v4275_v17 = vsel %vm4249_vm5, %v4242_v8, %v3979_v15 }
 0x868   : > { %v4274_v62 = vsel %vm4249_vm5, %v4241_v3, %v3977_v18 }
 0x86a   : > { %v4107_v39 = vpop.permute.xlu0 %4106 }
 0x86b   : > { %v4308_v51 = vsel %vm4282_vm6, %v4275_v17, %v4107_v39  ;;  %v4105_v42 = vpop.permute.xlu1 %4104 }
 0x86c   : > { %4340 = vst [vmem:[%s7884_s19 + $0xc8] sm:$0xff] %v4308_v51  ;;  %v4307_v44 = vsel %vm4282_vm6, %v4274_v62, %v4105_v42 }
 0x86d   : > { %4339 = vst [vmem:[%s7884_s19 + $0xc0] sm:$0xff] %v4307_v44 }
 0x86e   : > { %v3983_v30 = vpop.permute.xlu0 %3982 }
 0x86f   : > { %v3981_v56 = vpop.permute.xlu1 %3980  ;;  %v4277_v58 = vsel %vm4249_vm5, %v4244_v10, %v3983_v30 }
 0x870   : > { %v4276_v6 = vsel %vm4249_vm5, %v4243_v28, %v3981_v56 }
 0x872   : > { %v4111_v52 = vpop.permute.xlu0 %4110 }
 0x873   : > { %v4310_v49 = vsel %vm4282_vm6, %v4277_v58, %v4111_v52  ;;  %v4109_v46 = vpop.permute.xlu1 %4108 }
 0x874   : > { %4342 = vst [vmem:[%s7884_s19 + $0xd8] sm:$0xff] %v4310_v49  ;;  %v4309_v23 = vsel %vm4282_vm6, %v4276_v6, %v4109_v46 }
 0x875   : > { %4341 = vst [vmem:[%s7884_s19 + $0xd0] sm:$0xff] %v4309_v23 }
 0x876   : > { %v3987_v59 = vpop.permute.xlu0 %3986 }
 0x877   : > { %v3985_v38 = vpop.permute.xlu1 %3984  ;;  %v4279_v16 = vsel %vm4249_vm5, %v7841_v24, %v3987_v59  ;;  %v4214_v24 = vsel %vm437_vm0, %v4182_v63, %v8598_v34 }
 0x878   : > { %v4278_v25 = vsel %vm4249_vm5, %v8596_v21, %v3985_v38  ;;  %v4247_v9 = vsel %vm4216_vm4, %v4214_v24, %v8599_v54 }
 0x87a   : > { %v4115_v27 = vpop.permute.xlu0 %4114 }
 0x87b   : > { %v4312_v47 = vsel %vm4282_vm6, %v4279_v16, %v4115_v27  ;;  %v4113_v2 = vpop.permute.xlu1 %4112 }
 0x87c   : > { %4344 = vst [vmem:[%s7884_s19 + $0xe8] sm:$0xff] %v4312_v47  ;;  %v4311_v4 = vsel %vm4282_vm6, %v4278_v25, %v4113_v2 }
 0x87d   : > { %4343 = vst [vmem:[%s7884_s19 + $0xe0] sm:$0xff] %v4311_v4 }
 0x87e   : > { %v3991_v29 = vpop.permute.xlu0 %3990 }
 0x87f   : > { %v3989_v36 = vpop.permute.xlu1 %3988  ;;  %v4281_v31 = vsel %vm4249_vm5, %v7853_v1, %v3991_v29 }
 0x880   : > { %v4280_v22 = vsel %vm4249_vm5, %v4247_v9, %v3989_v36 }
 0x882   : > { %v4119_v60 = vpop.permute.xlu0 %4118 }
 0x883   : > { %v4314_v53 = vsel %vm4282_vm6, %v4281_v31, %v4119_v60  ;;  %v4117_v57 = vpop.permute.xlu1 %4116 }
 0x884   : > { %4346 = vst [vmem:[%s7884_s19 + $0xf8] sm:$0xff] %v4314_v53  ;;  %v4313_v45 = vsel %vm4282_vm6, %v4280_v22, %v4117_v57 }
 0x885   : > { %4345 = vst [vmem:[%s7884_s19 + $0xf0] sm:$0xff] %v4313_v45 }
 0x886 PF: > { %s19_s11 = sadd.s32 1, %s5571_s11   ;;  %s8600_s30 = smov %s5567_s10 }
 0x887   : > { %p16_p5 = scmp.ge.s32.totalorder %s19_s11, 4   ;;  %s8601_s10 = smov %s8603_s12 }
 0x889   :  { %18 = sbr.rel (!%p16_p5) target bundleno = 2 (0x2), region = 104 }

</bundles_post_ra>
